<compile_context>
chip_gen: v7x
topology: tpu7x:2x2x1
jax: 0.10.0
libtpu: 0.0.40
codegen_flags: <defaults>
</compile_context>

<pallas_src>
import functools

import jax
import jax.numpy as jnp
import numpy as np
from jax.experimental import pallas as pl
from jax.experimental.pallas import tpu as pltpu

# ----------------------------- model config ---------------------------------
IMG_SIZE = 16
N_CHANNELS = 4
PATCH = 4
EMB_DIM = 32
NUM_CLASSES = 10
NUM_BLOCKS = 4
BATCH = 2

PATCHES_DIM = N_CHANNELS * PATCH * PATCH          # 64
N_PATCHES = (IMG_SIZE // PATCH) ** 2              # 16
LN_EPS = 1e-5
OUT_LANES = 128                                   # lane-dense padded logits slab


# ------------------------------- Pallas kernel -------------------------------
def mixer_kernel(*refs, token_mode):
    if token_mode == "transpose":
        (x_ref, vecs_ref, pw_ref, w11_ref, w12_ref,
         wa_ref, wb_ref, cw_ref, out_ref) = refs
        colv_ref = None
    else:  # "batched" safety-net path (v2 structure)
        (x_ref, vecs_ref, colv_ref, pw_ref, w11_ref, w12_ref,
         wa_ref, wb_ref, cw_ref, out_ref) = refs

    BB, NP, PD = x_ref.shape
    E = pw_ref.shape[1]
    NB = w11_ref.shape[0]
    H1 = w11_ref.shape[2]          # 4*E  (=128, exactly fills v5e's 128-wide MXU)
    H2 = 4 * NP                    # 4*NP (=64)
    M = BB * NP
    f32, bf16 = jnp.float32, jnp.bfloat16

    def vrow(r, n):                      # lane-packed small param -> (1, n)
        return vecs_ref[r, :n].reshape(1, n)

    def ln_last(y, g, b):                # LayerNorm over the last (lane) dim
        n = y.shape[-1]
        mean = jnp.sum(y, axis=-1, keepdims=True) * (1.0 / n)
        msq = jnp.sum(y * y, axis=-1, keepdims=True) * (1.0 / n)
        var = jnp.maximum(msq - mean * mean, 0.0)          # guard rsqrt(<0)
        scale = jax.lax.rsqrt(var + LN_EPS) * g
        return y * scale + (b - mean * scale)

    def gelu(y):                         # tanh GELU -> EUP (own VLIW slot)
        return jax.nn.gelu(y, approximate=True)

    # --- patch projection: (BB*NP, PD) @ (PD, E) -----------------------------
    x2 = x_ref[...].reshape(M, PD)                       # merge leading dims (free)
    h = jnp.dot(x2.astype(bf16), pw_ref[...],
                preferred_element_type=f32) + vrow(0, E)               # (M, E) f32

    for i in range(NB):                  # static unroll over mixer blocks
        base = 4 + 8 * i

        # --- channel-mixing MLP (contract E): norm1 + Linear/GELU/Linear + res
        hn = ln_last(h, vrow(base + 0, E), vrow(base + 1, E))
        a = gelu(jnp.dot(hn.astype(bf16), w11_ref[i],
                         preferred_element_type=f32) + vrow(base + 2, H1))
        h = h + (jnp.dot(a.astype(bf16), w12_ref[i],
                         preferred_element_type=f32) + vrow(base + 3, E))

        if token_mode == "transpose":
            # --- token-mixing MLP as row-dense 2-D matmuls over M = BB*E rows.
            # wa_ref[i]: (NP, 4NP), wb_ref[i]: (4NP, NP) -- plain 2-D operands,
            # no broadcast materialization, no per-image batched MXU passes.
            t = jnp.transpose(h.reshape(BB, NP, E), (0, 2, 1)).reshape(BB * E, NP)
            tn = ln_last(t, vrow(base + 4, NP), vrow(base + 5, NP))
            a2 = gelu(jnp.dot(tn.astype(bf16), wa_ref[i],
                              preferred_element_type=f32) + vrow(base + 6, H2))
            m2 = jnp.dot(a2.astype(bf16), wb_ref[i],
                         preferred_element_type=f32) + vrow(base + 7, NP)
            h = h + jnp.transpose(m2.reshape(BB, E, NP), (0, 2, 1)).reshape(M, E)
        else:
            # --- safety-net token mixing (v2): batched dot_general over images.
            def ccol(lo, n):             # sublane-packed param -> (1, n, 1)
                return colv_ref[i, lo:lo + n, :].reshape(1, n, 1)

            def ln_mid(y, g, b):         # LayerNorm over axis=1 (patch dim)
                n = y.shape[1]
                mean = jnp.sum(y, axis=1, keepdims=True) * (1.0 / n)
                msq = jnp.sum(y * y, axis=1, keepdims=True) * (1.0 / n)
                var = jnp.maximum(msq - mean * mean, 0.0)
                scale = jax.lax.rsqrt(var + LN_EPS) * g
                return y * scale + (b - mean * scale)

            bdims = (((2,), (1,)), ((0,), (0,)))
            h3 = h.reshape(BB, NP, E)
            tn3 = ln_mid(h3, ccol(0, NP), ccol(NP, NP))
            w1b = jnp.broadcast_to(wa_ref[i], (BB, H2, NP))
            a2 = gelu(jax.lax.dot_general(w1b, tn3.astype(bf16), bdims,
                                          preferred_element_type=f32)
                      + ccol(2 * NP, H2))
            w2b = jnp.broadcast_to(wb_ref[i], (BB, NP, H2))
            m2 = jax.lax.dot_general(w2b, a2.astype(bf16), bdims,
                                     preferred_element_type=f32) + ccol(2 * NP + H2, NP)
            h = h + m2.reshape(M, E)

    # --- final LayerNorm, mean-pool over patches, lane-dense classifier -------
    hn = ln_last(h, vrow(1, E), vrow(2, E)).reshape(BB, NP, E)
    pooled = jnp.sum(hn, axis=1, keepdims=True).reshape(BB, E) * (1.0 / NP)
    out_ref[...] = jnp.dot(pooled.astype(bf16), cw_ref[...],
                           preferred_element_type=f32) + vrow(3, OUT_LANES)


# --------------------------------- wrapper -----------------------------------
def extract_patches(x, p):
    """x: (B, C, H, W) NCHW -> (B, n_patches, C*p*p), matching the torch unfold path."""
    B, C, H, W = x.shape
    nph, npw = H // p, W // p
    xt = x.reshape(B, C, nph, p, npw, p).transpose(0, 1, 2, 4, 3, 5)  # (B,C,nph,npw,p,p)
    xt = xt.reshape(B, C, nph * npw, p, p).transpose(0, 2, 1, 3, 4)   # (B,np,C,p,p)
    return xt.reshape(B, nph * npw, C * p * p)


def pick_batch_tile(B):
    """Batch tile selection (review items 1 & 2):
    - small batches (<=8): one grid step (demo harness: B=2).
    - large batches: pad B up to a multiple of 8, pick the largest multiple-of-8
      tile <=64 that still leaves >=2 grid steps so the 'parallel' axis shards
      across both TensorCores on v7x and M = bb*16 rows stays a multiple of 128."""
    if B <= 8:
        return B, B
    b_pad = ((B + 7) // 8) * 8
    bb = 8
    for cand in (64, 48, 32, 24, 16, 8):
        if b_pad % cand == 0 and b_pad // cand >= 2:
            bb = cand
            break
    return bb, b_pad


def pack_params(P):
    """One-time repack of module params into kernel-friendly buffers:
    - vecs (36,128) f32: every small vector (biases, LN affines, padded cls bias)
      lane-packed -> the primary path has no 1-lane column params at all.
    - colv (NB,112,1) f32: kept only for the safety-net batched path.
    - weight stacks cast to bf16; token-mix weights provided in both orientations."""
    E, NPp, NB, NC = EMB_DIM, N_PATCHES, NUM_BLOCKS, NUM_CLASSES
    H2 = 4 * NPp

    vecs = np.zeros((4 + 8 * NB, 128), np.float32)

    def put(r, v):
        v = np.asarray(v, np.float32).reshape(-1)
        vecs[r, :v.shape[0]] = v

    put(0, P["proj_b"]); put(1, P["ln_g"]); put(2, P["ln_b"]); put(3, P["cls_b"])
    for i in range(NB):
        base = 4 + 8 * i
        put(base + 0, P["n1_g"][i]); put(base + 1, P["n1_b"][i])
        put(base + 2, P["m1_b1"][i]); put(base + 3, P["m1_b2"][i])
        put(base + 4, P["n2_g"][i]); put(base + 5, P["n2_b"][i])
        put(base + 6, P["m2_b1"][i]); put(base + 7, P["m2_b2"][i])

    colv = np.zeros((NB, 2 * NPp + H2 + NPp, 1), np.float32)   # fallback only
    for i in range(NB):
        colv[i, 0:NPp, 0] = np.asarray(P["n2_g"][i], np.float32)
        colv[i, NPp:2 * NPp, 0] = np.asarray(P["n2_b"][i], np.float32)
        colv[i, 2 * NPp:2 * NPp + H2, 0] = np.asarray(P["m2_b1"][i], np.float32)
        colv[i, 2 * NPp + H2:, 0] = np.asarray(P["m2_b2"][i], np.float32)

    cls_pad = np.zeros((E, OUT_LANES), np.float32)             # lane-dense classifier
    cls_pad[:, :NC] = np.asarray(P["cls_w"], np.float32)

    return {
        "vecs": jnp.asarray(vecs),
        "colv": jnp.asarray(colv),
        "proj_w": P["proj_w"].astype(jnp.bfloat16),
        "m1_w1": P["m1_w1"].astype(jnp.bfloat16),
        "m1_w2": P["m1_w2"].astype(jnp.bfloat16),
        "m2_w1": P["m2_w1"].astype(jnp.bfloat16),                           # (NB, NP, 4NP)
        "m2_w2": P["m2_w2"].astype(jnp.bfloat16),                           # (NB, 4NP, NP)
        "m2_w1t": jnp.transpose(P["m2_w1"], (0, 2, 1)).astype(jnp.bfloat16),  # fallback
        "m2_w2t": jnp.transpose(P["m2_w2"], (0, 2, 1)).astype(jnp.bfloat16),  # fallback
        "cls_w_pad": jnp.asarray(cls_pad).astype(jnp.bfloat16),
    }


def mixer_forward(x, packed, token_mode="transpose"):
    B = x.shape[0]
    xp = extract_patches(x, PATCH).astype(jnp.float32)        # (B, NP, PD)

    bb, b_pad = pick_batch_tile(B)
    if b_pad != B:
        xp = jnp.pad(xp, ((0, b_pad - B), (0, 0), (0, 0)))
    grid = (b_pad // bb,)

    if token_mode == "transpose":
        args = (xp, packed["vecs"], packed["proj_w"],
                packed["m1_w1"], packed["m1_w2"],
                packed["m2_w1"], packed["m2_w2"], packed["cls_w_pad"])
    else:
        args = (xp, packed["vecs"], packed["colv"], packed["proj_w"],
                packed["m1_w1"], packed["m1_w2"],
                packed["m2_w1t"], packed["m2_w2t"], packed["cls_w_pad"])

    def full_spec(a):  # whole-array block, same block every grid step
        nd = a.ndim
        return pl.BlockSpec(a.shape, lambda b, _nd=nd: (0,) * _nd)

    in_specs = [pl.BlockSpec((bb, N_PATCHES, PATCHES_DIM), lambda b: (b, 0, 0))]
    in_specs += [full_spec(a) for a in args[1:]]

    out_pad = pl.pallas_call(
        functools.partial(mixer_kernel, token_mode=token_mode),
        out_shape=jax.ShapeDtypeStruct((b_pad, OUT_LANES), jnp.float32),
        grid=grid,
        in_specs=in_specs,
        out_specs=pl.BlockSpec((bb, OUT_LANES), lambda b: (b, 0)),
        compiler_params=pltpu.CompilerParams(
            dimension_semantics=("parallel",)),
    )(*args)
    return out_pad[:B, :NUM_CLASSES]


def mixer_forward_auto(x, packed):
    """Prefer the restructured (transpose / 2-D matmul) token-mix path; if Mosaic
    rejects the minor-dim transpose on this TPU generation, fall back to the
    proven batched-dot formulation so the script always runs clean."""
    try:
        return jax.block_until_ready(mixer_forward(x, packed, "transpose"))
    except Exception:
        return jax.block_until_ready(mixer_forward(x, packed, "batched"))


# ------------------------------ param init -----------------------------------
def init_params(key):
    E, NPp, PD, NB, NC = EMB_DIM, N_PATCHES, PATCHES_DIM, NUM_BLOCKS, NUM_CLASSES
    ks = iter(jax.random.split(key, 40))

    def lin(shape, fan_in):  # torch nn.Linear default: U(+-1/sqrt(fan_in))
        b = 1.0 / np.sqrt(fan_in)
        return jax.random.uniform(next(ks), shape, jnp.float32, -b, b)

    return {
        "proj_w": lin((PD, E), PD), "proj_b": lin((E,), PD),
        "n1_g": 1.0 + 0.1 * jax.random.normal(next(ks), (NB, E), jnp.float32),
        "n1_b": 0.1 * jax.random.normal(next(ks), (NB, E), jnp.float32),
        "n2_g": 1.0 + 0.1 * jax.random.normal(next(ks), (NB, NPp), jnp.float32),
        "n2_b": 0.1 * jax.random.normal(next(ks), (NB, NPp), jnp.float32),
        "m1_w1": lin((NB, E, 4 * E), E), "m1_b1": lin((NB, 4 * E), E),
        "m1_w2": lin((NB, 4 * E, E), 4 * E), "m1_b2": lin((NB, E), 4 * E),
        "m2_w1": lin((NB, NPp, 4 * NPp), NPp), "m2_b1": lin((NB, 4 * NPp), NPp),
        "m2_w2": lin((NB, 4 * NPp, NPp), 4 * NPp), "m2_b2": lin((NB, NPp), 4 * NPp),
        "ln_g": 1.0 + 0.1 * jax.random.normal(next(ks), (E,), jnp.float32),
        "ln_b": 0.1 * jax.random.normal(next(ks), (E,), jnp.float32),
        "cls_w": lin((E, NC), E), "cls_b": lin((NC,), E),
    }


# ---------------------------- pure-JAX reference -----------------------------
def mixer_reference(x, P):
    with jax.default_matmul_precision("highest"):   # trusted f32 / erf-GELU baseline
        def ln(y, g, b):
            mean = jnp.mean(y, axis=-1, keepdims=True)
            var = jnp.mean((y - mean) ** 2, axis=-1, keepdims=True)
            return (y - mean) * jax.lax.rsqrt(var + LN_EPS) * g + b

        xp = extract_patches(x, PATCH).astype(jnp.float32)
        h = xp @ P["proj_w"] + P["proj_b"]
        for i in range(NUM_BLOCKS):
            hn = ln(h, P["n1_g"][i], P["n1_b"][i])
            m = jax.nn.gelu(hn @ P["m1_w1"][i] + P["m1_b1"][i], approximate=False)
            h = h + (m @ P["m1_w2"][i] + P["m1_b2"][i])
            t = jnp.transpose(h, (0, 2, 1))
            tn = ln(t, P["n2_g"][i], P["n2_b"][i])
            m2 = jax.nn.gelu(tn @ P["m2_w1"][i] + P["m2_b1"][i], approximate=False)
            m2 = m2 @ P["m2_w2"][i] + P["m2_b2"][i]
            h = h + jnp.transpose(m2, (0, 2, 1))
        hn = ln(h, P["ln_g"], P["ln_b"])
        pooled = jnp.mean(hn, axis=1)
        return pooled @ P["cls_w"] + P["cls_b"]


# ----------------------------------- main ------------------------------------
if __name__ == "__main__":
    key = jax.random.PRNGKey(0)
    kx, kp = jax.random.split(key)
    x = jax.random.normal(kx, (BATCH, N_CHANNELS, IMG_SIZE, IMG_SIZE), jnp.float32)

    params = init_params(kp)
    packed = pack_params(params)          # one-time weight repack (not in hot path)

    out = mixer_forward_auto(x, packed)
    assert out.shape == (BATCH, NUM_CLASSES)

    ref = jax.block_until_ready(mixer_reference(x, params))
    # Intentional kernel deviations vs the f32/erf reference: bf16 MXU operands
    # (f32 accumulation) and tanh-GELU -> expect <~1-2% logit deviation.
    np.testing.assert_allclose(np.asarray(out), np.asarray(ref), rtol=4e-2, atol=4e-2)

    print("KERNEL_OK")
</pallas_src>

<mosaic_0001>
module attributes {stable_mosaic.version = 11 : i64} {
  func.func @mixer_kernel(%arg0: i32, %arg1: memref<2x16x64xf32, #tpu.memory_space<vmem>>, %arg2: memref<36x128xf32, #tpu.memory_space<vmem>>, %arg3: memref<64x32xbf16, #tpu.memory_space<vmem>>, %arg4: memref<4x32x128xbf16, #tpu.memory_space<vmem>>, %arg5: memref<4x128x32xbf16, #tpu.memory_space<vmem>>, %arg6: memref<4x16x64xbf16, #tpu.memory_space<vmem>>, %arg7: memref<4x64x16xbf16, #tpu.memory_space<vmem>>, %arg8: memref<32x128xbf16, #tpu.memory_space<vmem>>, %arg9: memref<2x128xf32, #tpu.memory_space<vmem>>) attributes {dimension_semantics = [#tpu.dimension_semantics<parallel>], iteration_bounds = array<i64: 1>, scalar_prefetch = 0 : i64, scratch_operands = 0 : i64, tpu.core_type = #tpu.core_type<tc>, window_params = [{transform_indices = @transform_0, window_bounds = array<i64: 2, 16, 64>}, {pipeline_mode = #tpu.pipeline_mode<synchronous>, transform_indices = @transform_1, window_bounds = array<i64: 36, 128>}, {pipeline_mode = #tpu.pipeline_mode<synchronous>, transform_indices = @transform_2, window_bounds = array<i64: 64, 32>}, {pipeline_mode = #tpu.pipeline_mode<synchronous>, transform_indices = @transform_3, window_bounds = array<i64: 4, 32, 128>}, {pipeline_mode = #tpu.pipeline_mode<synchronous>, transform_indices = @transform_4, window_bounds = array<i64: 4, 128, 32>}, {pipeline_mode = #tpu.pipeline_mode<synchronous>, transform_indices = @transform_5, window_bounds = array<i64: 4, 16, 64>}, {pipeline_mode = #tpu.pipeline_mode<synchronous>, transform_indices = @transform_6, window_bounds = array<i64: 4, 64, 16>}, {pipeline_mode = #tpu.pipeline_mode<synchronous>, transform_indices = @transform_7, window_bounds = array<i64: 32, 128>}, {transform_indices = @transform_8, window_bounds = array<i64: 2, 128>}]} {
    %c0 = arith.constant 0 : index
    %c0_0 = arith.constant 0 : index
    %c0_1 = arith.constant 0 : index
    %0 = vector.load %arg1[%c0, %c0_0, %c0_1] : memref<2x16x64xf32, #tpu.memory_space<vmem>>, vector<2x16x64xf32>
    %1 = vector.shape_cast %0 : vector<2x16x64xf32> to vector<32x64xf32>
    %2 = arith.truncf %1 : vector<32x64xf32> to vector<32x64xbf16>
    %c0_2 = arith.constant 0 : index
    %c0_3 = arith.constant 0 : index
    %3 = vector.load %arg3[%c0_2, %c0_3] : memref<64x32xbf16, #tpu.memory_space<vmem>>, vector<64x32xbf16>
    %cst = arith.constant dense<0.000000e+00> : vector<32x32xf32>
    %4 = tpu.matmul %2, %3, %cst {dimension_numbers = #tpu.dot_dimension_numbers<[1], [0], [0], [1], [0, 0, 1, 1], [], []>} : vector<32x64xbf16>, vector<64x32xbf16>, vector<32x32xf32> -> vector<32x32xf32>
    %c0_4 = arith.constant 0 : index
    %c0_5 = arith.constant 0 : index
    %5 = vector.load %arg2[%c0_4, %c0_5] : memref<36x128xf32, #tpu.memory_space<vmem>>, vector<1x32xf32>
    %6 = vector.shape_cast %5 : vector<1x32xf32> to vector<32xf32>
    %7 = vector.shape_cast %6 : vector<32xf32> to vector<1x32xf32>
    %8 = vector.broadcast %7 : vector<1x32xf32> to vector<32x32xf32>
    %9 = arith.addf %4, %8 : vector<32x32xf32>
    %c4 = arith.constant 4 : index
    %c0_6 = arith.constant 0 : index
    %10 = vector.load %arg2[%c4, %c0_6] : memref<36x128xf32, #tpu.memory_space<vmem>>, vector<1x32xf32>
    %11 = vector.shape_cast %10 : vector<1x32xf32> to vector<32xf32>
    %12 = vector.shape_cast %11 : vector<32xf32> to vector<1x32xf32>
    %c5 = arith.constant 5 : index
    %c0_7 = arith.constant 0 : index
    %13 = vector.load %arg2[%c5, %c0_7] : memref<36x128xf32, #tpu.memory_space<vmem>>, vector<1x32xf32>
    %14 = vector.shape_cast %13 : vector<1x32xf32> to vector<32xf32>
    %15 = vector.shape_cast %14 : vector<32xf32> to vector<1x32xf32>
    %cst_8 = arith.constant dense<0.000000e+00> : vector<32xf32>
    %16 = vector.multi_reduction <add>, %9, %cst_8 [1] : vector<32x32xf32> to vector<32xf32>
    %17 = vector.shape_cast %16 : vector<32xf32> to vector<32x1xf32>
    %cst_9 = arith.constant 3.125000e-02 : f32
    %18 = vector.broadcast %cst_9 : f32 to vector<32x1xf32>
    %19 = arith.mulf %17, %18 : vector<32x1xf32>
    %20 = arith.mulf %9, %9 : vector<32x32xf32>
    %cst_10 = arith.constant dense<0.000000e+00> : vector<32xf32>
    %21 = vector.multi_reduction <add>, %20, %cst_10 [1] : vector<32x32xf32> to vector<32xf32>
    %22 = vector.shape_cast %21 : vector<32xf32> to vector<32x1xf32>
    %cst_11 = arith.constant 3.125000e-02 : f32
    %23 = vector.broadcast %cst_11 : f32 to vector<32x1xf32>
    %24 = arith.mulf %22, %23 : vector<32x1xf32>
    %25 = arith.mulf %19, %19 : vector<32x1xf32>
    %26 = arith.subf %24, %25 : vector<32x1xf32>
    %cst_12 = arith.constant 0.000000e+00 : f32
    %27 = vector.broadcast %cst_12 : f32 to vector<32x1xf32>
    %28 = arith.maximumf %26, %27 : vector<32x1xf32>
    %cst_13 = arith.constant 9.99999974E-6 : f32
    %29 = vector.broadcast %cst_13 : f32 to vector<32x1xf32>
    %30 = arith.addf %28, %29 : vector<32x1xf32>
    %31 = math.rsqrt %30 : vector<32x1xf32>
    %32 = vector.broadcast %31 : vector<32x1xf32> to vector<32x32xf32>
    %33 = vector.broadcast %12 : vector<1x32xf32> to vector<32x32xf32>
    %34 = arith.mulf %32, %33 : vector<32x32xf32>
    %35 = arith.mulf %9, %34 : vector<32x32xf32>
    %36 = vector.broadcast %19 : vector<32x1xf32> to vector<32x32xf32>
    %37 = arith.mulf %36, %34 : vector<32x32xf32>
    %38 = vector.broadcast %15 : vector<1x32xf32> to vector<32x32xf32>
    %39 = arith.subf %38, %37 : vector<32x32xf32>
    %40 = arith.addf %35, %39 : vector<32x32xf32>
    %41 = arith.truncf %40 : vector<32x32xf32> to vector<32x32xbf16>
    %c0_14 = arith.constant 0 : index
    %c0_15 = arith.constant 0 : index
    %c0_16 = arith.constant 0 : index
    %42 = vector.load %arg4[%c0_14, %c0_15, %c0_16] : memref<4x32x128xbf16, #tpu.memory_space<vmem>>, vector<1x32x128xbf16>
    %43 = vector.shape_cast %42 : vector<1x32x128xbf16> to vector<32x128xbf16>
    %cst_17 = arith.constant dense<0.000000e+00> : vector<32x128xf32>
    %44 = tpu.matmul %41, %43, %cst_17 {dimension_numbers = #tpu.dot_dimension_numbers<[1], [0], [0], [1], [0, 0, 1, 1], [], []>} : vector<32x32xbf16>, vector<32x128xbf16>, vector<32x128xf32> -> vector<32x128xf32>
    %c6 = arith.constant 6 : index
    %c0_18 = arith.constant 0 : index
    %45 = vector.load %arg2[%c6, %c0_18] : memref<36x128xf32, #tpu.memory_space<vmem>>, vector<1x128xf32>
    %46 = vector.shape_cast %45 : vector<1x128xf32> to vector<128xf32>
    %47 = vector.shape_cast %46 : vector<128xf32> to vector<1x128xf32>
    %48 = vector.broadcast %47 : vector<1x128xf32> to vector<32x128xf32>
    %49 = arith.addf %44, %48 : vector<32x128xf32>
    %50 = arith.mulf %49, %49 : vector<32x128xf32>
    %51 = arith.mulf %49, %50 : vector<32x128xf32>
    %cst_19 = arith.constant 4.471500e-02 : f32
    %52 = vector.broadcast %cst_19 : f32 to vector<32x128xf32>
    %53 = arith.mulf %52, %51 : vector<32x128xf32>
    %54 = arith.addf %49, %53 : vector<32x128xf32>
    %cst_20 = arith.constant 0.797884583 : f32
    %55 = vector.broadcast %cst_20 : f32 to vector<32x128xf32>
    %56 = arith.mulf %55, %54 : vector<32x128xf32>
    %57 = math.tanh %56 : vector<32x128xf32>
    %cst_21 = arith.constant 1.000000e+00 : f32
    %58 = vector.broadcast %cst_21 : f32 to vector<32x128xf32>
    %59 = arith.addf %58, %57 : vector<32x128xf32>
    %cst_22 = arith.constant 5.000000e-01 : f32
    %60 = vector.broadcast %cst_22 : f32 to vector<32x128xf32>
    %61 = arith.mulf %60, %59 : vector<32x128xf32>
    %62 = arith.mulf %49, %61 : vector<32x128xf32>
    %63 = arith.truncf %62 : vector<32x128xf32> to vector<32x128xbf16>
    %c0_23 = arith.constant 0 : index
    %c0_24 = arith.constant 0 : index
    %c0_25 = arith.constant 0 : index
    %64 = vector.load %arg5[%c0_23, %c0_24, %c0_25] : memref<4x128x32xbf16, #tpu.memory_space<vmem>>, vector<1x128x32xbf16>
    %65 = vector.shape_cast %64 : vector<1x128x32xbf16> to vector<128x32xbf16>
    %cst_26 = arith.constant dense<0.000000e+00> : vector<32x32xf32>
    %66 = tpu.matmul %63, %65, %cst_26 {dimension_numbers = #tpu.dot_dimension_numbers<[1], [0], [0], [1], [0, 0, 1, 1], [], []>} : vector<32x128xbf16>, vector<128x32xbf16>, vector<32x32xf32> -> vector<32x32xf32>
    %c7 = arith.constant 7 : index
    %c0_27 = arith.constant 0 : index
    %67 = vector.load %arg2[%c7, %c0_27] : memref<36x128xf32, #tpu.memory_space<vmem>>, vector<1x32xf32>
    %68 = vector.shape_cast %67 : vector<1x32xf32> to vector<32xf32>
    %69 = vector.shape_cast %68 : vector<32xf32> to vector<1x32xf32>
    %70 = vector.broadcast %69 : vector<1x32xf32> to vector<32x32xf32>
    %71 = arith.addf %66, %70 : vector<32x32xf32>
    %72 = arith.addf %9, %71 : vector<32x32xf32>
    %73 = vector.shape_cast %72 : vector<32x32xf32> to vector<2x16x32xf32>
    %74 = tpu.transpose %73, [0, 2, 1] : vector<2x16x32xf32> -> vector<2x32x16xf32>
    %75 = vector.shape_cast %74 : vector<2x32x16xf32> to vector<64x16xf32>
    %c8 = arith.constant 8 : index
    %c0_28 = arith.constant 0 : index
    %76 = vector.load %arg2[%c8, %c0_28] : memref<36x128xf32, #tpu.memory_space<vmem>>, vector<1x16xf32>
    %77 = vector.shape_cast %76 : vector<1x16xf32> to vector<16xf32>
    %78 = vector.shape_cast %77 : vector<16xf32> to vector<1x16xf32>
    %c9 = arith.constant 9 : index
    %c0_29 = arith.constant 0 : index
    %79 = vector.load %arg2[%c9, %c0_29] : memref<36x128xf32, #tpu.memory_space<vmem>>, vector<1x16xf32>
    %80 = vector.shape_cast %79 : vector<1x16xf32> to vector<16xf32>
    %81 = vector.shape_cast %80 : vector<16xf32> to vector<1x16xf32>
    %cst_30 = arith.constant dense<0.000000e+00> : vector<64xf32>
    %82 = vector.multi_reduction <add>, %75, %cst_30 [1] : vector<64x16xf32> to vector<64xf32>
    %83 = vector.shape_cast %82 : vector<64xf32> to vector<64x1xf32>
    %cst_31 = arith.constant 6.250000e-02 : f32
    %84 = vector.broadcast %cst_31 : f32 to vector<64x1xf32>
    %85 = arith.mulf %83, %84 : vector<64x1xf32>
    %86 = arith.mulf %75, %75 : vector<64x16xf32>
    %cst_32 = arith.constant dense<0.000000e+00> : vector<64xf32>
    %87 = vector.multi_reduction <add>, %86, %cst_32 [1] : vector<64x16xf32> to vector<64xf32>
    %88 = vector.shape_cast %87 : vector<64xf32> to vector<64x1xf32>
    %cst_33 = arith.constant 6.250000e-02 : f32
    %89 = vector.broadcast %cst_33 : f32 to vector<64x1xf32>
    %90 = arith.mulf %88, %89 : vector<64x1xf32>
    %91 = arith.mulf %85, %85 : vector<64x1xf32>
    %92 = arith.subf %90, %91 : vector<64x1xf32>
    %cst_34 = arith.constant 0.000000e+00 : f32
    %93 = vector.broadcast %cst_34 : f32 to vector<64x1xf32>
    %94 = arith.maximumf %92, %93 : vector<64x1xf32>
    %cst_35 = arith.constant 9.99999974E-6 : f32
    %95 = vector.broadcast %cst_35 : f32 to vector<64x1xf32>
    %96 = arith.addf %94, %95 : vector<64x1xf32>
    %97 = math.rsqrt %96 : vector<64x1xf32>
    %98 = vector.broadcast %97 : vector<64x1xf32> to vector<64x16xf32>
    %99 = vector.broadcast %78 : vector<1x16xf32> to vector<64x16xf32>
    %100 = arith.mulf %98, %99 : vector<64x16xf32>
    %101 = arith.mulf %75, %100 : vector<64x16xf32>
    %102 = vector.broadcast %85 : vector<64x1xf32> to vector<64x16xf32>
    %103 = arith.mulf %102, %100 : vector<64x16xf32>
    %104 = vector.broadcast %81 : vector<1x16xf32> to vector<64x16xf32>
    %105 = arith.subf %104, %103 : vector<64x16xf32>
    %106 = arith.addf %101, %105 : vector<64x16xf32>
    %107 = arith.truncf %106 : vector<64x16xf32> to vector<64x16xbf16>
    %c0_36 = arith.constant 0 : index
    %c0_37 = arith.constant 0 : index
    %c0_38 = arith.constant 0 : index
    %108 = vector.load %arg6[%c0_36, %c0_37, %c0_38] : memref<4x16x64xbf16, #tpu.memory_space<vmem>>, vector<1x16x64xbf16>
    %109 = vector.shape_cast %108 : vector<1x16x64xbf16> to vector<16x64xbf16>
    %cst_39 = arith.constant dense<0.000000e+00> : vector<64x64xf32>
    %110 = tpu.matmul %107, %109, %cst_39 {dimension_numbers = #tpu.dot_dimension_numbers<[1], [0], [0], [1], [0, 0, 1, 1], [], []>} : vector<64x16xbf16>, vector<16x64xbf16>, vector<64x64xf32> -> vector<64x64xf32>
    %c10 = arith.constant 10 : index
    %c0_40 = arith.constant 0 : index
    %111 = vector.load %arg2[%c10, %c0_40] : memref<36x128xf32, #tpu.memory_space<vmem>>, vector<1x64xf32>
    %112 = vector.shape_cast %111 : vector<1x64xf32> to vector<64xf32>
    %113 = vector.shape_cast %112 : vector<64xf32> to vector<1x64xf32>
    %114 = vector.broadcast %113 : vector<1x64xf32> to vector<64x64xf32>
    %115 = arith.addf %110, %114 : vector<64x64xf32>
    %116 = arith.mulf %115, %115 : vector<64x64xf32>
    %117 = arith.mulf %115, %116 : vector<64x64xf32>
    %cst_41 = arith.constant 4.471500e-02 : f32
    %118 = vector.broadcast %cst_41 : f32 to vector<64x64xf32>
    %119 = arith.mulf %118, %117 : vector<64x64xf32>
    %120 = arith.addf %115, %119 : vector<64x64xf32>
    %cst_42 = arith.constant 0.797884583 : f32
    %121 = vector.broadcast %cst_42 : f32 to vector<64x64xf32>
    %122 = arith.mulf %121, %120 : vector<64x64xf32>
    %123 = math.tanh %122 : vector<64x64xf32>
    %cst_43 = arith.constant 1.000000e+00 : f32
    %124 = vector.broadcast %cst_43 : f32 to vector<64x64xf32>
    %125 = arith.addf %124, %123 : vector<64x64xf32>
    %cst_44 = arith.constant 5.000000e-01 : f32
    %126 = vector.broadcast %cst_44 : f32 to vector<64x64xf32>
    %127 = arith.mulf %126, %125 : vector<64x64xf32>
    %128 = arith.mulf %115, %127 : vector<64x64xf32>
    %129 = arith.truncf %128 : vector<64x64xf32> to vector<64x64xbf16>
    %c0_45 = arith.constant 0 : index
    %c0_46 = arith.constant 0 : index
    %c0_47 = arith.constant 0 : index
    %130 = vector.load %arg7[%c0_45, %c0_46, %c0_47] : memref<4x64x16xbf16, #tpu.memory_space<vmem>>, vector<1x64x16xbf16>
    %131 = vector.shape_cast %130 : vector<1x64x16xbf16> to vector<64x16xbf16>
    %cst_48 = arith.constant dense<0.000000e+00> : vector<64x16xf32>
    %132 = tpu.matmul %129, %131, %cst_48 {dimension_numbers = #tpu.dot_dimension_numbers<[1], [0], [0], [1], [0, 0, 1, 1], [], []>} : vector<64x64xbf16>, vector<64x16xbf16>, vector<64x16xf32> -> vector<64x16xf32>
    %c11 = arith.constant 11 : index
    %c0_49 = arith.constant 0 : index
    %133 = vector.load %arg2[%c11, %c0_49] : memref<36x128xf32, #tpu.memory_space<vmem>>, vector<1x16xf32>
    %134 = vector.shape_cast %133 : vector<1x16xf32> to vector<16xf32>
    %135 = vector.shape_cast %134 : vector<16xf32> to vector<1x16xf32>
    %136 = vector.broadcast %135 : vector<1x16xf32> to vector<64x16xf32>
    %137 = arith.addf %132, %136 : vector<64x16xf32>
    %138 = vector.shape_cast %137 : vector<64x16xf32> to vector<2x32x16xf32>
    %139 = tpu.transpose %138, [0, 2, 1] : vector<2x32x16xf32> -> vector<2x16x32xf32>
    %140 = vector.shape_cast %139 : vector<2x16x32xf32> to vector<32x32xf32>
    %141 = arith.addf %72, %140 : vector<32x32xf32>
    %c12 = arith.constant 12 : index
    %c0_50 = arith.constant 0 : index
    %142 = vector.load %arg2[%c12, %c0_50] : memref<36x128xf32, #tpu.memory_space<vmem>>, vector<1x32xf32>
    %143 = vector.shape_cast %142 : vector<1x32xf32> to vector<32xf32>
    %144 = vector.shape_cast %143 : vector<32xf32> to vector<1x32xf32>
    %c13 = arith.constant 13 : index
    %c0_51 = arith.constant 0 : index
    %145 = vector.load %arg2[%c13, %c0_51] : memref<36x128xf32, #tpu.memory_space<vmem>>, vector<1x32xf32>
    %146 = vector.shape_cast %145 : vector<1x32xf32> to vector<32xf32>
    %147 = vector.shape_cast %146 : vector<32xf32> to vector<1x32xf32>
    %cst_52 = arith.constant dense<0.000000e+00> : vector<32xf32>
    %148 = vector.multi_reduction <add>, %141, %cst_52 [1] : vector<32x32xf32> to vector<32xf32>
    %149 = vector.shape_cast %148 : vector<32xf32> to vector<32x1xf32>
    %cst_53 = arith.constant 3.125000e-02 : f32
    %150 = vector.broadcast %cst_53 : f32 to vector<32x1xf32>
    %151 = arith.mulf %149, %150 : vector<32x1xf32>
    %152 = arith.mulf %141, %141 : vector<32x32xf32>
    %cst_54 = arith.constant dense<0.000000e+00> : vector<32xf32>
    %153 = vector.multi_reduction <add>, %152, %cst_54 [1] : vector<32x32xf32> to vector<32xf32>
    %154 = vector.shape_cast %153 : vector<32xf32> to vector<32x1xf32>
    %cst_55 = arith.constant 3.125000e-02 : f32
    %155 = vector.broadcast %cst_55 : f32 to vector<32x1xf32>
    %156 = arith.mulf %154, %155 : vector<32x1xf32>
    %157 = arith.mulf %151, %151 : vector<32x1xf32>
    %158 = arith.subf %156, %157 : vector<32x1xf32>
    %cst_56 = arith.constant 0.000000e+00 : f32
    %159 = vector.broadcast %cst_56 : f32 to vector<32x1xf32>
    %160 = arith.maximumf %158, %159 : vector<32x1xf32>
    %cst_57 = arith.constant 9.99999974E-6 : f32
    %161 = vector.broadcast %cst_57 : f32 to vector<32x1xf32>
    %162 = arith.addf %160, %161 : vector<32x1xf32>
    %163 = math.rsqrt %162 : vector<32x1xf32>
    %164 = vector.broadcast %163 : vector<32x1xf32> to vector<32x32xf32>
    %165 = vector.broadcast %144 : vector<1x32xf32> to vector<32x32xf32>
    %166 = arith.mulf %164, %165 : vector<32x32xf32>
    %167 = arith.mulf %141, %166 : vector<32x32xf32>
    %168 = vector.broadcast %151 : vector<32x1xf32> to vector<32x32xf32>
    %169 = arith.mulf %168, %166 : vector<32x32xf32>
    %170 = vector.broadcast %147 : vector<1x32xf32> to vector<32x32xf32>
    %171 = arith.subf %170, %169 : vector<32x32xf32>
    %172 = arith.addf %167, %171 : vector<32x32xf32>
    %173 = arith.truncf %172 : vector<32x32xf32> to vector<32x32xbf16>
    %c1 = arith.constant 1 : index
    %c0_58 = arith.constant 0 : index
    %c0_59 = arith.constant 0 : index
    %174 = vector.load %arg4[%c1, %c0_58, %c0_59] : memref<4x32x128xbf16, #tpu.memory_space<vmem>>, vector<1x32x128xbf16>
    %175 = vector.shape_cast %174 : vector<1x32x128xbf16> to vector<32x128xbf16>
    %cst_60 = arith.constant dense<0.000000e+00> : vector<32x128xf32>
    %176 = tpu.matmul %173, %175, %cst_60 {dimension_numbers = #tpu.dot_dimension_numbers<[1], [0], [0], [1], [0, 0, 1, 1], [], []>} : vector<32x32xbf16>, vector<32x128xbf16>, vector<32x128xf32> -> vector<32x128xf32>
    %c14 = arith.constant 14 : index
    %c0_61 = arith.constant 0 : index
    %177 = vector.load %arg2[%c14, %c0_61] : memref<36x128xf32, #tpu.memory_space<vmem>>, vector<1x128xf32>
    %178 = vector.shape_cast %177 : vector<1x128xf32> to vector<128xf32>
    %179 = vector.shape_cast %178 : vector<128xf32> to vector<1x128xf32>
    %180 = vector.broadcast %179 : vector<1x128xf32> to vector<32x128xf32>
    %181 = arith.addf %176, %180 : vector<32x128xf32>
    %182 = arith.mulf %181, %181 : vector<32x128xf32>
    %183 = arith.mulf %181, %182 : vector<32x128xf32>
    %cst_62 = arith.constant 4.471500e-02 : f32
    %184 = vector.broadcast %cst_62 : f32 to vector<32x128xf32>
    %185 = arith.mulf %184, %183 : vector<32x128xf32>
    %186 = arith.addf %181, %185 : vector<32x128xf32>
    %cst_63 = arith.constant 0.797884583 : f32
    %187 = vector.broadcast %cst_63 : f32 to vector<32x128xf32>
    %188 = arith.mulf %187, %186 : vector<32x128xf32>
    %189 = math.tanh %188 : vector<32x128xf32>
    %cst_64 = arith.constant 1.000000e+00 : f32
    %190 = vector.broadcast %cst_64 : f32 to vector<32x128xf32>
    %191 = arith.addf %190, %189 : vector<32x128xf32>
    %cst_65 = arith.constant 5.000000e-01 : f32
    %192 = vector.broadcast %cst_65 : f32 to vector<32x128xf32>
    %193 = arith.mulf %192, %191 : vector<32x128xf32>
    %194 = arith.mulf %181, %193 : vector<32x128xf32>
    %195 = arith.truncf %194 : vector<32x128xf32> to vector<32x128xbf16>
    %c1_66 = arith.constant 1 : index
    %c0_67 = arith.constant 0 : index
    %c0_68 = arith.constant 0 : index
    %196 = vector.load %arg5[%c1_66, %c0_67, %c0_68] : memref<4x128x32xbf16, #tpu.memory_space<vmem>>, vector<1x128x32xbf16>
    %197 = vector.shape_cast %196 : vector<1x128x32xbf16> to vector<128x32xbf16>
    %cst_69 = arith.constant dense<0.000000e+00> : vector<32x32xf32>
    %198 = tpu.matmul %195, %197, %cst_69 {dimension_numbers = #tpu.dot_dimension_numbers<[1], [0], [0], [1], [0, 0, 1, 1], [], []>} : vector<32x128xbf16>, vector<128x32xbf16>, vector<32x32xf32> -> vector<32x32xf32>
    %c15 = arith.constant 15 : index
    %c0_70 = arith.constant 0 : index
    %199 = vector.load %arg2[%c15, %c0_70] : memref<36x128xf32, #tpu.memory_space<vmem>>, vector<1x32xf32>
    %200 = vector.shape_cast %199 : vector<1x32xf32> to vector<32xf32>
    %201 = vector.shape_cast %200 : vector<32xf32> to vector<1x32xf32>
    %202 = vector.broadcast %201 : vector<1x32xf32> to vector<32x32xf32>
    %203 = arith.addf %198, %202 : vector<32x32xf32>
    %204 = arith.addf %141, %203 : vector<32x32xf32>
    %205 = vector.shape_cast %204 : vector<32x32xf32> to vector<2x16x32xf32>
    %206 = tpu.transpose %205, [0, 2, 1] : vector<2x16x32xf32> -> vector<2x32x16xf32>
    %207 = vector.shape_cast %206 : vector<2x32x16xf32> to vector<64x16xf32>
    %c16 = arith.constant 16 : index
    %c0_71 = arith.constant 0 : index
    %208 = vector.load %arg2[%c16, %c0_71] : memref<36x128xf32, #tpu.memory_space<vmem>>, vector<1x16xf32>
    %209 = vector.shape_cast %208 : vector<1x16xf32> to vector<16xf32>
    %210 = vector.shape_cast %209 : vector<16xf32> to vector<1x16xf32>
    %c17 = arith.constant 17 : index
    %c0_72 = arith.constant 0 : index
    %211 = vector.load %arg2[%c17, %c0_72] : memref<36x128xf32, #tpu.memory_space<vmem>>, vector<1x16xf32>
    %212 = vector.shape_cast %211 : vector<1x16xf32> to vector<16xf32>
    %213 = vector.shape_cast %212 : vector<16xf32> to vector<1x16xf32>
    %cst_73 = arith.constant dense<0.000000e+00> : vector<64xf32>
    %214 = vector.multi_reduction <add>, %207, %cst_73 [1] : vector<64x16xf32> to vector<64xf32>
    %215 = vector.shape_cast %214 : vector<64xf32> to vector<64x1xf32>
    %cst_74 = arith.constant 6.250000e-02 : f32
    %216 = vector.broadcast %cst_74 : f32 to vector<64x1xf32>
    %217 = arith.mulf %215, %216 : vector<64x1xf32>
    %218 = arith.mulf %207, %207 : vector<64x16xf32>
    %cst_75 = arith.constant dense<0.000000e+00> : vector<64xf32>
    %219 = vector.multi_reduction <add>, %218, %cst_75 [1] : vector<64x16xf32> to vector<64xf32>
    %220 = vector.shape_cast %219 : vector<64xf32> to vector<64x1xf32>
    %cst_76 = arith.constant 6.250000e-02 : f32
    %221 = vector.broadcast %cst_76 : f32 to vector<64x1xf32>
    %222 = arith.mulf %220, %221 : vector<64x1xf32>
    %223 = arith.mulf %217, %217 : vector<64x1xf32>
    %224 = arith.subf %222, %223 : vector<64x1xf32>
    %cst_77 = arith.constant 0.000000e+00 : f32
    %225 = vector.broadcast %cst_77 : f32 to vector<64x1xf32>
    %226 = arith.maximumf %224, %225 : vector<64x1xf32>
    %cst_78 = arith.constant 9.99999974E-6 : f32
    %227 = vector.broadcast %cst_78 : f32 to vector<64x1xf32>
    %228 = arith.addf %226, %227 : vector<64x1xf32>
    %229 = math.rsqrt %228 : vector<64x1xf32>
    %230 = vector.broadcast %229 : vector<64x1xf32> to vector<64x16xf32>
    %231 = vector.broadcast %210 : vector<1x16xf32> to vector<64x16xf32>
    %232 = arith.mulf %230, %231 : vector<64x16xf32>
    %233 = arith.mulf %207, %232 : vector<64x16xf32>
    %234 = vector.broadcast %217 : vector<64x1xf32> to vector<64x16xf32>
    %235 = arith.mulf %234, %232 : vector<64x16xf32>
    %236 = vector.broadcast %213 : vector<1x16xf32> to vector<64x16xf32>
    %237 = arith.subf %236, %235 : vector<64x16xf32>
    %238 = arith.addf %233, %237 : vector<64x16xf32>
    %239 = arith.truncf %238 : vector<64x16xf32> to vector<64x16xbf16>
    %c1_79 = arith.constant 1 : index
    %c0_80 = arith.constant 0 : index
    %c0_81 = arith.constant 0 : index
    %240 = vector.load %arg6[%c1_79, %c0_80, %c0_81] : memref<4x16x64xbf16, #tpu.memory_space<vmem>>, vector<1x16x64xbf16>
    %241 = vector.shape_cast %240 : vector<1x16x64xbf16> to vector<16x64xbf16>
    %cst_82 = arith.constant dense<0.000000e+00> : vector<64x64xf32>
    %242 = tpu.matmul %239, %241, %cst_82 {dimension_numbers = #tpu.dot_dimension_numbers<[1], [0], [0], [1], [0, 0, 1, 1], [], []>} : vector<64x16xbf16>, vector<16x64xbf16>, vector<64x64xf32> -> vector<64x64xf32>
    %c18 = arith.constant 18 : index
    %c0_83 = arith.constant 0 : index
    %243 = vector.load %arg2[%c18, %c0_83] : memref<36x128xf32, #tpu.memory_space<vmem>>, vector<1x64xf32>
    %244 = vector.shape_cast %243 : vector<1x64xf32> to vector<64xf32>
    %245 = vector.shape_cast %244 : vector<64xf32> to vector<1x64xf32>
    %246 = vector.broadcast %245 : vector<1x64xf32> to vector<64x64xf32>
    %247 = arith.addf %242, %246 : vector<64x64xf32>
    %248 = arith.mulf %247, %247 : vector<64x64xf32>
    %249 = arith.mulf %247, %248 : vector<64x64xf32>
    %cst_84 = arith.constant 4.471500e-02 : f32
    %250 = vector.broadcast %cst_84 : f32 to vector<64x64xf32>
    %251 = arith.mulf %250, %249 : vector<64x64xf32>
    %252 = arith.addf %247, %251 : vector<64x64xf32>
    %cst_85 = arith.constant 0.797884583 : f32
    %253 = vector.broadcast %cst_85 : f32 to vector<64x64xf32>
    %254 = arith.mulf %253, %252 : vector<64x64xf32>
    %255 = math.tanh %254 : vector<64x64xf32>
    %cst_86 = arith.constant 1.000000e+00 : f32
    %256 = vector.broadcast %cst_86 : f32 to vector<64x64xf32>
    %257 = arith.addf %256, %255 : vector<64x64xf32>
    %cst_87 = arith.constant 5.000000e-01 : f32
    %258 = vector.broadcast %cst_87 : f32 to vector<64x64xf32>
    %259 = arith.mulf %258, %257 : vector<64x64xf32>
    %260 = arith.mulf %247, %259 : vector<64x64xf32>
    %261 = arith.truncf %260 : vector<64x64xf32> to vector<64x64xbf16>
    %c1_88 = arith.constant 1 : index
    %c0_89 = arith.constant 0 : index
    %c0_90 = arith.constant 0 : index
    %262 = vector.load %arg7[%c1_88, %c0_89, %c0_90] : memref<4x64x16xbf16, #tpu.memory_space<vmem>>, vector<1x64x16xbf16>
    %263 = vector.shape_cast %262 : vector<1x64x16xbf16> to vector<64x16xbf16>
    %cst_91 = arith.constant dense<0.000000e+00> : vector<64x16xf32>
    %264 = tpu.matmul %261, %263, %cst_91 {dimension_numbers = #tpu.dot_dimension_numbers<[1], [0], [0], [1], [0, 0, 1, 1], [], []>} : vector<64x64xbf16>, vector<64x16xbf16>, vector<64x16xf32> -> vector<64x16xf32>
    %c19 = arith.constant 19 : index
    %c0_92 = arith.constant 0 : index
    %265 = vector.load %arg2[%c19, %c0_92] : memref<36x128xf32, #tpu.memory_space<vmem>>, vector<1x16xf32>
    %266 = vector.shape_cast %265 : vector<1x16xf32> to vector<16xf32>
    %267 = vector.shape_cast %266 : vector<16xf32> to vector<1x16xf32>
    %268 = vector.broadcast %267 : vector<1x16xf32> to vector<64x16xf32>
    %269 = arith.addf %264, %268 : vector<64x16xf32>
    %270 = vector.shape_cast %269 : vector<64x16xf32> to vector<2x32x16xf32>
    %271 = tpu.transpose %270, [0, 2, 1] : vector<2x32x16xf32> -> vector<2x16x32xf32>
    %272 = vector.shape_cast %271 : vector<2x16x32xf32> to vector<32x32xf32>
    %273 = arith.addf %204, %272 : vector<32x32xf32>
    %c20 = arith.constant 20 : index
    %c0_93 = arith.constant 0 : index
    %274 = vector.load %arg2[%c20, %c0_93] : memref<36x128xf32, #tpu.memory_space<vmem>>, vector<1x32xf32>
    %275 = vector.shape_cast %274 : vector<1x32xf32> to vector<32xf32>
    %276 = vector.shape_cast %275 : vector<32xf32> to vector<1x32xf32>
    %c21 = arith.constant 21 : index
    %c0_94 = arith.constant 0 : index
    %277 = vector.load %arg2[%c21, %c0_94] : memref<36x128xf32, #tpu.memory_space<vmem>>, vector<1x32xf32>
    %278 = vector.shape_cast %277 : vector<1x32xf32> to vector<32xf32>
    %279 = vector.shape_cast %278 : vector<32xf32> to vector<1x32xf32>
    %cst_95 = arith.constant dense<0.000000e+00> : vector<32xf32>
    %280 = vector.multi_reduction <add>, %273, %cst_95 [1] : vector<32x32xf32> to vector<32xf32>
    %281 = vector.shape_cast %280 : vector<32xf32> to vector<32x1xf32>
    %cst_96 = arith.constant 3.125000e-02 : f32
    %282 = vector.broadcast %cst_96 : f32 to vector<32x1xf32>
    %283 = arith.mulf %281, %282 : vector<32x1xf32>
    %284 = arith.mulf %273, %273 : vector<32x32xf32>
    %cst_97 = arith.constant dense<0.000000e+00> : vector<32xf32>
    %285 = vector.multi_reduction <add>, %284, %cst_97 [1] : vector<32x32xf32> to vector<32xf32>
    %286 = vector.shape_cast %285 : vector<32xf32> to vector<32x1xf32>
    %cst_98 = arith.constant 3.125000e-02 : f32
    %287 = vector.broadcast %cst_98 : f32 to vector<32x1xf32>
    %288 = arith.mulf %286, %287 : vector<32x1xf32>
    %289 = arith.mulf %283, %283 : vector<32x1xf32>
    %290 = arith.subf %288, %289 : vector<32x1xf32>
    %cst_99 = arith.constant 0.000000e+00 : f32
    %291 = vector.broadcast %cst_99 : f32 to vector<32x1xf32>
    %292 = arith.maximumf %290, %291 : vector<32x1xf32>
    %cst_100 = arith.constant 9.99999974E-6 : f32
    %293 = vector.broadcast %cst_100 : f32 to vector<32x1xf32>
    %294 = arith.addf %292, %293 : vector<32x1xf32>
    %295 = math.rsqrt %294 : vector<32x1xf32>
    %296 = vector.broadcast %295 : vector<32x1xf32> to vector<32x32xf32>
    %297 = vector.broadcast %276 : vector<1x32xf32> to vector<32x32xf32>
    %298 = arith.mulf %296, %297 : vector<32x32xf32>
    %299 = arith.mulf %273, %298 : vector<32x32xf32>
    %300 = vector.broadcast %283 : vector<32x1xf32> to vector<32x32xf32>
    %301 = arith.mulf %300, %298 : vector<32x32xf32>
    %302 = vector.broadcast %279 : vector<1x32xf32> to vector<32x32xf32>
    %303 = arith.subf %302, %301 : vector<32x32xf32>
    %304 = arith.addf %299, %303 : vector<32x32xf32>
    %305 = arith.truncf %304 : vector<32x32xf32> to vector<32x32xbf16>
    %c2 = arith.constant 2 : index
    %c0_101 = arith.constant 0 : index
    %c0_102 = arith.constant 0 : index
    %306 = vector.load %arg4[%c2, %c0_101, %c0_102] : memref<4x32x128xbf16, #tpu.memory_space<vmem>>, vector<1x32x128xbf16>
    %307 = vector.shape_cast %306 : vector<1x32x128xbf16> to vector<32x128xbf16>
    %cst_103 = arith.constant dense<0.000000e+00> : vector<32x128xf32>
    %308 = tpu.matmul %305, %307, %cst_103 {dimension_numbers = #tpu.dot_dimension_numbers<[1], [0], [0], [1], [0, 0, 1, 1], [], []>} : vector<32x32xbf16>, vector<32x128xbf16>, vector<32x128xf32> -> vector<32x128xf32>
    %c22 = arith.constant 22 : index
    %c0_104 = arith.constant 0 : index
    %309 = vector.load %arg2[%c22, %c0_104] : memref<36x128xf32, #tpu.memory_space<vmem>>, vector<1x128xf32>
    %310 = vector.shape_cast %309 : vector<1x128xf32> to vector<128xf32>
    %311 = vector.shape_cast %310 : vector<128xf32> to vector<1x128xf32>
    %312 = vector.broadcast %311 : vector<1x128xf32> to vector<32x128xf32>
    %313 = arith.addf %308, %312 : vector<32x128xf32>
    %314 = arith.mulf %313, %313 : vector<32x128xf32>
    %315 = arith.mulf %313, %314 : vector<32x128xf32>
    %cst_105 = arith.constant 4.471500e-02 : f32
    %316 = vector.broadcast %cst_105 : f32 to vector<32x128xf32>
    %317 = arith.mulf %316, %315 : vector<32x128xf32>
    %318 = arith.addf %313, %317 : vector<32x128xf32>
    %cst_106 = arith.constant 0.797884583 : f32
    %319 = vector.broadcast %cst_106 : f32 to vector<32x128xf32>
    %320 = arith.mulf %319, %318 : vector<32x128xf32>
    %321 = math.tanh %320 : vector<32x128xf32>
    %cst_107 = arith.constant 1.000000e+00 : f32
    %322 = vector.broadcast %cst_107 : f32 to vector<32x128xf32>
    %323 = arith.addf %322, %321 : vector<32x128xf32>
    %cst_108 = arith.constant 5.000000e-01 : f32
    %324 = vector.broadcast %cst_108 : f32 to vector<32x128xf32>
    %325 = arith.mulf %324, %323 : vector<32x128xf32>
    %326 = arith.mulf %313, %325 : vector<32x128xf32>
    %327 = arith.truncf %326 : vector<32x128xf32> to vector<32x128xbf16>
    %c2_109 = arith.constant 2 : index
    %c0_110 = arith.constant 0 : index
    %c0_111 = arith.constant 0 : index
    %328 = vector.load %arg5[%c2_109, %c0_110, %c0_111] : memref<4x128x32xbf16, #tpu.memory_space<vmem>>, vector<1x128x32xbf16>
    %329 = vector.shape_cast %328 : vector<1x128x32xbf16> to vector<128x32xbf16>
    %cst_112 = arith.constant dense<0.000000e+00> : vector<32x32xf32>
    %330 = tpu.matmul %327, %329, %cst_112 {dimension_numbers = #tpu.dot_dimension_numbers<[1], [0], [0], [1], [0, 0, 1, 1], [], []>} : vector<32x128xbf16>, vector<128x32xbf16>, vector<32x32xf32> -> vector<32x32xf32>
    %c23 = arith.constant 23 : index
    %c0_113 = arith.constant 0 : index
    %331 = vector.load %arg2[%c23, %c0_113] : memref<36x128xf32, #tpu.memory_space<vmem>>, vector<1x32xf32>
    %332 = vector.shape_cast %331 : vector<1x32xf32> to vector<32xf32>
    %333 = vector.shape_cast %332 : vector<32xf32> to vector<1x32xf32>
    %334 = vector.broadcast %333 : vector<1x32xf32> to vector<32x32xf32>
    %335 = arith.addf %330, %334 : vector<32x32xf32>
    %336 = arith.addf %273, %335 : vector<32x32xf32>
    %337 = vector.shape_cast %336 : vector<32x32xf32> to vector<2x16x32xf32>
    %338 = tpu.transpose %337, [0, 2, 1] : vector<2x16x32xf32> -> vector<2x32x16xf32>
    %339 = vector.shape_cast %338 : vector<2x32x16xf32> to vector<64x16xf32>
    %c24 = arith.constant 24 : index
    %c0_114 = arith.constant 0 : index
    %340 = vector.load %arg2[%c24, %c0_114] : memref<36x128xf32, #tpu.memory_space<vmem>>, vector<1x16xf32>
    %341 = vector.shape_cast %340 : vector<1x16xf32> to vector<16xf32>
    %342 = vector.shape_cast %341 : vector<16xf32> to vector<1x16xf32>
    %c25 = arith.constant 25 : index
    %c0_115 = arith.constant 0 : index
    %343 = vector.load %arg2[%c25, %c0_115] : memref<36x128xf32, #tpu.memory_space<vmem>>, vector<1x16xf32>
    %344 = vector.shape_cast %343 : vector<1x16xf32> to vector<16xf32>
    %345 = vector.shape_cast %344 : vector<16xf32> to vector<1x16xf32>
    %cst_116 = arith.constant dense<0.000000e+00> : vector<64xf32>
    %346 = vector.multi_reduction <add>, %339, %cst_116 [1] : vector<64x16xf32> to vector<64xf32>
    %347 = vector.shape_cast %346 : vector<64xf32> to vector<64x1xf32>
    %cst_117 = arith.constant 6.250000e-02 : f32
    %348 = vector.broadcast %cst_117 : f32 to vector<64x1xf32>
    %349 = arith.mulf %347, %348 : vector<64x1xf32>
    %350 = arith.mulf %339, %339 : vector<64x16xf32>
    %cst_118 = arith.constant dense<0.000000e+00> : vector<64xf32>
    %351 = vector.multi_reduction <add>, %350, %cst_118 [1] : vector<64x16xf32> to vector<64xf32>
    %352 = vector.shape_cast %351 : vector<64xf32> to vector<64x1xf32>
    %cst_119 = arith.constant 6.250000e-02 : f32
    %353 = vector.broadcast %cst_119 : f32 to vector<64x1xf32>
    %354 = arith.mulf %352, %353 : vector<64x1xf32>
    %355 = arith.mulf %349, %349 : vector<64x1xf32>
    %356 = arith.subf %354, %355 : vector<64x1xf32>
    %cst_120 = arith.constant 0.000000e+00 : f32
    %357 = vector.broadcast %cst_120 : f32 to vector<64x1xf32>
    %358 = arith.maximumf %356, %357 : vector<64x1xf32>
    %cst_121 = arith.constant 9.99999974E-6 : f32
    %359 = vector.broadcast %cst_121 : f32 to vector<64x1xf32>
    %360 = arith.addf %358, %359 : vector<64x1xf32>
    %361 = math.rsqrt %360 : vector<64x1xf32>
    %362 = vector.broadcast %361 : vector<64x1xf32> to vector<64x16xf32>
    %363 = vector.broadcast %342 : vector<1x16xf32> to vector<64x16xf32>
    %364 = arith.mulf %362, %363 : vector<64x16xf32>
    %365 = arith.mulf %339, %364 : vector<64x16xf32>
    %366 = vector.broadcast %349 : vector<64x1xf32> to vector<64x16xf32>
    %367 = arith.mulf %366, %364 : vector<64x16xf32>
    %368 = vector.broadcast %345 : vector<1x16xf32> to vector<64x16xf32>
    %369 = arith.subf %368, %367 : vector<64x16xf32>
    %370 = arith.addf %365, %369 : vector<64x16xf32>
    %371 = arith.truncf %370 : vector<64x16xf32> to vector<64x16xbf16>
    %c2_122 = arith.constant 2 : index
    %c0_123 = arith.constant 0 : index
    %c0_124 = arith.constant 0 : index
    %372 = vector.load %arg6[%c2_122, %c0_123, %c0_124] : memref<4x16x64xbf16, #tpu.memory_space<vmem>>, vector<1x16x64xbf16>
    %373 = vector.shape_cast %372 : vector<1x16x64xbf16> to vector<16x64xbf16>
    %cst_125 = arith.constant dense<0.000000e+00> : vector<64x64xf32>
    %374 = tpu.matmul %371, %373, %cst_125 {dimension_numbers = #tpu.dot_dimension_numbers<[1], [0], [0], [1], [0, 0, 1, 1], [], []>} : vector<64x16xbf16>, vector<16x64xbf16>, vector<64x64xf32> -> vector<64x64xf32>
    %c26 = arith.constant 26 : index
    %c0_126 = arith.constant 0 : index
    %375 = vector.load %arg2[%c26, %c0_126] : memref<36x128xf32, #tpu.memory_space<vmem>>, vector<1x64xf32>
    %376 = vector.shape_cast %375 : vector<1x64xf32> to vector<64xf32>
    %377 = vector.shape_cast %376 : vector<64xf32> to vector<1x64xf32>
    %378 = vector.broadcast %377 : vector<1x64xf32> to vector<64x64xf32>
    %379 = arith.addf %374, %378 : vector<64x64xf32>
    %380 = arith.mulf %379, %379 : vector<64x64xf32>
    %381 = arith.mulf %379, %380 : vector<64x64xf32>
    %cst_127 = arith.constant 4.471500e-02 : f32
    %382 = vector.broadcast %cst_127 : f32 to vector<64x64xf32>
    %383 = arith.mulf %382, %381 : vector<64x64xf32>
    %384 = arith.addf %379, %383 : vector<64x64xf32>
    %cst_128 = arith.constant 0.797884583 : f32
    %385 = vector.broadcast %cst_128 : f32 to vector<64x64xf32>
    %386 = arith.mulf %385, %384 : vector<64x64xf32>
    %387 = math.tanh %386 : vector<64x64xf32>
    %cst_129 = arith.constant 1.000000e+00 : f32
    %388 = vector.broadcast %cst_129 : f32 to vector<64x64xf32>
    %389 = arith.addf %388, %387 : vector<64x64xf32>
    %cst_130 = arith.constant 5.000000e-01 : f32
    %390 = vector.broadcast %cst_130 : f32 to vector<64x64xf32>
    %391 = arith.mulf %390, %389 : vector<64x64xf32>
    %392 = arith.mulf %379, %391 : vector<64x64xf32>
    %393 = arith.truncf %392 : vector<64x64xf32> to vector<64x64xbf16>
    %c2_131 = arith.constant 2 : index
    %c0_132 = arith.constant 0 : index
    %c0_133 = arith.constant 0 : index
    %394 = vector.load %arg7[%c2_131, %c0_132, %c0_133] : memref<4x64x16xbf16, #tpu.memory_space<vmem>>, vector<1x64x16xbf16>
    %395 = vector.shape_cast %394 : vector<1x64x16xbf16> to vector<64x16xbf16>
    %cst_134 = arith.constant dense<0.000000e+00> : vector<64x16xf32>
    %396 = tpu.matmul %393, %395, %cst_134 {dimension_numbers = #tpu.dot_dimension_numbers<[1], [0], [0], [1], [0, 0, 1, 1], [], []>} : vector<64x64xbf16>, vector<64x16xbf16>, vector<64x16xf32> -> vector<64x16xf32>
    %c27 = arith.constant 27 : index
    %c0_135 = arith.constant 0 : index
    %397 = vector.load %arg2[%c27, %c0_135] : memref<36x128xf32, #tpu.memory_space<vmem>>, vector<1x16xf32>
    %398 = vector.shape_cast %397 : vector<1x16xf32> to vector<16xf32>
    %399 = vector.shape_cast %398 : vector<16xf32> to vector<1x16xf32>
    %400 = vector.broadcast %399 : vector<1x16xf32> to vector<64x16xf32>
    %401 = arith.addf %396, %400 : vector<64x16xf32>
    %402 = vector.shape_cast %401 : vector<64x16xf32> to vector<2x32x16xf32>
    %403 = tpu.transpose %402, [0, 2, 1] : vector<2x32x16xf32> -> vector<2x16x32xf32>
    %404 = vector.shape_cast %403 : vector<2x16x32xf32> to vector<32x32xf32>
    %405 = arith.addf %336, %404 : vector<32x32xf32>
    %c28 = arith.constant 28 : index
    %c0_136 = arith.constant 0 : index
    %406 = vector.load %arg2[%c28, %c0_136] : memref<36x128xf32, #tpu.memory_space<vmem>>, vector<1x32xf32>
    %407 = vector.shape_cast %406 : vector<1x32xf32> to vector<32xf32>
    %408 = vector.shape_cast %407 : vector<32xf32> to vector<1x32xf32>
    %c29 = arith.constant 29 : index
    %c0_137 = arith.constant 0 : index
    %409 = vector.load %arg2[%c29, %c0_137] : memref<36x128xf32, #tpu.memory_space<vmem>>, vector<1x32xf32>
    %410 = vector.shape_cast %409 : vector<1x32xf32> to vector<32xf32>
    %411 = vector.shape_cast %410 : vector<32xf32> to vector<1x32xf32>
    %cst_138 = arith.constant dense<0.000000e+00> : vector<32xf32>
    %412 = vector.multi_reduction <add>, %405, %cst_138 [1] : vector<32x32xf32> to vector<32xf32>
    %413 = vector.shape_cast %412 : vector<32xf32> to vector<32x1xf32>
    %cst_139 = arith.constant 3.125000e-02 : f32
    %414 = vector.broadcast %cst_139 : f32 to vector<32x1xf32>
    %415 = arith.mulf %413, %414 : vector<32x1xf32>
    %416 = arith.mulf %405, %405 : vector<32x32xf32>
    %cst_140 = arith.constant dense<0.000000e+00> : vector<32xf32>
    %417 = vector.multi_reduction <add>, %416, %cst_140 [1] : vector<32x32xf32> to vector<32xf32>
    %418 = vector.shape_cast %417 : vector<32xf32> to vector<32x1xf32>
    %cst_141 = arith.constant 3.125000e-02 : f32
    %419 = vector.broadcast %cst_141 : f32 to vector<32x1xf32>
    %420 = arith.mulf %418, %419 : vector<32x1xf32>
    %421 = arith.mulf %415, %415 : vector<32x1xf32>
    %422 = arith.subf %420, %421 : vector<32x1xf32>
    %cst_142 = arith.constant 0.000000e+00 : f32
    %423 = vector.broadcast %cst_142 : f32 to vector<32x1xf32>
    %424 = arith.maximumf %422, %423 : vector<32x1xf32>
    %cst_143 = arith.constant 9.99999974E-6 : f32
    %425 = vector.broadcast %cst_143 : f32 to vector<32x1xf32>
    %426 = arith.addf %424, %425 : vector<32x1xf32>
    %427 = math.rsqrt %426 : vector<32x1xf32>
    %428 = vector.broadcast %427 : vector<32x1xf32> to vector<32x32xf32>
    %429 = vector.broadcast %408 : vector<1x32xf32> to vector<32x32xf32>
    %430 = arith.mulf %428, %429 : vector<32x32xf32>
    %431 = arith.mulf %405, %430 : vector<32x32xf32>
    %432 = vector.broadcast %415 : vector<32x1xf32> to vector<32x32xf32>
    %433 = arith.mulf %432, %430 : vector<32x32xf32>
    %434 = vector.broadcast %411 : vector<1x32xf32> to vector<32x32xf32>
    %435 = arith.subf %434, %433 : vector<32x32xf32>
    %436 = arith.addf %431, %435 : vector<32x32xf32>
    %437 = arith.truncf %436 : vector<32x32xf32> to vector<32x32xbf16>
    %c3 = arith.constant 3 : index
    %c0_144 = arith.constant 0 : index
    %c0_145 = arith.constant 0 : index
    %438 = vector.load %arg4[%c3, %c0_144, %c0_145] : memref<4x32x128xbf16, #tpu.memory_space<vmem>>, vector<1x32x128xbf16>
    %439 = vector.shape_cast %438 : vector<1x32x128xbf16> to vector<32x128xbf16>
    %cst_146 = arith.constant dense<0.000000e+00> : vector<32x128xf32>
    %440 = tpu.matmul %437, %439, %cst_146 {dimension_numbers = #tpu.dot_dimension_numbers<[1], [0], [0], [1], [0, 0, 1, 1], [], []>} : vector<32x32xbf16>, vector<32x128xbf16>, vector<32x128xf32> -> vector<32x128xf32>
    %c30 = arith.constant 30 : index
    %c0_147 = arith.constant 0 : index
    %441 = vector.load %arg2[%c30, %c0_147] : memref<36x128xf32, #tpu.memory_space<vmem>>, vector<1x128xf32>
    %442 = vector.shape_cast %441 : vector<1x128xf32> to vector<128xf32>
    %443 = vector.shape_cast %442 : vector<128xf32> to vector<1x128xf32>
    %444 = vector.broadcast %443 : vector<1x128xf32> to vector<32x128xf32>
    %445 = arith.addf %440, %444 : vector<32x128xf32>
    %446 = arith.mulf %445, %445 : vector<32x128xf32>
    %447 = arith.mulf %445, %446 : vector<32x128xf32>
    %cst_148 = arith.constant 4.471500e-02 : f32
    %448 = vector.broadcast %cst_148 : f32 to vector<32x128xf32>
    %449 = arith.mulf %448, %447 : vector<32x128xf32>
    %450 = arith.addf %445, %449 : vector<32x128xf32>
    %cst_149 = arith.constant 0.797884583 : f32
    %451 = vector.broadcast %cst_149 : f32 to vector<32x128xf32>
    %452 = arith.mulf %451, %450 : vector<32x128xf32>
    %453 = math.tanh %452 : vector<32x128xf32>
    %cst_150 = arith.constant 1.000000e+00 : f32
    %454 = vector.broadcast %cst_150 : f32 to vector<32x128xf32>
    %455 = arith.addf %454, %453 : vector<32x128xf32>
    %cst_151 = arith.constant 5.000000e-01 : f32
    %456 = vector.broadcast %cst_151 : f32 to vector<32x128xf32>
    %457 = arith.mulf %456, %455 : vector<32x128xf32>
    %458 = arith.mulf %445, %457 : vector<32x128xf32>
    %459 = arith.truncf %458 : vector<32x128xf32> to vector<32x128xbf16>
    %c3_152 = arith.constant 3 : index
    %c0_153 = arith.constant 0 : index
    %c0_154 = arith.constant 0 : index
    %460 = vector.load %arg5[%c3_152, %c0_153, %c0_154] : memref<4x128x32xbf16, #tpu.memory_space<vmem>>, vector<1x128x32xbf16>
    %461 = vector.shape_cast %460 : vector<1x128x32xbf16> to vector<128x32xbf16>
    %cst_155 = arith.constant dense<0.000000e+00> : vector<32x32xf32>
    %462 = tpu.matmul %459, %461, %cst_155 {dimension_numbers = #tpu.dot_dimension_numbers<[1], [0], [0], [1], [0, 0, 1, 1], [], []>} : vector<32x128xbf16>, vector<128x32xbf16>, vector<32x32xf32> -> vector<32x32xf32>
    %c31 = arith.constant 31 : index
    %c0_156 = arith.constant 0 : index
    %463 = vector.load %arg2[%c31, %c0_156] : memref<36x128xf32, #tpu.memory_space<vmem>>, vector<1x32xf32>
    %464 = vector.shape_cast %463 : vector<1x32xf32> to vector<32xf32>
    %465 = vector.shape_cast %464 : vector<32xf32> to vector<1x32xf32>
    %466 = vector.broadcast %465 : vector<1x32xf32> to vector<32x32xf32>
    %467 = arith.addf %462, %466 : vector<32x32xf32>
    %468 = arith.addf %405, %467 : vector<32x32xf32>
    %469 = vector.shape_cast %468 : vector<32x32xf32> to vector<2x16x32xf32>
    %470 = tpu.transpose %469, [0, 2, 1] : vector<2x16x32xf32> -> vector<2x32x16xf32>
    %471 = vector.shape_cast %470 : vector<2x32x16xf32> to vector<64x16xf32>
    %c32 = arith.constant 32 : index
    %c0_157 = arith.constant 0 : index
    %472 = vector.load %arg2[%c32, %c0_157] : memref<36x128xf32, #tpu.memory_space<vmem>>, vector<1x16xf32>
    %473 = vector.shape_cast %472 : vector<1x16xf32> to vector<16xf32>
    %474 = vector.shape_cast %473 : vector<16xf32> to vector<1x16xf32>
    %c33 = arith.constant 33 : index
    %c0_158 = arith.constant 0 : index
    %475 = vector.load %arg2[%c33, %c0_158] : memref<36x128xf32, #tpu.memory_space<vmem>>, vector<1x16xf32>
    %476 = vector.shape_cast %475 : vector<1x16xf32> to vector<16xf32>
    %477 = vector.shape_cast %476 : vector<16xf32> to vector<1x16xf32>
    %cst_159 = arith.constant dense<0.000000e+00> : vector<64xf32>
    %478 = vector.multi_reduction <add>, %471, %cst_159 [1] : vector<64x16xf32> to vector<64xf32>
    %479 = vector.shape_cast %478 : vector<64xf32> to vector<64x1xf32>
    %cst_160 = arith.constant 6.250000e-02 : f32
    %480 = vector.broadcast %cst_160 : f32 to vector<64x1xf32>
    %481 = arith.mulf %479, %480 : vector<64x1xf32>
    %482 = arith.mulf %471, %471 : vector<64x16xf32>
    %cst_161 = arith.constant dense<0.000000e+00> : vector<64xf32>
    %483 = vector.multi_reduction <add>, %482, %cst_161 [1] : vector<64x16xf32> to vector<64xf32>
    %484 = vector.shape_cast %483 : vector<64xf32> to vector<64x1xf32>
    %cst_162 = arith.constant 6.250000e-02 : f32
    %485 = vector.broadcast %cst_162 : f32 to vector<64x1xf32>
    %486 = arith.mulf %484, %485 : vector<64x1xf32>
    %487 = arith.mulf %481, %481 : vector<64x1xf32>
    %488 = arith.subf %486, %487 : vector<64x1xf32>
    %cst_163 = arith.constant 0.000000e+00 : f32
    %489 = vector.broadcast %cst_163 : f32 to vector<64x1xf32>
    %490 = arith.maximumf %488, %489 : vector<64x1xf32>
    %cst_164 = arith.constant 9.99999974E-6 : f32
    %491 = vector.broadcast %cst_164 : f32 to vector<64x1xf32>
    %492 = arith.addf %490, %491 : vector<64x1xf32>
    %493 = math.rsqrt %492 : vector<64x1xf32>
    %494 = vector.broadcast %493 : vector<64x1xf32> to vector<64x16xf32>
    %495 = vector.broadcast %474 : vector<1x16xf32> to vector<64x16xf32>
    %496 = arith.mulf %494, %495 : vector<64x16xf32>
    %497 = arith.mulf %471, %496 : vector<64x16xf32>
    %498 = vector.broadcast %481 : vector<64x1xf32> to vector<64x16xf32>
    %499 = arith.mulf %498, %496 : vector<64x16xf32>
    %500 = vector.broadcast %477 : vector<1x16xf32> to vector<64x16xf32>
    %501 = arith.subf %500, %499 : vector<64x16xf32>
    %502 = arith.addf %497, %501 : vector<64x16xf32>
    %503 = arith.truncf %502 : vector<64x16xf32> to vector<64x16xbf16>
    %c3_165 = arith.constant 3 : index
    %c0_166 = arith.constant 0 : index
    %c0_167 = arith.constant 0 : index
    %504 = vector.load %arg6[%c3_165, %c0_166, %c0_167] : memref<4x16x64xbf16, #tpu.memory_space<vmem>>, vector<1x16x64xbf16>
    %505 = vector.shape_cast %504 : vector<1x16x64xbf16> to vector<16x64xbf16>
    %cst_168 = arith.constant dense<0.000000e+00> : vector<64x64xf32>
    %506 = tpu.matmul %503, %505, %cst_168 {dimension_numbers = #tpu.dot_dimension_numbers<[1], [0], [0], [1], [0, 0, 1, 1], [], []>} : vector<64x16xbf16>, vector<16x64xbf16>, vector<64x64xf32> -> vector<64x64xf32>
    %c34 = arith.constant 34 : index
    %c0_169 = arith.constant 0 : index
    %507 = vector.load %arg2[%c34, %c0_169] : memref<36x128xf32, #tpu.memory_space<vmem>>, vector<1x64xf32>
    %508 = vector.shape_cast %507 : vector<1x64xf32> to vector<64xf32>
    %509 = vector.shape_cast %508 : vector<64xf32> to vector<1x64xf32>
    %510 = vector.broadcast %509 : vector<1x64xf32> to vector<64x64xf32>
    %511 = arith.addf %506, %510 : vector<64x64xf32>
    %512 = arith.mulf %511, %511 : vector<64x64xf32>
    %513 = arith.mulf %511, %512 : vector<64x64xf32>
    %cst_170 = arith.constant 4.471500e-02 : f32
    %514 = vector.broadcast %cst_170 : f32 to vector<64x64xf32>
    %515 = arith.mulf %514, %513 : vector<64x64xf32>
    %516 = arith.addf %511, %515 : vector<64x64xf32>
    %cst_171 = arith.constant 0.797884583 : f32
    %517 = vector.broadcast %cst_171 : f32 to vector<64x64xf32>
    %518 = arith.mulf %517, %516 : vector<64x64xf32>
    %519 = math.tanh %518 : vector<64x64xf32>
    %cst_172 = arith.constant 1.000000e+00 : f32
    %520 = vector.broadcast %cst_172 : f32 to vector<64x64xf32>
    %521 = arith.addf %520, %519 : vector<64x64xf32>
    %cst_173 = arith.constant 5.000000e-01 : f32
    %522 = vector.broadcast %cst_173 : f32 to vector<64x64xf32>
    %523 = arith.mulf %522, %521 : vector<64x64xf32>
    %524 = arith.mulf %511, %523 : vector<64x64xf32>
    %525 = arith.truncf %524 : vector<64x64xf32> to vector<64x64xbf16>
    %c3_174 = arith.constant 3 : index
    %c0_175 = arith.constant 0 : index
    %c0_176 = arith.constant 0 : index
    %526 = vector.load %arg7[%c3_174, %c0_175, %c0_176] : memref<4x64x16xbf16, #tpu.memory_space<vmem>>, vector<1x64x16xbf16>
    %527 = vector.shape_cast %526 : vector<1x64x16xbf16> to vector<64x16xbf16>
    %cst_177 = arith.constant dense<0.000000e+00> : vector<64x16xf32>
    %528 = tpu.matmul %525, %527, %cst_177 {dimension_numbers = #tpu.dot_dimension_numbers<[1], [0], [0], [1], [0, 0, 1, 1], [], []>} : vector<64x64xbf16>, vector<64x16xbf16>, vector<64x16xf32> -> vector<64x16xf32>
    %c35 = arith.constant 35 : index
    %c0_178 = arith.constant 0 : index
    %529 = vector.load %arg2[%c35, %c0_178] : memref<36x128xf32, #tpu.memory_space<vmem>>, vector<1x16xf32>
    %530 = vector.shape_cast %529 : vector<1x16xf32> to vector<16xf32>
    %531 = vector.shape_cast %530 : vector<16xf32> to vector<1x16xf32>
    %532 = vector.broadcast %531 : vector<1x16xf32> to vector<64x16xf32>
    %533 = arith.addf %528, %532 : vector<64x16xf32>
    %534 = vector.shape_cast %533 : vector<64x16xf32> to vector<2x32x16xf32>
    %535 = tpu.transpose %534, [0, 2, 1] : vector<2x32x16xf32> -> vector<2x16x32xf32>
    %536 = vector.shape_cast %535 : vector<2x16x32xf32> to vector<32x32xf32>
    %537 = arith.addf %468, %536 : vector<32x32xf32>
    %c1_179 = arith.constant 1 : index
    %c0_180 = arith.constant 0 : index
    %538 = vector.load %arg2[%c1_179, %c0_180] : memref<36x128xf32, #tpu.memory_space<vmem>>, vector<1x32xf32>
    %539 = vector.shape_cast %538 : vector<1x32xf32> to vector<32xf32>
    %540 = vector.shape_cast %539 : vector<32xf32> to vector<1x32xf32>
    %c2_181 = arith.constant 2 : index
    %c0_182 = arith.constant 0 : index
    %541 = vector.load %arg2[%c2_181, %c0_182] : memref<36x128xf32, #tpu.memory_space<vmem>>, vector<1x32xf32>
    %542 = vector.shape_cast %541 : vector<1x32xf32> to vector<32xf32>
    %543 = vector.shape_cast %542 : vector<32xf32> to vector<1x32xf32>
    %cst_183 = arith.constant dense<0.000000e+00> : vector<32xf32>
    %544 = vector.multi_reduction <add>, %537, %cst_183 [1] : vector<32x32xf32> to vector<32xf32>
    %545 = vector.shape_cast %544 : vector<32xf32> to vector<32x1xf32>
    %cst_184 = arith.constant 3.125000e-02 : f32
    %546 = vector.broadcast %cst_184 : f32 to vector<32x1xf32>
    %547 = arith.mulf %545, %546 : vector<32x1xf32>
    %548 = arith.mulf %537, %537 : vector<32x32xf32>
    %cst_185 = arith.constant dense<0.000000e+00> : vector<32xf32>
    %549 = vector.multi_reduction <add>, %548, %cst_185 [1] : vector<32x32xf32> to vector<32xf32>
    %550 = vector.shape_cast %549 : vector<32xf32> to vector<32x1xf32>
    %cst_186 = arith.constant 3.125000e-02 : f32
    %551 = vector.broadcast %cst_186 : f32 to vector<32x1xf32>
    %552 = arith.mulf %550, %551 : vector<32x1xf32>
    %553 = arith.mulf %547, %547 : vector<32x1xf32>
    %554 = arith.subf %552, %553 : vector<32x1xf32>
    %cst_187 = arith.constant 0.000000e+00 : f32
    %555 = vector.broadcast %cst_187 : f32 to vector<32x1xf32>
    %556 = arith.maximumf %554, %555 : vector<32x1xf32>
    %cst_188 = arith.constant 9.99999974E-6 : f32
    %557 = vector.broadcast %cst_188 : f32 to vector<32x1xf32>
    %558 = arith.addf %556, %557 : vector<32x1xf32>
    %559 = math.rsqrt %558 : vector<32x1xf32>
    %560 = vector.broadcast %559 : vector<32x1xf32> to vector<32x32xf32>
    %561 = vector.broadcast %540 : vector<1x32xf32> to vector<32x32xf32>
    %562 = arith.mulf %560, %561 : vector<32x32xf32>
    %563 = arith.mulf %537, %562 : vector<32x32xf32>
    %564 = vector.broadcast %547 : vector<32x1xf32> to vector<32x32xf32>
    %565 = arith.mulf %564, %562 : vector<32x32xf32>
    %566 = vector.broadcast %543 : vector<1x32xf32> to vector<32x32xf32>
    %567 = arith.subf %566, %565 : vector<32x32xf32>
    %568 = arith.addf %563, %567 : vector<32x32xf32>
    %569 = vector.shape_cast %568 : vector<32x32xf32> to vector<2x16x32xf32>
    %cst_189 = arith.constant dense<0.000000e+00> : vector<2x32xf32>
    %570 = vector.multi_reduction <add>, %569, %cst_189 [1] : vector<2x16x32xf32> to vector<2x32xf32>
    %571 = vector.shape_cast %570 : vector<2x32xf32> to vector<2x1x32xf32>
    %572 = vector.shape_cast %571 : vector<2x1x32xf32> to vector<2x32xf32>
    %cst_190 = arith.constant 6.250000e-02 : f32
    %573 = vector.broadcast %cst_190 : f32 to vector<2x32xf32>
    %574 = arith.mulf %572, %573 : vector<2x32xf32>
    %575 = arith.truncf %574 : vector<2x32xf32> to vector<2x32xbf16>
    %c0_191 = arith.constant 0 : index
    %c0_192 = arith.constant 0 : index
    %576 = vector.load %arg8[%c0_191, %c0_192] : memref<32x128xbf16, #tpu.memory_space<vmem>>, vector<32x128xbf16>
    %cst_193 = arith.constant dense<0.000000e+00> : vector<2x128xf32>
    %577 = tpu.matmul %575, %576, %cst_193 {dimension_numbers = #tpu.dot_dimension_numbers<[1], [0], [0], [1], [0, 0, 1, 1], [], []>} : vector<2x32xbf16>, vector<32x128xbf16>, vector<2x128xf32> -> vector<2x128xf32>
    %c3_194 = arith.constant 3 : index
    %c0_195 = arith.constant 0 : index
    %578 = vector.load %arg2[%c3_194, %c0_195] : memref<36x128xf32, #tpu.memory_space<vmem>>, vector<1x128xf32>
    %579 = vector.shape_cast %578 : vector<1x128xf32> to vector<128xf32>
    %580 = vector.shape_cast %579 : vector<128xf32> to vector<1x128xf32>
    %581 = vector.broadcast %580 : vector<1x128xf32> to vector<2x128xf32>
    %582 = arith.addf %577, %581 : vector<2x128xf32>
    %c0_196 = arith.constant 0 : index
    %c0_197 = arith.constant 0 : index
    %583 = vector.load %arg9[%c0_196, %c0_197] : memref<2x128xf32, #tpu.memory_space<vmem>>, vector<2x128xf32>
    tpu.vector_store %arg9[%c0_196, %c0_197], %582 {strides = array<i32>} : memref<2x128xf32, #tpu.memory_space<vmem>>, vector<2x128xf32>,
    return
  }
  func.func @transform_0(%arg0: i32) -> (i32, i32, i32) {
    %c0_i32 = arith.constant 0 : i32
    %c0_i32_0 = arith.constant 0 : i32
    %c0_i32_1 = arith.constant 0 : i32
    return %arg0, %c0_i32, %c0_i32_0 : i32, i32, i32
  }
  func.func @transform_1(%arg0: i32) -> (i32, i32) {
    %c0_i32 = arith.constant 0 : i32
    %c0_i32_0 = arith.constant 0 : i32
    %c0_i32_1 = arith.constant 0 : i32
    return %c0_i32, %c0_i32_0 : i32, i32
  }
  func.func @transform_2(%arg0: i32) -> (i32, i32) {
    %c0_i32 = arith.constant 0 : i32
    %c0_i32_0 = arith.constant 0 : i32
    %c0_i32_1 = arith.constant 0 : i32
    return %c0_i32, %c0_i32_0 : i32, i32
  }
  func.func @transform_3(%arg0: i32) -> (i32, i32, i32) {
    %c0_i32 = arith.constant 0 : i32
    %c0_i32_0 = arith.constant 0 : i32
    %c0_i32_1 = arith.constant 0 : i32
    %c0_i32_2 = arith.constant 0 : i32
    return %c0_i32, %c0_i32_0, %c0_i32_1 : i32, i32, i32
  }
  func.func @transform_4(%arg0: i32) -> (i32, i32, i32) {
    %c0_i32 = arith.constant 0 : i32
    %c0_i32_0 = arith.constant 0 : i32
    %c0_i32_1 = arith.constant 0 : i32
    %c0_i32_2 = arith.constant 0 : i32
    return %c0_i32, %c0_i32_0, %c0_i32_1 : i32, i32, i32
  }
  func.func @transform_5(%arg0: i32) -> (i32, i32, i32) {
    %c0_i32 = arith.constant 0 : i32
    %c0_i32_0 = arith.constant 0 : i32
    %c0_i32_1 = arith.constant 0 : i32
    %c0_i32_2 = arith.constant 0 : i32
    return %c0_i32, %c0_i32_0, %c0_i32_1 : i32, i32, i32
  }
  func.func @transform_6(%arg0: i32) -> (i32, i32, i32) {
    %c0_i32 = arith.constant 0 : i32
    %c0_i32_0 = arith.constant 0 : i32
    %c0_i32_1 = arith.constant 0 : i32
    %c0_i32_2 = arith.constant 0 : i32
    return %c0_i32, %c0_i32_0, %c0_i32_1 : i32, i32, i32
  }
  func.func @transform_7(%arg0: i32) -> (i32, i32) {
    %c0_i32 = arith.constant 0 : i32
    %c0_i32_0 = arith.constant 0 : i32
    %c0_i32_1 = arith.constant 0 : i32
    return %c0_i32, %c0_i32_0 : i32, i32
  }
  func.func @transform_8(%arg0: i32) -> (i32, i32) {
    %c0_i32 = arith.constant 0 : i32
    %c0_i32_0 = arith.constant 0 : i32
    return %arg0, %c0_i32 : i32, i32
  }
}

module attributes {stable_mosaic.version = 11 : i64} {
  func.func @mixer_kernel(%arg0: i32, %arg1: memref<2x16x64xf32, #tpu.memory_space<vmem>>, %arg2: memref<36x128xf32, #tpu.memory_space<vmem>>, %arg3: memref<4x112x1xf32, #tpu.memory_space<vmem>>, %arg4: memref<64x32xbf16, #tpu.memory_space<vmem>>, %arg5: memref<4x32x128xbf16, #tpu.memory_space<vmem>>, %arg6: memref<4x128x32xbf16, #tpu.memory_space<vmem>>, %arg7: memref<4x64x16xbf16, #tpu.memory_space<vmem>>, %arg8: memref<4x16x64xbf16, #tpu.memory_space<vmem>>, %arg9: memref<32x128xbf16, #tpu.memory_space<vmem>>, %arg10: memref<2x128xf32, #tpu.memory_space<vmem>>) attributes {dimension_semantics = [#tpu.dimension_semantics<parallel>], iteration_bounds = array<i64: 1>, scalar_prefetch = 0 : i64, scratch_operands = 0 : i64, tpu.core_type = #tpu.core_type<tc>, window_params = [{transform_indices = @transform_0, window_bounds = array<i64: 2, 16, 64>}, {pipeline_mode = #tpu.pipeline_mode<synchronous>, transform_indices = @transform_1, window_bounds = array<i64: 36, 128>}, {pipeline_mode = #tpu.pipeline_mode<synchronous>, transform_indices = @transform_2, window_bounds = array<i64: 4, 112, 1>}, {pipeline_mode = #tpu.pipeline_mode<synchronous>, transform_indices = @transform_3, window_bounds = array<i64: 64, 32>}, {pipeline_mode = #tpu.pipeline_mode<synchronous>, transform_indices = @transform_4, window_bounds = array<i64: 4, 32, 128>}, {pipeline_mode = #tpu.pipeline_mode<synchronous>, transform_indices = @transform_5, window_bounds = array<i64: 4, 128, 32>}, {pipeline_mode = #tpu.pipeline_mode<synchronous>, transform_indices = @transform_6, window_bounds = array<i64: 4, 64, 16>}, {pipeline_mode = #tpu.pipeline_mode<synchronous>, transform_indices = @transform_7, window_bounds = array<i64: 4, 16, 64>}, {pipeline_mode = #tpu.pipeline_mode<synchronous>, transform_indices = @transform_8, window_bounds = array<i64: 32, 128>}, {transform_indices = @transform_9, window_bounds = array<i64: 2, 128>}]} {
    %c0 = arith.constant 0 : index
    %c0_0 = arith.constant 0 : index
    %c0_1 = arith.constant 0 : index
    %0 = vector.load %arg1[%c0, %c0_0, %c0_1] : memref<2x16x64xf32, #tpu.memory_space<vmem>>, vector<2x16x64xf32>
    %1 = vector.shape_cast %0 : vector<2x16x64xf32> to vector<32x64xf32>
    %2 = arith.truncf %1 : vector<32x64xf32> to vector<32x64xbf16>
    %c0_2 = arith.constant 0 : index
    %c0_3 = arith.constant 0 : index
    %3 = vector.load %arg4[%c0_2, %c0_3] : memref<64x32xbf16, #tpu.memory_space<vmem>>, vector<64x32xbf16>
    %cst = arith.constant dense<0.000000e+00> : vector<32x32xf32>
    %4 = tpu.matmul %2, %3, %cst {dimension_numbers = #tpu.dot_dimension_numbers<[1], [0], [0], [1], [0, 0, 1, 1], [], []>} : vector<32x64xbf16>, vector<64x32xbf16>, vector<32x32xf32> -> vector<32x32xf32>
    %c0_4 = arith.constant 0 : index
    %c0_5 = arith.constant 0 : index
    %5 = vector.load %arg2[%c0_4, %c0_5] : memref<36x128xf32, #tpu.memory_space<vmem>>, vector<1x32xf32>
    %6 = vector.shape_cast %5 : vector<1x32xf32> to vector<32xf32>
    %7 = vector.shape_cast %6 : vector<32xf32> to vector<1x32xf32>
    %8 = vector.broadcast %7 : vector<1x32xf32> to vector<32x32xf32>
    %9 = arith.addf %4, %8 : vector<32x32xf32>
    %c4 = arith.constant 4 : index
    %c0_6 = arith.constant 0 : index
    %10 = vector.load %arg2[%c4, %c0_6] : memref<36x128xf32, #tpu.memory_space<vmem>>, vector<1x32xf32>
    %11 = vector.shape_cast %10 : vector<1x32xf32> to vector<32xf32>
    %12 = vector.shape_cast %11 : vector<32xf32> to vector<1x32xf32>
    %c5 = arith.constant 5 : index
    %c0_7 = arith.constant 0 : index
    %13 = vector.load %arg2[%c5, %c0_7] : memref<36x128xf32, #tpu.memory_space<vmem>>, vector<1x32xf32>
    %14 = vector.shape_cast %13 : vector<1x32xf32> to vector<32xf32>
    %15 = vector.shape_cast %14 : vector<32xf32> to vector<1x32xf32>
    %cst_8 = arith.constant dense<0.000000e+00> : vector<32xf32>
    %16 = vector.multi_reduction <add>, %9, %cst_8 [1] : vector<32x32xf32> to vector<32xf32>
    %17 = vector.shape_cast %16 : vector<32xf32> to vector<32x1xf32>
    %cst_9 = arith.constant 3.125000e-02 : f32
    %18 = vector.broadcast %cst_9 : f32 to vector<32x1xf32>
    %19 = arith.mulf %17, %18 : vector<32x1xf32>
    %20 = arith.mulf %9, %9 : vector<32x32xf32>
    %cst_10 = arith.constant dense<0.000000e+00> : vector<32xf32>
    %21 = vector.multi_reduction <add>, %20, %cst_10 [1] : vector<32x32xf32> to vector<32xf32>
    %22 = vector.shape_cast %21 : vector<32xf32> to vector<32x1xf32>
    %cst_11 = arith.constant 3.125000e-02 : f32
    %23 = vector.broadcast %cst_11 : f32 to vector<32x1xf32>
    %24 = arith.mulf %22, %23 : vector<32x1xf32>
    %25 = arith.mulf %19, %19 : vector<32x1xf32>
    %26 = arith.subf %24, %25 : vector<32x1xf32>
    %cst_12 = arith.constant 0.000000e+00 : f32
    %27 = vector.broadcast %cst_12 : f32 to vector<32x1xf32>
    %28 = arith.maximumf %26, %27 : vector<32x1xf32>
    %cst_13 = arith.constant 9.99999974E-6 : f32
    %29 = vector.broadcast %cst_13 : f32 to vector<32x1xf32>
    %30 = arith.addf %28, %29 : vector<32x1xf32>
    %31 = math.rsqrt %30 : vector<32x1xf32>
    %32 = vector.broadcast %31 : vector<32x1xf32> to vector<32x32xf32>
    %33 = vector.broadcast %12 : vector<1x32xf32> to vector<32x32xf32>
    %34 = arith.mulf %32, %33 : vector<32x32xf32>
    %35 = arith.mulf %9, %34 : vector<32x32xf32>
    %36 = vector.broadcast %19 : vector<32x1xf32> to vector<32x32xf32>
    %37 = arith.mulf %36, %34 : vector<32x32xf32>
    %38 = vector.broadcast %15 : vector<1x32xf32> to vector<32x32xf32>
    %39 = arith.subf %38, %37 : vector<32x32xf32>
    %40 = arith.addf %35, %39 : vector<32x32xf32>
    %41 = arith.truncf %40 : vector<32x32xf32> to vector<32x32xbf16>
    %c0_14 = arith.constant 0 : index
    %c0_15 = arith.constant 0 : index
    %c0_16 = arith.constant 0 : index
    %42 = vector.load %arg5[%c0_14, %c0_15, %c0_16] : memref<4x32x128xbf16, #tpu.memory_space<vmem>>, vector<1x32x128xbf16>
    %43 = vector.shape_cast %42 : vector<1x32x128xbf16> to vector<32x128xbf16>
    %cst_17 = arith.constant dense<0.000000e+00> : vector<32x128xf32>
    %44 = tpu.matmul %41, %43, %cst_17 {dimension_numbers = #tpu.dot_dimension_numbers<[1], [0], [0], [1], [0, 0, 1, 1], [], []>} : vector<32x32xbf16>, vector<32x128xbf16>, vector<32x128xf32> -> vector<32x128xf32>
    %c6 = arith.constant 6 : index
    %c0_18 = arith.constant 0 : index
    %45 = vector.load %arg2[%c6, %c0_18] : memref<36x128xf32, #tpu.memory_space<vmem>>, vector<1x128xf32>
    %46 = vector.shape_cast %45 : vector<1x128xf32> to vector<128xf32>
    %47 = vector.shape_cast %46 : vector<128xf32> to vector<1x128xf32>
    %48 = vector.broadcast %47 : vector<1x128xf32> to vector<32x128xf32>
    %49 = arith.addf %44, %48 : vector<32x128xf32>
    %50 = arith.mulf %49, %49 : vector<32x128xf32>
    %51 = arith.mulf %49, %50 : vector<32x128xf32>
    %cst_19 = arith.constant 4.471500e-02 : f32
    %52 = vector.broadcast %cst_19 : f32 to vector<32x128xf32>
    %53 = arith.mulf %52, %51 : vector<32x128xf32>
    %54 = arith.addf %49, %53 : vector<32x128xf32>
    %cst_20 = arith.constant 0.797884583 : f32
    %55 = vector.broadcast %cst_20 : f32 to vector<32x128xf32>
    %56 = arith.mulf %55, %54 : vector<32x128xf32>
    %57 = math.tanh %56 : vector<32x128xf32>
    %cst_21 = arith.constant 1.000000e+00 : f32
    %58 = vector.broadcast %cst_21 : f32 to vector<32x128xf32>
    %59 = arith.addf %58, %57 : vector<32x128xf32>
    %cst_22 = arith.constant 5.000000e-01 : f32
    %60 = vector.broadcast %cst_22 : f32 to vector<32x128xf32>
    %61 = arith.mulf %60, %59 : vector<32x128xf32>
    %62 = arith.mulf %49, %61 : vector<32x128xf32>
    %63 = arith.truncf %62 : vector<32x128xf32> to vector<32x128xbf16>
    %c0_23 = arith.constant 0 : index
    %c0_24 = arith.constant 0 : index
    %c0_25 = arith.constant 0 : index
    %64 = vector.load %arg6[%c0_23, %c0_24, %c0_25] : memref<4x128x32xbf16, #tpu.memory_space<vmem>>, vector<1x128x32xbf16>
    %65 = vector.shape_cast %64 : vector<1x128x32xbf16> to vector<128x32xbf16>
    %cst_26 = arith.constant dense<0.000000e+00> : vector<32x32xf32>
    %66 = tpu.matmul %63, %65, %cst_26 {dimension_numbers = #tpu.dot_dimension_numbers<[1], [0], [0], [1], [0, 0, 1, 1], [], []>} : vector<32x128xbf16>, vector<128x32xbf16>, vector<32x32xf32> -> vector<32x32xf32>
    %c7 = arith.constant 7 : index
    %c0_27 = arith.constant 0 : index
    %67 = vector.load %arg2[%c7, %c0_27] : memref<36x128xf32, #tpu.memory_space<vmem>>, vector<1x32xf32>
    %68 = vector.shape_cast %67 : vector<1x32xf32> to vector<32xf32>
    %69 = vector.shape_cast %68 : vector<32xf32> to vector<1x32xf32>
    %70 = vector.broadcast %69 : vector<1x32xf32> to vector<32x32xf32>
    %71 = arith.addf %66, %70 : vector<32x32xf32>
    %72 = arith.addf %9, %71 : vector<32x32xf32>
    %73 = vector.shape_cast %72 : vector<32x32xf32> to vector<2x16x32xf32>
    %c0_28 = arith.constant 0 : index
    %c0_29 = arith.constant 0 : index
    %c0_30 = arith.constant 0 : index
    %74 = vector.load %arg3[%c0_28, %c0_29, %c0_30] : memref<4x112x1xf32, #tpu.memory_space<vmem>>, vector<1x16x1xf32>
    %75 = vector.shape_cast %74 : vector<1x16x1xf32> to vector<16x1xf32>
    %76 = vector.shape_cast %75 : vector<16x1xf32> to vector<1x16x1xf32>
    %c0_31 = arith.constant 0 : index
    %c16 = arith.constant 16 : index
    %c0_32 = arith.constant 0 : index
    %77 = vector.load %arg3[%c0_31, %c16, %c0_32] : memref<4x112x1xf32, #tpu.memory_space<vmem>>, vector<1x16x1xf32>
    %78 = vector.shape_cast %77 : vector<1x16x1xf32> to vector<16x1xf32>
    %79 = vector.shape_cast %78 : vector<16x1xf32> to vector<1x16x1xf32>
    %cst_33 = arith.constant dense<0.000000e+00> : vector<2x32xf32>
    %80 = vector.multi_reduction <add>, %73, %cst_33 [1] : vector<2x16x32xf32> to vector<2x32xf32>
    %81 = vector.shape_cast %80 : vector<2x32xf32> to vector<2x1x32xf32>
    %cst_34 = arith.constant 6.250000e-02 : f32
    %82 = vector.broadcast %cst_34 : f32 to vector<2x1x32xf32>
    %83 = arith.mulf %81, %82 : vector<2x1x32xf32>
    %84 = arith.mulf %73, %73 : vector<2x16x32xf32>
    %cst_35 = arith.constant dense<0.000000e+00> : vector<2x32xf32>
    %85 = vector.multi_reduction <add>, %84, %cst_35 [1] : vector<2x16x32xf32> to vector<2x32xf32>
    %86 = vector.shape_cast %85 : vector<2x32xf32> to vector<2x1x32xf32>
    %cst_36 = arith.constant 6.250000e-02 : f32
    %87 = vector.broadcast %cst_36 : f32 to vector<2x1x32xf32>
    %88 = arith.mulf %86, %87 : vector<2x1x32xf32>
    %89 = arith.mulf %83, %83 : vector<2x1x32xf32>
    %90 = arith.subf %88, %89 : vector<2x1x32xf32>
    %cst_37 = arith.constant 0.000000e+00 : f32
    %91 = vector.broadcast %cst_37 : f32 to vector<2x1x32xf32>
    %92 = arith.maximumf %90, %91 : vector<2x1x32xf32>
    %cst_38 = arith.constant 9.99999974E-6 : f32
    %93 = vector.broadcast %cst_38 : f32 to vector<2x1x32xf32>
    %94 = arith.addf %92, %93 : vector<2x1x32xf32>
    %95 = math.rsqrt %94 : vector<2x1x32xf32>
    %96 = vector.broadcast %95 : vector<2x1x32xf32> to vector<2x16x32xf32>
    %97 = vector.broadcast %76 : vector<1x16x1xf32> to vector<2x16x32xf32>
    %98 = arith.mulf %96, %97 : vector<2x16x32xf32>
    %99 = arith.mulf %73, %98 : vector<2x16x32xf32>
    %100 = vector.broadcast %83 : vector<2x1x32xf32> to vector<2x16x32xf32>
    %101 = arith.mulf %100, %98 : vector<2x16x32xf32>
    %102 = vector.broadcast %79 : vector<1x16x1xf32> to vector<2x16x32xf32>
    %103 = arith.subf %102, %101 : vector<2x16x32xf32>
    %104 = arith.addf %99, %103 : vector<2x16x32xf32>
    %c0_39 = arith.constant 0 : index
    %c0_40 = arith.constant 0 : index
    %c0_41 = arith.constant 0 : index
    %105 = vector.load %arg7[%c0_39, %c0_40, %c0_41] : memref<4x64x16xbf16, #tpu.memory_space<vmem>>, vector<1x64x16xbf16>
    %106 = vector.shape_cast %105 : vector<1x64x16xbf16> to vector<64x16xbf16>
    %107 = vector.shape_cast %106 : vector<64x16xbf16> to vector<1x64x16xbf16>
    %108 = vector.broadcast %107 : vector<1x64x16xbf16> to vector<2x64x16xbf16>
    %109 = arith.truncf %104 : vector<2x16x32xf32> to vector<2x16x32xbf16>
    %cst_42 = arith.constant dense<0.000000e+00> : vector<2x64x32xf32>
    %110 = tpu.matmul %108, %109, %cst_42 {dimension_numbers = #tpu.dot_dimension_numbers<[2], [1], [1], [2], [0, 0, 0, 1, 1, 2], [0], [0]>} : vector<2x64x16xbf16>, vector<2x16x32xbf16>, vector<2x64x32xf32> -> vector<2x64x32xf32>
    %c0_43 = arith.constant 0 : index
    %c32 = arith.constant 32 : index
    %c0_44 = arith.constant 0 : index
    %111 = vector.load %arg3[%c0_43, %c32, %c0_44] : memref<4x112x1xf32, #tpu.memory_space<vmem>>, vector<1x64x1xf32>
    %112 = vector.shape_cast %111 : vector<1x64x1xf32> to vector<64x1xf32>
    %113 = vector.shape_cast %112 : vector<64x1xf32> to vector<1x64x1xf32>
    %114 = vector.broadcast %113 : vector<1x64x1xf32> to vector<2x64x32xf32>
    %115 = arith.addf %110, %114 : vector<2x64x32xf32>
    %116 = arith.mulf %115, %115 : vector<2x64x32xf32>
    %117 = arith.mulf %115, %116 : vector<2x64x32xf32>
    %cst_45 = arith.constant 4.471500e-02 : f32
    %118 = vector.broadcast %cst_45 : f32 to vector<2x64x32xf32>
    %119 = arith.mulf %118, %117 : vector<2x64x32xf32>
    %120 = arith.addf %115, %119 : vector<2x64x32xf32>
    %cst_46 = arith.constant 0.797884583 : f32
    %121 = vector.broadcast %cst_46 : f32 to vector<2x64x32xf32>
    %122 = arith.mulf %121, %120 : vector<2x64x32xf32>
    %123 = math.tanh %122 : vector<2x64x32xf32>
    %cst_47 = arith.constant 1.000000e+00 : f32
    %124 = vector.broadcast %cst_47 : f32 to vector<2x64x32xf32>
    %125 = arith.addf %124, %123 : vector<2x64x32xf32>
    %cst_48 = arith.constant 5.000000e-01 : f32
    %126 = vector.broadcast %cst_48 : f32 to vector<2x64x32xf32>
    %127 = arith.mulf %126, %125 : vector<2x64x32xf32>
    %128 = arith.mulf %115, %127 : vector<2x64x32xf32>
    %c0_49 = arith.constant 0 : index
    %c0_50 = arith.constant 0 : index
    %c0_51 = arith.constant 0 : index
    %129 = vector.load %arg8[%c0_49, %c0_50, %c0_51] : memref<4x16x64xbf16, #tpu.memory_space<vmem>>, vector<1x16x64xbf16>
    %130 = vector.shape_cast %129 : vector<1x16x64xbf16> to vector<16x64xbf16>
    %131 = vector.shape_cast %130 : vector<16x64xbf16> to vector<1x16x64xbf16>
    %132 = vector.broadcast %131 : vector<1x16x64xbf16> to vector<2x16x64xbf16>
    %133 = arith.truncf %128 : vector<2x64x32xf32> to vector<2x64x32xbf16>
    %cst_52 = arith.constant dense<0.000000e+00> : vector<2x16x32xf32>
    %134 = tpu.matmul %132, %133, %cst_52 {dimension_numbers = #tpu.dot_dimension_numbers<[2], [1], [1], [2], [0, 0, 0, 1, 1, 2], [0], [0]>} : vector<2x16x64xbf16>, vector<2x64x32xbf16>, vector<2x16x32xf32> -> vector<2x16x32xf32>
    %c0_53 = arith.constant 0 : index
    %c96 = arith.constant 96 : index
    %c0_54 = arith.constant 0 : index
    %135 = vector.load %arg3[%c0_53, %c96, %c0_54] : memref<4x112x1xf32, #tpu.memory_space<vmem>>, vector<1x16x1xf32>
    %136 = vector.shape_cast %135 : vector<1x16x1xf32> to vector<16x1xf32>
    %137 = vector.shape_cast %136 : vector<16x1xf32> to vector<1x16x1xf32>
    %138 = vector.broadcast %137 : vector<1x16x1xf32> to vector<2x16x32xf32>
    %139 = arith.addf %134, %138 : vector<2x16x32xf32>
    %140 = vector.shape_cast %139 : vector<2x16x32xf32> to vector<32x32xf32>
    %141 = arith.addf %72, %140 : vector<32x32xf32>
    %c12 = arith.constant 12 : index
    %c0_55 = arith.constant 0 : index
    %142 = vector.load %arg2[%c12, %c0_55] : memref<36x128xf32, #tpu.memory_space<vmem>>, vector<1x32xf32>
    %143 = vector.shape_cast %142 : vector<1x32xf32> to vector<32xf32>
    %144 = vector.shape_cast %143 : vector<32xf32> to vector<1x32xf32>
    %c13 = arith.constant 13 : index
    %c0_56 = arith.constant 0 : index
    %145 = vector.load %arg2[%c13, %c0_56] : memref<36x128xf32, #tpu.memory_space<vmem>>, vector<1x32xf32>
    %146 = vector.shape_cast %145 : vector<1x32xf32> to vector<32xf32>
    %147 = vector.shape_cast %146 : vector<32xf32> to vector<1x32xf32>
    %cst_57 = arith.constant dense<0.000000e+00> : vector<32xf32>
    %148 = vector.multi_reduction <add>, %141, %cst_57 [1] : vector<32x32xf32> to vector<32xf32>
    %149 = vector.shape_cast %148 : vector<32xf32> to vector<32x1xf32>
    %cst_58 = arith.constant 3.125000e-02 : f32
    %150 = vector.broadcast %cst_58 : f32 to vector<32x1xf32>
    %151 = arith.mulf %149, %150 : vector<32x1xf32>
    %152 = arith.mulf %141, %141 : vector<32x32xf32>
    %cst_59 = arith.constant dense<0.000000e+00> : vector<32xf32>
    %153 = vector.multi_reduction <add>, %152, %cst_59 [1] : vector<32x32xf32> to vector<32xf32>
    %154 = vector.shape_cast %153 : vector<32xf32> to vector<32x1xf32>
    %cst_60 = arith.constant 3.125000e-02 : f32
    %155 = vector.broadcast %cst_60 : f32 to vector<32x1xf32>
    %156 = arith.mulf %154, %155 : vector<32x1xf32>
    %157 = arith.mulf %151, %151 : vector<32x1xf32>
    %158 = arith.subf %156, %157 : vector<32x1xf32>
    %cst_61 = arith.constant 0.000000e+00 : f32
    %159 = vector.broadcast %cst_61 : f32 to vector<32x1xf32>
    %160 = arith.maximumf %158, %159 : vector<32x1xf32>
    %cst_62 = arith.constant 9.99999974E-6 : f32
    %161 = vector.broadcast %cst_62 : f32 to vector<32x1xf32>
    %162 = arith.addf %160, %161 : vector<32x1xf32>
    %163 = math.rsqrt %162 : vector<32x1xf32>
    %164 = vector.broadcast %163 : vector<32x1xf32> to vector<32x32xf32>
    %165 = vector.broadcast %144 : vector<1x32xf32> to vector<32x32xf32>
    %166 = arith.mulf %164, %165 : vector<32x32xf32>
    %167 = arith.mulf %141, %166 : vector<32x32xf32>
    %168 = vector.broadcast %151 : vector<32x1xf32> to vector<32x32xf32>
    %169 = arith.mulf %168, %166 : vector<32x32xf32>
    %170 = vector.broadcast %147 : vector<1x32xf32> to vector<32x32xf32>
    %171 = arith.subf %170, %169 : vector<32x32xf32>
    %172 = arith.addf %167, %171 : vector<32x32xf32>
    %173 = arith.truncf %172 : vector<32x32xf32> to vector<32x32xbf16>
    %c1 = arith.constant 1 : index
    %c0_63 = arith.constant 0 : index
    %c0_64 = arith.constant 0 : index
    %174 = vector.load %arg5[%c1, %c0_63, %c0_64] : memref<4x32x128xbf16, #tpu.memory_space<vmem>>, vector<1x32x128xbf16>
    %175 = vector.shape_cast %174 : vector<1x32x128xbf16> to vector<32x128xbf16>
    %cst_65 = arith.constant dense<0.000000e+00> : vector<32x128xf32>
    %176 = tpu.matmul %173, %175, %cst_65 {dimension_numbers = #tpu.dot_dimension_numbers<[1], [0], [0], [1], [0, 0, 1, 1], [], []>} : vector<32x32xbf16>, vector<32x128xbf16>, vector<32x128xf32> -> vector<32x128xf32>
    %c14 = arith.constant 14 : index
    %c0_66 = arith.constant 0 : index
    %177 = vector.load %arg2[%c14, %c0_66] : memref<36x128xf32, #tpu.memory_space<vmem>>, vector<1x128xf32>
    %178 = vector.shape_cast %177 : vector<1x128xf32> to vector<128xf32>
    %179 = vector.shape_cast %178 : vector<128xf32> to vector<1x128xf32>
    %180 = vector.broadcast %179 : vector<1x128xf32> to vector<32x128xf32>
    %181 = arith.addf %176, %180 : vector<32x128xf32>
    %182 = arith.mulf %181, %181 : vector<32x128xf32>
    %183 = arith.mulf %181, %182 : vector<32x128xf32>
    %cst_67 = arith.constant 4.471500e-02 : f32
    %184 = vector.broadcast %cst_67 : f32 to vector<32x128xf32>
    %185 = arith.mulf %184, %183 : vector<32x128xf32>
    %186 = arith.addf %181, %185 : vector<32x128xf32>
    %cst_68 = arith.constant 0.797884583 : f32
    %187 = vector.broadcast %cst_68 : f32 to vector<32x128xf32>
    %188 = arith.mulf %187, %186 : vector<32x128xf32>
    %189 = math.tanh %188 : vector<32x128xf32>
    %cst_69 = arith.constant 1.000000e+00 : f32
    %190 = vector.broadcast %cst_69 : f32 to vector<32x128xf32>
    %191 = arith.addf %190, %189 : vector<32x128xf32>
    %cst_70 = arith.constant 5.000000e-01 : f32
    %192 = vector.broadcast %cst_70 : f32 to vector<32x128xf32>
    %193 = arith.mulf %192, %191 : vector<32x128xf32>
    %194 = arith.mulf %181, %193 : vector<32x128xf32>
    %195 = arith.truncf %194 : vector<32x128xf32> to vector<32x128xbf16>
    %c1_71 = arith.constant 1 : index
    %c0_72 = arith.constant 0 : index
    %c0_73 = arith.constant 0 : index
    %196 = vector.load %arg6[%c1_71, %c0_72, %c0_73] : memref<4x128x32xbf16, #tpu.memory_space<vmem>>, vector<1x128x32xbf16>
    %197 = vector.shape_cast %196 : vector<1x128x32xbf16> to vector<128x32xbf16>
    %cst_74 = arith.constant dense<0.000000e+00> : vector<32x32xf32>
    %198 = tpu.matmul %195, %197, %cst_74 {dimension_numbers = #tpu.dot_dimension_numbers<[1], [0], [0], [1], [0, 0, 1, 1], [], []>} : vector<32x128xbf16>, vector<128x32xbf16>, vector<32x32xf32> -> vector<32x32xf32>
    %c15 = arith.constant 15 : index
    %c0_75 = arith.constant 0 : index
    %199 = vector.load %arg2[%c15, %c0_75] : memref<36x128xf32, #tpu.memory_space<vmem>>, vector<1x32xf32>
    %200 = vector.shape_cast %199 : vector<1x32xf32> to vector<32xf32>
    %201 = vector.shape_cast %200 : vector<32xf32> to vector<1x32xf32>
    %202 = vector.broadcast %201 : vector<1x32xf32> to vector<32x32xf32>
    %203 = arith.addf %198, %202 : vector<32x32xf32>
    %204 = arith.addf %141, %203 : vector<32x32xf32>
    %205 = vector.shape_cast %204 : vector<32x32xf32> to vector<2x16x32xf32>
    %c1_76 = arith.constant 1 : index
    %c0_77 = arith.constant 0 : index
    %c0_78 = arith.constant 0 : index
    %206 = vector.load %arg3[%c1_76, %c0_77, %c0_78] : memref<4x112x1xf32, #tpu.memory_space<vmem>>, vector<1x16x1xf32>
    %207 = vector.shape_cast %206 : vector<1x16x1xf32> to vector<16x1xf32>
    %208 = vector.shape_cast %207 : vector<16x1xf32> to vector<1x16x1xf32>
    %c1_79 = arith.constant 1 : index
    %c16_80 = arith.constant 16 : index
    %c0_81 = arith.constant 0 : index
    %209 = vector.load %arg3[%c1_79, %c16_80, %c0_81] : memref<4x112x1xf32, #tpu.memory_space<vmem>>, vector<1x16x1xf32>
    %210 = vector.shape_cast %209 : vector<1x16x1xf32> to vector<16x1xf32>
    %211 = vector.shape_cast %210 : vector<16x1xf32> to vector<1x16x1xf32>
    %cst_82 = arith.constant dense<0.000000e+00> : vector<2x32xf32>
    %212 = vector.multi_reduction <add>, %205, %cst_82 [1] : vector<2x16x32xf32> to vector<2x32xf32>
    %213 = vector.shape_cast %212 : vector<2x32xf32> to vector<2x1x32xf32>
    %cst_83 = arith.constant 6.250000e-02 : f32
    %214 = vector.broadcast %cst_83 : f32 to vector<2x1x32xf32>
    %215 = arith.mulf %213, %214 : vector<2x1x32xf32>
    %216 = arith.mulf %205, %205 : vector<2x16x32xf32>
    %cst_84 = arith.constant dense<0.000000e+00> : vector<2x32xf32>
    %217 = vector.multi_reduction <add>, %216, %cst_84 [1] : vector<2x16x32xf32> to vector<2x32xf32>
    %218 = vector.shape_cast %217 : vector<2x32xf32> to vector<2x1x32xf32>
    %cst_85 = arith.constant 6.250000e-02 : f32
    %219 = vector.broadcast %cst_85 : f32 to vector<2x1x32xf32>
    %220 = arith.mulf %218, %219 : vector<2x1x32xf32>
    %221 = arith.mulf %215, %215 : vector<2x1x32xf32>
    %222 = arith.subf %220, %221 : vector<2x1x32xf32>
    %cst_86 = arith.constant 0.000000e+00 : f32
    %223 = vector.broadcast %cst_86 : f32 to vector<2x1x32xf32>
    %224 = arith.maximumf %222, %223 : vector<2x1x32xf32>
    %cst_87 = arith.constant 9.99999974E-6 : f32
    %225 = vector.broadcast %cst_87 : f32 to vector<2x1x32xf32>
    %226 = arith.addf %224, %225 : vector<2x1x32xf32>
    %227 = math.rsqrt %226 : vector<2x1x32xf32>
    %228 = vector.broadcast %227 : vector<2x1x32xf32> to vector<2x16x32xf32>
    %229 = vector.broadcast %208 : vector<1x16x1xf32> to vector<2x16x32xf32>
    %230 = arith.mulf %228, %229 : vector<2x16x32xf32>
    %231 = arith.mulf %205, %230 : vector<2x16x32xf32>
    %232 = vector.broadcast %215 : vector<2x1x32xf32> to vector<2x16x32xf32>
    %233 = arith.mulf %232, %230 : vector<2x16x32xf32>
    %234 = vector.broadcast %211 : vector<1x16x1xf32> to vector<2x16x32xf32>
    %235 = arith.subf %234, %233 : vector<2x16x32xf32>
    %236 = arith.addf %231, %235 : vector<2x16x32xf32>
    %c1_88 = arith.constant 1 : index
    %c0_89 = arith.constant 0 : index
    %c0_90 = arith.constant 0 : index
    %237 = vector.load %arg7[%c1_88, %c0_89, %c0_90] : memref<4x64x16xbf16, #tpu.memory_space<vmem>>, vector<1x64x16xbf16>
    %238 = vector.shape_cast %237 : vector<1x64x16xbf16> to vector<64x16xbf16>
    %239 = vector.shape_cast %238 : vector<64x16xbf16> to vector<1x64x16xbf16>
    %240 = vector.broadcast %239 : vector<1x64x16xbf16> to vector<2x64x16xbf16>
    %241 = arith.truncf %236 : vector<2x16x32xf32> to vector<2x16x32xbf16>
    %cst_91 = arith.constant dense<0.000000e+00> : vector<2x64x32xf32>
    %242 = tpu.matmul %240, %241, %cst_91 {dimension_numbers = #tpu.dot_dimension_numbers<[2], [1], [1], [2], [0, 0, 0, 1, 1, 2], [0], [0]>} : vector<2x64x16xbf16>, vector<2x16x32xbf16>, vector<2x64x32xf32> -> vector<2x64x32xf32>
    %c1_92 = arith.constant 1 : index
    %c32_93 = arith.constant 32 : index
    %c0_94 = arith.constant 0 : index
    %243 = vector.load %arg3[%c1_92, %c32_93, %c0_94] : memref<4x112x1xf32, #tpu.memory_space<vmem>>, vector<1x64x1xf32>
    %244 = vector.shape_cast %243 : vector<1x64x1xf32> to vector<64x1xf32>
    %245 = vector.shape_cast %244 : vector<64x1xf32> to vector<1x64x1xf32>
    %246 = vector.broadcast %245 : vector<1x64x1xf32> to vector<2x64x32xf32>
    %247 = arith.addf %242, %246 : vector<2x64x32xf32>
    %248 = arith.mulf %247, %247 : vector<2x64x32xf32>
    %249 = arith.mulf %247, %248 : vector<2x64x32xf32>
    %cst_95 = arith.constant 4.471500e-02 : f32
    %250 = vector.broadcast %cst_95 : f32 to vector<2x64x32xf32>
    %251 = arith.mulf %250, %249 : vector<2x64x32xf32>
    %252 = arith.addf %247, %251 : vector<2x64x32xf32>
    %cst_96 = arith.constant 0.797884583 : f32
    %253 = vector.broadcast %cst_96 : f32 to vector<2x64x32xf32>
    %254 = arith.mulf %253, %252 : vector<2x64x32xf32>
    %255 = math.tanh %254 : vector<2x64x32xf32>
    %cst_97 = arith.constant 1.000000e+00 : f32
    %256 = vector.broadcast %cst_97 : f32 to vector<2x64x32xf32>
    %257 = arith.addf %256, %255 : vector<2x64x32xf32>
    %cst_98 = arith.constant 5.000000e-01 : f32
    %258 = vector.broadcast %cst_98 : f32 to vector<2x64x32xf32>
    %259 = arith.mulf %258, %257 : vector<2x64x32xf32>
    %260 = arith.mulf %247, %259 : vector<2x64x32xf32>
    %c1_99 = arith.constant 1 : index
    %c0_100 = arith.constant 0 : index
    %c0_101 = arith.constant 0 : index
    %261 = vector.load %arg8[%c1_99, %c0_100, %c0_101] : memref<4x16x64xbf16, #tpu.memory_space<vmem>>, vector<1x16x64xbf16>
    %262 = vector.shape_cast %261 : vector<1x16x64xbf16> to vector<16x64xbf16>
    %263 = vector.shape_cast %262 : vector<16x64xbf16> to vector<1x16x64xbf16>
    %264 = vector.broadcast %263 : vector<1x16x64xbf16> to vector<2x16x64xbf16>
    %265 = arith.truncf %260 : vector<2x64x32xf32> to vector<2x64x32xbf16>
    %cst_102 = arith.constant dense<0.000000e+00> : vector<2x16x32xf32>
    %266 = tpu.matmul %264, %265, %cst_102 {dimension_numbers = #tpu.dot_dimension_numbers<[2], [1], [1], [2], [0, 0, 0, 1, 1, 2], [0], [0]>} : vector<2x16x64xbf16>, vector<2x64x32xbf16>, vector<2x16x32xf32> -> vector<2x16x32xf32>
    %c1_103 = arith.constant 1 : index
    %c96_104 = arith.constant 96 : index
    %c0_105 = arith.constant 0 : index
    %267 = vector.load %arg3[%c1_103, %c96_104, %c0_105] : memref<4x112x1xf32, #tpu.memory_space<vmem>>, vector<1x16x1xf32>
    %268 = vector.shape_cast %267 : vector<1x16x1xf32> to vector<16x1xf32>
    %269 = vector.shape_cast %268 : vector<16x1xf32> to vector<1x16x1xf32>
    %270 = vector.broadcast %269 : vector<1x16x1xf32> to vector<2x16x32xf32>
    %271 = arith.addf %266, %270 : vector<2x16x32xf32>
    %272 = vector.shape_cast %271 : vector<2x16x32xf32> to vector<32x32xf32>
    %273 = arith.addf %204, %272 : vector<32x32xf32>
    %c20 = arith.constant 20 : index
    %c0_106 = arith.constant 0 : index
    %274 = vector.load %arg2[%c20, %c0_106] : memref<36x128xf32, #tpu.memory_space<vmem>>, vector<1x32xf32>
    %275 = vector.shape_cast %274 : vector<1x32xf32> to vector<32xf32>
    %276 = vector.shape_cast %275 : vector<32xf32> to vector<1x32xf32>
    %c21 = arith.constant 21 : index
    %c0_107 = arith.constant 0 : index
    %277 = vector.load %arg2[%c21, %c0_107] : memref<36x128xf32, #tpu.memory_space<vmem>>, vector<1x32xf32>
    %278 = vector.shape_cast %277 : vector<1x32xf32> to vector<32xf32>
    %279 = vector.shape_cast %278 : vector<32xf32> to vector<1x32xf32>
    %cst_108 = arith.constant dense<0.000000e+00> : vector<32xf32>
    %280 = vector.multi_reduction <add>, %273, %cst_108 [1] : vector<32x32xf32> to vector<32xf32>
    %281 = vector.shape_cast %280 : vector<32xf32> to vector<32x1xf32>
    %cst_109 = arith.constant 3.125000e-02 : f32
    %282 = vector.broadcast %cst_109 : f32 to vector<32x1xf32>
    %283 = arith.mulf %281, %282 : vector<32x1xf32>
    %284 = arith.mulf %273, %273 : vector<32x32xf32>
    %cst_110 = arith.constant dense<0.000000e+00> : vector<32xf32>
    %285 = vector.multi_reduction <add>, %284, %cst_110 [1] : vector<32x32xf32> to vector<32xf32>
    %286 = vector.shape_cast %285 : vector<32xf32> to vector<32x1xf32>
    %cst_111 = arith.constant 3.125000e-02 : f32
    %287 = vector.broadcast %cst_111 : f32 to vector<32x1xf32>
    %288 = arith.mulf %286, %287 : vector<32x1xf32>
    %289 = arith.mulf %283, %283 : vector<32x1xf32>
    %290 = arith.subf %288, %289 : vector<32x1xf32>
    %cst_112 = arith.constant 0.000000e+00 : f32
    %291 = vector.broadcast %cst_112 : f32 to vector<32x1xf32>
    %292 = arith.maximumf %290, %291 : vector<32x1xf32>
    %cst_113 = arith.constant 9.99999974E-6 : f32
    %293 = vector.broadcast %cst_113 : f32 to vector<32x1xf32>
    %294 = arith.addf %292, %293 : vector<32x1xf32>
    %295 = math.rsqrt %294 : vector<32x1xf32>
    %296 = vector.broadcast %295 : vector<32x1xf32> to vector<32x32xf32>
    %297 = vector.broadcast %276 : vector<1x32xf32> to vector<32x32xf32>
    %298 = arith.mulf %296, %297 : vector<32x32xf32>
    %299 = arith.mulf %273, %298 : vector<32x32xf32>
    %300 = vector.broadcast %283 : vector<32x1xf32> to vector<32x32xf32>
    %301 = arith.mulf %300, %298 : vector<32x32xf32>
    %302 = vector.broadcast %279 : vector<1x32xf32> to vector<32x32xf32>
    %303 = arith.subf %302, %301 : vector<32x32xf32>
    %304 = arith.addf %299, %303 : vector<32x32xf32>
    %305 = arith.truncf %304 : vector<32x32xf32> to vector<32x32xbf16>
    %c2 = arith.constant 2 : index
    %c0_114 = arith.constant 0 : index
    %c0_115 = arith.constant 0 : index
    %306 = vector.load %arg5[%c2, %c0_114, %c0_115] : memref<4x32x128xbf16, #tpu.memory_space<vmem>>, vector<1x32x128xbf16>
    %307 = vector.shape_cast %306 : vector<1x32x128xbf16> to vector<32x128xbf16>
    %cst_116 = arith.constant dense<0.000000e+00> : vector<32x128xf32>
    %308 = tpu.matmul %305, %307, %cst_116 {dimension_numbers = #tpu.dot_dimension_numbers<[1], [0], [0], [1], [0, 0, 1, 1], [], []>} : vector<32x32xbf16>, vector<32x128xbf16>, vector<32x128xf32> -> vector<32x128xf32>
    %c22 = arith.constant 22 : index
    %c0_117 = arith.constant 0 : index
    %309 = vector.load %arg2[%c22, %c0_117] : memref<36x128xf32, #tpu.memory_space<vmem>>, vector<1x128xf32>
    %310 = vector.shape_cast %309 : vector<1x128xf32> to vector<128xf32>
    %311 = vector.shape_cast %310 : vector<128xf32> to vector<1x128xf32>
    %312 = vector.broadcast %311 : vector<1x128xf32> to vector<32x128xf32>
    %313 = arith.addf %308, %312 : vector<32x128xf32>
    %314 = arith.mulf %313, %313 : vector<32x128xf32>
    %315 = arith.mulf %313, %314 : vector<32x128xf32>
    %cst_118 = arith.constant 4.471500e-02 : f32
    %316 = vector.broadcast %cst_118 : f32 to vector<32x128xf32>
    %317 = arith.mulf %316, %315 : vector<32x128xf32>
    %318 = arith.addf %313, %317 : vector<32x128xf32>
    %cst_119 = arith.constant 0.797884583 : f32
    %319 = vector.broadcast %cst_119 : f32 to vector<32x128xf32>
    %320 = arith.mulf %319, %318 : vector<32x128xf32>
    %321 = math.tanh %320 : vector<32x128xf32>
    %cst_120 = arith.constant 1.000000e+00 : f32
    %322 = vector.broadcast %cst_120 : f32 to vector<32x128xf32>
    %323 = arith.addf %322, %321 : vector<32x128xf32>
    %cst_121 = arith.constant 5.000000e-01 : f32
    %324 = vector.broadcast %cst_121 : f32 to vector<32x128xf32>
    %325 = arith.mulf %324, %323 : vector<32x128xf32>
    %326 = arith.mulf %313, %325 : vector<32x128xf32>
    %327 = arith.truncf %326 : vector<32x128xf32> to vector<32x128xbf16>
    %c2_122 = arith.constant 2 : index
    %c0_123 = arith.constant 0 : index
    %c0_124 = arith.constant 0 : index
    %328 = vector.load %arg6[%c2_122, %c0_123, %c0_124] : memref<4x128x32xbf16, #tpu.memory_space<vmem>>, vector<1x128x32xbf16>
    %329 = vector.shape_cast %328 : vector<1x128x32xbf16> to vector<128x32xbf16>
    %cst_125 = arith.constant dense<0.000000e+00> : vector<32x32xf32>
    %330 = tpu.matmul %327, %329, %cst_125 {dimension_numbers = #tpu.dot_dimension_numbers<[1], [0], [0], [1], [0, 0, 1, 1], [], []>} : vector<32x128xbf16>, vector<128x32xbf16>, vector<32x32xf32> -> vector<32x32xf32>
    %c23 = arith.constant 23 : index
    %c0_126 = arith.constant 0 : index
    %331 = vector.load %arg2[%c23, %c0_126] : memref<36x128xf32, #tpu.memory_space<vmem>>, vector<1x32xf32>
    %332 = vector.shape_cast %331 : vector<1x32xf32> to vector<32xf32>
    %333 = vector.shape_cast %332 : vector<32xf32> to vector<1x32xf32>
    %334 = vector.broadcast %333 : vector<1x32xf32> to vector<32x32xf32>
    %335 = arith.addf %330, %334 : vector<32x32xf32>
    %336 = arith.addf %273, %335 : vector<32x32xf32>
    %337 = vector.shape_cast %336 : vector<32x32xf32> to vector<2x16x32xf32>
    %c2_127 = arith.constant 2 : index
    %c0_128 = arith.constant 0 : index
    %c0_129 = arith.constant 0 : index
    %338 = vector.load %arg3[%c2_127, %c0_128, %c0_129] : memref<4x112x1xf32, #tpu.memory_space<vmem>>, vector<1x16x1xf32>
    %339 = vector.shape_cast %338 : vector<1x16x1xf32> to vector<16x1xf32>
    %340 = vector.shape_cast %339 : vector<16x1xf32> to vector<1x16x1xf32>
    %c2_130 = arith.constant 2 : index
    %c16_131 = arith.constant 16 : index
    %c0_132 = arith.constant 0 : index
    %341 = vector.load %arg3[%c2_130, %c16_131, %c0_132] : memref<4x112x1xf32, #tpu.memory_space<vmem>>, vector<1x16x1xf32>
    %342 = vector.shape_cast %341 : vector<1x16x1xf32> to vector<16x1xf32>
    %343 = vector.shape_cast %342 : vector<16x1xf32> to vector<1x16x1xf32>
    %cst_133 = arith.constant dense<0.000000e+00> : vector<2x32xf32>
    %344 = vector.multi_reduction <add>, %337, %cst_133 [1] : vector<2x16x32xf32> to vector<2x32xf32>
    %345 = vector.shape_cast %344 : vector<2x32xf32> to vector<2x1x32xf32>
    %cst_134 = arith.constant 6.250000e-02 : f32
    %346 = vector.broadcast %cst_134 : f32 to vector<2x1x32xf32>
    %347 = arith.mulf %345, %346 : vector<2x1x32xf32>
    %348 = arith.mulf %337, %337 : vector<2x16x32xf32>
    %cst_135 = arith.constant dense<0.000000e+00> : vector<2x32xf32>
    %349 = vector.multi_reduction <add>, %348, %cst_135 [1] : vector<2x16x32xf32> to vector<2x32xf32>
    %350 = vector.shape_cast %349 : vector<2x32xf32> to vector<2x1x32xf32>
    %cst_136 = arith.constant 6.250000e-02 : f32
    %351 = vector.broadcast %cst_136 : f32 to vector<2x1x32xf32>
    %352 = arith.mulf %350, %351 : vector<2x1x32xf32>
    %353 = arith.mulf %347, %347 : vector<2x1x32xf32>
    %354 = arith.subf %352, %353 : vector<2x1x32xf32>
    %cst_137 = arith.constant 0.000000e+00 : f32
    %355 = vector.broadcast %cst_137 : f32 to vector<2x1x32xf32>
    %356 = arith.maximumf %354, %355 : vector<2x1x32xf32>
    %cst_138 = arith.constant 9.99999974E-6 : f32
    %357 = vector.broadcast %cst_138 : f32 to vector<2x1x32xf32>
    %358 = arith.addf %356, %357 : vector<2x1x32xf32>
    %359 = math.rsqrt %358 : vector<2x1x32xf32>
    %360 = vector.broadcast %359 : vector<2x1x32xf32> to vector<2x16x32xf32>
    %361 = vector.broadcast %340 : vector<1x16x1xf32> to vector<2x16x32xf32>
    %362 = arith.mulf %360, %361 : vector<2x16x32xf32>
    %363 = arith.mulf %337, %362 : vector<2x16x32xf32>
    %364 = vector.broadcast %347 : vector<2x1x32xf32> to vector<2x16x32xf32>
    %365 = arith.mulf %364, %362 : vector<2x16x32xf32>
    %366 = vector.broadcast %343 : vector<1x16x1xf32> to vector<2x16x32xf32>
    %367 = arith.subf %366, %365 : vector<2x16x32xf32>
    %368 = arith.addf %363, %367 : vector<2x16x32xf32>
    %c2_139 = arith.constant 2 : index
    %c0_140 = arith.constant 0 : index
    %c0_141 = arith.constant 0 : index
    %369 = vector.load %arg7[%c2_139, %c0_140, %c0_141] : memref<4x64x16xbf16, #tpu.memory_space<vmem>>, vector<1x64x16xbf16>
    %370 = vector.shape_cast %369 : vector<1x64x16xbf16> to vector<64x16xbf16>
    %371 = vector.shape_cast %370 : vector<64x16xbf16> to vector<1x64x16xbf16>
    %372 = vector.broadcast %371 : vector<1x64x16xbf16> to vector<2x64x16xbf16>
    %373 = arith.truncf %368 : vector<2x16x32xf32> to vector<2x16x32xbf16>
    %cst_142 = arith.constant dense<0.000000e+00> : vector<2x64x32xf32>
    %374 = tpu.matmul %372, %373, %cst_142 {dimension_numbers = #tpu.dot_dimension_numbers<[2], [1], [1], [2], [0, 0, 0, 1, 1, 2], [0], [0]>} : vector<2x64x16xbf16>, vector<2x16x32xbf16>, vector<2x64x32xf32> -> vector<2x64x32xf32>
    %c2_143 = arith.constant 2 : index
    %c32_144 = arith.constant 32 : index
    %c0_145 = arith.constant 0 : index
    %375 = vector.load %arg3[%c2_143, %c32_144, %c0_145] : memref<4x112x1xf32, #tpu.memory_space<vmem>>, vector<1x64x1xf32>
    %376 = vector.shape_cast %375 : vector<1x64x1xf32> to vector<64x1xf32>
    %377 = vector.shape_cast %376 : vector<64x1xf32> to vector<1x64x1xf32>
    %378 = vector.broadcast %377 : vector<1x64x1xf32> to vector<2x64x32xf32>
    %379 = arith.addf %374, %378 : vector<2x64x32xf32>
    %380 = arith.mulf %379, %379 : vector<2x64x32xf32>
    %381 = arith.mulf %379, %380 : vector<2x64x32xf32>
    %cst_146 = arith.constant 4.471500e-02 : f32
    %382 = vector.broadcast %cst_146 : f32 to vector<2x64x32xf32>
    %383 = arith.mulf %382, %381 : vector<2x64x32xf32>
    %384 = arith.addf %379, %383 : vector<2x64x32xf32>
    %cst_147 = arith.constant 0.797884583 : f32
    %385 = vector.broadcast %cst_147 : f32 to vector<2x64x32xf32>
    %386 = arith.mulf %385, %384 : vector<2x64x32xf32>
    %387 = math.tanh %386 : vector<2x64x32xf32>
    %cst_148 = arith.constant 1.000000e+00 : f32
    %388 = vector.broadcast %cst_148 : f32 to vector<2x64x32xf32>
    %389 = arith.addf %388, %387 : vector<2x64x32xf32>
    %cst_149 = arith.constant 5.000000e-01 : f32
    %390 = vector.broadcast %cst_149 : f32 to vector<2x64x32xf32>
    %391 = arith.mulf %390, %389 : vector<2x64x32xf32>
    %392 = arith.mulf %379, %391 : vector<2x64x32xf32>
    %c2_150 = arith.constant 2 : index
    %c0_151 = arith.constant 0 : index
    %c0_152 = arith.constant 0 : index
    %393 = vector.load %arg8[%c2_150, %c0_151, %c0_152] : memref<4x16x64xbf16, #tpu.memory_space<vmem>>, vector<1x16x64xbf16>
    %394 = vector.shape_cast %393 : vector<1x16x64xbf16> to vector<16x64xbf16>
    %395 = vector.shape_cast %394 : vector<16x64xbf16> to vector<1x16x64xbf16>
    %396 = vector.broadcast %395 : vector<1x16x64xbf16> to vector<2x16x64xbf16>
    %397 = arith.truncf %392 : vector<2x64x32xf32> to vector<2x64x32xbf16>
    %cst_153 = arith.constant dense<0.000000e+00> : vector<2x16x32xf32>
    %398 = tpu.matmul %396, %397, %cst_153 {dimension_numbers = #tpu.dot_dimension_numbers<[2], [1], [1], [2], [0, 0, 0, 1, 1, 2], [0], [0]>} : vector<2x16x64xbf16>, vector<2x64x32xbf16>, vector<2x16x32xf32> -> vector<2x16x32xf32>
    %c2_154 = arith.constant 2 : index
    %c96_155 = arith.constant 96 : index
    %c0_156 = arith.constant 0 : index
    %399 = vector.load %arg3[%c2_154, %c96_155, %c0_156] : memref<4x112x1xf32, #tpu.memory_space<vmem>>, vector<1x16x1xf32>
    %400 = vector.shape_cast %399 : vector<1x16x1xf32> to vector<16x1xf32>
    %401 = vector.shape_cast %400 : vector<16x1xf32> to vector<1x16x1xf32>
    %402 = vector.broadcast %401 : vector<1x16x1xf32> to vector<2x16x32xf32>
    %403 = arith.addf %398, %402 : vector<2x16x32xf32>
    %404 = vector.shape_cast %403 : vector<2x16x32xf32> to vector<32x32xf32>
    %405 = arith.addf %336, %404 : vector<32x32xf32>
    %c28 = arith.constant 28 : index
    %c0_157 = arith.constant 0 : index
    %406 = vector.load %arg2[%c28, %c0_157] : memref<36x128xf32, #tpu.memory_space<vmem>>, vector<1x32xf32>
    %407 = vector.shape_cast %406 : vector<1x32xf32> to vector<32xf32>
    %408 = vector.shape_cast %407 : vector<32xf32> to vector<1x32xf32>
    %c29 = arith.constant 29 : index
    %c0_158 = arith.constant 0 : index
    %409 = vector.load %arg2[%c29, %c0_158] : memref<36x128xf32, #tpu.memory_space<vmem>>, vector<1x32xf32>
    %410 = vector.shape_cast %409 : vector<1x32xf32> to vector<32xf32>
    %411 = vector.shape_cast %410 : vector<32xf32> to vector<1x32xf32>
    %cst_159 = arith.constant dense<0.000000e+00> : vector<32xf32>
    %412 = vector.multi_reduction <add>, %405, %cst_159 [1] : vector<32x32xf32> to vector<32xf32>
    %413 = vector.shape_cast %412 : vector<32xf32> to vector<32x1xf32>
    %cst_160 = arith.constant 3.125000e-02 : f32
    %414 = vector.broadcast %cst_160 : f32 to vector<32x1xf32>
    %415 = arith.mulf %413, %414 : vector<32x1xf32>
    %416 = arith.mulf %405, %405 : vector<32x32xf32>
    %cst_161 = arith.constant dense<0.000000e+00> : vector<32xf32>
    %417 = vector.multi_reduction <add>, %416, %cst_161 [1] : vector<32x32xf32> to vector<32xf32>
    %418 = vector.shape_cast %417 : vector<32xf32> to vector<32x1xf32>
    %cst_162 = arith.constant 3.125000e-02 : f32
    %419 = vector.broadcast %cst_162 : f32 to vector<32x1xf32>
    %420 = arith.mulf %418, %419 : vector<32x1xf32>
    %421 = arith.mulf %415, %415 : vector<32x1xf32>
    %422 = arith.subf %420, %421 : vector<32x1xf32>
    %cst_163 = arith.constant 0.000000e+00 : f32
    %423 = vector.broadcast %cst_163 : f32 to vector<32x1xf32>
    %424 = arith.maximumf %422, %423 : vector<32x1xf32>
    %cst_164 = arith.constant 9.99999974E-6 : f32
    %425 = vector.broadcast %cst_164 : f32 to vector<32x1xf32>
    %426 = arith.addf %424, %425 : vector<32x1xf32>
    %427 = math.rsqrt %426 : vector<32x1xf32>
    %428 = vector.broadcast %427 : vector<32x1xf32> to vector<32x32xf32>
    %429 = vector.broadcast %408 : vector<1x32xf32> to vector<32x32xf32>
    %430 = arith.mulf %428, %429 : vector<32x32xf32>
    %431 = arith.mulf %405, %430 : vector<32x32xf32>
    %432 = vector.broadcast %415 : vector<32x1xf32> to vector<32x32xf32>
    %433 = arith.mulf %432, %430 : vector<32x32xf32>
    %434 = vector.broadcast %411 : vector<1x32xf32> to vector<32x32xf32>
    %435 = arith.subf %434, %433 : vector<32x32xf32>
    %436 = arith.addf %431, %435 : vector<32x32xf32>
    %437 = arith.truncf %436 : vector<32x32xf32> to vector<32x32xbf16>
    %c3 = arith.constant 3 : index
    %c0_165 = arith.constant 0 : index
    %c0_166 = arith.constant 0 : index
    %438 = vector.load %arg5[%c3, %c0_165, %c0_166] : memref<4x32x128xbf16, #tpu.memory_space<vmem>>, vector<1x32x128xbf16>
    %439 = vector.shape_cast %438 : vector<1x32x128xbf16> to vector<32x128xbf16>
    %cst_167 = arith.constant dense<0.000000e+00> : vector<32x128xf32>
    %440 = tpu.matmul %437, %439, %cst_167 {dimension_numbers = #tpu.dot_dimension_numbers<[1], [0], [0], [1], [0, 0, 1, 1], [], []>} : vector<32x32xbf16>, vector<32x128xbf16>, vector<32x128xf32> -> vector<32x128xf32>
    %c30 = arith.constant 30 : index
    %c0_168 = arith.constant 0 : index
    %441 = vector.load %arg2[%c30, %c0_168] : memref<36x128xf32, #tpu.memory_space<vmem>>, vector<1x128xf32>
    %442 = vector.shape_cast %441 : vector<1x128xf32> to vector<128xf32>
    %443 = vector.shape_cast %442 : vector<128xf32> to vector<1x128xf32>
    %444 = vector.broadcast %443 : vector<1x128xf32> to vector<32x128xf32>
    %445 = arith.addf %440, %444 : vector<32x128xf32>
    %446 = arith.mulf %445, %445 : vector<32x128xf32>
    %447 = arith.mulf %445, %446 : vector<32x128xf32>
    %cst_169 = arith.constant 4.471500e-02 : f32
    %448 = vector.broadcast %cst_169 : f32 to vector<32x128xf32>
    %449 = arith.mulf %448, %447 : vector<32x128xf32>
    %450 = arith.addf %445, %449 : vector<32x128xf32>
    %cst_170 = arith.constant 0.797884583 : f32
    %451 = vector.broadcast %cst_170 : f32 to vector<32x128xf32>
    %452 = arith.mulf %451, %450 : vector<32x128xf32>
    %453 = math.tanh %452 : vector<32x128xf32>
    %cst_171 = arith.constant 1.000000e+00 : f32
    %454 = vector.broadcast %cst_171 : f32 to vector<32x128xf32>
    %455 = arith.addf %454, %453 : vector<32x128xf32>
    %cst_172 = arith.constant 5.000000e-01 : f32
    %456 = vector.broadcast %cst_172 : f32 to vector<32x128xf32>
    %457 = arith.mulf %456, %455 : vector<32x128xf32>
    %458 = arith.mulf %445, %457 : vector<32x128xf32>
    %459 = arith.truncf %458 : vector<32x128xf32> to vector<32x128xbf16>
    %c3_173 = arith.constant 3 : index
    %c0_174 = arith.constant 0 : index
    %c0_175 = arith.constant 0 : index
    %460 = vector.load %arg6[%c3_173, %c0_174, %c0_175] : memref<4x128x32xbf16, #tpu.memory_space<vmem>>, vector<1x128x32xbf16>
    %461 = vector.shape_cast %460 : vector<1x128x32xbf16> to vector<128x32xbf16>
    %cst_176 = arith.constant dense<0.000000e+00> : vector<32x32xf32>
    %462 = tpu.matmul %459, %461, %cst_176 {dimension_numbers = #tpu.dot_dimension_numbers<[1], [0], [0], [1], [0, 0, 1, 1], [], []>} : vector<32x128xbf16>, vector<128x32xbf16>, vector<32x32xf32> -> vector<32x32xf32>
    %c31 = arith.constant 31 : index
    %c0_177 = arith.constant 0 : index
    %463 = vector.load %arg2[%c31, %c0_177] : memref<36x128xf32, #tpu.memory_space<vmem>>, vector<1x32xf32>
    %464 = vector.shape_cast %463 : vector<1x32xf32> to vector<32xf32>
    %465 = vector.shape_cast %464 : vector<32xf32> to vector<1x32xf32>
    %466 = vector.broadcast %465 : vector<1x32xf32> to vector<32x32xf32>
    %467 = arith.addf %462, %466 : vector<32x32xf32>
    %468 = arith.addf %405, %467 : vector<32x32xf32>
    %469 = vector.shape_cast %468 : vector<32x32xf32> to vector<2x16x32xf32>
    %c3_178 = arith.constant 3 : index
    %c0_179 = arith.constant 0 : index
    %c0_180 = arith.constant 0 : index
    %470 = vector.load %arg3[%c3_178, %c0_179, %c0_180] : memref<4x112x1xf32, #tpu.memory_space<vmem>>, vector<1x16x1xf32>
    %471 = vector.shape_cast %470 : vector<1x16x1xf32> to vector<16x1xf32>
    %472 = vector.shape_cast %471 : vector<16x1xf32> to vector<1x16x1xf32>
    %c3_181 = arith.constant 3 : index
    %c16_182 = arith.constant 16 : index
    %c0_183 = arith.constant 0 : index
    %473 = vector.load %arg3[%c3_181, %c16_182, %c0_183] : memref<4x112x1xf32, #tpu.memory_space<vmem>>, vector<1x16x1xf32>
    %474 = vector.shape_cast %473 : vector<1x16x1xf32> to vector<16x1xf32>
    %475 = vector.shape_cast %474 : vector<16x1xf32> to vector<1x16x1xf32>
    %cst_184 = arith.constant dense<0.000000e+00> : vector<2x32xf32>
    %476 = vector.multi_reduction <add>, %469, %cst_184 [1] : vector<2x16x32xf32> to vector<2x32xf32>
    %477 = vector.shape_cast %476 : vector<2x32xf32> to vector<2x1x32xf32>
    %cst_185 = arith.constant 6.250000e-02 : f32
    %478 = vector.broadcast %cst_185 : f32 to vector<2x1x32xf32>
    %479 = arith.mulf %477, %478 : vector<2x1x32xf32>
    %480 = arith.mulf %469, %469 : vector<2x16x32xf32>
    %cst_186 = arith.constant dense<0.000000e+00> : vector<2x32xf32>
    %481 = vector.multi_reduction <add>, %480, %cst_186 [1] : vector<2x16x32xf32> to vector<2x32xf32>
    %482 = vector.shape_cast %481 : vector<2x32xf32> to vector<2x1x32xf32>
    %cst_187 = arith.constant 6.250000e-02 : f32
    %483 = vector.broadcast %cst_187 : f32 to vector<2x1x32xf32>
    %484 = arith.mulf %482, %483 : vector<2x1x32xf32>
    %485 = arith.mulf %479, %479 : vector<2x1x32xf32>
    %486 = arith.subf %484, %485 : vector<2x1x32xf32>
    %cst_188 = arith.constant 0.000000e+00 : f32
    %487 = vector.broadcast %cst_188 : f32 to vector<2x1x32xf32>
    %488 = arith.maximumf %486, %487 : vector<2x1x32xf32>
    %cst_189 = arith.constant 9.99999974E-6 : f32
    %489 = vector.broadcast %cst_189 : f32 to vector<2x1x32xf32>
    %490 = arith.addf %488, %489 : vector<2x1x32xf32>
    %491 = math.rsqrt %490 : vector<2x1x32xf32>
    %492 = vector.broadcast %491 : vector<2x1x32xf32> to vector<2x16x32xf32>
    %493 = vector.broadcast %472 : vector<1x16x1xf32> to vector<2x16x32xf32>
    %494 = arith.mulf %492, %493 : vector<2x16x32xf32>
    %495 = arith.mulf %469, %494 : vector<2x16x32xf32>
    %496 = vector.broadcast %479 : vector<2x1x32xf32> to vector<2x16x32xf32>
    %497 = arith.mulf %496, %494 : vector<2x16x32xf32>
    %498 = vector.broadcast %475 : vector<1x16x1xf32> to vector<2x16x32xf32>
    %499 = arith.subf %498, %497 : vector<2x16x32xf32>
    %500 = arith.addf %495, %499 : vector<2x16x32xf32>
    %c3_190 = arith.constant 3 : index
    %c0_191 = arith.constant 0 : index
    %c0_192 = arith.constant 0 : index
    %501 = vector.load %arg7[%c3_190, %c0_191, %c0_192] : memref<4x64x16xbf16, #tpu.memory_space<vmem>>, vector<1x64x16xbf16>
    %502 = vector.shape_cast %501 : vector<1x64x16xbf16> to vector<64x16xbf16>
    %503 = vector.shape_cast %502 : vector<64x16xbf16> to vector<1x64x16xbf16>
    %504 = vector.broadcast %503 : vector<1x64x16xbf16> to vector<2x64x16xbf16>
    %505 = arith.truncf %500 : vector<2x16x32xf32> to vector<2x16x32xbf16>
    %cst_193 = arith.constant dense<0.000000e+00> : vector<2x64x32xf32>
    %506 = tpu.matmul %504, %505, %cst_193 {dimension_numbers = #tpu.dot_dimension_numbers<[2], [1], [1], [2], [0, 0, 0, 1, 1, 2], [0], [0]>} : vector<2x64x16xbf16>, vector<2x16x32xbf16>, vector<2x64x32xf32> -> vector<2x64x32xf32>
    %c3_194 = arith.constant 3 : index
    %c32_195 = arith.constant 32 : index
    %c0_196 = arith.constant 0 : index
    %507 = vector.load %arg3[%c3_194, %c32_195, %c0_196] : memref<4x112x1xf32, #tpu.memory_space<vmem>>, vector<1x64x1xf32>
    %508 = vector.shape_cast %507 : vector<1x64x1xf32> to vector<64x1xf32>
    %509 = vector.shape_cast %508 : vector<64x1xf32> to vector<1x64x1xf32>
    %510 = vector.broadcast %509 : vector<1x64x1xf32> to vector<2x64x32xf32>
    %511 = arith.addf %506, %510 : vector<2x64x32xf32>
    %512 = arith.mulf %511, %511 : vector<2x64x32xf32>
    %513 = arith.mulf %511, %512 : vector<2x64x32xf32>
    %cst_197 = arith.constant 4.471500e-02 : f32
    %514 = vector.broadcast %cst_197 : f32 to vector<2x64x32xf32>
    %515 = arith.mulf %514, %513 : vector<2x64x32xf32>
    %516 = arith.addf %511, %515 : vector<2x64x32xf32>
    %cst_198 = arith.constant 0.797884583 : f32
    %517 = vector.broadcast %cst_198 : f32 to vector<2x64x32xf32>
    %518 = arith.mulf %517, %516 : vector<2x64x32xf32>
    %519 = math.tanh %518 : vector<2x64x32xf32>
    %cst_199 = arith.constant 1.000000e+00 : f32
    %520 = vector.broadcast %cst_199 : f32 to vector<2x64x32xf32>
    %521 = arith.addf %520, %519 : vector<2x64x32xf32>
    %cst_200 = arith.constant 5.000000e-01 : f32
    %522 = vector.broadcast %cst_200 : f32 to vector<2x64x32xf32>
    %523 = arith.mulf %522, %521 : vector<2x64x32xf32>
    %524 = arith.mulf %511, %523 : vector<2x64x32xf32>
    %c3_201 = arith.constant 3 : index
    %c0_202 = arith.constant 0 : index
    %c0_203 = arith.constant 0 : index
    %525 = vector.load %arg8[%c3_201, %c0_202, %c0_203] : memref<4x16x64xbf16, #tpu.memory_space<vmem>>, vector<1x16x64xbf16>
    %526 = vector.shape_cast %525 : vector<1x16x64xbf16> to vector<16x64xbf16>
    %527 = vector.shape_cast %526 : vector<16x64xbf16> to vector<1x16x64xbf16>
    %528 = vector.broadcast %527 : vector<1x16x64xbf16> to vector<2x16x64xbf16>
    %529 = arith.truncf %524 : vector<2x64x32xf32> to vector<2x64x32xbf16>
    %cst_204 = arith.constant dense<0.000000e+00> : vector<2x16x32xf32>
    %530 = tpu.matmul %528, %529, %cst_204 {dimension_numbers = #tpu.dot_dimension_numbers<[2], [1], [1], [2], [0, 0, 0, 1, 1, 2], [0], [0]>} : vector<2x16x64xbf16>, vector<2x64x32xbf16>, vector<2x16x32xf32> -> vector<2x16x32xf32>
    %c3_205 = arith.constant 3 : index
    %c96_206 = arith.constant 96 : index
    %c0_207 = arith.constant 0 : index
    %531 = vector.load %arg3[%c3_205, %c96_206, %c0_207] : memref<4x112x1xf32, #tpu.memory_space<vmem>>, vector<1x16x1xf32>
    %532 = vector.shape_cast %531 : vector<1x16x1xf32> to vector<16x1xf32>
    %533 = vector.shape_cast %532 : vector<16x1xf32> to vector<1x16x1xf32>
    %534 = vector.broadcast %533 : vector<1x16x1xf32> to vector<2x16x32xf32>
    %535 = arith.addf %530, %534 : vector<2x16x32xf32>
    %536 = vector.shape_cast %535 : vector<2x16x32xf32> to vector<32x32xf32>
    %537 = arith.addf %468, %536 : vector<32x32xf32>
    %c1_208 = arith.constant 1 : index
    %c0_209 = arith.constant 0 : index
    %538 = vector.load %arg2[%c1_208, %c0_209] : memref<36x128xf32, #tpu.memory_space<vmem>>, vector<1x32xf32>
    %539 = vector.shape_cast %538 : vector<1x32xf32> to vector<32xf32>
    %540 = vector.shape_cast %539 : vector<32xf32> to vector<1x32xf32>
    %c2_210 = arith.constant 2 : index
    %c0_211 = arith.constant 0 : index
    %541 = vector.load %arg2[%c2_210, %c0_211] : memref<36x128xf32, #tpu.memory_space<vmem>>, vector<1x32xf32>
    %542 = vector.shape_cast %541 : vector<1x32xf32> to vector<32xf32>
    %543 = vector.shape_cast %542 : vector<32xf32> to vector<1x32xf32>
    %cst_212 = arith.constant dense<0.000000e+00> : vector<32xf32>
    %544 = vector.multi_reduction <add>, %537, %cst_212 [1] : vector<32x32xf32> to vector<32xf32>
    %545 = vector.shape_cast %544 : vector<32xf32> to vector<32x1xf32>
    %cst_213 = arith.constant 3.125000e-02 : f32
    %546 = vector.broadcast %cst_213 : f32 to vector<32x1xf32>
    %547 = arith.mulf %545, %546 : vector<32x1xf32>
    %548 = arith.mulf %537, %537 : vector<32x32xf32>
    %cst_214 = arith.constant dense<0.000000e+00> : vector<32xf32>
    %549 = vector.multi_reduction <add>, %548, %cst_214 [1] : vector<32x32xf32> to vector<32xf32>
    %550 = vector.shape_cast %549 : vector<32xf32> to vector<32x1xf32>
    %cst_215 = arith.constant 3.125000e-02 : f32
    %551 = vector.broadcast %cst_215 : f32 to vector<32x1xf32>
    %552 = arith.mulf %550, %551 : vector<32x1xf32>
    %553 = arith.mulf %547, %547 : vector<32x1xf32>
    %554 = arith.subf %552, %553 : vector<32x1xf32>
    %cst_216 = arith.constant 0.000000e+00 : f32
    %555 = vector.broadcast %cst_216 : f32 to vector<32x1xf32>
    %556 = arith.maximumf %554, %555 : vector<32x1xf32>
    %cst_217 = arith.constant 9.99999974E-6 : f32
    %557 = vector.broadcast %cst_217 : f32 to vector<32x1xf32>
    %558 = arith.addf %556, %557 : vector<32x1xf32>
    %559 = math.rsqrt %558 : vector<32x1xf32>
    %560 = vector.broadcast %559 : vector<32x1xf32> to vector<32x32xf32>
    %561 = vector.broadcast %540 : vector<1x32xf32> to vector<32x32xf32>
    %562 = arith.mulf %560, %561 : vector<32x32xf32>
    %563 = arith.mulf %537, %562 : vector<32x32xf32>
    %564 = vector.broadcast %547 : vector<32x1xf32> to vector<32x32xf32>
    %565 = arith.mulf %564, %562 : vector<32x32xf32>
    %566 = vector.broadcast %543 : vector<1x32xf32> to vector<32x32xf32>
    %567 = arith.subf %566, %565 : vector<32x32xf32>
    %568 = arith.addf %563, %567 : vector<32x32xf32>
    %569 = vector.shape_cast %568 : vector<32x32xf32> to vector<2x16x32xf32>
    %cst_218 = arith.constant dense<0.000000e+00> : vector<2x32xf32>
    %570 = vector.multi_reduction <add>, %569, %cst_218 [1] : vector<2x16x32xf32> to vector<2x32xf32>
    %571 = vector.shape_cast %570 : vector<2x32xf32> to vector<2x1x32xf32>
    %572 = vector.shape_cast %571 : vector<2x1x32xf32> to vector<2x32xf32>
    %cst_219 = arith.constant 6.250000e-02 : f32
    %573 = vector.broadcast %cst_219 : f32 to vector<2x32xf32>
    %574 = arith.mulf %572, %573 : vector<2x32xf32>
    %575 = arith.truncf %574 : vector<2x32xf32> to vector<2x32xbf16>
    %c0_220 = arith.constant 0 : index
    %c0_221 = arith.constant 0 : index
    %576 = vector.load %arg9[%c0_220, %c0_221] : memref<32x128xbf16, #tpu.memory_space<vmem>>, vector<32x128xbf16>
    %cst_222 = arith.constant dense<0.000000e+00> : vector<2x128xf32>
    %577 = tpu.matmul %575, %576, %cst_222 {dimension_numbers = #tpu.dot_dimension_numbers<[1], [0], [0], [1], [0, 0, 1, 1], [], []>} : vector<2x32xbf16>, vector<32x128xbf16>, vector<2x128xf32> -> vector<2x128xf32>
    %c3_223 = arith.constant 3 : index
    %c0_224 = arith.constant 0 : index
    %578 = vector.load %arg2[%c3_223, %c0_224] : memref<36x128xf32, #tpu.memory_space<vmem>>, vector<1x128xf32>
    %579 = vector.shape_cast %578 : vector<1x128xf32> to vector<128xf32>
    %580 = vector.shape_cast %579 : vector<128xf32> to vector<1x128xf32>
    %581 = vector.broadcast %580 : vector<1x128xf32> to vector<2x128xf32>
    %582 = arith.addf %577, %581 : vector<2x128xf32>
    %c0_225 = arith.constant 0 : index
    %c0_226 = arith.constant 0 : index
    %583 = vector.load %arg10[%c0_225, %c0_226] : memref<2x128xf32, #tpu.memory_space<vmem>>, vector<2x128xf32>
    tpu.vector_store %arg10[%c0_225, %c0_226], %582 {strides = array<i32>} : memref<2x128xf32, #tpu.memory_space<vmem>>, vector<2x128xf32>,
    return
  }
  func.func @transform_0(%arg0: i32) -> (i32, i32, i32) {
    %c0_i32 = arith.constant 0 : i32
    %c0_i32_0 = arith.constant 0 : i32
    %c0_i32_1 = arith.constant 0 : i32
    return %arg0, %c0_i32, %c0_i32_0 : i32, i32, i32
  }
  func.func @transform_1(%arg0: i32) -> (i32, i32) {
    %c0_i32 = arith.constant 0 : i32
    %c0_i32_0 = arith.constant 0 : i32
    %c0_i32_1 = arith.constant 0 : i32
    return %c0_i32, %c0_i32_0 : i32, i32
  }
  func.func @transform_2(%arg0: i32) -> (i32, i32, i32) {
    %c0_i32 = arith.constant 0 : i32
    %c0_i32_0 = arith.constant 0 : i32
    %c0_i32_1 = arith.constant 0 : i32
    %c0_i32_2 = arith.constant 0 : i32
    return %c0_i32, %c0_i32_0, %c0_i32_1 : i32, i32, i32
  }
  func.func @transform_3(%arg0: i32) -> (i32, i32) {
    %c0_i32 = arith.constant 0 : i32
    %c0_i32_0 = arith.constant 0 : i32
    %c0_i32_1 = arith.constant 0 : i32
    return %c0_i32, %c0_i32_0 : i32, i32
  }
  func.func @transform_4(%arg0: i32) -> (i32, i32, i32) {
    %c0_i32 = arith.constant 0 : i32
    %c0_i32_0 = arith.constant 0 : i32
    %c0_i32_1 = arith.constant 0 : i32
    %c0_i32_2 = arith.constant 0 : i32
    return %c0_i32, %c0_i32_0, %c0_i32_1 : i32, i32, i32
  }
  func.func @transform_5(%arg0: i32) -> (i32, i32, i32) {
    %c0_i32 = arith.constant 0 : i32
    %c0_i32_0 = arith.constant 0 : i32
    %c0_i32_1 = arith.constant 0 : i32
    %c0_i32_2 = arith.constant 0 : i32
    return %c0_i32, %c0_i32_0, %c0_i32_1 : i32, i32, i32
  }
  func.func @transform_6(%arg0: i32) -> (i32, i32, i32) {
    %c0_i32 = arith.constant 0 : i32
    %c0_i32_0 = arith.constant 0 : i32
    %c0_i32_1 = arith.constant 0 : i32
    %c0_i32_2 = arith.constant 0 : i32
    return %c0_i32, %c0_i32_0, %c0_i32_1 : i32, i32, i32
  }
  func.func @transform_7(%arg0: i32) -> (i32, i32, i32) {
    %c0_i32 = arith.constant 0 : i32
    %c0_i32_0 = arith.constant 0 : i32
    %c0_i32_1 = arith.constant 0 : i32
    %c0_i32_2 = arith.constant 0 : i32
    return %c0_i32, %c0_i32_0, %c0_i32_1 : i32, i32, i32
  }
  func.func @transform_8(%arg0: i32) -> (i32, i32) {
    %c0_i32 = arith.constant 0 : i32
    %c0_i32_0 = arith.constant 0 : i32
    %c0_i32_1 = arith.constant 0 : i32
    return %c0_i32, %c0_i32_0 : i32, i32
  }
  func.func @transform_9(%arg0: i32) -> (i32, i32) {
    %c0_i32 = arith.constant 0 : i32
    %c0_i32_0 = arith.constant 0 : i32
    return %arg0, %c0_i32 : i32, i32
  }
}

</mosaic_0001>

<bundles_post_ra>
// kernel: tpu_custom_call.1
= control target key start
LH: loop header
LB: loop body
LE: loop exit
PB: predicated region body
PF: predicated region fallthrough
CT: control target
= control target key end

     0   :  { %vm74_vm0 = vcmask 523264   ;;  %s6192_s0 = inlined_call_operand.vmem [shape: f32[2,16,64], index: 0, kind: input, shape index: {}]   ;;  %s6193_s1 = inlined_call_operand.vmem [shape: f32[36,128], index: 1, kind: input, shape index: {}]   ;;  %s6194_s2 = inlined_call_operand.vmem [shape: bf16[64,32], index: 2, kind: input, shape index: {}]   ;;  %s6195_s3 = inlined_call_operand.vmem [shape: bf16[4,32,128], index: 3, kind: input, shape index: {}]   ;;  %s6196_s4 = inlined_call_operand.vmem [shape: bf16[4,128,32], index: 4, kind: input, shape index: {}]   ;;  %s6197_s5 = inlined_call_operand.vmem [shape: bf16[4,16,64], index: 5, kind: input, shape index: {}]   ;;  %s6198_s6 = inlined_call_operand.vmem [shape: bf16[4,64,16], index: 6, kind: input, shape index: {}]   ;;  %s6199_s7 = inlined_call_operand.vmem [shape: bf16[32,128], index: 7, kind: input, shape index: {}]   ;;  %s6200_s8 = inlined_call_operand.hbm [shape: f32[2,128], index: 8, kind: output, shape index: {}]  }
   0x1   :  { %v4537_v0 = vld [vmem:[%s6194_s2] sm:$0xff]   ;;  %v4538_v1 = vld [vmem:[%s6194_s2 + $0x8] sm:$0xff]   ;;  %v4539_v2 = vld [vmem:[%s6194_s2 + $0x10] sm:$0xff]  }
   0x2   :  { %4298 = vmatprep.subr.bf16.mxu0 %v4537_v0  ;;  %v31_v3 = vld [vmem:[%s6192_s0] sm:$0xff]  ;;  %v32_v4 = vld [vmem:[%s6192_s0 + $0x8] sm:$0xff]  ;;  %v4540_v6 = vld [vmem:[%s6194_s2 + $0x18] sm:$0xff]  }
   0x3   :  { %4299 = vmatpush3.bf16.msra.mxu0 %v4537_v0  ;;  %v35_v5 = vpack.c.bf16 %v32_v4, %v31_v3  ;;  %v33_v7 = vld [vmem:[%s6192_s0 + $0x10] sm:$0xff]  ;;  %v34_v8 = vld [vmem:[%s6192_s0 + $0x18] sm:$0xff] }
   0x4   :  { %4300 = vmatprep.subr.bf16.mxu0 %v4538_v1  ;;  %v36_v9 = vpack.c.bf16 %v34_v8, %v33_v7 }
   0x5   :  { %4306 = vmatprep.mubr.msk.bf16.mxu0 %vm74_vm0, %v35_v5 }
   0x7   :  { %4301 = vmatpush3.bf16.msra.mxu0 %v4538_v1 }
   0x8   :  { %4302 = vmatprep.subr.bf16.mxu0 %v4539_v2 }
   0xb   :  { %4303 = vmatpush3.bf16.msra.mxu0 %v4539_v2 }
   0xc   :  { %4304 = vmatprep.subr.bf16.mxu0 %v4540_v6 }
   0xf   :  { %4305 = vmatpush3.bf16.msra.mxu0 %v4540_v6 }
  0x12   :  { %4307 = vmatmul.mubr.msk.bf16.vlgmr.msra.gmra.mrb[0].mxu0 %vm74_vm0, %v36_v9 }
  0x13   :  { %13 = vsyncpa [#allocation3], 0  ;;  %v3946_v10 = vld [vmem:[%s6193_s1] ss:$0 sm:$0xff]  ;;  %vm132_vm1 = vcmask 261120   ;;  %v4542_v32 = vld [vmem:[%s6195_s3 + $0x8] sm:$0xff]  }
  0x14   :  { %v4541_v31 = vld [vmem:[%s6195_s3] sm:$0xff]   ;;  %vm521_vm2 = vcmask 130048   ;;  %vm4828_vm3 = vmmov 0   ;;  %vm3873_vm4 = vcmask 1041409   ;;  %s4829_s18 = smov [#allocation2]  }
  0x15   :  { %4310 = vmatprep.subr.bf16.mxu1 %v4541_v31  ;;  %v3953_v1 = vld [vmem:[%s6193_s1 + $0x4] ss:$0 sm:$0xff]  ;;  %v3954_v5 = vld [vmem:[%s6193_s1 + $0x5] ss:$0 sm:$0xff]  ;;  %s3938_s19 = sshll.u32 %s4829_s18, 4  ;;  %s3939_s19 = int_to_ptr.vmem [resolvable:$true] %s3938_s19 }
  0x16   :  { %4311 = vmatpush3.bf16.msra.mxu1 %v4541_v31  ;;  %s4803_s20 = scalar_lea.vmem %s3939_s19, 32  ;;  %p4808_p1 = scmp.lt.s32.totalorder %s3939_s19, %s3939_s19 }
  0x17   :  { %4312 = vmatprep.subr.bf16.mxu1 %v4542_v32  ;;  %p4804_p0 = scmp.ne.s32.totalorder %s3939_s19, %s4803_s20  ;;  %p4809_p2 = scmp.lt.s32.totalorder %s4803_s20, %s4803_s20 }
  0x19   :  { %p4810_p3 = por %p4809_p2, %p4808_p1 }
  0x1a   :  { %4313 = vmatpush3.bf16.msra.mxu1 %v4542_v32 }
  0x1b   :  { %p4811_p4 = pnand %p4810_p3, %p4804_p0 }
  0xe5   :  { %v4308_v11 = vpop.f32.mrb[0].mxu0 }
  0xe6   :  { %v4904_v12 = vadd.f32 %v4308_v11, %v3946_v10  ;;  %v115_v13 = vpop.f32.mrb[1].mxu0 }
  0xe7   :  { %v4906_v14 = vadd.f32 %v3946_v10, %v115_v13  ;;  %v4309_v15 = vpop.f32.mrb[2].mxu0 }
  0xe8   :  { %v4908_v16 = vadd.f32 %v4309_v15, %v3946_v10  ;;  %v118_v17 = vpop.f32.mrb[3].mxu0  ;;  %v139_v18 = vsel %vm132_vm1, %v4904_v12, 0.0  ;;  %v151_v28 = vmul.f32 %v4904_v12, %v4904_v12 }
  0xe9   :  { %v4912_v19 = vadd.f32 %v3946_v10, %v118_v17  ;;  %140 = vadd.xlane.f32.xlu1 %v139_v18  ;;  %v133_v20 = vsel %vm132_vm1, %v4906_v14, 0.0  ;;  %v149_v24 = vmul.f32 %v4906_v14, %v4906_v14 }
  0xea   :  { %134 = vadd.xlane.f32.xlu0 %v133_v20  ;;  %v142_v21 = vsel %vm132_vm1, %v4908_v16, 0.0  ;;  %v152_v26 = vmul.f32 %v4908_v16, %v4908_v16  ;;  %v159_v30 = vsel %vm132_vm1, %v151_v28, 0.0 }
  0xeb   :  { %v150_v22 = vmul.f32 %v4912_v19, %v4912_v19  ;;  %v136_v23 = vsel %vm132_vm1, %v4912_v19, 0.0  ;;  %v153_v27 = vsel %vm132_vm1, %v149_v24, 0.0 }
  0xec   :  { %v162_v29 = vsel %vm132_vm1, %v152_v26, 0.0 }
  0xed   :  { %143 = vadd.xlane.f32.xlu1 %v142_v21  ;;  %v156_v25 = vsel %vm132_vm1, %v150_v22, 0.0 }
  0xee   :  { %137 = vadd.xlane.f32.xlu0 %v136_v23 }
  0xf1   :  { %157 = vadd.xlane.f32.xlu1 %v156_v25 }
  0xf2   :  { %154 = vadd.xlane.f32.xlu0 %v153_v27 }
  0xf5   :  { %163 = vadd.xlane.f32.xlu1 %v162_v29 }
  0xf6   :  { %160 = vadd.xlane.f32.xlu0 %v159_v30 }
 0x176   :  { %v141_v33 = vpop.xlane.xlu1 %140 }
 0x177   :  { %v135_v34 = vpop.xlane.xlu0 %134  ;;  %v147_v44 = vmul.f32 0.03125, %v141_v33  ;;  %v4543_v33 = vld [vmem:[%s6196_s4] sm:$0xff]  }
 0x178   :  { %v145_v37 = vmul.f32 0.03125, %v135_v34  ;;  %4318 = vmatprep.subr.bf16.mxu1 %v4543_v33  ;;  %v4544_v34 = vld [vmem:[%s6196_s4 + $0x8] sm:$0xff]  }
 0x179   :  { %v171_v54 = vmul.f32 %v147_v44, %v147_v44 }
 0x17a   :  { %v144_v35 = vpop.xlane.xlu1 %143  ;;  %v169_v45 = vmul.f32 %v145_v37, %v145_v37 }
 0x17b   :  { %v138_v36 = vpop.xlane.xlu0 %137  ;;  %v148_v41 = vmul.f32 0.03125, %v144_v35  ;;  %v4545_v35 = vld [vmem:[%s6196_s4 + $0x10] sm:$0xff]  }
 0x17c   :  { %v146_v38 = vmul.f32 0.03125, %v138_v36  ;;  %v4546_v36 = vld [vmem:[%s6196_s4 + $0x18] sm:$0xff]  }
 0x17d   :  { %v172_v50 = vmul.f32 %v148_v41, %v148_v41 }
 0x17e   :  { %v170_v39 = vmul.f32 %v146_v38, %v146_v38  ;;  %v158_v40 = vpop.xlane.xlu1 %157 }
 0x17f   :  { %v166_v42 = vmul.f32 0.03125, %v158_v40  ;;  %v155_v43 = vpop.xlane.xlu0 %154  ;;  %v4550_v40 = vld [vmem:[%s6196_s4 + $0x38] sm:$0xff]  }
 0x180   :  { %v165_v46 = vmul.f32 0.03125, %v155_v43 }
 0x181   :  { %v174_v47 = vsub.f32 %v166_v42, %v170_v39  ;;  %v4549_v39 = vld [vmem:[%s6196_s4 + $0x30] sm:$0xff]  }
 0x182   :  { %v173_v48 = vsub.f32 %v165_v46, %v169_v45  ;;  %v164_v49 = vpop.xlane.xlu1 %163 }
 0x183   :  { %v178_v51 = vmax.f32 %v174_v47, 0.0  ;;  %v168_v52 = vmul.f32 0.03125, %v164_v49  ;;  %v161_v53 = vpop.xlane.xlu0 %160 }
 0x184   :  { %v177_v55 = vmax.f32 %v173_v48, 0.0  ;;  %v167_v56 = vmul.f32 0.03125, %v161_v53 }
 0x185   :  { %v182_v57 = vadd.f32 1e-05, %v178_v51  ;;  %v176_v58 = vsub.f32 %v168_v52, %v172_v50 }
 0x186   :  { %v181_v59 = vadd.f32 1e-05, %v177_v55  ;;  %v175_v60 = vsub.f32 %v167_v56, %v171_v54 }
 0x187   :  { %4603 = vrsqrt.f32 %v182_v57  ;;  %v180_v61 = vmax.f32 %v176_v58, 0.0 }
 0x188   :  { %4605 = vrsqrt.f32 %v181_v59  ;;  %v179_v62 = vmax.f32 %v175_v60, 0.0 }
 0x189   :  { %v184_v63 = vadd.f32 1e-05, %v180_v61 }
 0x18a   :  { %v183_v0 = vadd.f32 1e-05, %v179_v62 }
 0x18b   :  { %4607 = vrsqrt.f32 %v184_v63 }
 0x18c   :  { %4609 = vrsqrt.f32 %v183_v0 }
 0x191   :  { %v4604_v2 = vpop.eup %4603 }
 0x192   :  { %v4606_v3 = vpop.eup %4605  ;;  %v194_v4 = vmul.f32 %v4604_v2, %v3953_v1 }
 0x193   :  { %v193_v6 = vmul.f32 %v4606_v3, %v3953_v1 }
 0x194   :  { %v202_v7 = vmul.f32 %v194_v4, %v146_v38  ;;  %v198_v11 = vmul.f32 %v194_v4, %v4912_v19  ;;  %v4548_v38 = vld [vmem:[%s6196_s4 + $0x28] sm:$0xff]  }
 0x195   :  { %v4608_v8 = vpop.eup %4607  ;;  %v201_v9 = vmul.f32 %v193_v6, %v145_v37  ;;  %v197_v17 = vmul.f32 %v193_v6, %v4906_v14  ;;  %v4547_v37 = vld [vmem:[%s6196_s4 + $0x20] sm:$0xff]  }
 0x196   :  { %v4610_v10 = vpop.eup %4609  ;;  %v210_v13 = vsub.f32 %v3954_v5, %v202_v7  ;;  %v196_v15 = vmul.f32 %v4608_v8, %v3953_v1 }
 0x197   :  { %v209_v18 = vsub.f32 %v3954_v5, %v201_v9  ;;  %v195_v20 = vmul.f32 %v4610_v10, %v3953_v1 }
 0x198   :  { %v214_v21 = vadd.f32 %v210_v13, %v198_v11  ;;  %v204_v22 = vmul.f32 %v196_v15, %v148_v41  ;;  %v200_v25 = vmul.f32 %v196_v15, %v4908_v16  ;;  %v3955_v41 = vld [vmem:[%s6193_s1 + $0x6] ss:$0 sm:$0xff] }
 0x199   :  { %v213_v23 = vadd.f32 %v209_v18, %v197_v17  ;;  %v203_v24 = vmul.f32 %v195_v20, %v147_v44  ;;  %v199_v28 = vmul.f32 %v195_v20, %v4904_v12 }
 0x19a   :  { %v212_v26 = vsub.f32 %v3954_v5, %v204_v22 }
 0x19b   :  { %v217_v27 = vpack.c.bf16 %v214_v21, %v213_v23  ;;  %v211_v29 = vsub.f32 %v3954_v5, %v203_v24 }
 0x19c   :  { %v216_v30 = vadd.f32 %v212_v26, %v200_v25 }
 0x19d   :  { %4314 = vmatprep.mubr.msk.bf16.mxu1 %vm132_vm1, %v217_v27  ;;  %v215_v31 = vadd.f32 %v211_v29, %v199_v28  ;;  %v3960_v28 = vld [vmem:[%s6193_s1 + $0x7] ss:$0 sm:$0xff] }
 0x19f   :  { %v218_v32 = vpack.c.bf16 %v216_v30, %v215_v31 }
 0x1a1   :  { %4315 = vmatmul.mubr.msk.bf16.vlgmr.msra.gmra.mrb[0].mxu1 %vm132_vm1, %v218_v32 }
 0x1a2   :  { %4319 = vmatpush3.bf16.msra.mxu1 %v4543_v33 }
 0x1a3   :  { %4320 = vmatprep.subr.bf16.mxu1 %v4544_v34 }
 0x1a6   :  { %4321 = vmatpush3.bf16.msra.mxu1 %v4544_v34 }
 0x1a7   :  { %4322 = vmatprep.subr.bf16.mxu1 %v4545_v35 }
 0x1aa   :  { %4323 = vmatpush3.bf16.msra.mxu1 %v4545_v35 }
 0x1ab   :  { %4324 = vmatprep.subr.bf16.mxu1 %v4546_v36 }
 0x1ae   :  { %4325 = vmatpush3.bf16.msra.mxu1 %v4546_v36 }
 0x1af   :  { %4326 = vmatprep.subr.bf16.mxu1 %v4547_v37 }
 0x1b2   :  { %4327 = vmatpush3.bf16.msra.mxu1 %v4547_v37 }
 0x1b3   :  { %4328 = vmatprep.subr.bf16.mxu1 %v4548_v38 }
 0x1b6   :  { %4329 = vmatpush3.bf16.msra.mxu1 %v4548_v38 }
 0x1b7   :  { %4330 = vmatprep.subr.bf16.mxu1 %v4549_v39 }
 0x1ba   :  { %4331 = vmatpush3.bf16.msra.mxu1 %v4549_v39 }
 0x1bb   :  { %4332 = vmatprep.subr.bf16.mxu1 %v4550_v40 }
 0x1be   :  { %4333 = vmatpush3.bf16.msra.mxu1 %v4550_v40 }
 0x274   :  { %v4316_v42 = vpop.f32.mrb[0].mxu1 }
 0x275   :  { %v289_v43 = vadd.f32 %v4316_v42, %v3955_v41  ;;  %v280_v44 = vpop.f32.mrb[1].mxu1 }
 0x276   :  { %v281_v45 = vadd.f32 %v3955_v41, %v280_v44  ;;  %v4317_v46 = vpop.f32.mrb[2].mxu1 }
 0x277   :  { %v297_v47 = vmul.f32 %v289_v43, %v289_v43  ;;  %v292_v48 = vadd.f32 %v4317_v46, %v3955_v41  ;;  %v283_v49 = vpop.f32.mrb[3].mxu1 }
 0x278   :  { %v295_v50 = vmul.f32 %v281_v45, %v281_v45  ;;  %v284_v51 = vadd.f32 %v3955_v41, %v283_v49 }
 0x279   :  { %v301_v52 = vmul.f32 %v297_v47, %v289_v43  ;;  %v298_v53 = vmul.f32 %v292_v48, %v292_v48 }
 0x27a   :  { %v299_v54 = vmul.f32 %v295_v50, %v281_v45  ;;  %v296_v55 = vmul.f32 %v284_v51, %v284_v51 }
 0x27b   :  { %v305_v56 = vmul.f32 0.044715, %v301_v52  ;;  %v302_v57 = vmul.f32 %v298_v53, %v292_v48 }
 0x27c   :  { %v303_v58 = vmul.f32 0.044715, %v299_v54  ;;  %v300_v59 = vmul.f32 %v296_v55, %v284_v51 }
 0x27d   :  { %v309_v60 = vadd.f32 %v305_v56, %v289_v43  ;;  %v306_v61 = vmul.f32 0.044715, %v302_v57 }
 0x27e   :  { %v307_v62 = vadd.f32 %v303_v58, %v281_v45  ;;  %v304_v63 = vmul.f32 0.044715, %v300_v59 }
 0x27f   :  { %v313_v0 = vmul.f32 0.7978846, %v309_v60  ;;  %v310_v1 = vadd.f32 %v306_v61, %v292_v48 }
 0x280   :  { %v311_v2 = vmul.f32 0.7978846, %v307_v62  ;;  %v308_v3 = vadd.f32 %v304_v63, %v284_v51 }
 0x281   :  { %4611 = vtanh.f32 %v313_v0  ;;  %v314_v4 = vmul.f32 0.7978846, %v310_v1 }
 0x282   :  { %4613 = vtanh.f32 %v311_v2  ;;  %v312_v5 = vmul.f32 0.7978846, %v308_v3 }
 0x283   :  { %4615 = vtanh.f32 %v314_v4 }
 0x284   :  { %4617 = vtanh.f32 %v312_v5  ;;  %v4551_v5 = vld [vmem:[%s6197_s5] sm:$0xff]  }
 0x285   :  { %4338 = vmatprep.subr.bf16.mxu0 %v4551_v5 }
 0x286   :  { %4339 = vmatpush3.bf16.msra.mxu0 %v4551_v5 }
 0x28b   :  { %v4612_v6 = vpop.eup %4611 }
 0x28c   :  { %v4614_v7 = vpop.eup %4613  ;;  %v321_v8 = vadd.f32 1.0, %v4612_v6 }
 0x28d   :  { %v4616_v9 = vpop.eup %4615  ;;  %v319_v10 = vadd.f32 1.0, %v4614_v7 }
 0x28e   :  { %v4618_v11 = vpop.eup %4617  ;;  %v325_v13 = vmul.f32 0.5, %v321_v8  ;;  %v322_v15 = vadd.f32 1.0, %v4616_v9 }
 0x28f   :  { %v320_v17 = vadd.f32 1.0, %v4618_v11  ;;  %v323_v18 = vmul.f32 0.5, %v319_v10 }
 0x290   :  { %v326_v20 = vmul.f32 0.5, %v322_v15  ;;  %v329_v22 = vmul.f32 %v325_v13, %v289_v43 }
 0x291   :  { %v324_v21 = vmul.f32 0.5, %v320_v17  ;;  %v327_v24 = vmul.f32 %v323_v18, %v281_v45 }
 0x292   :  { %v330_v23 = vmul.f32 %v326_v20, %v292_v48 }
 0x293   :  { %v328_v25 = vmul.f32 %v324_v21, %v284_v51 }
 0x294   :  { %v332_v26 = vpack.c.bf16 %v330_v23, %v329_v22 }
 0x295   :  { %v331_v27 = vpack.c.bf16 %v328_v25, %v327_v24 }
 0x297   :  { %4334 = vmatprep.mubr.bf16.mxu1 %v331_v27 }
 0x298   :  { %4335 = vmatmul.mubr.bf16.vlgmr.msra.gmra.mrb[4].mxu1 %v332_v26 }
 0x36b   :  { %v4336_v29 = vpop.f32.mrb[4].mxu1 }
 0x36c   :  { %v445_v30 = vadd.f32 %v4336_v29, %v3960_v28  ;;  %v436_v31 = vpop.f32.mrb[5].mxu1 }
 0x36d   :  { %v437_v32 = vadd.f32 %v3960_v28, %v436_v31  ;;  %v4337_v33 = vpop.f32.mrb[6].mxu1 }
 0x36e   :  { %v448_v34 = vadd.f32 %v4337_v33, %v3960_v28  ;;  %v439_v35 = vpop.f32.mrb[7].mxu1  ;;  %v4981_v36 = vadd.f32 %v445_v30, %v4904_v12 }
 0x36f   :  { %v440_v37 = vadd.f32 %v3960_v28, %v439_v35  ;;  %v4984_v38 = vadd.f32 %v437_v32, %v4906_v14 }
 0x370   :  { %487 = vxpose.xlu1.b32.start [1/2] (short) (narrow) %v4981_v36, 32  ;;  %v4989_v39 = vadd.f32 %v448_v34, %v4908_v16 }
 0x371   :  { %455 = vxpose.xlu0.b32.start [1/2] (short) (narrow) %v4984_v38, 32  ;;  %v4992_v40 = vadd.f32 %v440_v37, %v4912_v19 }
 0x374   :  { %488 = vxpose.xlu1.b32.end [2/2] (short) (narrow) %v4989_v39, 32 }
 0x375   :  { %456 = vxpose.xlu0.b32.end [2/2] (short) (narrow) %v4992_v40, 32 }
 0x3f0   :  { %v4996_v12 = vpop.trf.xlu1 }
 0x3f1   :  { %v534_v14 = vsel %vm521_vm2, %v4996_v12, 0.0  ;;  %v5000_v41 = vpop.trf.xlu0  ;;  %v558_v59 = vmul.f32 %v4996_v12, %v4996_v12 }
 0x3f2   :  { %535 = vadd.xlane.f32.xlu0 %v534_v14  ;;  %v522_v16 = vsel %vm521_vm2, %v5000_v41, 0.0  ;;  %v554_v44 = vmul.f32 %v5000_v41, %v5000_v41 }
 0x3f3   :  { %v574_v61 = vsel %vm521_vm2, %v558_v59, 0.0 }
 0x3f4   :  { %v5004_v42 = vpop.trf.xlu1  ;;  %v562_v47 = vsel %vm521_vm2, %v554_v44, 0.0 }
 0x3f5   :  { %v537_v19 = vsel %vm521_vm2, %v5004_v42, 0.0  ;;  %v5008_v43 = vpop.trf.xlu0  ;;  %v559_v0 = vmul.f32 %v5004_v42, %v5004_v42 }
 0x3f6   :  { %538 = vadd.xlane.f32.xlu1 %v537_v19  ;;  %523 = vadd.xlane.f32.xlu0 %v522_v16  ;;  %v525_v45 = vsel %vm521_vm2, %v5008_v43, 0.0  ;;  %v555_v48 = vmul.f32 %v5008_v43, %v5008_v43 }
 0x3f7   :  { %v577_v2 = vsel %vm521_vm2, %v559_v0, 0.0 }
 0x3f8   :  { %v5014_v46 = vpop.trf.xlu1  ;;  %v565_v52 = vsel %vm521_vm2, %v555_v48, 0.0 }
 0x3f9   :  { %v5019_v49 = vpop.trf.xlu0  ;;  %v540_v50 = vsel %vm521_vm2, %v5014_v46, 0.0  ;;  %v560_v63 = vmul.f32 %v5014_v46, %v5014_v46 }
 0x3fa   :  { %563 = vadd.xlane.f32.xlu0 %v562_v47  ;;  %526 = vadd.xlane.f32.xlu1 %v525_v45  ;;  %v528_v54 = vsel %vm521_vm2, %v5019_v49, 0.0  ;;  %v556_v56 = vmul.f32 %v5019_v49, %v5019_v49 }
 0x3fb   :  { %v580_v1 = vsel %vm521_vm2, %v560_v63, 0.0 }
 0x3fc   :  { %v5023_v51 = vpop.trf.xlu1  ;;  %v568_v58 = vsel %vm521_vm2, %v556_v56, 0.0 }
 0x3fd   :  { %v543_v53 = vsel %vm521_vm2, %v5023_v51, 0.0  ;;  %v5030_v55 = vpop.trf.xlu0  ;;  %v561_v3 = vmul.f32 %v5023_v51, %v5023_v51 }
 0x3fe   :  { %541 = vadd.xlane.f32.xlu0 %v540_v50  ;;  %566 = vadd.xlane.f32.xlu1 %v565_v52  ;;  %v531_v57 = vsel %vm521_vm2, %v5030_v55, 0.0  ;;  %v557_v60 = vmul.f32 %v5030_v55, %v5030_v55  ;;  %v5076_v50 = vld [vmem:[%s6193_s1 + $0x8] ss:$0 sm:$0xff] }
 0x3ff   :  { %v583_v4 = vsel %vm521_vm2, %v561_v3, 0.0 }
 0x400   :  { %v571_v62 = vsel %vm521_vm2, %v557_v60, 0.0 }
 0x402   :  { %544 = vadd.xlane.f32.xlu1 %v543_v53  ;;  %529 = vadd.xlane.f32.xlu0 %v528_v54 }
 0x406   :  { %569 = vadd.xlane.f32.xlu0 %v568_v58  ;;  %532 = vadd.xlane.f32.xlu1 %v531_v57 }
 0x40a   :  { %575 = vadd.xlane.f32.xlu0 %v574_v61  ;;  %572 = vadd.xlane.f32.xlu1 %v571_v62 }
 0x40e   :  { %581 = vadd.xlane.f32.xlu0 %v580_v1  ;;  %578 = vadd.xlane.f32.xlu1 %v577_v2 }
 0x412   :  { %584 = vadd.xlane.f32.xlu1 %v583_v4 }
 0x47f   :  { %v536_v6 = vpop.xlane.xlu0 %535 }
 0x480   :  { %v5061_v32 = vmul.f32 0.0625, %v536_v6 }
 0x482   :  { %v598_v19 = vmul.f32 %v5061_v32, %v5061_v32 }
 0x483   :  { %v539_v7 = vpop.xlane.xlu1 %538  ;;  %v524_v8 = vpop.xlane.xlu0 %523 }
 0x484   :  { %v546_v9 = vmul.f32 0.0625, %v524_v8  ;;  %v5069_v44 = vmul.f32 0.0625, %v539_v7 }
 0x486   :  { %v594_v13 = vmul.f32 %v546_v9, %v546_v9  ;;  %v599_v61 = vmul.f32 %v5069_v44, %v5069_v44 }
 0x487   :  { %v527_v10 = vpop.xlane.xlu1 %526  ;;  %v564_v11 = vpop.xlane.xlu0 %563 }
 0x488   :  { %v5055_v15 = vmul.f32 0.0625, %v527_v10  ;;  %v586_v17 = vmul.f32 0.0625, %v564_v11 }
 0x48a   :  { %v602_v18 = vsub.f32 %v586_v17, %v594_v13  ;;  %v595_v22 = vmul.f32 %v5055_v15, %v5055_v15  ;;  %v5090_v17 = vld [vmem:[%s6193_s1 + $0x9] ss:$0 sm:$0xff] }
 0x48b   :  { %v567_v20 = vpop.xlane.xlu1 %566  ;;  %v542_v21 = vpop.xlane.xlu0 %541 }
 0x48c   :  { %v610_v23 = vmax.f32 %v602_v18, 0.0  ;;  %v587_v24 = vmul.f32 0.0625, %v567_v20  ;;  %v5078_v56 = vmul.f32 0.0625, %v542_v21 }
 0x48e   :  { %v618_v25 = vadd.f32 1e-05, %v610_v23  ;;  %v603_v26 = vsub.f32 %v587_v24, %v595_v22  ;;  %v600_v5 = vmul.f32 %v5078_v56, %v5078_v56 }
 0x48f   :  { %v545_v27 = vpop.xlane.xlu1 %544  ;;  %v530_v28 = vpop.xlane.xlu0 %529 }
 0x490   :  { %4619 = vrsqrt.f32 %v618_v25  ;;  %v611_v29 = vmax.f32 %v603_v26, 0.0  ;;  %v5059_v30 = vmul.f32 0.0625, %v530_v28  ;;  %v5082_v62 = vmul.f32 0.0625, %v545_v27 }
 0x492   :  { %v619_v31 = vadd.f32 1e-05, %v611_v29  ;;  %v596_v35 = vmul.f32 %v5059_v30, %v5059_v30  ;;  %v601_v22 = vmul.f32 %v5082_v62, %v5082_v62 }
 0x493   :  { %v533_v33 = vpop.xlane.xlu1 %532  ;;  %v570_v34 = vpop.xlane.xlu0 %569 }
 0x494   :  { %4621 = vrsqrt.f32 %v619_v31  ;;  %v5065_v37 = vmul.f32 0.0625, %v533_v33  ;;  %v588_v14 = vmul.f32 0.0625, %v570_v34 }
 0x496   :  { %v604_v16 = vsub.f32 %v588_v14, %v596_v35  ;;  %v597_v48 = vmul.f32 %v5065_v37, %v5065_v37 }
 0x497   :  { %v573_v45 = vpop.xlane.xlu1 %572  ;;  %v576_v47 = vpop.xlane.xlu0 %575 }
 0x498   :  { %v612_v52 = vmax.f32 %v604_v16, 0.0  ;;  %v589_v53 = vmul.f32 0.0625, %v573_v45  ;;  %v590_v54 = vmul.f32 0.0625, %v576_v47 }
 0x49a   :  { %v4620_v57 = vpop.eup %4619  ;;  %v620_v58 = vadd.f32 1e-05, %v612_v52  ;;  %v605_v59 = vsub.f32 %v589_v53, %v597_v48  ;;  %v606_v60 = vsub.f32 %v590_v54, %v598_v19 }
 0x49b   :  { %v579_v63 = vpop.xlane.xlu1 %578  ;;  %v582_v0 = vpop.xlane.xlu0 %581  ;;  %v638_v1 = vmul.f32 %v4620_v57, %v5076_v50 }
 0x49c   :  { %4623 = vrsqrt.f32 %v620_v58  ;;  %v613_v2 = vmax.f32 %v605_v59, 0.0  ;;  %v614_v3 = vmax.f32 %v606_v60, 0.0  ;;  %v591_v4 = vmul.f32 0.0625, %v579_v63 }
 0x49d   :  { %v592_v6 = vmul.f32 0.0625, %v582_v0  ;;  %v654_v7 = vmul.f32 %v638_v1, %v546_v9  ;;  %v646_v31 = vmul.f32 %v638_v1, %v5000_v41 }
 0x49e   :  { %v4622_v8 = vpop.eup %4621  ;;  %v621_v10 = vadd.f32 1e-05, %v613_v2  ;;  %v622_v11 = vadd.f32 1e-05, %v614_v3  ;;  %v607_v13 = vsub.f32 %v591_v4, %v599_v61 }
 0x49f   :  { %v608_v18 = vsub.f32 %v592_v6, %v600_v5  ;;  %v585_v20 = vpop.xlane.xlu1 %584  ;;  %v639_v21 = vmul.f32 %v4622_v8, %v5076_v50  ;;  %v666_v26 = vsub.f32 %v5090_v17, %v654_v7 }
 0x4a0   :  { %4625 = vrsqrt.f32 %v621_v10  ;;  %v615_v23 = vmax.f32 %v607_v13, 0.0  ;;  %v593_v24 = vmul.f32 0.0625, %v585_v20 }
 0x4a1   :  { %4627 = vrsqrt.f32 %v622_v11  ;;  %v616_v9 = vmax.f32 %v608_v18, 0.0  ;;  %v655_v25 = vmul.f32 %v639_v21, %v5055_v15  ;;  %v647_v33 = vmul.f32 %v639_v21, %v5008_v43 }
 0x4a2   :  { %v623_v27 = vadd.f32 1e-05, %v615_v23  ;;  %v609_v28 = vsub.f32 %v593_v24, %v601_v22  ;;  %v674_v14 = vadd.f32 %v666_v26, %v646_v31  ;;  %v3971_v22 = vld [vmem:[%s6193_s1 + $0xa] ss:$0 sm:$0xff] }
 0x4a3   :  { %v624_v29 = vadd.f32 1e-05, %v616_v9  ;;  %v667_v34 = vsub.f32 %v5090_v17, %v655_v25 }
 0x4a4   :  { %4629 = vrsqrt.f32 %v623_v27  ;;  %v617_v35 = vmax.f32 %v609_v28, 0.0 }
 0x4a5   :  { %4631 = vrsqrt.f32 %v624_v29  ;;  %v675_v16 = vadd.f32 %v667_v34, %v647_v33 }
 0x4a6   :  { %v4624_v19 = vpop.eup %4623  ;;  %v625_v45 = vadd.f32 1e-05, %v617_v35 }
 0x4a7   :  { %v640_v15 = vmul.f32 %v4624_v19, %v5076_v50  ;;  %v682_v47 = vpack.c.bf16 %v675_v16, %v674_v14 }
 0x4a8   :  { %4633 = vrsqrt.f32 %v625_v45 }
 0x4a9   :  { %4340 = vmatprep.mubr.msk.bf16.mxu0 %vm521_vm2, %v682_v47  ;;  %v656_v48 = vmul.f32 %v640_v15, %v5059_v30  ;;  %v648_v61 = vmul.f32 %v640_v15, %v5019_v49 }
 0x4aa   :  { %v4626_v41 = vpop.eup %4625 }
 0x4ab   :  { %v4628_v52 = vpop.eup %4627  ;;  %v641_v43 = vmul.f32 %v4626_v41, %v5076_v50  ;;  %v668_v57 = vsub.f32 %v5090_v17, %v656_v48 }
 0x4ac   :  { %v642_v53 = vmul.f32 %v4628_v52, %v5076_v50 }
 0x4ad   :  { %v657_v54 = vmul.f32 %v641_v43, %v5065_v37  ;;  %v649_v63 = vmul.f32 %v641_v43, %v5030_v55  ;;  %v676_v2 = vadd.f32 %v668_v57, %v648_v61 }
 0x4ae   :  { %v4630_v58 = vpop.eup %4629  ;;  %v658_v59 = vmul.f32 %v642_v53, %v5061_v32  ;;  %v650_v32 = vmul.f32 %v642_v53, %v4996_v12 }
 0x4af   :  { %v4632_v60 = vpop.eup %4631  ;;  %v669_v30 = vsub.f32 %v5090_v17, %v657_v54  ;;  %v643_v0 = vmul.f32 %v4630_v58, %v5076_v50 }
 0x4b0   :  { %v644_v1 = vmul.f32 %v4632_v60, %v5076_v50  ;;  %v670_v4 = vsub.f32 %v5090_v17, %v658_v59 }
 0x4b1   :  { %v677_v3 = vadd.f32 %v669_v30, %v649_v63  ;;  %v659_v37 = vmul.f32 %v643_v0, %v5069_v44  ;;  %v651_v55 = vmul.f32 %v643_v0, %v5004_v42 }
 0x4b2   :  { %v4634_v5 = vpop.eup %4633  ;;  %v660_v6 = vmul.f32 %v644_v1, %v5078_v56  ;;  %v678_v10 = vadd.f32 %v670_v4, %v650_v32  ;;  %v652_v12 = vmul.f32 %v644_v1, %v5014_v46  ;;  %v4553_v46 = vld [vmem:[%s6198_s6 + $0x8] sm:$0xff]  }
 0x4b3   :  { %v683_v49 = vpack.c.bf16 %v677_v3, %v676_v2  ;;  %v671_v7 = vsub.f32 %v5090_v17, %v659_v37  ;;  %v645_v8 = vmul.f32 %v4634_v5, %v5076_v50 }
 0x4b4   :  { %v672_v13 = vsub.f32 %v5090_v17, %v660_v6 }
 0x4b5   :  { %4341 = vmatmul.mubr.msk.bf16.vlgmr.msra.gmra.mrb[4].mxu0 %vm521_vm2, %v683_v49  ;;  %v679_v11 = vadd.f32 %v671_v7, %v651_v55  ;;  %v661_v44 = vmul.f32 %v645_v8, %v5082_v62  ;;  %v653_v56 = vmul.f32 %v645_v8, %v5023_v51  ;;  %v4552_v62 = vld [vmem:[%s6198_s6] sm:$0xff]   ;;  %v4554_v51 = vld [vmem:[%s6198_s6 + $0x10] sm:$0xff]  }
 0x4b6   :  { %v680_v42 = vadd.f32 %v672_v13, %v652_v12  ;;  %4348 = vmatprep.subr.bf16.mxu0 %v4552_v62 }
 0x4b7   :  { %v684_v18 = vpack.c.bf16 %v679_v11, %v678_v10  ;;  %v673_v20 = vsub.f32 %v5090_v17, %v661_v44  ;;  %4349 = vmatpush3.bf16.msra.mxu0 %v4552_v62  ;;  %v4555_v17 = vld [vmem:[%s6198_s6 + $0x18] sm:$0xff]  }
 0x4b8   :  { %4350 = vmatprep.subr.bf16.mxu0 %v4553_v46 }
 0x4b9   :  { %4344 = vmatprep.mubr.msk.bf16.mxu0 %vm521_vm2, %v684_v18  ;;  %v681_v21 = vadd.f32 %v673_v20, %v653_v56 }
 0x4bb   :  { %v685_v50 = vpack.c.bf16 %v681_v21, %v680_v42  ;;  %4351 = vmatpush3.bf16.msra.mxu0 %v4553_v46 }
 0x4bc   :  { %4352 = vmatprep.subr.bf16.mxu0 %v4554_v51 }
 0x4bd   :  { %4345 = vmatmul.mubr.msk.bf16.gmra.mrb[8].mxu0 %vm521_vm2, %v685_v50 }
 0x4bf   :  { %4353 = vmatpush3.bf16.msra.mxu0 %v4554_v51 }
 0x4c0   :  { %4354 = vmatprep.subr.bf16.mxu0 %v4555_v17 }
 0x4c3   :  { %4355 = vmatpush3.bf16.msra.mxu0 %v4555_v17 }
 0x588   :  { %v4342_v23 = vpop.f32.mrb[4].mxu0 }
 0x589   :  { %v5143_v24 = vadd.f32 %v4342_v23, %v3971_v22  ;;  %v745_v9 = vpop.f32.mrb[5].mxu0 }
 0x58a   :  { %v5145_v25 = vadd.f32 %v3971_v22, %v745_v9  ;;  %v4343_v26 = vpop.f32.mrb[6].mxu0 }
 0x58b   :  { %v778_v27 = vmul.f32 %v5143_v24, %v5143_v24  ;;  %v5149_v28 = vadd.f32 %v4343_v26, %v3971_v22  ;;  %v748_v29 = vpop.f32.mrb[7].mxu0 }
 0x58c   :  { %v776_v31 = vmul.f32 %v5145_v25, %v5145_v25  ;;  %v5153_v33 = vadd.f32 %v3971_v22, %v748_v29 }
 0x58d   :  { %v786_v34 = vmul.f32 %v778_v27, %v5143_v24  ;;  %v779_v35 = vmul.f32 %v5149_v28, %v5149_v28 }
 0x58e   :  { %v784_v14 = vmul.f32 %v776_v31, %v5145_v25  ;;  %v777_v16 = vmul.f32 %v5153_v33, %v5153_v33 }
 0x58f   :  { %v794_v19 = vmul.f32 0.044715, %v786_v34  ;;  %v787_v45 = vmul.f32 %v779_v35, %v5149_v28 }
 0x590   :  { %v792_v15 = vmul.f32 0.044715, %v784_v14  ;;  %v785_v47 = vmul.f32 %v777_v16, %v5153_v33  ;;  %v4346_v48 = vpop.f32.mrb[8].mxu0 }
 0x591   :  { %v802_v41 = vadd.f32 %v794_v19, %v5143_v24  ;;  %v795_v52 = vmul.f32 0.044715, %v787_v45  ;;  %v5164_v43 = vadd.f32 %v4346_v48, %v3971_v22  ;;  %v761_v53 = vpop.f32.mrb[9].mxu0 }
 0x592   :  { %v800_v54 = vadd.f32 %v792_v15, %v5145_v25  ;;  %v793_v57 = vmul.f32 0.044715, %v785_v47  ;;  %v5167_v58 = vadd.f32 %v3971_v22, %v761_v53  ;;  %v4347_v59 = vpop.f32.mrb[10].mxu0 }
 0x593   :  { %v810_v60 = vmul.f32 0.7978846, %v802_v41  ;;  %v803_v61 = vadd.f32 %v795_v52, %v5149_v28  ;;  %v782_v63 = vmul.f32 %v5164_v43, %v5164_v43  ;;  %v5172_v30 = vadd.f32 %v4347_v59, %v3971_v22  ;;  %v764_v0 = vpop.f32.mrb[11].mxu0 }
 0x594   :  { %v808_v1 = vmul.f32 0.7978846, %v800_v54  ;;  %v801_v2 = vadd.f32 %v793_v57, %v5153_v33  ;;  %v780_v3 = vmul.f32 %v5167_v58, %v5167_v58  ;;  %v5177_v37 = vadd.f32 %v3971_v22, %v764_v0 }
 0x595   :  { %4635 = vtanh.f32 %v810_v60  ;;  %v811_v4 = vmul.f32 0.7978846, %v803_v61  ;;  %v790_v5 = vmul.f32 %v782_v63, %v5164_v43  ;;  %v783_v32 = vmul.f32 %v5172_v30, %v5172_v30 }
 0x596   :  { %4637 = vtanh.f32 %v808_v1  ;;  %v809_v6 = vmul.f32 0.7978846, %v801_v2  ;;  %v788_v49 = vmul.f32 %v780_v3, %v5167_v58  ;;  %v781_v55 = vmul.f32 %v5177_v37, %v5177_v37 }
 0x597   :  { %4639 = vtanh.f32 %v811_v4  ;;  %v798_v7 = vmul.f32 0.044715, %v790_v5  ;;  %v791_v8 = vmul.f32 %v783_v32, %v5172_v30  ;;  %v3977_v4 = vld [vmem:[%s6193_s1 + $0xb] ss:$0 sm:$0xff] }
 0x598   :  { %4641 = vtanh.f32 %v809_v6  ;;  %v796_v10 = vmul.f32 0.044715, %v788_v49  ;;  %v789_v11 = vmul.f32 %v781_v55, %v5177_v37 }
 0x599   :  { %v806_v44 = vadd.f32 %v798_v7, %v5164_v43  ;;  %v799_v13 = vmul.f32 0.044715, %v791_v8 }
 0x59a   :  { %v804_v18 = vadd.f32 %v796_v10, %v5167_v58  ;;  %v797_v12 = vmul.f32 0.044715, %v789_v11 }
 0x59b   :  { %v814_v56 = vmul.f32 0.7978846, %v806_v44  ;;  %v807_v20 = vadd.f32 %v799_v13, %v5172_v30 }
 0x59c   :  { %v812_v42 = vmul.f32 0.7978846, %v804_v18  ;;  %v805_v21 = vadd.f32 %v797_v12, %v5177_v37 }
 0x59d   :  { %4643 = vtanh.f32 %v814_v56  ;;  %v815_v50 = vmul.f32 0.7978846, %v807_v20 }
 0x59e   :  { %4645 = vtanh.f32 %v812_v42  ;;  %v813_v62 = vmul.f32 0.7978846, %v805_v21 }
 0x59f   :  { %v4636_v46 = vpop.eup %4635  ;;  %4647 = vtanh.f32 %v815_v50 }
 0x5a0   :  { %v4638_v51 = vpop.eup %4637  ;;  %v826_v17 = vadd.f32 1.0, %v4636_v46  ;;  %4649 = vtanh.f32 %v813_v62 }
 0x5a1   :  { %v4640_v22 = vpop.eup %4639  ;;  %v824_v23 = vadd.f32 1.0, %v4638_v51 }
 0x5a2   :  { %v4642_v9 = vpop.eup %4641  ;;  %v834_v26 = vmul.f32 0.5, %v826_v17  ;;  %v827_v27 = vadd.f32 1.0, %v4640_v22 }
 0x5a3   :  { %v832_v29 = vmul.f32 0.5, %v824_v23  ;;  %v825_v31 = vadd.f32 1.0, %v4642_v9 }
 0x5a4   :  { %v835_v34 = vmul.f32 0.5, %v827_v27  ;;  %v842_v14 = vmul.f32 %v834_v26, %v5143_v24 }
 0x5a5   :  { %v833_v35 = vmul.f32 0.5, %v825_v31  ;;  %v840_v45 = vmul.f32 %v832_v29, %v5145_v25 }
 0x5a6   :  { %v843_v16 = vmul.f32 %v835_v34, %v5149_v28  ;;  %v4556_v34 = vld [vmem:[%s6195_s3 + $0x10] sm:$0xff]  }
 0x5a7   :  { %v4644_v19 = vpop.eup %4643  ;;  %v841_v15 = vmul.f32 %v833_v35, %v5153_v33  ;;  %4364 = vmatprep.subr.bf16.mxu1 %v4556_v34 }
 0x5a8   :  { %v4646_v47 = vpop.eup %4645  ;;  %v849_v48 = vpack.c.bf16 %v843_v16, %v842_v14  ;;  %v830_v41 = vadd.f32 1.0, %v4644_v19  ;;  %4365 = vmatpush3.bf16.msra.mxu1 %v4556_v34 }
 0x5a9   :  { %v4648_v52 = vpop.eup %4647  ;;  %v828_v53 = vadd.f32 1.0, %v4646_v47  ;;  %v848_v54 = vpack.c.bf16 %v841_v15, %v840_v45 }
 0x5aa   :  { %v4650_v57 = vpop.eup %4649  ;;  %v838_v59 = vmul.f32 0.5, %v830_v41  ;;  %v831_v60 = vadd.f32 1.0, %v4648_v52 }
 0x5ab   :  { %v836_v61 = vmul.f32 0.5, %v828_v53  ;;  %v829_v63 = vadd.f32 1.0, %v4650_v57  ;;  %4356 = vmatprep.mubr.msk.bf16.mxu0 %vm74_vm0, %v848_v54 }
 0x5ac   :  { %v839_v24 = vmul.f32 0.5, %v831_v60  ;;  %4357 = vmatmul.mubr.msk.bf16.vlgmr.msra.gmra.mrb[12].mxu0 %vm74_vm0, %v849_v48  ;;  %v846_v25 = vmul.f32 %v838_v59, %v5164_v43 }
 0x5ad   :  { %v837_v28 = vmul.f32 0.5, %v829_v63  ;;  %v844_v0 = vmul.f32 %v836_v61, %v5167_v58 }
 0x5ae   :  { %v847_v33 = vmul.f32 %v839_v24, %v5172_v30 }
 0x5af   :  { %v845_v1 = vmul.f32 %v837_v28, %v5177_v37 }
 0x5b0   :  { %v851_v2 = vpack.c.bf16 %v847_v33, %v846_v25 }
 0x5b1   :  { %v850_v3 = vpack.c.bf16 %v845_v1, %v844_v0 }
 0x5b3   :  { %4360 = vmatprep.mubr.msk.bf16.mxu0 %vm74_vm0, %v850_v3 }
 0x5b4   :  { %4361 = vmatmul.mubr.msk.bf16.gmra.mrb[16].mxu0 %vm74_vm0, %v851_v2 }
 0x67f   :  { %v4358_v5 = vpop.f32.mrb[12].mxu0 }
 0x680   :  { %v935_v32 = vpop.f32.mrb[13].mxu0  ;;  %v944_v55 = vadd.f32 %v4358_v5, %v3977_v4 }
 0x681   :  { %v936_v6 = vadd.f32 %v3977_v4, %v935_v32  ;;  %v4359_v43 = vpop.f32.mrb[14].mxu0 }
 0x682   :  { %v938_v49 = vpop.f32.mrb[15].mxu0  ;;  %v947_v11 = vadd.f32 %v4359_v43, %v3977_v4 }
 0x683   :  { %966 = vxpose.xlu0.b32.start [1/4] (short) (narrow) %v936_v6, 16  ;;  %v939_v30 = vadd.f32 %v3977_v4, %v938_v49  ;;  %v3986_v49 = vld [vmem:[%s6193_s1 + $0xc] ss:$0 sm:$0xff] }
 0x687   :  { %967 = vxpose.xlu0.b32.cont [2/4] (short) (narrow) %v939_v30, 16  ;;  %v4362_v58 = vpop.f32.mrb[16].mxu0 }
 0x688   :  { %v951_v37 = vpop.f32.mrb[17].mxu0  ;;  %v960_v13 = vadd.f32 %v4362_v58, %v3977_v4 }
 0x689   :  { %v952_v7 = vadd.f32 %v3977_v4, %v951_v37  ;;  %v4363_v8 = vpop.f32.mrb[18].mxu0 }
 0x68a   :  { %v954_v10 = vpop.f32.mrb[19].mxu0  ;;  %v963_v18 = vadd.f32 %v4363_v8, %v3977_v4 }
 0x68b   :  { %968 = vxpose.xlu0.b32.cont [3/4] (short) (narrow) %v944_v55, 16  ;;  %998 = vxpose.xlu1.b32.start [1/4] (short) (narrow) %v952_v7, 16  ;;  %v955_v44 = vadd.f32 %v3977_v4, %v954_v10  ;;  %v3987_v10 = vld [vmem:[%s6193_s1 + $0xd] ss:$0 sm:$0xff] }
 0x68f   :  { %969 = vxpose.xlu0.b32.end [4/4] (short) (narrow) %v947_v11, 16  ;;  %999 = vxpose.xlu1.b32.cont [2/4] (short) (narrow) %v955_v44, 16 }
 0x693   :  { %1000 = vxpose.xlu1.b32.cont [3/4] (short) (narrow) %v960_v13, 16 }
 0x697   :  { %1001 = vxpose.xlu1.b32.end [4/4] (short) (narrow) %v963_v18, 16 }
 0x703   :  { %v982_v12 = vpop.trf.xlu0 }
 0x704   :  { %v5207_v56 = vadd.f32 %v982_v12, %v4984_v38 }
 0x706   :  { %v1036_v20 = vsel %vm132_vm1, %v5207_v56, 0.0  ;;  %v1052_v42 = vmul.f32 %v5207_v56, %v5207_v56 }
 0x707   :  { %1037 = vadd.xlane.f32.xlu0 %v1036_v20  ;;  %v983_v21 = vpop.trf.xlu0 }
 0x708   :  { %v5214_v50 = vadd.f32 %v983_v21, %v4992_v40  ;;  %v1056_v62 = vsel %vm132_vm1, %v1052_v42, 0.0 }
 0x70a   :  { %v1039_v46 = vsel %vm132_vm1, %v5214_v50, 0.0  ;;  %v1053_v38 = vmul.f32 %v5214_v50, %v5214_v50 }
 0x70b   :  { %1057 = vadd.xlane.f32.xlu0 %v1056_v62  ;;  %1040 = vadd.xlane.f32.xlu1 %v1039_v46  ;;  %v1014_v51 = vpop.trf.xlu1 }
 0x70c   :  { %v5222_v17 = vadd.f32 %v1014_v51, %v4981_v36  ;;  %v1059_v22 = vsel %vm132_vm1, %v1053_v38, 0.0 }
 0x70e   :  { %v1042_v40 = vsel %vm132_vm1, %v5222_v17, 0.0  ;;  %v1054_v23 = vmul.f32 %v5222_v17, %v5222_v17 }
 0x70f   :  { %1060 = vadd.xlane.f32.xlu1 %v1059_v22  ;;  %1043 = vadd.xlane.f32.xlu0 %v1042_v40  ;;  %v1015_v9 = vpop.trf.xlu1 }
 0x710   :  { %v5230_v26 = vadd.f32 %v1015_v9, %v4989_v39  ;;  %v1062_v27 = vsel %vm132_vm1, %v1054_v23, 0.0  ;;  %v4557_v39 = vld [vmem:[%s6195_s3 + $0x18] sm:$0xff]  }
 0x711   :  { %4366 = vmatprep.subr.bf16.mxu1 %v4557_v39 }
 0x712   :  { %v1045_v36 = vsel %vm132_vm1, %v5230_v26, 0.0  ;;  %v1055_v29 = vmul.f32 %v5230_v26, %v5230_v26  ;;  %4367 = vmatpush3.bf16.msra.mxu1 %v4557_v39 }
 0x713   :  { %1063 = vadd.xlane.f32.xlu0 %v1062_v27  ;;  %1046 = vadd.xlane.f32.xlu1 %v1045_v36 }
 0x714   :  { %v1065_v31 = vsel %vm132_vm1, %v1055_v29, 0.0 }
 0x717   :  { %1066 = vadd.xlane.f32.xlu1 %v1065_v31 }
 0x794   :  { %v1038_v35 = vpop.xlane.xlu0 %1037 }
 0x795   :  { %v1048_v14 = vmul.f32 0.03125, %v1038_v35  ;;  %v4558_v35 = vld [vmem:[%s6196_s4 + $0x40] sm:$0xff]  }
 0x796   :  { %4372 = vmatprep.subr.bf16.mxu0 %v4558_v35 }
 0x797   :  { %v1072_v45 = vmul.f32 %v1048_v14, %v1048_v14  ;;  %4373 = vmatpush3.bf16.msra.mxu0 %v4558_v35 }
 0x798   :  { %v1058_v16 = vpop.xlane.xlu0 %1057  ;;  %v1041_v19 = vpop.xlane.xlu1 %1040 }
 0x799   :  { %v1068_v15 = vmul.f32 0.03125, %v1058_v16  ;;  %v1049_v47 = vmul.f32 0.03125, %v1041_v19  ;;  %v4560_v16 = vld [vmem:[%s6196_s4 + $0x50] sm:$0xff]   ;;  %v4561_v19 = vld [vmem:[%s6196_s4 + $0x58] sm:$0xff]  }
 0x79b   :  { %v1076_v48 = vsub.f32 %v1068_v15, %v1072_v45  ;;  %v1073_v54 = vmul.f32 %v1049_v47, %v1049_v47  ;;  %v4562_v45 = vld [vmem:[%s6196_s4 + $0x60] sm:$0xff]   ;;  %v4563_v15 = vld [vmem:[%s6196_s4 + $0x68] sm:$0xff]  }
 0x79c   :  { %v1044_v41 = vpop.xlane.xlu0 %1043  ;;  %v1061_v52 = vpop.xlane.xlu1 %1060 }
 0x79d   :  { %v1080_v53 = vmax.f32 %v1076_v48, 0.0  ;;  %v1050_v57 = vmul.f32 0.03125, %v1044_v41  ;;  %v1069_v59 = vmul.f32 0.03125, %v1061_v52  ;;  %v4565_v48 = vld [vmem:[%s6196_s4 + $0x78] sm:$0xff]   ;;  %v3992_v41 = vld [vmem:[%s6193_s1 + $0xe] ss:$0 sm:$0xff] }
 0x79f   :  { %v1084_v60 = vadd.f32 1e-05, %v1080_v53  ;;  %v1077_v61 = vsub.f32 %v1069_v59, %v1073_v54  ;;  %v1074_v63 = vmul.f32 %v1050_v57, %v1050_v57 }
 0x7a0   :  { %v1064_v24 = vpop.xlane.xlu0 %1063  ;;  %v1047_v28 = vpop.xlane.xlu1 %1046 }
 0x7a1   :  { %4651 = vrsqrt.f32 %v1084_v60  ;;  %v1081_v25 = vmax.f32 %v1077_v61, 0.0  ;;  %v1070_v33 = vmul.f32 0.03125, %v1064_v24  ;;  %v1051_v0 = vmul.f32 0.03125, %v1047_v28 }
 0x7a3   :  { %v1085_v1 = vadd.f32 1e-05, %v1081_v25  ;;  %v1078_v2 = vsub.f32 %v1070_v33, %v1074_v63  ;;  %v1075_v5 = vmul.f32 %v1051_v0, %v1051_v0 }
 0x7a4   :  { %v1067_v3 = vpop.xlane.xlu1 %1066 }
 0x7a5   :  { %4653 = vrsqrt.f32 %v1085_v1  ;;  %v1082_v4 = vmax.f32 %v1078_v2, 0.0  ;;  %v1071_v32 = vmul.f32 0.03125, %v1067_v3 }
 0x7a7   :  { %v1086_v6 = vadd.f32 1e-05, %v1082_v4  ;;  %v1079_v43 = vsub.f32 %v1071_v32, %v1075_v5 }
 0x7a9   :  { %4655 = vrsqrt.f32 %v1086_v6  ;;  %v1083_v30 = vmax.f32 %v1079_v43, 0.0 }
 0x7ab   :  { %v4652_v58 = vpop.eup %4651  ;;  %v1087_v37 = vadd.f32 1e-05, %v1083_v30 }
 0x7ac   :  { %v1096_v55 = vmul.f32 %v4652_v58, %v3986_v49 }
 0x7ad   :  { %4657 = vrsqrt.f32 %v1087_v37 }
 0x7ae   :  { %v1104_v7 = vmul.f32 %v1096_v55, %v1048_v14  ;;  %v1100_v20 = vmul.f32 %v1096_v55, %v5207_v56  ;;  %v4559_v14 = vld [vmem:[%s6196_s4 + $0x48] sm:$0xff]  }
 0x7af   :  { %v4654_v8 = vpop.eup %4653  ;;  %4374 = vmatprep.subr.bf16.mxu0 %v4559_v14 }
 0x7b0   :  { %v1097_v11 = vmul.f32 %v4654_v8, %v3986_v49  ;;  %v1112_v13 = vsub.f32 %v3987_v10, %v1104_v7  ;;  %4375 = vmatpush3.bf16.msra.mxu0 %v4559_v14 }
 0x7b1   :  { %4376 = vmatprep.subr.bf16.mxu0 %v4560_v16 }
 0x7b2   :  { %v1105_v44 = vmul.f32 %v1097_v11, %v1049_v47  ;;  %v1101_v42 = vmul.f32 %v1097_v11, %v5214_v50  ;;  %v1116_v46 = vadd.f32 %v1112_v13, %v1100_v20  ;;  %v4564_v47 = vld [vmem:[%s6196_s4 + $0x70] sm:$0xff]  }
 0x7b3   :  { %v4656_v18 = vpop.eup %4655 }
 0x7b4   :  { %v1098_v12 = vmul.f32 %v4656_v18, %v3986_v49  ;;  %v1113_v21 = vsub.f32 %v3987_v10, %v1105_v44  ;;  %4377 = vmatpush3.bf16.msra.mxu0 %v4560_v16 }
 0x7b5   :  { %4378 = vmatprep.subr.bf16.mxu0 %v4561_v19 }
 0x7b6   :  { %v1106_v62 = vmul.f32 %v1098_v12, %v1050_v57  ;;  %v1117_v38 = vadd.f32 %v1113_v21, %v1101_v42  ;;  %v1102_v27 = vmul.f32 %v1098_v12, %v5222_v17 }
 0x7b7   :  { %v4658_v51 = vpop.eup %4657 }
 0x7b8   :  { %v1099_v22 = vmul.f32 %v4658_v51, %v3986_v49  ;;  %v1120_v40 = vpack.c.bf16 %v1117_v38, %v1116_v46  ;;  %v1114_v9 = vsub.f32 %v3987_v10, %v1106_v62  ;;  %4379 = vmatpush3.bf16.msra.mxu0 %v4561_v19 }
 0x7b9   :  { %4380 = vmatprep.subr.bf16.mxu0 %v4562_v45 }
 0x7ba   :  { %v1107_v23 = vmul.f32 %v1099_v22, %v1051_v0  ;;  %4368 = vmatprep.mubr.msk.bf16.mxu1 %vm132_vm1, %v1120_v40  ;;  %v1103_v36 = vmul.f32 %v1099_v22, %v5230_v26  ;;  %v1118_v31 = vadd.f32 %v1114_v9, %v1102_v27 }
 0x7bc   :  { %v1115_v29 = vsub.f32 %v3987_v10, %v1107_v23  ;;  %4381 = vmatpush3.bf16.msra.mxu0 %v4562_v45 }
 0x7bd   :  { %4382 = vmatprep.subr.bf16.mxu0 %v4563_v15 }
 0x7be   :  { %v1119_v34 = vadd.f32 %v1115_v29, %v1103_v36  ;;  %v4013_v36 = vld [vmem:[%s6193_s1 + $0xf] ss:$0 sm:$0xff] }
 0x7c0   :  { %v1121_v39 = vpack.c.bf16 %v1119_v34, %v1118_v31  ;;  %4383 = vmatpush3.bf16.msra.mxu0 %v4563_v15 }
 0x7c1   :  { %4384 = vmatprep.subr.bf16.mxu0 %v4564_v47 }
 0x7c2   :  { %4369 = vmatmul.mubr.msk.bf16.vlgmr.msra.gmra.mrb[8].mxu1 %vm132_vm1, %v1121_v39 }
 0x7c4   :  { %4385 = vmatpush3.bf16.msra.mxu0 %v4564_v47 }
 0x7c5   :  { %4386 = vmatprep.subr.bf16.mxu0 %v4565_v48 }
 0x7c8   :  { %4387 = vmatpush3.bf16.msra.mxu0 %v4565_v48 }
 0x895   :  { %v4370_v52 = vpop.f32.mrb[8].mxu1 }
 0x896   :  { %v1193_v53 = vadd.f32 %v4370_v52, %v3992_v41  ;;  %v1184_v54 = vpop.f32.mrb[9].mxu1 }
 0x897   :  { %v1185_v57 = vadd.f32 %v3992_v41, %v1184_v54  ;;  %v4371_v59 = vpop.f32.mrb[10].mxu1 }
 0x898   :  { %v1201_v60 = vmul.f32 %v1193_v53, %v1193_v53  ;;  %v1196_v61 = vadd.f32 %v4371_v59, %v3992_v41  ;;  %v1187_v63 = vpop.f32.mrb[11].mxu1 }
 0x899   :  { %v1199_v24 = vmul.f32 %v1185_v57, %v1185_v57  ;;  %v1188_v28 = vadd.f32 %v3992_v41, %v1187_v63 }
 0x89a   :  { %v1205_v25 = vmul.f32 %v1201_v60, %v1193_v53  ;;  %v1202_v33 = vmul.f32 %v1196_v61, %v1196_v61 }
 0x89b   :  { %v1203_v0 = vmul.f32 %v1199_v24, %v1185_v57  ;;  %v1200_v1 = vmul.f32 %v1188_v28, %v1188_v28 }
 0x89c   :  { %v1209_v2 = vmul.f32 0.044715, %v1205_v25  ;;  %v1206_v3 = vmul.f32 %v1202_v33, %v1196_v61 }
 0x89d   :  { %v1207_v4 = vmul.f32 0.044715, %v1203_v0  ;;  %v1204_v5 = vmul.f32 %v1200_v1, %v1188_v28 }
 0x89e   :  { %v1213_v32 = vadd.f32 %v1209_v2, %v1193_v53  ;;  %v1210_v6 = vmul.f32 0.044715, %v1206_v3 }
 0x89f   :  { %v1211_v43 = vadd.f32 %v1207_v4, %v1185_v57  ;;  %v1208_v49 = vmul.f32 0.044715, %v1204_v5 }
 0x8a0   :  { %v1217_v30 = vmul.f32 0.7978846, %v1213_v32  ;;  %v1214_v58 = vadd.f32 %v1210_v6, %v1196_v61 }
 0x8a1   :  { %v1215_v37 = vmul.f32 0.7978846, %v1211_v43  ;;  %v1212_v55 = vadd.f32 %v1208_v49, %v1188_v28 }
 0x8a2   :  { %4659 = vtanh.f32 %v1217_v30  ;;  %v1218_v7 = vmul.f32 0.7978846, %v1214_v58 }
 0x8a3   :  { %4661 = vtanh.f32 %v1215_v37  ;;  %v1216_v8 = vmul.f32 0.7978846, %v1212_v55 }
 0x8a4   :  { %4663 = vtanh.f32 %v1218_v7 }
 0x8a5   :  { %4665 = vtanh.f32 %v1216_v8  ;;  %v4566_v8 = vld [vmem:[%s6197_s5 + $0x8] sm:$0xff]  }
 0x8a6   :  { %4392 = vmatprep.subr.bf16.mxu1 %v4566_v8 }
 0x8a7   :  { %4393 = vmatpush3.bf16.msra.mxu1 %v4566_v8 }
 0x8ac   :  { %v4660_v10 = vpop.eup %4659 }
 0x8ad   :  { %v4662_v11 = vpop.eup %4661  ;;  %v1225_v44 = vadd.f32 1.0, %v4660_v10 }
 0x8ae   :  { %v4664_v13 = vpop.eup %4663  ;;  %v1223_v18 = vadd.f32 1.0, %v4662_v11 }
 0x8af   :  { %v4666_v12 = vpop.eup %4665  ;;  %v1229_v20 = vmul.f32 0.5, %v1225_v44  ;;  %v1226_v42 = vadd.f32 1.0, %v4664_v13 }
 0x8b0   :  { %v1224_v21 = vadd.f32 1.0, %v4666_v12  ;;  %v1227_v62 = vmul.f32 0.5, %v1223_v18 }
 0x8b1   :  { %v1230_v46 = vmul.f32 0.5, %v1226_v42  ;;  %v1233_v51 = vmul.f32 %v1229_v20, %v1193_v53 }
 0x8b2   :  { %v1228_v38 = vmul.f32 0.5, %v1224_v21  ;;  %v1231_v40 = vmul.f32 %v1227_v62, %v1185_v57 }
 0x8b3   :  { %v1234_v22 = vmul.f32 %v1230_v46, %v1196_v61 }
 0x8b4   :  { %v1232_v23 = vmul.f32 %v1228_v38, %v1188_v28 }
 0x8b5   :  { %v1236_v9 = vpack.c.bf16 %v1234_v22, %v1233_v51 }
 0x8b6   :  { %v1235_v27 = vpack.c.bf16 %v1232_v23, %v1231_v40 }
 0x8b8   :  { %4388 = vmatprep.mubr.bf16.mxu0 %v1235_v27 }
 0x8b9   :  { %4389 = vmatmul.mubr.bf16.vlgmr.msra.gmra.mrb[20].mxu0 %v1236_v9 }
 0x98c   :  { %v4390_v29 = vpop.f32.mrb[20].mxu0 }
 0x98d   :  { %v1350_v31 = vadd.f32 %v4390_v29, %v4013_v36  ;;  %v1341_v34 = vpop.f32.mrb[21].mxu0 }
 0x98e   :  { %v1342_v39 = vadd.f32 %v4013_v36, %v1341_v34  ;;  %v4391_v35 = vpop.f32.mrb[22].mxu0 }
 0x98f   :  { %v5287_v14 = vadd.f32 %v1350_v31, %v5222_v17  ;;  %v1353_v16 = vadd.f32 %v4391_v35, %v4013_v36  ;;  %v1344_v19 = vpop.f32.mrb[23].mxu0 }
 0x990   :  { %v5290_v45 = vadd.f32 %v1342_v39, %v5207_v56  ;;  %v1345_v15 = vadd.f32 %v4013_v36, %v1344_v19 }
 0x991   :  { %1392 = vxpose.xlu1.b32.start [1/2] (short) (narrow) %v5287_v14, 32  ;;  %v5295_v47 = vadd.f32 %v1353_v16, %v5230_v26 }
 0x992   :  { %1360 = vxpose.xlu0.b32.start [1/2] (short) (narrow) %v5290_v45, 32  ;;  %v5298_v48 = vadd.f32 %v1345_v15, %v5214_v50 }
 0x995   :  { %1393 = vxpose.xlu1.b32.end [2/2] (short) (narrow) %v5295_v47, 32 }
 0x996   :  { %1361 = vxpose.xlu0.b32.end [2/2] (short) (narrow) %v5298_v48, 32 }
 0xa11   :  { %v5302_v17 = vpop.trf.xlu1 }
 0xa12   :  { %v1438_v56 = vsel %vm521_vm2, %v5302_v17, 0.0  ;;  %v5306_v41 = vpop.trf.xlu0  ;;  %v1462_v5 = vmul.f32 %v5302_v17, %v5302_v17 }
 0xa13   :  { %1439 = vadd.xlane.f32.xlu0 %v1438_v56  ;;  %v1426_v52 = vsel %vm521_vm2, %v5306_v41, 0.0  ;;  %v1458_v54 = vmul.f32 %v5306_v41, %v5306_v41 }
 0xa14   :  { %v1478_v6 = vsel %vm521_vm2, %v1462_v5, 0.0 }
 0xa15   :  { %v5310_v26 = vpop.trf.xlu1  ;;  %v1466_v60 = vsel %vm521_vm2, %v1458_v54, 0.0 }
 0xa16   :  { %v1441_v50 = vsel %vm521_vm2, %v5310_v26, 0.0  ;;  %v5314_v53 = vpop.trf.xlu0  ;;  %v1463_v30 = vmul.f32 %v5310_v26, %v5310_v26 }
 0xa17   :  { %1442 = vadd.xlane.f32.xlu1 %v1441_v50  ;;  %1427 = vadd.xlane.f32.xlu0 %v1426_v52  ;;  %v1429_v57 = vsel %vm521_vm2, %v5314_v53, 0.0  ;;  %v1459_v61 = vmul.f32 %v5314_v53, %v5314_v53 }
 0xa18   :  { %v1481_v37 = vsel %vm521_vm2, %v1463_v30, 0.0 }
 0xa19   :  { %v5320_v59 = vpop.trf.xlu1  ;;  %v1469_v25 = vsel %vm521_vm2, %v1459_v61, 0.0 }
 0xa1a   :  { %v5325_v63 = vpop.trf.xlu0  ;;  %v1444_v24 = vsel %vm521_vm2, %v5320_v59, 0.0  ;;  %v1464_v49 = vmul.f32 %v5320_v59, %v5320_v59 }
 0xa1b   :  { %1467 = vadd.xlane.f32.xlu0 %v1466_v60  ;;  %1430 = vadd.xlane.f32.xlu1 %v1429_v57  ;;  %v1432_v0 = vsel %vm521_vm2, %v5325_v63, 0.0  ;;  %v1460_v2 = vmul.f32 %v5325_v63, %v5325_v63 }
 0xa1c   :  { %v1484_v58 = vsel %vm521_vm2, %v1464_v49, 0.0 }
 0xa1d   :  { %v5329_v28 = vpop.trf.xlu1  ;;  %v1472_v4 = vsel %vm521_vm2, %v1460_v2, 0.0 }
 0xa1e   :  { %v1447_v33 = vsel %vm521_vm2, %v5329_v28, 0.0  ;;  %v5336_v1 = vpop.trf.xlu0  ;;  %v1465_v55 = vmul.f32 %v5329_v28, %v5329_v28 }
 0xa1f   :  { %1445 = vadd.xlane.f32.xlu0 %v1444_v24  ;;  %1470 = vadd.xlane.f32.xlu1 %v1469_v25  ;;  %v1435_v3 = vsel %vm521_vm2, %v5336_v1, 0.0  ;;  %v1461_v32 = vmul.f32 %v5336_v1, %v5336_v1  ;;  %v5382_v24 = vld [vmem:[%s6193_s1 + $0x10] ss:$0 sm:$0xff] }
 0xa20   :  { %v1487_v7 = vsel %vm521_vm2, %v1465_v55, 0.0 }
 0xa21   :  { %v1475_v43 = vsel %vm521_vm2, %v1461_v32, 0.0 }
 0xa23   :  { %1448 = vadd.xlane.f32.xlu1 %v1447_v33  ;;  %1433 = vadd.xlane.f32.xlu0 %v1432_v0 }
 0xa27   :  { %1473 = vadd.xlane.f32.xlu0 %v1472_v4  ;;  %1436 = vadd.xlane.f32.xlu1 %v1435_v3 }
 0xa2b   :  { %1479 = vadd.xlane.f32.xlu0 %v1478_v6  ;;  %1476 = vadd.xlane.f32.xlu1 %v1475_v43 }
 0xa2f   :  { %1485 = vadd.xlane.f32.xlu0 %v1484_v58  ;;  %1482 = vadd.xlane.f32.xlu1 %v1481_v37 }
 0xa33   :  { %1488 = vadd.xlane.f32.xlu1 %v1487_v7 }
 0xaa0   :  { %v1440_v10 = vpop.xlane.xlu0 %1439 }
 0xaa1   :  { %v5367_v39 = vmul.f32 0.0625, %v1440_v10 }
 0xaa3   :  { %v1502_v50 = vmul.f32 %v5367_v39, %v5367_v39 }
 0xaa4   :  { %v1443_v11 = vpop.xlane.xlu1 %1442  ;;  %v1428_v44 = vpop.xlane.xlu0 %1427 }
 0xaa5   :  { %v1450_v13 = vmul.f32 0.0625, %v1428_v44  ;;  %v5375_v54 = vmul.f32 0.0625, %v1443_v11 }
 0xaa7   :  { %v1498_v20 = vmul.f32 %v1450_v13, %v1450_v13  ;;  %v1503_v6 = vmul.f32 %v5375_v54, %v5375_v54 }
 0xaa8   :  { %v1431_v18 = vpop.xlane.xlu1 %1430  ;;  %v1468_v12 = vpop.xlane.xlu0 %1467 }
 0xaa9   :  { %v5361_v42 = vmul.f32 0.0625, %v1431_v18  ;;  %v1490_v21 = vmul.f32 0.0625, %v1468_v12 }
 0xaab   :  { %v1506_v62 = vsub.f32 %v1490_v21, %v1498_v20  ;;  %v1499_v51 = vmul.f32 %v5361_v42, %v5361_v42  ;;  %v5396_v21 = vld [vmem:[%s6193_s1 + $0x11] ss:$0 sm:$0xff] }
 0xaac   :  { %v1471_v46 = vpop.xlane.xlu1 %1470  ;;  %v1446_v38 = vpop.xlane.xlu0 %1445 }
 0xaad   :  { %v1514_v22 = vmax.f32 %v1506_v62, 0.0  ;;  %v1491_v40 = vmul.f32 0.0625, %v1471_v46  ;;  %v5384_v2 = vmul.f32 0.0625, %v1446_v38 }
 0xaaf   :  { %v1522_v23 = vadd.f32 1e-05, %v1514_v22  ;;  %v1507_v9 = vsub.f32 %v1491_v40, %v1499_v51  ;;  %v1504_v8 = vmul.f32 %v5384_v2, %v5384_v2 }
 0xab0   :  { %v1449_v27 = vpop.xlane.xlu1 %1448  ;;  %v1434_v36 = vpop.xlane.xlu0 %1433 }
 0xab1   :  { %4667 = vrsqrt.f32 %v1522_v23  ;;  %v1515_v29 = vmax.f32 %v1507_v9, 0.0  ;;  %v5365_v31 = vmul.f32 0.0625, %v1434_v36  ;;  %v5388_v43 = vmul.f32 0.0625, %v1449_v27 }
 0xab3   :  { %v1523_v34 = vadd.f32 1e-05, %v1515_v29  ;;  %v1500_v19 = vmul.f32 %v5365_v31, %v5365_v31  ;;  %v1505_v51 = vmul.f32 %v5388_v43, %v5388_v43 }
 0xab4   :  { %v1437_v35 = vpop.xlane.xlu1 %1436  ;;  %v1474_v16 = vpop.xlane.xlu0 %1473 }
 0xab5   :  { %4669 = vrsqrt.f32 %v1523_v34  ;;  %v5371_v15 = vmul.f32 0.0625, %v1437_v35  ;;  %v1492_v56 = vmul.f32 0.0625, %v1474_v16 }
 0xab7   :  { %v1508_v52 = vsub.f32 %v1492_v56, %v1500_v19  ;;  %v1501_v61 = vmul.f32 %v5371_v15, %v5371_v15 }
 0xab8   :  { %v1477_v57 = vpop.xlane.xlu1 %1476  ;;  %v1480_v60 = vpop.xlane.xlu0 %1479 }
 0xab9   :  { %v1516_v25 = vmax.f32 %v1508_v52, 0.0  ;;  %v1493_v33 = vmul.f32 0.0625, %v1477_v57  ;;  %v1494_v0 = vmul.f32 0.0625, %v1480_v60 }
 0xabb   :  { %v4668_v3 = vpop.eup %4667  ;;  %v1524_v4 = vadd.f32 1e-05, %v1516_v25  ;;  %v1509_v5 = vsub.f32 %v1493_v33, %v1501_v61  ;;  %v1510_v32 = vsub.f32 %v1494_v0, %v1502_v50 }
 0xabc   :  { %v1483_v49 = vpop.xlane.xlu1 %1482  ;;  %v1486_v30 = vpop.xlane.xlu0 %1485  ;;  %v1542_v58 = vmul.f32 %v4668_v3, %v5382_v24 }
 0xabd   :  { %4671 = vrsqrt.f32 %v1524_v4  ;;  %v1517_v37 = vmax.f32 %v1509_v5, 0.0  ;;  %v1518_v55 = vmax.f32 %v1510_v32, 0.0  ;;  %v1495_v7 = vmul.f32 0.0625, %v1483_v49 }
 0xabe   :  { %v1496_v10 = vmul.f32 0.0625, %v1486_v30  ;;  %v1558_v11 = vmul.f32 %v1542_v58, %v1450_v13  ;;  %v1550_v34 = vmul.f32 %v1542_v58, %v5306_v41 }
 0xabf   :  { %v4670_v44 = vpop.eup %4669  ;;  %v1525_v18 = vadd.f32 1e-05, %v1517_v37  ;;  %v1526_v12 = vadd.f32 1e-05, %v1518_v55  ;;  %v1511_v20 = vsub.f32 %v1495_v7, %v1503_v6 }
 0xac0   :  { %v1512_v62 = vsub.f32 %v1496_v10, %v1504_v8  ;;  %v1489_v46 = vpop.xlane.xlu1 %1488  ;;  %v1543_v38 = vmul.f32 %v4670_v44, %v5382_v24  ;;  %v1570_v9 = vsub.f32 %v5396_v21, %v1558_v11 }
 0xac1   :  { %4673 = vrsqrt.f32 %v1525_v18  ;;  %v1519_v22 = vmax.f32 %v1511_v20, 0.0  ;;  %v1497_v40 = vmul.f32 0.0625, %v1489_v46 }
 0xac2   :  { %4675 = vrsqrt.f32 %v1526_v12  ;;  %v1520_v13 = vmax.f32 %v1512_v62, 0.0  ;;  %v1559_v23 = vmul.f32 %v1543_v38, %v5361_v42  ;;  %v1551_v35 = vmul.f32 %v1543_v38, %v5314_v53 }
 0xac3   :  { %v1527_v27 = vadd.f32 1e-05, %v1519_v22  ;;  %v1513_v36 = vsub.f32 %v1497_v40, %v1505_v51  ;;  %v1578_v56 = vadd.f32 %v1570_v9, %v1550_v34  ;;  %v4026_v51 = vld [vmem:[%s6193_s1 + $0x12] ss:$0 sm:$0xff] }
 0xac4   :  { %v1528_v29 = vadd.f32 1e-05, %v1520_v13  ;;  %v1571_v16 = vsub.f32 %v5396_v21, %v1559_v23 }
 0xac5   :  { %4677 = vrsqrt.f32 %v1527_v27  ;;  %v1521_v19 = vmax.f32 %v1513_v36, 0.0 }
 0xac6   :  { %4679 = vrsqrt.f32 %v1528_v29  ;;  %v1579_v52 = vadd.f32 %v1571_v16, %v1551_v35 }
 0xac7   :  { %v4672_v50 = vpop.eup %4671  ;;  %v1529_v57 = vadd.f32 1e-05, %v1521_v19 }
 0xac8   :  { %v1544_v42 = vmul.f32 %v4672_v50, %v5382_v24  ;;  %v1586_v60 = vpack.c.bf16 %v1579_v52, %v1578_v56 }
 0xac9   :  { %4681 = vrsqrt.f32 %v1529_v57 }
 0xaca   :  { %v1560_v61 = vmul.f32 %v1544_v42, %v5365_v31  ;;  %4394 = vmatprep.mubr.msk.bf16.mxu1 %vm521_vm2, %v1586_v60  ;;  %v1552_v6 = vmul.f32 %v1544_v42, %v5325_v63 }
 0xacb   :  { %v4674_v41 = vpop.eup %4673 }
 0xacc   :  { %v4676_v25 = vpop.eup %4675  ;;  %v1545_v53 = vmul.f32 %v4674_v41, %v5382_v24  ;;  %v1572_v3 = vsub.f32 %v5396_v21, %v1560_v61 }
 0xacd   :  { %v1546_v33 = vmul.f32 %v4676_v25, %v5382_v24 }
 0xace   :  { %v1561_v0 = vmul.f32 %v1545_v53, %v5371_v15  ;;  %v1553_v31 = vmul.f32 %v1545_v53, %v5336_v1  ;;  %v1580_v37 = vadd.f32 %v1572_v3, %v1552_v6 }
 0xacf   :  { %v4678_v4 = vpop.eup %4677  ;;  %v1562_v5 = vmul.f32 %v1546_v33, %v5367_v39  ;;  %v1554_v39 = vmul.f32 %v1546_v33, %v5302_v17 }
 0xad0   :  { %v4680_v32 = vpop.eup %4679  ;;  %v1573_v49 = vsub.f32 %v5396_v21, %v1561_v0  ;;  %v1547_v30 = vmul.f32 %v4678_v4, %v5382_v24 }
 0xad1   :  { %v1548_v58 = vmul.f32 %v4680_v32, %v5382_v24  ;;  %v1574_v7 = vsub.f32 %v5396_v21, %v1562_v5 }
 0xad2   :  { %v1581_v55 = vadd.f32 %v1573_v49, %v1553_v31  ;;  %v1563_v15 = vmul.f32 %v1547_v30, %v5375_v54  ;;  %v1555_v1 = vmul.f32 %v1547_v30, %v5310_v26 }
 0xad3   :  { %v4682_v8 = vpop.eup %4681  ;;  %v1564_v10 = vmul.f32 %v1548_v58, %v5384_v2  ;;  %v1582_v18 = vadd.f32 %v1574_v7, %v1554_v39  ;;  %v1556_v17 = vmul.f32 %v1548_v58, %v5320_v59  ;;  %v4568_v59 = vld [vmem:[%s6198_s6 + $0x28] sm:$0xff]  }
 0xad4   :  { %v1587_v63 = vpack.c.bf16 %v1581_v55, %v1580_v37  ;;  %v1575_v11 = vsub.f32 %v5396_v21, %v1563_v15  ;;  %v1549_v44 = vmul.f32 %v4682_v8, %v5382_v24 }
 0xad5   :  { %v1576_v20 = vsub.f32 %v5396_v21, %v1564_v10 }
 0xad6   :  { %4395 = vmatmul.mubr.msk.bf16.vlgmr.msra.gmra.mrb[12].mxu1 %vm521_vm2, %v1587_v63  ;;  %v1583_v12 = vadd.f32 %v1575_v11, %v1555_v1  ;;  %v1565_v54 = vmul.f32 %v1549_v44, %v5388_v43  ;;  %v1557_v2 = vmul.f32 %v1549_v44, %v5329_v28  ;;  %v4567_v43 = vld [vmem:[%s6198_s6 + $0x20] sm:$0xff]   ;;  %v4569_v28 = vld [vmem:[%s6198_s6 + $0x30] sm:$0xff]  }
 0xad7   :  { %v1584_v26 = vadd.f32 %v1576_v20, %v1556_v17  ;;  %4402 = vmatprep.subr.bf16.mxu1 %v4567_v43 }
 0xad8   :  { %v1588_v62 = vpack.c.bf16 %v1583_v12, %v1582_v18  ;;  %v1577_v46 = vsub.f32 %v5396_v21, %v1565_v54  ;;  %4403 = vmatpush3.bf16.msra.mxu1 %v4567_v43  ;;  %v4570_v21 = vld [vmem:[%s6198_s6 + $0x38] sm:$0xff]  }
 0xad9   :  { %4404 = vmatprep.subr.bf16.mxu1 %v4568_v59 }
 0xada   :  { %4398 = vmatprep.mubr.msk.bf16.mxu1 %vm521_vm2, %v1588_v62  ;;  %v1585_v38 = vadd.f32 %v1577_v46, %v1557_v2 }
 0xadc   :  { %v1589_v24 = vpack.c.bf16 %v1585_v38, %v1584_v26  ;;  %4405 = vmatpush3.bf16.msra.mxu1 %v4568_v59 }
 0xadd   :  { %4406 = vmatprep.subr.bf16.mxu1 %v4569_v28 }
 0xade   :  { %4399 = vmatmul.mubr.msk.bf16.gmra.mrb[16].mxu1 %vm521_vm2, %v1589_v24 }
 0xae0   :  { %4407 = vmatpush3.bf16.msra.mxu1 %v4569_v28 }
 0xae1   :  { %4408 = vmatprep.subr.bf16.mxu1 %v4570_v21 }
 0xae4   :  { %4409 = vmatpush3.bf16.msra.mxu1 %v4570_v21 }
 0xba9   :  { %v4396_v22 = vpop.f32.mrb[12].mxu1 }
 0xbaa   :  { %v5449_v40 = vadd.f32 %v4396_v22, %v4026_v51  ;;  %v1650_v13 = vpop.f32.mrb[13].mxu1 }
 0xbab   :  { %v5451_v23 = vadd.f32 %v4026_v51, %v1650_v13  ;;  %v4397_v9 = vpop.f32.mrb[14].mxu1 }
 0xbac   :  { %v1683_v27 = vmul.f32 %v5449_v40, %v5449_v40  ;;  %v5455_v36 = vadd.f32 %v4397_v9, %v4026_v51  ;;  %v1653_v29 = vpop.f32.mrb[15].mxu1 }
 0xbad   :  { %v1681_v34 = vmul.f32 %v5451_v23, %v5451_v23  ;;  %v5459_v35 = vadd.f32 %v4026_v51, %v1653_v29 }
 0xbae   :  { %v1691_v16 = vmul.f32 %v1683_v27, %v5449_v40  ;;  %v1684_v19 = vmul.f32 %v5455_v36, %v5455_v36 }
 0xbaf   :  { %v1689_v56 = vmul.f32 %v1681_v34, %v5451_v23  ;;  %v1682_v52 = vmul.f32 %v5459_v35, %v5459_v35 }
 0xbb0   :  { %v1699_v50 = vmul.f32 0.044715, %v1691_v16  ;;  %v1692_v57 = vmul.f32 %v1684_v19, %v5455_v36 }
 0xbb1   :  { %v1697_v42 = vmul.f32 0.044715, %v1689_v56  ;;  %v1690_v60 = vmul.f32 %v1682_v52, %v5459_v35  ;;  %v4400_v61 = vpop.f32.mrb[16].mxu1 }
 0xbb2   :  { %v1707_v41 = vadd.f32 %v1699_v50, %v5449_v40  ;;  %v1700_v25 = vmul.f32 0.044715, %v1692_v57  ;;  %v5470_v53 = vadd.f32 %v4400_v61, %v4026_v51  ;;  %v1666_v33 = vpop.f32.mrb[17].mxu1 }
 0xbb3   :  { %v1705_v0 = vadd.f32 %v1697_v42, %v5451_v23  ;;  %v1698_v3 = vmul.f32 0.044715, %v1690_v60  ;;  %v5473_v4 = vadd.f32 %v4026_v51, %v1666_v33  ;;  %v4401_v5 = vpop.f32.mrb[18].mxu1 }
 0xbb4   :  { %v1715_v32 = vmul.f32 0.7978846, %v1707_v41  ;;  %v1708_v6 = vadd.f32 %v1700_v25, %v5455_v36  ;;  %v1687_v31 = vmul.f32 %v5470_v53, %v5470_v53  ;;  %v5478_v49 = vadd.f32 %v4401_v5, %v4026_v51  ;;  %v1669_v30 = vpop.f32.mrb[19].mxu1 }
 0xbb5   :  { %v1713_v58 = vmul.f32 0.7978846, %v1705_v0  ;;  %v1706_v37 = vadd.f32 %v1698_v3, %v5459_v35  ;;  %v1685_v55 = vmul.f32 %v5473_v4, %v5473_v4  ;;  %v5483_v15 = vadd.f32 %v4026_v51, %v1669_v30 }
 0xbb6   :  { %4683 = vtanh.f32 %v1715_v32  ;;  %v1716_v7 = vmul.f32 0.7978846, %v1708_v6  ;;  %v1695_v8 = vmul.f32 %v1687_v31, %v5470_v53  ;;  %v1688_v39 = vmul.f32 %v5478_v49, %v5478_v49 }
 0xbb7   :  { %4685 = vtanh.f32 %v1713_v58  ;;  %v1714_v10 = vmul.f32 0.7978846, %v1706_v37  ;;  %v1693_v63 = vmul.f32 %v1685_v55, %v5473_v4  ;;  %v1686_v1 = vmul.f32 %v5483_v15, %v5483_v15 }
 0xbb8   :  { %4687 = vtanh.f32 %v1716_v7  ;;  %v1703_v11 = vmul.f32 0.044715, %v1695_v8  ;;  %v1696_v44 = vmul.f32 %v1688_v39, %v5478_v49  ;;  %v4040_v7 = vld [vmem:[%s6193_s1 + $0x13] ss:$0 sm:$0xff] }
 0xbb9   :  { %4689 = vtanh.f32 %v1714_v10  ;;  %v1701_v18 = vmul.f32 0.044715, %v1693_v63  ;;  %v1694_v12 = vmul.f32 %v1686_v1, %v5483_v15 }
 0xbba   :  { %v1711_v54 = vadd.f32 %v1703_v11, %v5470_v53  ;;  %v1704_v20 = vmul.f32 0.044715, %v1696_v44 }
 0xbbb   :  { %v1709_v62 = vadd.f32 %v1701_v18, %v5473_v4  ;;  %v1702_v17 = vmul.f32 0.044715, %v1694_v12 }
 0xbbc   :  { %v1719_v2 = vmul.f32 0.7978846, %v1711_v54  ;;  %v1712_v46 = vadd.f32 %v1704_v20, %v5478_v49 }
 0xbbd   :  { %v1717_v26 = vmul.f32 0.7978846, %v1709_v62  ;;  %v1710_v38 = vadd.f32 %v1702_v17, %v5483_v15 }
 0xbbe   :  { %4691 = vtanh.f32 %v1719_v2  ;;  %v1720_v24 = vmul.f32 0.7978846, %v1712_v46 }
 0xbbf   :  { %4693 = vtanh.f32 %v1717_v26  ;;  %v1718_v43 = vmul.f32 0.7978846, %v1710_v38 }
 0xbc0   :  { %v4684_v59 = vpop.eup %4683  ;;  %4695 = vtanh.f32 %v1720_v24 }
 0xbc1   :  { %v4686_v28 = vpop.eup %4685  ;;  %v1731_v21 = vadd.f32 1.0, %v4684_v59  ;;  %4697 = vtanh.f32 %v1718_v43 }
 0xbc2   :  { %v4688_v51 = vpop.eup %4687  ;;  %v1729_v22 = vadd.f32 1.0, %v4686_v28 }
 0xbc3   :  { %v4690_v13 = vpop.eup %4689  ;;  %v1739_v9 = vmul.f32 0.5, %v1731_v21  ;;  %v1732_v27 = vadd.f32 1.0, %v4688_v51 }
 0xbc4   :  { %v1737_v29 = vmul.f32 0.5, %v1729_v22  ;;  %v1730_v34 = vadd.f32 1.0, %v4690_v13 }
 0xbc5   :  { %v1740_v16 = vmul.f32 0.5, %v1732_v27  ;;  %v1747_v56 = vmul.f32 %v1739_v9, %v5449_v40 }
 0xbc6   :  { %v1738_v19 = vmul.f32 0.5, %v1730_v34  ;;  %v1745_v57 = vmul.f32 %v1737_v29, %v5451_v23 }
 0xbc7   :  { %v1748_v52 = vmul.f32 %v1740_v16, %v5455_v36  ;;  %v4571_v16 = vld [vmem:[%s6195_s3 + $0x20] sm:$0xff]  }
 0xbc8   :  { %v4692_v50 = vpop.eup %4691  ;;  %v1746_v42 = vmul.f32 %v1738_v19, %v5459_v35  ;;  %4418 = vmatprep.subr.bf16.mxu0 %v4571_v16 }
 0xbc9   :  { %v4694_v60 = vpop.eup %4693  ;;  %v1754_v61 = vpack.c.bf16 %v1748_v52, %v1747_v56  ;;  %v1735_v41 = vadd.f32 1.0, %v4692_v50  ;;  %4419 = vmatpush3.bf16.msra.mxu0 %v4571_v16 }
 0xbca   :  { %v4696_v25 = vpop.eup %4695  ;;  %v1733_v33 = vadd.f32 1.0, %v4694_v60  ;;  %v1753_v0 = vpack.c.bf16 %v1746_v42, %v1745_v57 }
 0xbcb   :  { %v4698_v3 = vpop.eup %4697  ;;  %v1743_v5 = vmul.f32 0.5, %v1735_v41  ;;  %v1736_v32 = vadd.f32 1.0, %v4696_v25 }
 0xbcc   :  { %v1741_v6 = vmul.f32 0.5, %v1733_v33  ;;  %v1734_v31 = vadd.f32 1.0, %v4698_v3  ;;  %4410 = vmatprep.mubr.msk.bf16.mxu1 %vm74_vm0, %v1753_v0 }
 0xbcd   :  { %v1744_v40 = vmul.f32 0.5, %v1736_v32  ;;  %4411 = vmatmul.mubr.msk.bf16.vlgmr.msra.gmra.mrb[20].mxu1 %vm74_vm0, %v1754_v61  ;;  %v1751_v23 = vmul.f32 %v1743_v5, %v5470_v53 }
 0xbce   :  { %v1742_v36 = vmul.f32 0.5, %v1734_v31  ;;  %v1749_v30 = vmul.f32 %v1741_v6, %v5473_v4 }
 0xbcf   :  { %v1752_v35 = vmul.f32 %v1744_v40, %v5478_v49 }
 0xbd0   :  { %v1750_v58 = vmul.f32 %v1742_v36, %v5483_v15 }
 0xbd1   :  { %v1756_v37 = vpack.c.bf16 %v1752_v35, %v1751_v23 }
 0xbd2   :  { %v1755_v55 = vpack.c.bf16 %v1750_v58, %v1749_v30 }
 0xbd4   :  { %4414 = vmatprep.mubr.msk.bf16.mxu1 %vm74_vm0, %v1755_v55 }
 0xbd5   :  { %4415 = vmatmul.mubr.msk.bf16.gmra.mrb[24].mxu1 %vm74_vm0, %v1756_v37 }
 0xca0   :  { %v4412_v8 = vpop.f32.mrb[20].mxu1 }
 0xca1   :  { %v1841_v39 = vpop.f32.mrb[21].mxu1  ;;  %v1850_v1 = vadd.f32 %v4412_v8, %v4040_v7 }
 0xca2   :  { %v1842_v10 = vadd.f32 %v4040_v7, %v1841_v39  ;;  %v4413_v53 = vpop.f32.mrb[22].mxu1 }
 0xca3   :  { %v1844_v63 = vpop.f32.mrb[23].mxu1  ;;  %v1853_v12 = vadd.f32 %v4413_v53, %v4040_v7 }
 0xca4   :  { %1872 = vxpose.xlu0.b32.start [1/4] (short) (narrow) %v1842_v10, 16  ;;  %v1845_v49 = vadd.f32 %v4040_v7, %v1844_v63  ;;  %v4049_v63 = vld [vmem:[%s6193_s1 + $0x14] ss:$0 sm:$0xff] }
 0xca8   :  { %1873 = vxpose.xlu0.b32.cont [2/4] (short) (narrow) %v1845_v49, 16  ;;  %v4416_v4 = vpop.f32.mrb[24].mxu1 }
 0xca9   :  { %v1857_v15 = vpop.f32.mrb[25].mxu1  ;;  %v1866_v20 = vadd.f32 %v4416_v4, %v4040_v7 }
 0xcaa   :  { %v1858_v11 = vadd.f32 %v4040_v7, %v1857_v15  ;;  %v4417_v44 = vpop.f32.mrb[26].mxu1 }
 0xcab   :  { %v1860_v18 = vpop.f32.mrb[27].mxu1  ;;  %v1869_v62 = vadd.f32 %v4417_v44, %v4040_v7 }
 0xcac   :  { %1874 = vxpose.xlu0.b32.cont [3/4] (short) (narrow) %v1850_v1, 16  ;;  %1904 = vxpose.xlu1.b32.start [1/4] (short) (narrow) %v1858_v11, 16  ;;  %v1861_v54 = vadd.f32 %v4040_v7, %v1860_v18  ;;  %v4050_v18 = vld [vmem:[%s6193_s1 + $0x15] ss:$0 sm:$0xff] }
 0xcb0   :  { %1875 = vxpose.xlu0.b32.end [4/4] (short) (narrow) %v1853_v12, 16  ;;  %1905 = vxpose.xlu1.b32.cont [2/4] (short) (narrow) %v1861_v54, 16 }
 0xcb4   :  { %1906 = vxpose.xlu1.b32.cont [3/4] (short) (narrow) %v1866_v20, 16 }
 0xcb8   :  { %1907 = vxpose.xlu1.b32.end [4/4] (short) (narrow) %v1869_v62, 16 }
 0xd24   :  { %v1888_v17 = vpop.trf.xlu0 }
 0xd25   :  { %v5513_v2 = vadd.f32 %v1888_v17, %v5290_v45 }
 0xd27   :  { %v1942_v46 = vsel %vm132_vm1, %v5513_v2, 0.0  ;;  %v1958_v26 = vmul.f32 %v5513_v2, %v5513_v2 }
 0xd28   :  { %1943 = vadd.xlane.f32.xlu0 %v1942_v46  ;;  %v1889_v38 = vpop.trf.xlu0 }
 0xd29   :  { %v5520_v24 = vadd.f32 %v1889_v38, %v5298_v48  ;;  %v1962_v43 = vsel %vm132_vm1, %v1958_v26, 0.0 }
 0xd2b   :  { %v1945_v59 = vsel %vm132_vm1, %v5520_v24, 0.0  ;;  %v1959_v45 = vmul.f32 %v5520_v24, %v5520_v24 }
 0xd2c   :  { %1963 = vadd.xlane.f32.xlu0 %v1962_v43  ;;  %1946 = vadd.xlane.f32.xlu1 %v1945_v59  ;;  %v1920_v28 = vpop.trf.xlu1 }
 0xd2d   :  { %v5528_v21 = vadd.f32 %v1920_v28, %v5287_v14  ;;  %v1965_v51 = vsel %vm132_vm1, %v1959_v45, 0.0 }
 0xd2f   :  { %v1948_v48 = vsel %vm132_vm1, %v5528_v21, 0.0  ;;  %v1960_v22 = vmul.f32 %v5528_v21, %v5528_v21 }
 0xd30   :  { %1966 = vadd.xlane.f32.xlu1 %v1965_v51  ;;  %1949 = vadd.xlane.f32.xlu0 %v1948_v48  ;;  %v1921_v13 = vpop.trf.xlu1 }
 0xd31   :  { %v5536_v9 = vadd.f32 %v1921_v13, %v5295_v47  ;;  %v1968_v27 = vsel %vm132_vm1, %v1960_v22, 0.0  ;;  %v4572_v47 = vld [vmem:[%s6195_s3 + $0x28] sm:$0xff]  }
 0xd32   :  { %4420 = vmatprep.subr.bf16.mxu0 %v4572_v47 }
 0xd33   :  { %v1951_v14 = vsel %vm132_vm1, %v5536_v9, 0.0  ;;  %v1961_v29 = vmul.f32 %v5536_v9, %v5536_v9  ;;  %4421 = vmatpush3.bf16.msra.mxu0 %v4572_v47 }
 0xd34   :  { %1969 = vadd.xlane.f32.xlu0 %v1968_v27  ;;  %1952 = vadd.xlane.f32.xlu1 %v1951_v14 }
 0xd35   :  { %v1971_v34 = vsel %vm132_vm1, %v1961_v29, 0.0 }
 0xd38   :  { %1972 = vadd.xlane.f32.xlu1 %v1971_v34 }
 0xdb5   :  { %v1944_v19 = vpop.xlane.xlu0 %1943 }
 0xdb6   :  { %v1954_v56 = vmul.f32 0.03125, %v1944_v19  ;;  %v4573_v19 = vld [vmem:[%s6196_s4 + $0x80] sm:$0xff]  }
 0xdb7   :  { %4426 = vmatprep.subr.bf16.mxu1 %v4573_v19 }
 0xdb8   :  { %v1978_v57 = vmul.f32 %v1954_v56, %v1954_v56  ;;  %4427 = vmatpush3.bf16.msra.mxu1 %v4573_v19 }
 0xdb9   :  { %v1964_v52 = vpop.xlane.xlu0 %1963  ;;  %v1947_v50 = vpop.xlane.xlu1 %1946 }
 0xdba   :  { %v1974_v42 = vmul.f32 0.03125, %v1964_v52  ;;  %v1955_v60 = vmul.f32 0.03125, %v1947_v50  ;;  %v4575_v52 = vld [vmem:[%s6196_s4 + $0x90] sm:$0xff]   ;;  %v4576_v50 = vld [vmem:[%s6196_s4 + $0x98] sm:$0xff]  }
 0xdbc   :  { %v1982_v61 = vsub.f32 %v1974_v42, %v1978_v57  ;;  %v1979_v0 = vmul.f32 %v1955_v60, %v1955_v60  ;;  %v4577_v57 = vld [vmem:[%s6196_s4 + $0xa0] sm:$0xff]   ;;  %v4578_v42 = vld [vmem:[%s6196_s4 + $0xa8] sm:$0xff]  }
 0xdbd   :  { %v1950_v41 = vpop.xlane.xlu0 %1949  ;;  %v1967_v25 = vpop.xlane.xlu1 %1966 }
 0xdbe   :  { %v1986_v33 = vmax.f32 %v1982_v61, 0.0  ;;  %v1956_v3 = vmul.f32 0.03125, %v1950_v41  ;;  %v1975_v5 = vmul.f32 0.03125, %v1967_v25  ;;  %v4580_v61 = vld [vmem:[%s6196_s4 + $0xb8] sm:$0xff]   ;;  %v4055_v41 = vld [vmem:[%s6193_s1 + $0x16] ss:$0 sm:$0xff] }
 0xdc0   :  { %v1990_v32 = vadd.f32 1e-05, %v1986_v33  ;;  %v1983_v6 = vsub.f32 %v1975_v5, %v1979_v0  ;;  %v1980_v31 = vmul.f32 %v1956_v3, %v1956_v3 }
 0xdc1   :  { %v1970_v40 = vpop.xlane.xlu0 %1969  ;;  %v1953_v36 = vpop.xlane.xlu1 %1952 }
 0xdc2   :  { %4699 = vrsqrt.f32 %v1990_v32  ;;  %v1987_v23 = vmax.f32 %v1983_v6, 0.0  ;;  %v1976_v35 = vmul.f32 0.03125, %v1970_v40  ;;  %v1957_v30 = vmul.f32 0.03125, %v1953_v36 }
 0xdc4   :  { %v1991_v58 = vadd.f32 1e-05, %v1987_v23  ;;  %v1984_v37 = vsub.f32 %v1976_v35, %v1980_v31  ;;  %v1981_v8 = vmul.f32 %v1957_v30, %v1957_v30 }
 0xdc5   :  { %v1973_v55 = vpop.xlane.xlu1 %1972 }
 0xdc6   :  { %4701 = vrsqrt.f32 %v1991_v58  ;;  %v1988_v7 = vmax.f32 %v1984_v37, 0.0  ;;  %v1977_v39 = vmul.f32 0.03125, %v1973_v55 }
 0xdc8   :  { %v1992_v10 = vadd.f32 1e-05, %v1988_v7  ;;  %v1985_v53 = vsub.f32 %v1977_v39, %v1981_v8 }
 0xdca   :  { %4703 = vrsqrt.f32 %v1992_v10  ;;  %v1989_v49 = vmax.f32 %v1985_v53, 0.0 }
 0xdcc   :  { %v4700_v4 = vpop.eup %4699  ;;  %v1993_v15 = vadd.f32 1e-05, %v1989_v49 }
 0xdcd   :  { %v2002_v1 = vmul.f32 %v4700_v4, %v4049_v63 }
 0xdce   :  { %4705 = vrsqrt.f32 %v1993_v15 }
 0xdcf   :  { %v2010_v11 = vmul.f32 %v2002_v1, %v1954_v56  ;;  %v2006_v46 = vmul.f32 %v2002_v1, %v5513_v2  ;;  %v4574_v56 = vld [vmem:[%s6196_s4 + $0x88] sm:$0xff]  }
 0xdd0   :  { %v4702_v44 = vpop.eup %4701  ;;  %4428 = vmatprep.subr.bf16.mxu1 %v4574_v56 }
 0xdd1   :  { %v2003_v12 = vmul.f32 %v4702_v44, %v4049_v63  ;;  %v2018_v20 = vsub.f32 %v4050_v18, %v2010_v11  ;;  %4429 = vmatpush3.bf16.msra.mxu1 %v4574_v56 }
 0xdd2   :  { %4430 = vmatprep.subr.bf16.mxu1 %v4575_v52 }
 0xdd3   :  { %v2011_v54 = vmul.f32 %v2003_v12, %v1955_v60  ;;  %v2007_v26 = vmul.f32 %v2003_v12, %v5520_v24  ;;  %v2022_v59 = vadd.f32 %v2018_v20, %v2006_v46  ;;  %v4579_v60 = vld [vmem:[%s6196_s4 + $0xb0] sm:$0xff]  }
 0xdd4   :  { %v4704_v62 = vpop.eup %4703 }
 0xdd5   :  { %v2004_v17 = vmul.f32 %v4704_v62, %v4049_v63  ;;  %v2019_v38 = vsub.f32 %v4050_v18, %v2011_v54  ;;  %4431 = vmatpush3.bf16.msra.mxu1 %v4575_v52 }
 0xdd6   :  { %4432 = vmatprep.subr.bf16.mxu1 %v4576_v50 }
 0xdd7   :  { %v2012_v43 = vmul.f32 %v2004_v17, %v1956_v3  ;;  %v2023_v45 = vadd.f32 %v2019_v38, %v2007_v26  ;;  %v2008_v27 = vmul.f32 %v2004_v17, %v5528_v21 }
 0xdd8   :  { %v4706_v28 = vpop.eup %4705 }
 0xdd9   :  { %v2005_v51 = vmul.f32 %v4706_v28, %v4049_v63  ;;  %v2026_v48 = vpack.c.bf16 %v2023_v45, %v2022_v59  ;;  %v2020_v13 = vsub.f32 %v4050_v18, %v2012_v43  ;;  %4433 = vmatpush3.bf16.msra.mxu1 %v4576_v50 }
 0xdda   :  { %4434 = vmatprep.subr.bf16.mxu1 %v4577_v57 }
 0xddb   :  { %v2013_v22 = vmul.f32 %v2005_v51, %v1957_v30  ;;  %4422 = vmatprep.mubr.msk.bf16.mxu0 %vm132_vm1, %v2026_v48  ;;  %v2009_v14 = vmul.f32 %v2005_v51, %v5536_v9  ;;  %v2024_v34 = vadd.f32 %v2020_v13, %v2008_v27 }
 0xddd   :  { %v2021_v29 = vsub.f32 %v4050_v18, %v2013_v22  ;;  %4435 = vmatpush3.bf16.msra.mxu1 %v4577_v57 }
 0xdde   :  { %4436 = vmatprep.subr.bf16.mxu1 %v4578_v42 }
 0xddf   :  { %v2025_v16 = vadd.f32 %v2021_v29, %v2009_v14  ;;  %v4076_v14 = vld [vmem:[%s6193_s1 + $0x17] ss:$0 sm:$0xff] }
 0xde1   :  { %v2027_v47 = vpack.c.bf16 %v2025_v16, %v2024_v34  ;;  %4437 = vmatpush3.bf16.msra.mxu1 %v4578_v42 }
 0xde2   :  { %4438 = vmatprep.subr.bf16.mxu1 %v4579_v60 }
 0xde3   :  { %4423 = vmatmul.mubr.msk.bf16.vlgmr.msra.gmra.mrb[24].mxu0 %vm132_vm1, %v2027_v47 }
 0xde5   :  { %4439 = vmatpush3.bf16.msra.mxu1 %v4579_v60 }
 0xde6   :  { %4440 = vmatprep.subr.bf16.mxu1 %v4580_v61 }
 0xde9   :  { %4441 = vmatpush3.bf16.msra.mxu1 %v4580_v61 }
 0xeb6   :  { %v4424_v25 = vpop.f32.mrb[24].mxu0 }
 0xeb7   :  { %v2099_v33 = vadd.f32 %v4424_v25, %v4055_v41  ;;  %v2090_v0 = vpop.f32.mrb[25].mxu0 }
 0xeb8   :  { %v2091_v3 = vadd.f32 %v4055_v41, %v2090_v0  ;;  %v4425_v5 = vpop.f32.mrb[26].mxu0 }
 0xeb9   :  { %v2107_v32 = vmul.f32 %v2099_v33, %v2099_v33  ;;  %v2102_v6 = vadd.f32 %v4425_v5, %v4055_v41  ;;  %v2093_v31 = vpop.f32.mrb[27].mxu0 }
 0xeba   :  { %v2105_v40 = vmul.f32 %v2091_v3, %v2091_v3  ;;  %v2094_v36 = vadd.f32 %v4055_v41, %v2093_v31 }
 0xebb   :  { %v2111_v23 = vmul.f32 %v2107_v32, %v2099_v33  ;;  %v2108_v35 = vmul.f32 %v2102_v6, %v2102_v6 }
 0xebc   :  { %v2109_v30 = vmul.f32 %v2105_v40, %v2091_v3  ;;  %v2106_v58 = vmul.f32 %v2094_v36, %v2094_v36 }
 0xebd   :  { %v2115_v37 = vmul.f32 0.044715, %v2111_v23  ;;  %v2112_v55 = vmul.f32 %v2108_v35, %v2102_v6 }
 0xebe   :  { %v2113_v7 = vmul.f32 0.044715, %v2109_v30  ;;  %v2110_v8 = vmul.f32 %v2106_v58, %v2094_v36 }
 0xebf   :  { %v2119_v39 = vadd.f32 %v2115_v37, %v2099_v33  ;;  %v2116_v10 = vmul.f32 0.044715, %v2112_v55 }
 0xec0   :  { %v2117_v53 = vadd.f32 %v2113_v7, %v2091_v3  ;;  %v2114_v63 = vmul.f32 0.044715, %v2110_v8 }
 0xec1   :  { %v2123_v49 = vmul.f32 0.7978846, %v2119_v39  ;;  %v2120_v4 = vadd.f32 %v2116_v10, %v2102_v6 }
 0xec2   :  { %v2121_v15 = vmul.f32 0.7978846, %v2117_v53  ;;  %v2118_v1 = vadd.f32 %v2114_v63, %v2094_v36 }
 0xec3   :  { %4707 = vtanh.f32 %v2123_v49  ;;  %v2124_v11 = vmul.f32 0.7978846, %v2120_v4 }
 0xec4   :  { %4709 = vtanh.f32 %v2121_v15  ;;  %v2122_v44 = vmul.f32 0.7978846, %v2118_v1 }
 0xec5   :  { %4711 = vtanh.f32 %v2124_v11 }
 0xec6   :  { %4713 = vtanh.f32 %v2122_v44  ;;  %v4581_v44 = vld [vmem:[%s6197_s5 + $0x10] sm:$0xff]  }
 0xec7   :  { %4446 = vmatprep.subr.bf16.mxu0 %v4581_v44 }
 0xec8   :  { %4447 = vmatpush3.bf16.msra.mxu0 %v4581_v44 }
 0xecd   :  { %v4708_v18 = vpop.eup %4707 }
 0xece   :  { %v4710_v12 = vpop.eup %4709  ;;  %v2131_v54 = vadd.f32 1.0, %v4708_v18 }
 0xecf   :  { %v4712_v20 = vpop.eup %4711  ;;  %v2129_v62 = vadd.f32 1.0, %v4710_v12 }
 0xed0   :  { %v4714_v17 = vpop.eup %4713  ;;  %v2135_v46 = vmul.f32 0.5, %v2131_v54  ;;  %v2132_v26 = vadd.f32 1.0, %v4712_v20 }
 0xed1   :  { %v2130_v38 = vadd.f32 1.0, %v4714_v17  ;;  %v2133_v43 = vmul.f32 0.5, %v2129_v62 }
 0xed2   :  { %v2136_v59 = vmul.f32 0.5, %v2132_v26  ;;  %v2139_v28 = vmul.f32 %v2135_v46, %v2099_v33 }
 0xed3   :  { %v2134_v45 = vmul.f32 0.5, %v2130_v38  ;;  %v2137_v48 = vmul.f32 %v2133_v43, %v2091_v3 }
 0xed4   :  { %v2140_v51 = vmul.f32 %v2136_v59, %v2102_v6 }
 0xed5   :  { %v2138_v22 = vmul.f32 %v2134_v45, %v2094_v36 }
 0xed6   :  { %v2142_v13 = vpack.c.bf16 %v2140_v51, %v2139_v28 }
 0xed7   :  { %v2141_v27 = vpack.c.bf16 %v2138_v22, %v2137_v48 }
 0xed9   :  { %4442 = vmatprep.mubr.bf16.mxu1 %v2141_v27 }
 0xeda   :  { %4443 = vmatmul.mubr.bf16.vlgmr.msra.gmra.mrb[28].mxu1 %v2142_v13 }
 0xfad   :  { %v4444_v29 = vpop.f32.mrb[28].mxu1 }
 0xfae   :  { %v2256_v34 = vadd.f32 %v4444_v29, %v4076_v14  ;;  %v2247_v16 = vpop.f32.mrb[29].mxu1 }
 0xfaf   :  { %v2248_v47 = vadd.f32 %v4076_v14, %v2247_v16  ;;  %v4445_v19 = vpop.f32.mrb[30].mxu1 }
 0xfb0   :  { %v5593_v56 = vadd.f32 %v2256_v34, %v5528_v21  ;;  %v2259_v52 = vadd.f32 %v4445_v19, %v4076_v14  ;;  %v2250_v50 = vpop.f32.mrb[31].mxu1 }
 0xfb1   :  { %v5596_v57 = vadd.f32 %v2248_v47, %v5513_v2  ;;  %v2251_v42 = vadd.f32 %v4076_v14, %v2250_v50 }
 0xfb2   :  { %2298 = vxpose.xlu1.b32.start [1/2] (short) (narrow) %v5593_v56, 32  ;;  %v5601_v60 = vadd.f32 %v2259_v52, %v5536_v9 }
 0xfb3   :  { %2266 = vxpose.xlu0.b32.start [1/2] (short) (narrow) %v5596_v57, 32  ;;  %v5604_v61 = vadd.f32 %v2251_v42, %v5520_v24 }
 0xfb6   :  { %2299 = vxpose.xlu1.b32.end [2/2] (short) (narrow) %v5601_v60, 32 }
 0xfb7   :  { %2267 = vxpose.xlu0.b32.end [2/2] (short) (narrow) %v5604_v61, 32 }
0x1032   :  { %v5608_v21 = vpop.trf.xlu1 }
0x1033   :  { %v2344_v2 = vsel %vm521_vm2, %v5608_v21, 0.0  ;;  %v5612_v41 = vpop.trf.xlu0  ;;  %v2368_v7 = vmul.f32 %v5608_v21, %v5608_v21 }
0x1034   :  { %2345 = vadd.xlane.f32.xlu0 %v2344_v2  ;;  %v2332_v25 = vsel %vm521_vm2, %v5612_v41, 0.0  ;;  %v2364_v0 = vmul.f32 %v5612_v41, %v5612_v41 }
0x1035   :  { %v2384_v63 = vsel %vm521_vm2, %v2368_v7, 0.0 }
0x1036   :  { %v5616_v9 = vpop.trf.xlu1  ;;  %v2372_v32 = vsel %vm521_vm2, %v2364_v0, 0.0 }
0x1037   :  { %v2347_v24 = vsel %vm521_vm2, %v5616_v9, 0.0  ;;  %v5620_v33 = vpop.trf.xlu0  ;;  %v2369_v10 = vmul.f32 %v5616_v9, %v5616_v9 }
0x1038   :  { %2348 = vadd.xlane.f32.xlu1 %v2347_v24  ;;  %2333 = vadd.xlane.f32.xlu0 %v2332_v25  ;;  %v2335_v3 = vsel %vm521_vm2, %v5620_v33, 0.0  ;;  %v2365_v6 = vmul.f32 %v5620_v33, %v5620_v33 }
0x1039   :  { %v2387_v1 = vsel %vm521_vm2, %v2369_v10, 0.0 }
0x103a   :  { %v5626_v5 = vpop.trf.xlu1  ;;  %v2375_v23 = vsel %vm521_vm2, %v2365_v6, 0.0 }
0x103b   :  { %v5631_v31 = vpop.trf.xlu0  ;;  %v2350_v40 = vsel %vm521_vm2, %v5626_v5, 0.0  ;;  %v2370_v53 = vmul.f32 %v5626_v5, %v5626_v5 }
0x103c   :  { %2373 = vadd.xlane.f32.xlu0 %v2372_v32  ;;  %2336 = vadd.xlane.f32.xlu1 %v2335_v3  ;;  %v2338_v30 = vsel %vm521_vm2, %v5631_v31, 0.0  ;;  %v2366_v37 = vmul.f32 %v5631_v31, %v5631_v31 }
0x103d   :  { %v2390_v15 = vsel %vm521_vm2, %v2370_v53, 0.0 }
0x103e   :  { %v5635_v36 = vpop.trf.xlu1  ;;  %v2378_v39 = vsel %vm521_vm2, %v2366_v37, 0.0 }
0x103f   :  { %v2353_v35 = vsel %vm521_vm2, %v5635_v36, 0.0  ;;  %v5642_v58 = vpop.trf.xlu0  ;;  %v2371_v4 = vmul.f32 %v5635_v36, %v5635_v36 }
0x1040   :  { %2351 = vadd.xlane.f32.xlu0 %v2350_v40  ;;  %2376 = vadd.xlane.f32.xlu1 %v2375_v23  ;;  %v2341_v55 = vsel %vm521_vm2, %v5642_v58, 0.0  ;;  %v2367_v8 = vmul.f32 %v5642_v58, %v5642_v58  ;;  %v5688_v40 = vld [vmem:[%s6193_s1 + $0x18] ss:$0 sm:$0xff] }
0x1041   :  { %v2393_v11 = vsel %vm521_vm2, %v2371_v4, 0.0 }
0x1042   :  { %v2381_v49 = vsel %vm521_vm2, %v2367_v8, 0.0 }
0x1044   :  { %2354 = vadd.xlane.f32.xlu1 %v2353_v35  ;;  %2339 = vadd.xlane.f32.xlu0 %v2338_v30 }
0x1048   :  { %2379 = vadd.xlane.f32.xlu0 %v2378_v39  ;;  %2342 = vadd.xlane.f32.xlu1 %v2341_v55 }
0x104c   :  { %2385 = vadd.xlane.f32.xlu0 %v2384_v63  ;;  %2382 = vadd.xlane.f32.xlu1 %v2381_v49 }
0x1050   :  { %2391 = vadd.xlane.f32.xlu0 %v2390_v15  ;;  %2388 = vadd.xlane.f32.xlu1 %v2387_v1 }
0x1054   :  { %2394 = vadd.xlane.f32.xlu1 %v2393_v11 }
0x10c1   :  { %v2346_v18 = vpop.xlane.xlu0 %2345 }
0x10c2   :  { %v5673_v47 = vmul.f32 0.0625, %v2346_v18 }
0x10c4   :  { %v2408_v24 = vmul.f32 %v5673_v47, %v5673_v47 }
0x10c5   :  { %v2349_v12 = vpop.xlane.xlu1 %2348  ;;  %v2334_v54 = vpop.xlane.xlu0 %2333 }
0x10c6   :  { %v2356_v20 = vmul.f32 0.0625, %v2334_v54  ;;  %v5681_v0 = vmul.f32 0.0625, %v2349_v12 }
0x10c8   :  { %v2404_v46 = vmul.f32 %v2356_v20, %v2356_v20  ;;  %v2409_v10 = vmul.f32 %v5681_v0, %v5681_v0 }
0x10c9   :  { %v2337_v62 = vpop.xlane.xlu1 %2336  ;;  %v2374_v17 = vpop.xlane.xlu0 %2373 }
0x10ca   :  { %v5667_v26 = vmul.f32 0.0625, %v2337_v62  ;;  %v2396_v38 = vmul.f32 0.0625, %v2374_v17 }
0x10cc   :  { %v2412_v43 = vsub.f32 %v2396_v38, %v2404_v46  ;;  %v2405_v28 = vmul.f32 %v5667_v26, %v5667_v26  ;;  %v5702_v38 = vld [vmem:[%s6193_s1 + $0x19] ss:$0 sm:$0xff] }
0x10cd   :  { %v2377_v59 = vpop.xlane.xlu1 %2376  ;;  %v2352_v45 = vpop.xlane.xlu0 %2351 }
0x10ce   :  { %v2420_v51 = vmax.f32 %v2412_v43, 0.0  ;;  %v2397_v48 = vmul.f32 0.0625, %v2377_v59  ;;  %v5690_v37 = vmul.f32 0.0625, %v2352_v45 }
0x10d0   :  { %v2428_v22 = vadd.f32 1e-05, %v2420_v51  ;;  %v2413_v13 = vsub.f32 %v2397_v48, %v2405_v28  ;;  %v2410_v44 = vmul.f32 %v5690_v37, %v5690_v37 }
0x10d1   :  { %v2355_v27 = vpop.xlane.xlu1 %2354  ;;  %v2340_v14 = vpop.xlane.xlu0 %2339 }
0x10d2   :  { %4715 = vrsqrt.f32 %v2428_v22  ;;  %v2421_v29 = vmax.f32 %v2413_v13, 0.0  ;;  %v5671_v34 = vmul.f32 0.0625, %v2340_v14  ;;  %v5694_v53 = vmul.f32 0.0625, %v2355_v27 }
0x10d4   :  { %v2429_v16 = vadd.f32 1e-05, %v2421_v29  ;;  %v2406_v50 = vmul.f32 %v5671_v34, %v5671_v34  ;;  %v2411_v28 = vmul.f32 %v5694_v53, %v5694_v53 }
0x10d5   :  { %v2343_v19 = vpop.xlane.xlu1 %2342  ;;  %v2380_v52 = vpop.xlane.xlu0 %2379 }
0x10d6   :  { %4717 = vrsqrt.f32 %v2429_v16  ;;  %v5677_v42 = vmul.f32 0.0625, %v2343_v19  ;;  %v2398_v2 = vmul.f32 0.0625, %v2380_v52 }
0x10d8   :  { %v2414_v25 = vsub.f32 %v2398_v2, %v2406_v50  ;;  %v2407_v6 = vmul.f32 %v5677_v42, %v5677_v42 }
0x10d9   :  { %v2383_v3 = vpop.xlane.xlu1 %2382  ;;  %v2386_v32 = vpop.xlane.xlu0 %2385 }
0x10da   :  { %v2422_v23 = vmax.f32 %v2414_v25, 0.0  ;;  %v2399_v35 = vmul.f32 0.0625, %v2383_v3  ;;  %v2400_v30 = vmul.f32 0.0625, %v2386_v32 }
0x10dc   :  { %v4716_v55 = vpop.eup %4715  ;;  %v2430_v7 = vadd.f32 1e-05, %v2422_v23  ;;  %v2415_v8 = vsub.f32 %v2399_v35, %v2407_v6  ;;  %v2416_v39 = vsub.f32 %v2400_v30, %v2408_v24 }
0x10dd   :  { %v2389_v63 = vpop.xlane.xlu1 %2388  ;;  %v2392_v49 = vpop.xlane.xlu0 %2391  ;;  %v2448_v4 = vmul.f32 %v4716_v55, %v5688_v40 }
0x10de   :  { %4719 = vrsqrt.f32 %v2430_v7  ;;  %v2423_v15 = vmax.f32 %v2415_v8, 0.0  ;;  %v2424_v1 = vmax.f32 %v2416_v39, 0.0  ;;  %v2401_v11 = vmul.f32 0.0625, %v2389_v63 }
0x10df   :  { %v2402_v18 = vmul.f32 0.0625, %v2392_v49  ;;  %v2464_v12 = vmul.f32 %v2448_v4, %v2356_v20  ;;  %v2456_v16 = vmul.f32 %v2448_v4, %v5612_v41 }
0x10e0   :  { %v4718_v54 = vpop.eup %4717  ;;  %v2431_v62 = vadd.f32 1e-05, %v2423_v15  ;;  %v2432_v17 = vadd.f32 1e-05, %v2424_v1  ;;  %v2417_v46 = vsub.f32 %v2401_v11, %v2409_v10 }
0x10e1   :  { %v2418_v43 = vsub.f32 %v2402_v18, %v2410_v44  ;;  %v2395_v59 = vpop.xlane.xlu1 %2394  ;;  %v2449_v45 = vmul.f32 %v4718_v54, %v5688_v40  ;;  %v2476_v13 = vsub.f32 %v5702_v38, %v2464_v12 }
0x10e2   :  { %4721 = vrsqrt.f32 %v2431_v62  ;;  %v2425_v51 = vmax.f32 %v2417_v46, 0.0  ;;  %v2403_v48 = vmul.f32 0.0625, %v2395_v59 }
0x10e3   :  { %4723 = vrsqrt.f32 %v2432_v17  ;;  %v2426_v20 = vmax.f32 %v2418_v43, 0.0  ;;  %v2465_v22 = vmul.f32 %v2449_v45, %v5667_v26  ;;  %v2457_v19 = vmul.f32 %v2449_v45, %v5620_v33 }
0x10e4   :  { %v2433_v27 = vadd.f32 1e-05, %v2425_v51  ;;  %v2419_v14 = vsub.f32 %v2403_v48, %v2411_v28  ;;  %v2484_v2 = vadd.f32 %v2476_v13, %v2456_v16  ;;  %v4089_v28 = vld [vmem:[%s6193_s1 + $0x1a] ss:$0 sm:$0xff] }
0x10e5   :  { %v2434_v29 = vadd.f32 1e-05, %v2426_v20  ;;  %v2477_v52 = vsub.f32 %v5702_v38, %v2465_v22 }
0x10e6   :  { %4725 = vrsqrt.f32 %v2433_v27  ;;  %v2427_v50 = vmax.f32 %v2419_v14, 0.0 }
0x10e7   :  { %4727 = vrsqrt.f32 %v2434_v29  ;;  %v2485_v25 = vadd.f32 %v2477_v52, %v2457_v19 }
0x10e8   :  { %v4720_v24 = vpop.eup %4719  ;;  %v2435_v3 = vadd.f32 1e-05, %v2427_v50 }
0x10e9   :  { %v2450_v26 = vmul.f32 %v4720_v24, %v5688_v40  ;;  %v2492_v32 = vpack.c.bf16 %v2485_v25, %v2484_v2 }
0x10ea   :  { %4729 = vrsqrt.f32 %v2435_v3 }
0x10eb   :  { %v2466_v6 = vmul.f32 %v2450_v26, %v5671_v34  ;;  %4448 = vmatprep.mubr.msk.bf16.mxu0 %vm521_vm2, %v2492_v32  ;;  %v2458_v10 = vmul.f32 %v2450_v26, %v5631_v31 }
0x10ec   :  { %v4722_v41 = vpop.eup %4721 }
0x10ed   :  { %v4724_v23 = vpop.eup %4723  ;;  %v2451_v33 = vmul.f32 %v4722_v41, %v5688_v40  ;;  %v2478_v55 = vsub.f32 %v5702_v38, %v2466_v6 }
0x10ee   :  { %v2452_v35 = vmul.f32 %v4724_v23, %v5688_v40 }
0x10ef   :  { %v2467_v30 = vmul.f32 %v2451_v33, %v5677_v42  ;;  %v2459_v34 = vmul.f32 %v2451_v33, %v5642_v58  ;;  %v2486_v15 = vadd.f32 %v2478_v55, %v2458_v10 }
0x10f0   :  { %v4726_v7 = vpop.eup %4725  ;;  %v2468_v8 = vmul.f32 %v2452_v35, %v5673_v47  ;;  %v2460_v47 = vmul.f32 %v2452_v35, %v5608_v21 }
0x10f1   :  { %v4728_v39 = vpop.eup %4727  ;;  %v2479_v63 = vsub.f32 %v5702_v38, %v2467_v30  ;;  %v2453_v49 = vmul.f32 %v4726_v7, %v5688_v40 }
0x10f2   :  { %v2454_v4 = vmul.f32 %v4728_v39, %v5688_v40  ;;  %v2480_v11 = vsub.f32 %v5702_v38, %v2468_v8 }
0x10f3   :  { %v2487_v1 = vadd.f32 %v2479_v63, %v2459_v34  ;;  %v2469_v42 = vmul.f32 %v2453_v49, %v5681_v0  ;;  %v2461_v58 = vmul.f32 %v2453_v49, %v5616_v9 }
0x10f4   :  { %v4730_v44 = vpop.eup %4729  ;;  %v2470_v18 = vmul.f32 %v2454_v4, %v5690_v37  ;;  %v2488_v62 = vadd.f32 %v2480_v11, %v2460_v47  ;;  %v2462_v21 = vmul.f32 %v2454_v4, %v5626_v5  ;;  %v4583_v5 = vld [vmem:[%s6198_s6 + $0x48] sm:$0xff]  }
0x10f5   :  { %v2493_v31 = vpack.c.bf16 %v2487_v1, %v2486_v15  ;;  %v2481_v12 = vsub.f32 %v5702_v38, %v2469_v42  ;;  %v2455_v54 = vmul.f32 %v4730_v44, %v5688_v40 }
0x10f6   :  { %v2482_v46 = vsub.f32 %v5702_v38, %v2470_v18 }
0x10f7   :  { %4449 = vmatmul.mubr.msk.bf16.vlgmr.msra.gmra.mrb[28].mxu0 %vm521_vm2, %v2493_v31  ;;  %v2489_v17 = vadd.f32 %v2481_v12, %v2461_v58  ;;  %v2471_v0 = vmul.f32 %v2455_v54, %v5694_v53  ;;  %v2463_v37 = vmul.f32 %v2455_v54, %v5635_v36  ;;  %v4582_v53 = vld [vmem:[%s6198_s6 + $0x40] sm:$0xff]   ;;  %v4584_v36 = vld [vmem:[%s6198_s6 + $0x50] sm:$0xff]  }
0x10f8   :  { %v2490_v9 = vadd.f32 %v2482_v46, %v2462_v21  ;;  %4456 = vmatprep.subr.bf16.mxu0 %v4582_v53 }
0x10f9   :  { %v2494_v43 = vpack.c.bf16 %v2489_v17, %v2488_v62  ;;  %v2483_v59 = vsub.f32 %v5702_v38, %v2471_v0  ;;  %4457 = vmatpush3.bf16.msra.mxu0 %v4582_v53  ;;  %v4585_v38 = vld [vmem:[%s6198_s6 + $0x58] sm:$0xff]  }
0x10fa   :  { %4458 = vmatprep.subr.bf16.mxu0 %v4583_v5 }
0x10fb   :  { %4452 = vmatprep.mubr.msk.bf16.mxu0 %vm521_vm2, %v2494_v43  ;;  %v2491_v45 = vadd.f32 %v2483_v59, %v2463_v37 }
0x10fd   :  { %v2495_v40 = vpack.c.bf16 %v2491_v45, %v2490_v9  ;;  %4459 = vmatpush3.bf16.msra.mxu0 %v4583_v5 }
0x10fe   :  { %4460 = vmatprep.subr.bf16.mxu0 %v4584_v36 }
0x10ff   :  { %4453 = vmatmul.mubr.msk.bf16.gmra.mrb[32].mxu0 %vm521_vm2, %v2495_v40 }
0x1101   :  { %4461 = vmatpush3.bf16.msra.mxu0 %v4584_v36 }
0x1102   :  { %4462 = vmatprep.subr.bf16.mxu0 %v4585_v38 }
0x1105   :  { %4463 = vmatpush3.bf16.msra.mxu0 %v4585_v38 }
0x11ca   :  { %v4450_v51 = vpop.f32.mrb[28].mxu0 }
0x11cb   :  { %v5755_v48 = vadd.f32 %v4450_v51, %v4089_v28  ;;  %v2556_v20 = vpop.f32.mrb[29].mxu0 }
0x11cc   :  { %v5757_v22 = vadd.f32 %v4089_v28, %v2556_v20  ;;  %v4451_v13 = vpop.f32.mrb[30].mxu0 }
0x11cd   :  { %v2589_v27 = vmul.f32 %v5755_v48, %v5755_v48  ;;  %v5761_v14 = vadd.f32 %v4451_v13, %v4089_v28  ;;  %v2559_v29 = vpop.f32.mrb[31].mxu0 }
0x11ce   :  { %v2587_v16 = vmul.f32 %v5757_v22, %v5757_v22  ;;  %v5765_v19 = vadd.f32 %v4089_v28, %v2559_v29 }
0x11cf   :  { %v2597_v52 = vmul.f32 %v2589_v27, %v5755_v48  ;;  %v2590_v50 = vmul.f32 %v5761_v14, %v5761_v14 }
0x11d0   :  { %v2595_v2 = vmul.f32 %v2587_v16, %v5757_v22  ;;  %v2588_v25 = vmul.f32 %v5765_v19, %v5765_v19 }
0x11d1   :  { %v2605_v24 = vmul.f32 0.044715, %v2597_v52  ;;  %v2598_v3 = vmul.f32 %v2590_v50, %v5761_v14 }
0x11d2   :  { %v2603_v26 = vmul.f32 0.044715, %v2595_v2  ;;  %v2596_v32 = vmul.f32 %v2588_v25, %v5765_v19  ;;  %v4454_v6 = vpop.f32.mrb[32].mxu0 }
0x11d3   :  { %v2613_v41 = vadd.f32 %v2605_v24, %v5755_v48  ;;  %v2606_v23 = vmul.f32 0.044715, %v2598_v3  ;;  %v5776_v33 = vadd.f32 %v4454_v6, %v4089_v28  ;;  %v2572_v35 = vpop.f32.mrb[33].mxu0 }
0x11d4   :  { %v2611_v30 = vadd.f32 %v2603_v26, %v5757_v22  ;;  %v2604_v55 = vmul.f32 0.044715, %v2596_v32  ;;  %v5779_v7 = vadd.f32 %v4089_v28, %v2572_v35  ;;  %v4455_v8 = vpop.f32.mrb[34].mxu0 }
0x11d5   :  { %v2621_v39 = vmul.f32 0.7978846, %v2613_v41  ;;  %v2614_v10 = vadd.f32 %v2606_v23, %v5761_v14  ;;  %v2593_v34 = vmul.f32 %v5776_v33, %v5776_v33  ;;  %v5784_v63 = vadd.f32 %v4455_v8, %v4089_v28  ;;  %v2575_v49 = vpop.f32.mrb[35].mxu0 }
0x11d6   :  { %v2619_v4 = vmul.f32 0.7978846, %v2611_v30  ;;  %v2612_v15 = vadd.f32 %v2604_v55, %v5765_v19  ;;  %v2591_v1 = vmul.f32 %v5779_v7, %v5779_v7  ;;  %v5789_v42 = vadd.f32 %v4089_v28, %v2575_v49 }
0x11d7   :  { %4731 = vtanh.f32 %v2621_v39  ;;  %v2622_v11 = vmul.f32 0.7978846, %v2614_v10  ;;  %v2601_v44 = vmul.f32 %v2593_v34, %v5776_v33  ;;  %v2594_v47 = vmul.f32 %v5784_v63, %v5784_v63 }
0x11d8   :  { %4733 = vtanh.f32 %v2619_v4  ;;  %v2620_v18 = vmul.f32 0.7978846, %v2612_v15  ;;  %v2599_v31 = vmul.f32 %v2591_v1, %v5779_v7  ;;  %v2592_v58 = vmul.f32 %v5789_v42, %v5789_v42 }
0x11d9   :  { %4735 = vtanh.f32 %v2622_v11  ;;  %v2609_v12 = vmul.f32 0.044715, %v2601_v44  ;;  %v2602_v54 = vmul.f32 %v2594_v47, %v5784_v63  ;;  %v4103_v11 = vld [vmem:[%s6193_s1 + $0x1b] ss:$0 sm:$0xff] }
0x11da   :  { %4737 = vtanh.f32 %v2620_v18  ;;  %v2607_v62 = vmul.f32 0.044715, %v2599_v31  ;;  %v2600_v17 = vmul.f32 %v2592_v58, %v5789_v42 }
0x11db   :  { %v2617_v0 = vadd.f32 %v2609_v12, %v5776_v33  ;;  %v2610_v46 = vmul.f32 0.044715, %v2602_v54 }
0x11dc   :  { %v2615_v43 = vadd.f32 %v2607_v62, %v5779_v7  ;;  %v2608_v21 = vmul.f32 0.044715, %v2600_v17 }
0x11dd   :  { %v2625_v37 = vmul.f32 0.7978846, %v2617_v0  ;;  %v2618_v59 = vadd.f32 %v2610_v46, %v5784_v63 }
0x11de   :  { %v2623_v9 = vmul.f32 0.7978846, %v2615_v43  ;;  %v2616_v45 = vadd.f32 %v2608_v21, %v5789_v42 }
0x11df   :  { %4739 = vtanh.f32 %v2625_v37  ;;  %v2626_v40 = vmul.f32 0.7978846, %v2618_v59 }
0x11e0   :  { %4741 = vtanh.f32 %v2623_v9  ;;  %v2624_v53 = vmul.f32 0.7978846, %v2616_v45 }
0x11e1   :  { %v4732_v5 = vpop.eup %4731  ;;  %4743 = vtanh.f32 %v2626_v40 }
0x11e2   :  { %v4734_v36 = vpop.eup %4733  ;;  %v2637_v38 = vadd.f32 1.0, %v4732_v5  ;;  %4745 = vtanh.f32 %v2624_v53 }
0x11e3   :  { %v4736_v28 = vpop.eup %4735  ;;  %v2635_v51 = vadd.f32 1.0, %v4734_v36 }
0x11e4   :  { %v4738_v20 = vpop.eup %4737  ;;  %v2645_v13 = vmul.f32 0.5, %v2637_v38  ;;  %v2638_v27 = vadd.f32 1.0, %v4736_v28 }
0x11e5   :  { %v2643_v29 = vmul.f32 0.5, %v2635_v51  ;;  %v2636_v16 = vadd.f32 1.0, %v4738_v20 }
0x11e6   :  { %v2646_v52 = vmul.f32 0.5, %v2638_v27  ;;  %v2653_v2 = vmul.f32 %v2645_v13, %v5755_v48 }
0x11e7   :  { %v2644_v50 = vmul.f32 0.5, %v2636_v16  ;;  %v2651_v3 = vmul.f32 %v2643_v29, %v5757_v22 }
0x11e8   :  { %v2654_v25 = vmul.f32 %v2646_v52, %v5761_v14  ;;  %v4586_v52 = vld [vmem:[%s6195_s3 + $0x30] sm:$0xff]  }
0x11e9   :  { %v4740_v24 = vpop.eup %4739  ;;  %v2652_v26 = vmul.f32 %v2644_v50, %v5765_v19  ;;  %4472 = vmatprep.subr.bf16.mxu1 %v4586_v52 }
0x11ea   :  { %v4742_v32 = vpop.eup %4741  ;;  %v2660_v6 = vpack.c.bf16 %v2654_v25, %v2653_v2  ;;  %v2641_v41 = vadd.f32 1.0, %v4740_v24  ;;  %4473 = vmatpush3.bf16.msra.mxu1 %v4586_v52 }
0x11eb   :  { %v4744_v23 = vpop.eup %4743  ;;  %v2639_v35 = vadd.f32 1.0, %v4742_v32  ;;  %v2659_v30 = vpack.c.bf16 %v2652_v26, %v2651_v3 }
0x11ec   :  { %v4746_v55 = vpop.eup %4745  ;;  %v2649_v8 = vmul.f32 0.5, %v2641_v41  ;;  %v2642_v39 = vadd.f32 1.0, %v4744_v23 }
0x11ed   :  { %v2647_v10 = vmul.f32 0.5, %v2639_v35  ;;  %v2640_v34 = vadd.f32 1.0, %v4746_v55  ;;  %4464 = vmatprep.mubr.msk.bf16.mxu0 %vm74_vm0, %v2659_v30 }
0x11ee   :  { %v2650_v48 = vmul.f32 0.5, %v2642_v39  ;;  %4465 = vmatmul.mubr.msk.bf16.vlgmr.msra.gmra.mrb[36].mxu0 %vm74_vm0, %v2660_v6  ;;  %v2657_v22 = vmul.f32 %v2649_v8, %v5776_v33 }
0x11ef   :  { %v2648_v14 = vmul.f32 0.5, %v2640_v34  ;;  %v2655_v49 = vmul.f32 %v2647_v10, %v5779_v7 }
0x11f0   :  { %v2658_v19 = vmul.f32 %v2650_v48, %v5784_v63 }
0x11f1   :  { %v2656_v4 = vmul.f32 %v2648_v14, %v5789_v42 }
0x11f2   :  { %v2662_v15 = vpack.c.bf16 %v2658_v19, %v2657_v22 }
0x11f3   :  { %v2661_v1 = vpack.c.bf16 %v2656_v4, %v2655_v49 }
0x11f5   :  { %4468 = vmatprep.mubr.msk.bf16.mxu0 %vm74_vm0, %v2661_v1 }
0x11f6   :  { %4469 = vmatmul.mubr.msk.bf16.gmra.mrb[40].mxu0 %vm74_vm0, %v2662_v15 }
0x12c1   :  { %v4466_v44 = vpop.f32.mrb[36].mxu0 }
0x12c2   :  { %v2747_v47 = vpop.f32.mrb[37].mxu0  ;;  %v2756_v58 = vadd.f32 %v4466_v44, %v4103_v11 }
0x12c3   :  { %v2748_v18 = vadd.f32 %v4103_v11, %v2747_v47  ;;  %v4467_v33 = vpop.f32.mrb[38].mxu0 }
0x12c4   :  { %v2750_v31 = vpop.f32.mrb[39].mxu0  ;;  %v2759_v17 = vadd.f32 %v4467_v33, %v4103_v11 }
0x12c5   :  { %2778 = vxpose.xlu0.b32.start [1/4] (short) (narrow) %v2748_v18, 16  ;;  %v2751_v63 = vadd.f32 %v4103_v11, %v2750_v31  ;;  %v4112_v31 = vld [vmem:[%s6193_s1 + $0x1c] ss:$0 sm:$0xff] }
0x12c9   :  { %2779 = vxpose.xlu0.b32.cont [2/4] (short) (narrow) %v2751_v63, 16  ;;  %v4470_v7 = vpop.f32.mrb[40].mxu0 }
0x12ca   :  { %v2763_v42 = vpop.f32.mrb[41].mxu0  ;;  %v2772_v46 = vadd.f32 %v4470_v7, %v4103_v11 }
0x12cb   :  { %v2764_v12 = vadd.f32 %v4103_v11, %v2763_v42  ;;  %v4471_v54 = vpop.f32.mrb[42].mxu0 }
0x12cc   :  { %v2766_v62 = vpop.f32.mrb[43].mxu0  ;;  %v2775_v43 = vadd.f32 %v4471_v54, %v4103_v11 }
0x12cd   :  { %2780 = vxpose.xlu0.b32.cont [3/4] (short) (narrow) %v2756_v58, 16  ;;  %2810 = vxpose.xlu1.b32.start [1/4] (short) (narrow) %v2764_v12, 16  ;;  %v2767_v0 = vadd.f32 %v4103_v11, %v2766_v62  ;;  %v4113_v62 = vld [vmem:[%s6193_s1 + $0x1d] ss:$0 sm:$0xff] }
0x12d1   :  { %2781 = vxpose.xlu0.b32.end [4/4] (short) (narrow) %v2759_v17, 16  ;;  %2811 = vxpose.xlu1.b32.cont [2/4] (short) (narrow) %v2767_v0, 16 }
0x12d5   :  { %2812 = vxpose.xlu1.b32.cont [3/4] (short) (narrow) %v2772_v46, 16 }
0x12d9   :  { %2813 = vxpose.xlu1.b32.end [4/4] (short) (narrow) %v2775_v43, 16 }
0x1345   :  { %v2794_v21 = vpop.trf.xlu0 }
0x1346   :  { %v5819_v37 = vadd.f32 %v2794_v21, %v5596_v57 }
0x1348   :  { %v2848_v59 = vsel %vm132_vm1, %v5819_v37, 0.0  ;;  %v2864_v9 = vmul.f32 %v5819_v37, %v5819_v37 }
0x1349   :  { %2849 = vadd.xlane.f32.xlu0 %v2848_v59  ;;  %v2795_v45 = vpop.trf.xlu0 }
0x134a   :  { %v5826_v40 = vadd.f32 %v2795_v45, %v5604_v61  ;;  %v2868_v53 = vsel %vm132_vm1, %v2864_v9, 0.0 }
0x134c   :  { %v2851_v5 = vsel %vm132_vm1, %v5826_v40, 0.0  ;;  %v2865_v57 = vmul.f32 %v5826_v40, %v5826_v40 }
0x134d   :  { %2869 = vadd.xlane.f32.xlu0 %v2868_v53  ;;  %2852 = vadd.xlane.f32.xlu1 %v2851_v5  ;;  %v2826_v36 = vpop.trf.xlu1 }
0x134e   :  { %v5834_v38 = vadd.f32 %v2826_v36, %v5593_v56  ;;  %v2871_v28 = vsel %vm132_vm1, %v2865_v57, 0.0 }
0x1350   :  { %v2854_v61 = vsel %vm132_vm1, %v5834_v38, 0.0  ;;  %v2866_v51 = vmul.f32 %v5834_v38, %v5834_v38 }
0x1351   :  { %2872 = vadd.xlane.f32.xlu1 %v2871_v28  ;;  %2855 = vadd.xlane.f32.xlu0 %v2854_v61  ;;  %v2827_v20 = vpop.trf.xlu1 }
0x1352   :  { %v5842_v13 = vadd.f32 %v2827_v20, %v5601_v60  ;;  %v2874_v27 = vsel %vm132_vm1, %v2866_v51, 0.0  ;;  %v4587_v60 = vld [vmem:[%s6195_s3 + $0x38] sm:$0xff]  }
0x1353   :  { %4474 = vmatprep.subr.bf16.mxu1 %v4587_v60 }
0x1354   :  { %v2857_v56 = vsel %vm132_vm1, %v5842_v13, 0.0  ;;  %v2867_v29 = vmul.f32 %v5842_v13, %v5842_v13  ;;  %4475 = vmatpush3.bf16.msra.mxu1 %v4587_v60 }
0x1355   :  { %2875 = vadd.xlane.f32.xlu0 %v2874_v27  ;;  %2858 = vadd.xlane.f32.xlu1 %v2857_v56 }
0x1356   :  { %v2877_v16 = vsel %vm132_vm1, %v2867_v29, 0.0 }
0x1359   :  { %2878 = vadd.xlane.f32.xlu1 %v2877_v16 }
0x13d6   :  { %v2850_v50 = vpop.xlane.xlu0 %2849 }
0x13d7   :  { %v2860_v2 = vmul.f32 0.03125, %v2850_v50  ;;  %v4588_v50 = vld [vmem:[%s6196_s4 + $0xc0] sm:$0xff]  }
0x13d8   :  { %4480 = vmatprep.subr.bf16.mxu0 %v4588_v50 }
0x13d9   :  { %v2884_v3 = vmul.f32 %v2860_v2, %v2860_v2  ;;  %4481 = vmatpush3.bf16.msra.mxu0 %v4588_v50 }
0x13da   :  { %v2870_v25 = vpop.xlane.xlu0 %2869  ;;  %v2853_v24 = vpop.xlane.xlu1 %2852 }
0x13db   :  { %v2880_v26 = vmul.f32 0.03125, %v2870_v25  ;;  %v2861_v32 = vmul.f32 0.03125, %v2853_v24  ;;  %v4590_v25 = vld [vmem:[%s6196_s4 + $0xd0] sm:$0xff]   ;;  %v4591_v24 = vld [vmem:[%s6196_s4 + $0xd8] sm:$0xff]  }
0x13dd   :  { %v2888_v6 = vsub.f32 %v2880_v26, %v2884_v3  ;;  %v2885_v30 = vmul.f32 %v2861_v32, %v2861_v32  ;;  %v4592_v3 = vld [vmem:[%s6196_s4 + $0xe0] sm:$0xff]   ;;  %v4593_v26 = vld [vmem:[%s6196_s4 + $0xe8] sm:$0xff]  }
0x13de   :  { %v2856_v41 = vpop.xlane.xlu0 %2855  ;;  %v2873_v23 = vpop.xlane.xlu1 %2872 }
0x13df   :  { %v2892_v35 = vmax.f32 %v2888_v6, 0.0  ;;  %v2862_v55 = vmul.f32 0.03125, %v2856_v41  ;;  %v2881_v8 = vmul.f32 0.03125, %v2873_v23  ;;  %v4595_v6 = vld [vmem:[%s6196_s4 + $0xf8] sm:$0xff]  }
0x13e0   :  { %v4118_v41 = vld [vmem:[%s6193_s1 + $0x1e] ss:$0 sm:$0xff] }
0x13e1   :  { %v2896_v39 = vadd.f32 1e-05, %v2892_v35  ;;  %v2889_v10 = vsub.f32 %v2881_v8, %v2885_v30  ;;  %v2886_v34 = vmul.f32 %v2862_v55, %v2862_v55 }
0x13e2   :  { %v2876_v48 = vpop.xlane.xlu0 %2875  ;;  %v2859_v14 = vpop.xlane.xlu1 %2858 }
0x13e3   :  { %4747 = vrsqrt.f32 %v2896_v39  ;;  %v2893_v22 = vmax.f32 %v2889_v10, 0.0  ;;  %v2882_v19 = vmul.f32 0.03125, %v2876_v48  ;;  %v2863_v49 = vmul.f32 0.03125, %v2859_v14 }
0x13e5   :  { %v2897_v4 = vadd.f32 1e-05, %v2893_v22  ;;  %v2890_v15 = vsub.f32 %v2882_v19, %v2886_v34  ;;  %v2887_v44 = vmul.f32 %v2863_v49, %v2863_v49 }
0x13e6   :  { %v2879_v1 = vpop.xlane.xlu1 %2878 }
0x13e7   :  { %4749 = vrsqrt.f32 %v2897_v4  ;;  %v2894_v11 = vmax.f32 %v2890_v15, 0.0  ;;  %v2883_v47 = vmul.f32 0.03125, %v2879_v1 }
0x13e9   :  { %v2898_v18 = vadd.f32 1e-05, %v2894_v11  ;;  %v2891_v33 = vsub.f32 %v2883_v47, %v2887_v44 }
0x13eb   :  { %4751 = vrsqrt.f32 %v2898_v18  ;;  %v2895_v63 = vmax.f32 %v2891_v33, 0.0 }
0x13ed   :  { %v4748_v7 = vpop.eup %4747  ;;  %v2899_v42 = vadd.f32 1e-05, %v2895_v63 }
0x13ee   :  { %v2908_v58 = vmul.f32 %v4748_v7, %v4112_v31 }
0x13ef   :  { %4753 = vrsqrt.f32 %v2899_v42 }
0x13f0   :  { %v2916_v12 = vmul.f32 %v2908_v58, %v2860_v2  ;;  %v2912_v59 = vmul.f32 %v2908_v58, %v5819_v37  ;;  %v4589_v2 = vld [vmem:[%s6196_s4 + $0xc8] sm:$0xff]  }
0x13f1   :  { %v4750_v54 = vpop.eup %4749  ;;  %4482 = vmatprep.subr.bf16.mxu0 %v4589_v2 }
0x13f2   :  { %v2909_v17 = vmul.f32 %v4750_v54, %v4112_v31  ;;  %v2924_v46 = vsub.f32 %v4113_v62, %v2916_v12  ;;  %4483 = vmatpush3.bf16.msra.mxu0 %v4589_v2 }
0x13f3   :  { %4484 = vmatprep.subr.bf16.mxu0 %v4590_v25 }
0x13f4   :  { %v2917_v0 = vmul.f32 %v2909_v17, %v2861_v32  ;;  %v2913_v9 = vmul.f32 %v2909_v17, %v5826_v40  ;;  %v2928_v5 = vadd.f32 %v2924_v46, %v2912_v59  ;;  %v4594_v32 = vld [vmem:[%s6196_s4 + $0xf0] sm:$0xff]  }
0x13f5   :  { %v4752_v43 = vpop.eup %4751 }
0x13f6   :  { %v2910_v21 = vmul.f32 %v4752_v43, %v4112_v31  ;;  %v2925_v45 = vsub.f32 %v4113_v62, %v2917_v0  ;;  %4485 = vmatpush3.bf16.msra.mxu0 %v4590_v25 }
0x13f7   :  { %4486 = vmatprep.subr.bf16.mxu0 %v4591_v24 }
0x13f8   :  { %v2918_v53 = vmul.f32 %v2910_v21, %v2862_v55  ;;  %v2929_v57 = vadd.f32 %v2925_v45, %v2913_v9  ;;  %v2914_v27 = vmul.f32 %v2910_v21, %v5834_v38 }
0x13f9   :  { %v4754_v36 = vpop.eup %4753 }
0x13fa   :  { %v2911_v28 = vmul.f32 %v4754_v36, %v4112_v31  ;;  %v2932_v61 = vpack.c.bf16 %v2929_v57, %v2928_v5  ;;  %v2926_v20 = vsub.f32 %v4113_v62, %v2918_v53  ;;  %4487 = vmatpush3.bf16.msra.mxu0 %v4591_v24 }
0x13fb   :  { %4488 = vmatprep.subr.bf16.mxu0 %v4592_v3 }
0x13fc   :  { %v2919_v51 = vmul.f32 %v2911_v28, %v2863_v49  ;;  %4476 = vmatprep.mubr.msk.bf16.mxu1 %vm132_vm1, %v2932_v61  ;;  %v2915_v56 = vmul.f32 %v2911_v28, %v5842_v13  ;;  %v2930_v16 = vadd.f32 %v2926_v20, %v2914_v27 }
0x13fe   :  { %v2927_v29 = vsub.f32 %v4113_v62, %v2919_v51  ;;  %4489 = vmatpush3.bf16.msra.mxu0 %v4592_v3 }
0x13ff   :  { %4490 = vmatprep.subr.bf16.mxu0 %v4593_v26 }
0x1400   :  { %v2931_v52 = vadd.f32 %v2927_v29, %v2915_v56  ;;  %v4139_v56 = vld [vmem:[%s6193_s1 + $0x1f] ss:$0 sm:$0xff] }
0x1402   :  { %v2933_v60 = vpack.c.bf16 %v2931_v52, %v2930_v16  ;;  %4491 = vmatpush3.bf16.msra.mxu0 %v4593_v26 }
0x1403   :  { %4492 = vmatprep.subr.bf16.mxu0 %v4594_v32 }
0x1404   :  { %4477 = vmatmul.mubr.msk.bf16.vlgmr.msra.gmra.mrb[32].mxu1 %vm132_vm1, %v2933_v60 }
0x1406   :  { %4493 = vmatpush3.bf16.msra.mxu0 %v4594_v32 }
0x1407   :  { %4494 = vmatprep.subr.bf16.mxu0 %v4595_v6 }
0x140a   :  { %4495 = vmatpush3.bf16.msra.mxu0 %v4595_v6 }
0x14d7   :  { %v4478_v23 = vpop.f32.mrb[32].mxu1 }
0x14d8   :  { %v3005_v35 = vadd.f32 %v4478_v23, %v4118_v41  ;;  %v2996_v30 = vpop.f32.mrb[33].mxu1 }
0x14d9   :  { %v2997_v55 = vadd.f32 %v4118_v41, %v2996_v30  ;;  %v4479_v8 = vpop.f32.mrb[34].mxu1 }
0x14da   :  { %v3013_v39 = vmul.f32 %v3005_v35, %v3005_v35  ;;  %v3008_v10 = vadd.f32 %v4479_v8, %v4118_v41  ;;  %v2999_v34 = vpop.f32.mrb[35].mxu1 }
0x14db   :  { %v3011_v48 = vmul.f32 %v2997_v55, %v2997_v55  ;;  %v3000_v14 = vadd.f32 %v4118_v41, %v2999_v34 }
0x14dc   :  { %v3017_v22 = vmul.f32 %v3013_v39, %v3005_v35  ;;  %v3014_v19 = vmul.f32 %v3008_v10, %v3008_v10 }
0x14dd   :  { %v3015_v49 = vmul.f32 %v3011_v48, %v2997_v55  ;;  %v3012_v4 = vmul.f32 %v3000_v14, %v3000_v14 }
0x14de   :  { %v3021_v15 = vmul.f32 0.044715, %v3017_v22  ;;  %v3018_v1 = vmul.f32 %v3014_v19, %v3008_v10 }
0x14df   :  { %v3019_v11 = vmul.f32 0.044715, %v3015_v49  ;;  %v3016_v44 = vmul.f32 %v3012_v4, %v3000_v14 }
0x14e0   :  { %v3025_v47 = vadd.f32 %v3021_v15, %v3005_v35  ;;  %v3022_v18 = vmul.f32 0.044715, %v3018_v1 }
0x14e1   :  { %v3023_v33 = vadd.f32 %v3019_v11, %v2997_v55  ;;  %v3020_v31 = vmul.f32 0.044715, %v3016_v44 }
0x14e2   :  { %v3029_v63 = vmul.f32 0.7978846, %v3025_v47  ;;  %v3026_v7 = vadd.f32 %v3022_v18, %v3008_v10 }
0x14e3   :  { %v3027_v42 = vmul.f32 0.7978846, %v3023_v33  ;;  %v3024_v58 = vadd.f32 %v3020_v31, %v3000_v14 }
0x14e4   :  { %4755 = vtanh.f32 %v3029_v63  ;;  %v3030_v12 = vmul.f32 0.7978846, %v3026_v7 }
0x14e5   :  { %4757 = vtanh.f32 %v3027_v42  ;;  %v3028_v54 = vmul.f32 0.7978846, %v3024_v58 }
0x14e6   :  { %4759 = vtanh.f32 %v3030_v12 }
0x14e7   :  { %4761 = vtanh.f32 %v3028_v54  ;;  %v4596_v54 = vld [vmem:[%s6197_s5 + $0x18] sm:$0xff]  }
0x14e8   :  { %4500 = vmatprep.subr.bf16.mxu1 %v4596_v54 }
0x14e9   :  { %4501 = vmatpush3.bf16.msra.mxu1 %v4596_v54 }
0x14ee   :  { %v4756_v62 = vpop.eup %4755 }
0x14ef   :  { %v4758_v17 = vpop.eup %4757  ;;  %v3037_v0 = vadd.f32 1.0, %v4756_v62 }
0x14f0   :  { %v4760_v46 = vpop.eup %4759  ;;  %v3035_v43 = vadd.f32 1.0, %v4758_v17 }
0x14f1   :  { %v4762_v21 = vpop.eup %4761  ;;  %v3041_v59 = vmul.f32 0.5, %v3037_v0  ;;  %v3038_v9 = vadd.f32 1.0, %v4760_v46 }
0x14f2   :  { %v3036_v45 = vadd.f32 1.0, %v4762_v21  ;;  %v3039_v53 = vmul.f32 0.5, %v3035_v43 }
0x14f3   :  { %v3042_v5 = vmul.f32 0.5, %v3038_v9  ;;  %v3045_v36 = vmul.f32 %v3041_v59, %v3005_v35 }
0x14f4   :  { %v3040_v57 = vmul.f32 0.5, %v3036_v45  ;;  %v3043_v61 = vmul.f32 %v3039_v53, %v2997_v55 }
0x14f5   :  { %v3046_v28 = vmul.f32 %v3042_v5, %v3008_v10 }
0x14f6   :  { %v3044_v51 = vmul.f32 %v3040_v57, %v3000_v14 }
0x14f7   :  { %v3048_v20 = vpack.c.bf16 %v3046_v28, %v3045_v36 }
0x14f8   :  { %v3047_v27 = vpack.c.bf16 %v3044_v51, %v3043_v61 }
0x14fa   :  { %4496 = vmatprep.mubr.bf16.mxu0 %v3047_v27 }
0x14fb   :  { %4497 = vmatmul.mubr.bf16.vlgmr.msra.gmra.mrb[44].mxu0 %v3048_v20 }
0x15ce   :  { %v4498_v29 = vpop.f32.mrb[44].mxu0 }
0x15cf   :  { %v3162_v16 = vadd.f32 %v4498_v29, %v4139_v56  ;;  %v3153_v52 = vpop.f32.mrb[45].mxu0 }
0x15d0   :  { %v3154_v60 = vadd.f32 %v4139_v56, %v3153_v52  ;;  %v4499_v50 = vpop.f32.mrb[46].mxu0 }
0x15d1   :  { %v5899_v2 = vadd.f32 %v3162_v16, %v5834_v38  ;;  %v3165_v25 = vadd.f32 %v4499_v50, %v4139_v56  ;;  %v3156_v24 = vpop.f32.mrb[47].mxu0 }
0x15d2   :  { %v5902_v3 = vadd.f32 %v3154_v60, %v5819_v37  ;;  %v3157_v26 = vadd.f32 %v4139_v56, %v3156_v24 }
0x15d3   :  { %3204 = vxpose.xlu1.b32.start [1/2] (short) (narrow) %v5899_v2, 32  ;;  %v5907_v32 = vadd.f32 %v3165_v25, %v5842_v13 }
0x15d4   :  { %3172 = vxpose.xlu0.b32.start [1/2] (short) (narrow) %v5902_v3, 32  ;;  %v5910_v6 = vadd.f32 %v3157_v26, %v5826_v40 }
0x15d7   :  { %3205 = vxpose.xlu1.b32.end [2/2] (short) (narrow) %v5907_v32, 32 }
0x15d8   :  { %3173 = vxpose.xlu0.b32.end [2/2] (short) (narrow) %v5910_v6, 32 }
0x1653   :  { %v5914_v38 = vpop.trf.xlu1 }
0x1654   :  { %v3250_v37 = vsel %vm521_vm2, %v5914_v38, 0.0  ;;  %v5918_v41 = vpop.trf.xlu0  ;;  %v3274_v11 = vmul.f32 %v5914_v38, %v5914_v38 }
0x1655   :  { %3251 = vadd.xlane.f32.xlu0 %v3250_v37  ;;  %v3238_v23 = vsel %vm521_vm2, %v5918_v41, 0.0  ;;  %v3270_v40 = vmul.f32 %v5918_v41, %v5918_v41 }
0x1656   :  { %v3290_v31 = vsel %vm521_vm2, %v3274_v11, 0.0 }
0x1657   :  { %v5922_v13 = vpop.trf.xlu1  ;;  %v3278_v10 = vsel %vm521_vm2, %v3270_v40, 0.0 }
0x1658   :  { %v3253_v35 = vsel %vm521_vm2, %v5922_v13, 0.0  ;;  %v5928_v30 = vpop.trf.xlu0  ;;  %v3275_v18 = vmul.f32 %v5922_v13, %v5922_v13 }
0x1659   :  { %3254 = vadd.xlane.f32.xlu1 %v3253_v35  ;;  %3239 = vadd.xlane.f32.xlu0 %v3238_v23  ;;  %v3241_v55 = vsel %vm521_vm2, %v5928_v30, 0.0  ;;  %v3271_v39 = vmul.f32 %v5928_v30, %v5928_v30 }
0x165a   :  { %v3293_v58 = vsel %vm521_vm2, %v3275_v18, 0.0 }
0x165b   :  { %v5932_v8 = vpop.trf.xlu1  ;;  %v3281_v22 = vsel %vm521_vm2, %v3271_v39, 0.0 }
0x165c   :  { %v5937_v34 = vpop.trf.xlu0  ;;  %v3256_v48 = vsel %vm521_vm2, %v5932_v8, 0.0  ;;  %v3276_v33 = vmul.f32 %v5932_v8, %v5932_v8 }
0x165d   :  { %3279 = vadd.xlane.f32.xlu0 %v3278_v10  ;;  %3242 = vadd.xlane.f32.xlu1 %v3241_v55  ;;  %v3244_v49 = vsel %vm521_vm2, %v5937_v34, 0.0  ;;  %v3272_v15 = vmul.f32 %v5937_v34, %v5937_v34 }
0x165e   :  { %v3296_v42 = vsel %vm521_vm2, %v3276_v33, 0.0 }
0x165f   :  { %v5941_v14 = vpop.trf.xlu1  ;;  %v3284_v47 = vsel %vm521_vm2, %v3272_v15, 0.0 }
0x1660   :  { %v3259_v19 = vsel %vm521_vm2, %v5941_v14, 0.0  ;;  %v5948_v4 = vpop.trf.xlu0  ;;  %v3277_v7 = vmul.f32 %v5941_v14, %v5941_v14 }
0x1661   :  { %3257 = vadd.xlane.f32.xlu0 %v3256_v48  ;;  %3282 = vadd.xlane.f32.xlu1 %v3281_v22  ;;  %v3247_v1 = vsel %vm521_vm2, %v5948_v4, 0.0  ;;  %v3273_v44 = vmul.f32 %v5948_v4, %v5948_v4  ;;  %v5994_v48 = vld [vmem:[%s6193_s1 + $0x20] ss:$0 sm:$0xff] }
0x1662   :  { %v3299_v12 = vsel %vm521_vm2, %v3277_v7, 0.0 }
0x1663   :  { %v3287_v63 = vsel %vm521_vm2, %v3273_v44, 0.0 }
0x1665   :  { %3260 = vadd.xlane.f32.xlu1 %v3259_v19  ;;  %3245 = vadd.xlane.f32.xlu0 %v3244_v49 }
0x1669   :  { %3285 = vadd.xlane.f32.xlu0 %v3284_v47  ;;  %3248 = vadd.xlane.f32.xlu1 %v3247_v1 }
0x166d   :  { %3291 = vadd.xlane.f32.xlu0 %v3290_v31  ;;  %3288 = vadd.xlane.f32.xlu1 %v3287_v63 }
0x1671   :  { %3297 = vadd.xlane.f32.xlu0 %v3296_v42  ;;  %3294 = vadd.xlane.f32.xlu1 %v3293_v58 }
0x1675   :  { %3300 = vadd.xlane.f32.xlu1 %v3299_v12 }
0x16e2   :  { %v3252_v62 = vpop.xlane.xlu0 %3251 }
0x16e3   :  { %v5979_v60 = vmul.f32 0.0625, %v3252_v62 }
0x16e5   :  { %v3314_v40 = vmul.f32 %v5979_v60, %v5979_v60 }
0x16e6   :  { %v3255_v17 = vpop.xlane.xlu1 %3254  ;;  %v3240_v0 = vpop.xlane.xlu0 %3239 }
0x16e7   :  { %v3262_v46 = vmul.f32 0.0625, %v3240_v0  ;;  %v5987_v35 = vmul.f32 0.0625, %v3255_v17 }
0x16e9   :  { %v3310_v59 = vmul.f32 %v3262_v46, %v3262_v46  ;;  %v3315_v18 = vmul.f32 %v5987_v35, %v5987_v35 }
0x16ea   :  { %v3243_v43 = vpop.xlane.xlu1 %3242  ;;  %v3280_v21 = vpop.xlane.xlu0 %3279 }
0x16eb   :  { %v5973_v9 = vmul.f32 0.0625, %v3243_v43  ;;  %v3302_v45 = vmul.f32 0.0625, %v3280_v21 }
0x16ed   :  { %v3318_v53 = vsub.f32 %v3302_v45, %v3310_v59  ;;  %v3311_v36 = vmul.f32 %v5973_v9, %v5973_v9  ;;  %v6008_v45 = vld [vmem:[%s6193_s1 + $0x21] ss:$0 sm:$0xff] }
0x16ee   :  { %v3283_v5 = vpop.xlane.xlu1 %3282  ;;  %v3258_v57 = vpop.xlane.xlu0 %3257 }
0x16ef   :  { %v3326_v28 = vmax.f32 %v3318_v53, 0.0  ;;  %v3303_v61 = vmul.f32 0.0625, %v3283_v5  ;;  %v5996_v15 = vmul.f32 0.0625, %v3258_v57 }
0x16f1   :  { %v3334_v51 = vadd.f32 1e-05, %v3326_v28  ;;  %v3319_v20 = vsub.f32 %v3303_v61, %v3311_v36  ;;  %v3316_v54 = vmul.f32 %v5996_v15, %v5996_v15 }
0x16f2   :  { %v3261_v27 = vpop.xlane.xlu1 %3260  ;;  %v3246_v56 = vpop.xlane.xlu0 %3245 }
0x16f3   :  { %4763 = vrsqrt.f32 %v3334_v51  ;;  %v3327_v29 = vmax.f32 %v3319_v20, 0.0  ;;  %v5977_v16 = vmul.f32 0.0625, %v3246_v56  ;;  %v6000_v33 = vmul.f32 0.0625, %v3261_v27 }
0x16f5   :  { %v3335_v52 = vadd.f32 1e-05, %v3327_v29  ;;  %v3312_v24 = vmul.f32 %v5977_v16, %v5977_v16  ;;  %v3317_v36 = vmul.f32 %v6000_v33, %v6000_v33 }
0x16f6   :  { %v3249_v50 = vpop.xlane.xlu1 %3248  ;;  %v3286_v25 = vpop.xlane.xlu0 %3285 }
0x16f7   :  { %4765 = vrsqrt.f32 %v3335_v52  ;;  %v5983_v26 = vmul.f32 0.0625, %v3249_v50  ;;  %v3304_v37 = vmul.f32 0.0625, %v3286_v25 }
0x16f9   :  { %v3320_v23 = vsub.f32 %v3304_v37, %v3312_v24  ;;  %v3313_v10 = vmul.f32 %v5983_v26, %v5983_v26 }
0x16fa   :  { %v3289_v55 = vpop.xlane.xlu1 %3288  ;;  %v3292_v39 = vpop.xlane.xlu0 %3291 }
0x16fb   :  { %v3328_v22 = vmax.f32 %v3320_v23, 0.0  ;;  %v3305_v19 = vmul.f32 0.0625, %v3289_v55  ;;  %v3306_v49 = vmul.f32 0.0625, %v3292_v39 }
0x16fd   :  { %v4764_v1 = vpop.eup %4763  ;;  %v3336_v11 = vadd.f32 1e-05, %v3328_v22  ;;  %v3321_v44 = vsub.f32 %v3305_v19, %v3313_v10  ;;  %v3322_v47 = vsub.f32 %v3306_v49, %v3314_v40 }
0x16fe   :  { %v3295_v31 = vpop.xlane.xlu1 %3294  ;;  %v3298_v63 = vpop.xlane.xlu0 %3297  ;;  %v3354_v7 = vmul.f32 %v4764_v1, %v5994_v48 }
0x16ff   :  { %4767 = vrsqrt.f32 %v3336_v11  ;;  %v3329_v42 = vmax.f32 %v3321_v44, 0.0  ;;  %v3330_v58 = vmax.f32 %v3322_v47, 0.0  ;;  %v3307_v12 = vmul.f32 0.0625, %v3295_v31 }
0x1700   :  { %v3308_v62 = vmul.f32 0.0625, %v3298_v63  ;;  %v3370_v17 = vmul.f32 %v3354_v7, %v3262_v46  ;;  %v3362_v52 = vmul.f32 %v3354_v7, %v5918_v41 }
0x1701   :  { %v4766_v0 = vpop.eup %4765  ;;  %v3337_v43 = vadd.f32 1e-05, %v3329_v42  ;;  %v3338_v21 = vadd.f32 1e-05, %v3330_v58  ;;  %v3323_v59 = vsub.f32 %v3307_v12, %v3315_v18 }
0x1702   :  { %v3324_v53 = vsub.f32 %v3308_v62, %v3316_v54  ;;  %v3301_v5 = vpop.xlane.xlu1 %3300  ;;  %v3355_v57 = vmul.f32 %v4766_v0, %v5994_v48  ;;  %v3382_v20 = vsub.f32 %v6008_v45, %v3370_v17 }
0x1703   :  { %4769 = vrsqrt.f32 %v3337_v43  ;;  %v3331_v28 = vmax.f32 %v3323_v59, 0.0  ;;  %v3309_v61 = vmul.f32 0.0625, %v3301_v5 }
0x1704   :  { %4771 = vrsqrt.f32 %v3338_v21  ;;  %v3332_v46 = vmax.f32 %v3324_v53, 0.0  ;;  %v3371_v51 = vmul.f32 %v3355_v57, %v5973_v9  ;;  %v3363_v50 = vmul.f32 %v3355_v57, %v5928_v30 }
0x1705   :  { %v3339_v27 = vadd.f32 1e-05, %v3331_v28  ;;  %v3325_v56 = vsub.f32 %v3309_v61, %v3317_v36  ;;  %v3390_v37 = vadd.f32 %v3382_v20, %v3362_v52  ;;  %v4152_v36 = vld [vmem:[%s6193_s1 + $0x22] ss:$0 sm:$0xff] }
0x1706   :  { %v3340_v29 = vadd.f32 1e-05, %v3332_v46  ;;  %v3383_v25 = vsub.f32 %v6008_v45, %v3371_v51 }
0x1707   :  { %4773 = vrsqrt.f32 %v3339_v27  ;;  %v3333_v24 = vmax.f32 %v3325_v56, 0.0 }
0x1708   :  { %4775 = vrsqrt.f32 %v3340_v29  ;;  %v3391_v23 = vadd.f32 %v3383_v25, %v3363_v50 }
0x1709   :  { %v4768_v40 = vpop.eup %4767  ;;  %v3341_v55 = vadd.f32 1e-05, %v3333_v24 }
0x170a   :  { %v3356_v9 = vmul.f32 %v4768_v40, %v5994_v48  ;;  %v3398_v39 = vpack.c.bf16 %v3391_v23, %v3390_v37 }
0x170b   :  { %4777 = vrsqrt.f32 %v3341_v55 }
0x170c   :  { %v3372_v10 = vmul.f32 %v3356_v9, %v5977_v16  ;;  %4502 = vmatprep.mubr.msk.bf16.mxu1 %vm521_vm2, %v3398_v39  ;;  %v3364_v18 = vmul.f32 %v3356_v9, %v5937_v34 }
0x170d   :  { %v4770_v41 = vpop.eup %4769 }
0x170e   :  { %v4772_v22 = vpop.eup %4771  ;;  %v3357_v30 = vmul.f32 %v4770_v41, %v5994_v48  ;;  %v3384_v1 = vsub.f32 %v6008_v45, %v3372_v10 }
0x170f   :  { %v3358_v19 = vmul.f32 %v4772_v22, %v5994_v48 }
0x1710   :  { %v3373_v49 = vmul.f32 %v3357_v30, %v5983_v26  ;;  %v3365_v16 = vmul.f32 %v3357_v30, %v5948_v4  ;;  %v3392_v42 = vadd.f32 %v3384_v1, %v3364_v18 }
0x1711   :  { %v4774_v11 = vpop.eup %4773  ;;  %v3374_v44 = vmul.f32 %v3358_v19, %v5979_v60  ;;  %v3366_v60 = vmul.f32 %v3358_v19, %v5914_v38 }
0x1712   :  { %v4776_v47 = vpop.eup %4775  ;;  %v3385_v31 = vsub.f32 %v6008_v45, %v3373_v49  ;;  %v3359_v63 = vmul.f32 %v4774_v11, %v5994_v48 }
0x1713   :  { %v3360_v7 = vmul.f32 %v4776_v47, %v5994_v48  ;;  %v3386_v12 = vsub.f32 %v6008_v45, %v3374_v44 }
0x1714   :  { %v3393_v58 = vadd.f32 %v3385_v31, %v3365_v16  ;;  %v3375_v26 = vmul.f32 %v3359_v63, %v5987_v35  ;;  %v3367_v4 = vmul.f32 %v3359_v63, %v5922_v13 }
0x1715   :  { %v4778_v54 = vpop.eup %4777  ;;  %v3376_v62 = vmul.f32 %v3360_v7, %v5996_v15  ;;  %v3394_v43 = vadd.f32 %v3386_v12, %v3366_v60  ;;  %v3368_v38 = vmul.f32 %v3360_v7, %v5932_v8  ;;  %v4598_v8 = vld [vmem:[%s6198_s6 + $0x68] sm:$0xff]  }
0x1716   :  { %v3399_v34 = vpack.c.bf16 %v3393_v58, %v3392_v42  ;;  %v3387_v17 = vsub.f32 %v6008_v45, %v3375_v26  ;;  %v3361_v0 = vmul.f32 %v4778_v54, %v5994_v48 }
0x1717   :  { %v3388_v59 = vsub.f32 %v6008_v45, %v3376_v62 }
0x1718   :  { %4503 = vmatmul.mubr.msk.bf16.vlgmr.msra.gmra.mrb[36].mxu1 %vm521_vm2, %v3399_v34  ;;  %v3395_v21 = vadd.f32 %v3387_v17, %v3367_v4  ;;  %v3377_v35 = vmul.f32 %v3361_v0, %v6000_v33  ;;  %v3369_v15 = vmul.f32 %v3361_v0, %v5941_v14  ;;  %v4597_v33 = vld [vmem:[%s6198_s6 + $0x60] sm:$0xff]   ;;  %v4599_v14 = vld [vmem:[%s6198_s6 + $0x70] sm:$0xff]  }
0x1719   :  { %v3396_v13 = vadd.f32 %v3388_v59, %v3368_v38  ;;  %4510 = vmatprep.subr.bf16.mxu1 %v4597_v33 }
0x171a   :  { %v3400_v53 = vpack.c.bf16 %v3395_v21, %v3394_v43  ;;  %v3389_v5 = vsub.f32 %v6008_v45, %v3377_v35  ;;  %4511 = vmatpush3.bf16.msra.mxu1 %v4597_v33  ;;  %v4600_v45 = vld [vmem:[%s6198_s6 + $0x78] sm:$0xff]  }
0x171b   :  { %4512 = vmatprep.subr.bf16.mxu1 %v4598_v8 }
0x171c   :  { %4506 = vmatprep.mubr.msk.bf16.mxu1 %vm521_vm2, %v3400_v53  ;;  %v3397_v57 = vadd.f32 %v3389_v5, %v3369_v15 }
0x171e   :  { %v3401_v48 = vpack.c.bf16 %v3397_v57, %v3396_v13  ;;  %4513 = vmatpush3.bf16.msra.mxu1 %v4598_v8 }
0x171f   :  { %4514 = vmatprep.subr.bf16.mxu1 %v4599_v14 }
0x1720   :  { %4507 = vmatmul.mubr.msk.bf16.gmra.mrb[40].mxu1 %vm521_vm2, %v3401_v48 }
0x1722   :  { %4515 = vmatpush3.bf16.msra.mxu1 %v4599_v14 }
0x1723   :  { %4516 = vmatprep.subr.bf16.mxu1 %v4600_v45 }
0x1726   :  { %4517 = vmatpush3.bf16.msra.mxu1 %v4600_v45 }
0x17eb   :  { %v4504_v28 = vpop.f32.mrb[36].mxu1 }
0x17ec   :  { %v6061_v61 = vadd.f32 %v4504_v28, %v4152_v36  ;;  %v3462_v46 = vpop.f32.mrb[37].mxu1 }
0x17ed   :  { %v6063_v51 = vadd.f32 %v4152_v36, %v3462_v46  ;;  %v4505_v20 = vpop.f32.mrb[38].mxu1 }
0x17ee   :  { %v3495_v27 = vmul.f32 %v6061_v61, %v6061_v61  ;;  %v6067_v56 = vadd.f32 %v4505_v20, %v4152_v36  ;;  %v3465_v29 = vpop.f32.mrb[39].mxu1 }
0x17ef   :  { %v3493_v52 = vmul.f32 %v6063_v51, %v6063_v51  ;;  %v6071_v50 = vadd.f32 %v4152_v36, %v3465_v29 }
0x17f0   :  { %v3503_v25 = vmul.f32 %v3495_v27, %v6061_v61  ;;  %v3496_v24 = vmul.f32 %v6067_v56, %v6067_v56 }
0x17f1   :  { %v3501_v37 = vmul.f32 %v3493_v52, %v6063_v51  ;;  %v3494_v23 = vmul.f32 %v6071_v50, %v6071_v50 }
0x17f2   :  { %v3511_v40 = vmul.f32 0.044715, %v3503_v25  ;;  %v3504_v55 = vmul.f32 %v3496_v24, %v6067_v56 }
0x17f3   :  { %v3509_v9 = vmul.f32 0.044715, %v3501_v37  ;;  %v3502_v39 = vmul.f32 %v3494_v23, %v6071_v50  ;;  %v4508_v10 = vpop.f32.mrb[40].mxu1 }
0x17f4   :  { %v3519_v41 = vadd.f32 %v3511_v40, %v6061_v61  ;;  %v3512_v22 = vmul.f32 0.044715, %v3504_v55  ;;  %v6082_v30 = vadd.f32 %v4508_v10, %v4152_v36  ;;  %v3478_v19 = vpop.f32.mrb[41].mxu1 }
0x17f5   :  { %v3517_v49 = vadd.f32 %v3509_v9, %v6063_v51  ;;  %v3510_v1 = vmul.f32 0.044715, %v3502_v39  ;;  %v6085_v11 = vadd.f32 %v4152_v36, %v3478_v19  ;;  %v4509_v44 = vpop.f32.mrb[42].mxu1 }
0x17f6   :  { %v3527_v47 = vmul.f32 0.7978846, %v3519_v41  ;;  %v3520_v18 = vadd.f32 %v3512_v22, %v6067_v56  ;;  %v3499_v16 = vmul.f32 %v6082_v30, %v6082_v30  ;;  %v6090_v31 = vadd.f32 %v4509_v44, %v4152_v36  ;;  %v3481_v63 = vpop.f32.mrb[43].mxu1 }
0x17f7   :  { %v3525_v7 = vmul.f32 0.7978846, %v3517_v49  ;;  %v3518_v42 = vadd.f32 %v3510_v1, %v6071_v50  ;;  %v3497_v58 = vmul.f32 %v6085_v11, %v6085_v11  ;;  %v6095_v26 = vadd.f32 %v4152_v36, %v3481_v63 }
0x17f8   :  { %4779 = vtanh.f32 %v3527_v47  ;;  %v3528_v12 = vmul.f32 0.7978846, %v3520_v18  ;;  %v3507_v54 = vmul.f32 %v3499_v16, %v6082_v30  ;;  %v3500_v60 = vmul.f32 %v6090_v31, %v6090_v31 }
0x17f9   :  { %4781 = vtanh.f32 %v3525_v7  ;;  %v3526_v62 = vmul.f32 0.7978846, %v3518_v42  ;;  %v3505_v34 = vmul.f32 %v3497_v58, %v6085_v11  ;;  %v3498_v4 = vmul.f32 %v6095_v26, %v6095_v26 }
0x17fa   :  { %4783 = vtanh.f32 %v3528_v12  ;;  %v3515_v17 = vmul.f32 0.044715, %v3507_v54  ;;  %v3508_v0 = vmul.f32 %v3500_v60, %v6090_v31  ;;  %v4166_v12 = vld [vmem:[%s6193_s1 + $0x23] ss:$0 sm:$0xff] }
0x17fb   :  { %4785 = vtanh.f32 %v3526_v62  ;;  %v3513_v43 = vmul.f32 0.044715, %v3505_v34  ;;  %v3506_v21 = vmul.f32 %v3498_v4, %v6095_v26 }
0x17fc   :  { %v3523_v35 = vadd.f32 %v3515_v17, %v6082_v30  ;;  %v3516_v59 = vmul.f32 0.044715, %v3508_v0 }
0x17fd   :  { %v3521_v53 = vadd.f32 %v3513_v43, %v6085_v11  ;;  %v3514_v38 = vmul.f32 0.044715, %v3506_v21 }
0x17fe   :  { %v3531_v15 = vmul.f32 0.7978846, %v3523_v35  ;;  %v3524_v5 = vadd.f32 %v3516_v59, %v6090_v31 }
0x17ff   :  { %v3529_v13 = vmul.f32 0.7978846, %v3521_v53  ;;  %v3522_v57 = vadd.f32 %v3514_v38, %v6095_v26 }
0x1800   :  { %4787 = vtanh.f32 %v3531_v15  ;;  %v3532_v48 = vmul.f32 0.7978846, %v3524_v5 }
0x1801   :  { %4789 = vtanh.f32 %v3529_v13  ;;  %v3530_v33 = vmul.f32 0.7978846, %v3522_v57 }
0x1802   :  { %v4780_v8 = vpop.eup %4779  ;;  %4791 = vtanh.f32 %v3532_v48 }
0x1803   :  { %v4782_v14 = vpop.eup %4781  ;;  %v3543_v45 = vadd.f32 1.0, %v4780_v8  ;;  %4793 = vtanh.f32 %v3530_v33 }
0x1804   :  { %v4784_v36 = vpop.eup %4783  ;;  %v3541_v28 = vadd.f32 1.0, %v4782_v14 }
0x1805   :  { %v4786_v46 = vpop.eup %4785  ;;  %v3551_v20 = vmul.f32 0.5, %v3543_v45  ;;  %v3544_v27 = vadd.f32 1.0, %v4784_v36 }
0x1806   :  { %v3549_v29 = vmul.f32 0.5, %v3541_v28  ;;  %v3542_v52 = vadd.f32 1.0, %v4786_v46 }
0x1807   :  { %v3552_v25 = vmul.f32 0.5, %v3544_v27  ;;  %v3559_v37 = vmul.f32 %v3551_v20, %v6061_v61 }
0x1808   :  { %v3550_v24 = vmul.f32 0.5, %v3542_v52  ;;  %v3557_v55 = vmul.f32 %v3549_v29, %v6063_v51 }
0x1809   :  { %v3560_v23 = vmul.f32 %v3552_v25, %v6067_v56  ;;  %v4601_v25 = vld [vmem:[%s6199_s7] sm:$0xff]  }
0x180a   :  { %v4788_v40 = vpop.eup %4787  ;;  %v3558_v9 = vmul.f32 %v3550_v24, %v6071_v50  ;;  %v4827_v24 = vmov 0.0  }
0x180b   :  { %v4790_v39 = vpop.eup %4789  ;;  %v3566_v10 = vpack.c.bf16 %v3560_v23, %v3559_v37  ;;  %v3547_v41 = vadd.f32 1.0, %v4788_v40  ;;  %4526 = vmatprep.subr.bf16.mxu0 %v4827_v24  ;;  %4530 = vmatprep.mubr.msk.bf16.mxu0 %vm4828_vm3, %v4827_v24 }
0x180c   :  { %v4792_v22 = vpop.eup %4791  ;;  %v3545_v19 = vadd.f32 1.0, %v4790_v39  ;;  %v3565_v49 = vpack.c.bf16 %v3558_v9, %v3557_v55  ;;  %4527 = vmatpush3.bf16.msra.mxu0 %v4601_v25 }
0x180d   :  { %v4794_v1 = vpop.eup %4793  ;;  %v3555_v44 = vmul.f32 0.5, %v3547_v41  ;;  %v3548_v47 = vadd.f32 1.0, %v4792_v22  ;;  %4528 = vmatprep.subr.bf16.mxu0 %v4827_v24 }
0x180e   :  { %v3553_v18 = vmul.f32 0.5, %v3545_v19  ;;  %v3546_v16 = vadd.f32 1.0, %v4794_v1  ;;  %4518 = vmatprep.mubr.msk.bf16.mxu1 %vm74_vm0, %v3565_v49 }
0x180f   :  { %v3556_v61 = vmul.f32 0.5, %v3548_v47  ;;  %4519 = vmatmul.mubr.msk.bf16.vlgmr.msra.gmra.mrb[44].mxu1 %vm74_vm0, %v3566_v10  ;;  %v3563_v51 = vmul.f32 %v3555_v44, %v6082_v30 }
0x1810   :  { %v3554_v56 = vmul.f32 0.5, %v3546_v16  ;;  %v3561_v63 = vmul.f32 %v3553_v18, %v6085_v11 }
0x1811   :  { %v3564_v50 = vmul.f32 %v3556_v61, %v6090_v31 }
0x1812   :  { %v3562_v7 = vmul.f32 %v3554_v56, %v6095_v26 }
0x1813   :  { %v3568_v42 = vpack.c.bf16 %v3564_v50, %v3563_v51 }
0x1814   :  { %v3567_v58 = vpack.c.bf16 %v3562_v7, %v3561_v63 }
0x1816   :  { %4522 = vmatprep.mubr.msk.bf16.mxu1 %vm74_vm0, %v3567_v58 }
0x1817   :  { %4523 = vmatmul.mubr.msk.bf16.gmra.mrb[48].mxu1 %vm74_vm0, %v3568_v42 }
0x18e2   :  { %v4520_v54 = vpop.f32.mrb[44].mxu1 }
0x18e3   :  { %v3653_v60 = vpop.f32.mrb[45].mxu1  ;;  %v3662_v4 = vadd.f32 %v4520_v54, %v4166_v12 }
0x18e4   :  { %v3654_v62 = vadd.f32 %v4166_v12, %v3653_v60  ;;  %v4521_v30 = vpop.f32.mrb[46].mxu1 }
0x18e5   :  { %v3656_v34 = vpop.f32.mrb[47].mxu1  ;;  %v3665_v21 = vadd.f32 %v4521_v30, %v4166_v12 }
0x18e6   :  { %3684 = vxpose.xlu0.b32.start [1/4] (short) (narrow) %v3654_v62, 16  ;;  %v3657_v31 = vadd.f32 %v4166_v12, %v3656_v34 }
0x18ea   :  { %3685 = vxpose.xlu0.b32.cont [2/4] (short) (narrow) %v3657_v31, 16  ;;  %v4524_v11 = vpop.f32.mrb[48].mxu1  ;;  %v4175_v31 = vld [vmem:[%s6193_s1 + $0x1] ss:$0 sm:$0xff] }
0x18eb   :  { %v3669_v26 = vpop.f32.mrb[49].mxu1  ;;  %v3678_v59 = vadd.f32 %v4524_v11, %v4166_v12 }
0x18ec   :  { %v3670_v17 = vadd.f32 %v4166_v12, %v3669_v26  ;;  %v4525_v0 = vpop.f32.mrb[50].mxu1 }
0x18ed   :  { %v3672_v43 = vpop.f32.mrb[51].mxu1  ;;  %v3681_v53 = vadd.f32 %v4525_v0, %v4166_v12  ;;  %v4176_v0 = vld [vmem:[%s6193_s1 + $0x2] ss:$0 sm:$0xff] }
0x18ee   :  { %3686 = vxpose.xlu0.b32.cont [3/4] (short) (narrow) %v3662_v4, 16  ;;  %3716 = vxpose.xlu1.b32.start [1/4] (short) (narrow) %v3670_v17, 16  ;;  %v3673_v35 = vadd.f32 %v4166_v12, %v3672_v43 }
0x18f2   :  { %3687 = vxpose.xlu0.b32.end [4/4] (short) (narrow) %v3665_v21, 16  ;;  %3717 = vxpose.xlu1.b32.cont [2/4] (short) (narrow) %v3673_v35, 16 }
0x18f6   :  { %3718 = vxpose.xlu1.b32.cont [3/4] (short) (narrow) %v3678_v59, 16 }
0x18fa   :  { %3719 = vxpose.xlu1.b32.end [4/4] (short) (narrow) %v3681_v53, 16 }
0x1966   :  { %v3700_v38 = vpop.trf.xlu0 }
0x1967   :  { %v6125_v15 = vadd.f32 %v3700_v38, %v5902_v3 }
0x1969   :  { %v3754_v5 = vsel %vm132_vm1, %v6125_v15, 0.0  ;;  %v3770_v13 = vmul.f32 %v6125_v15, %v6125_v15 }
0x196a   :  { %3755 = vadd.xlane.f32.xlu0 %v3754_v5  ;;  %v3701_v57 = vpop.trf.xlu0 }
0x196b   :  { %v6132_v48 = vadd.f32 %v3701_v57, %v5910_v6  ;;  %v3774_v33 = vsel %vm132_vm1, %v3770_v13, 0.0 }
0x196d   :  { %v3757_v8 = vsel %vm132_vm1, %v6132_v48, 0.0  ;;  %v3771_v3 = vmul.f32 %v6132_v48, %v6132_v48 }
0x196e   :  { %3775 = vadd.xlane.f32.xlu0 %v3774_v33  ;;  %3758 = vadd.xlane.f32.xlu1 %v3757_v8  ;;  %v3732_v14 = vpop.trf.xlu1 }
0x196f   :  { %v6140_v45 = vadd.f32 %v3732_v14, %v5899_v2  ;;  %v3777_v36 = vsel %vm132_vm1, %v3771_v3, 0.0 }
0x1971   :  { %v3760_v6 = vsel %vm132_vm1, %v6140_v45, 0.0  ;;  %v3772_v28 = vmul.f32 %v6140_v45, %v6140_v45 }
0x1972   :  { %3778 = vadd.xlane.f32.xlu1 %v3777_v36  ;;  %3761 = vadd.xlane.f32.xlu0 %v3760_v6  ;;  %v3733_v46 = vpop.trf.xlu1 }
0x1973   :  { %v6148_v20 = vadd.f32 %v3733_v46, %v5907_v32  ;;  %v3780_v27 = vsel %vm132_vm1, %v3772_v28, 0.0  ;;  %v4602_v32 = vld [vmem:[%s6199_s7 + $0x8] sm:$0xff]  }
0x1974   :  { %4529 = vmatpush3.bf16.msra.mxu0 %v4602_v32 }
0x1975   :  { %v3763_v2 = vsel %vm132_vm1, %v6148_v20, 0.0  ;;  %v3773_v29 = vmul.f32 %v6148_v20, %v6148_v20 }
0x1976   :  { %3781 = vadd.xlane.f32.xlu0 %v3780_v27  ;;  %3764 = vadd.xlane.f32.xlu1 %v3763_v2 }
0x1977   :  { %v3783_v52 = vsel %vm132_vm1, %v3773_v29, 0.0 }
0x197a   :  { %3784 = vadd.xlane.f32.xlu1 %v3783_v52 }
0x19f7   :  { %v3756_v37 = vpop.xlane.xlu0 %3755 }
0x19f8   :  { %v3766_v23 = vmul.f32 0.03125, %v3756_v37 }
0x19fa   :  { %v3790_v9 = vmul.f32 %v3766_v23, %v3766_v23 }
0x19fb   :  { %v3776_v40 = vpop.xlane.xlu0 %3775  ;;  %v3759_v55 = vpop.xlane.xlu1 %3758 }
0x19fc   :  { %v3786_v39 = vmul.f32 0.03125, %v3776_v40  ;;  %v3767_v10 = vmul.f32 0.03125, %v3759_v55 }
0x19fe   :  { %v3794_v41 = vsub.f32 %v3786_v39, %v3790_v9  ;;  %v3791_v1 = vmul.f32 %v3767_v10, %v3767_v10 }
0x19ff   :  { %v3762_v22 = vpop.xlane.xlu0 %3761  ;;  %v3779_v19 = vpop.xlane.xlu1 %3778 }
0x1a00   :  { %v3798_v49 = vmax.f32 %v3794_v41, 0.0  ;;  %v3768_v44 = vmul.f32 0.03125, %v3762_v22  ;;  %v3787_v47 = vmul.f32 0.03125, %v3779_v19 }
0x1a02   :  { %v3802_v18 = vadd.f32 1e-05, %v3798_v49  ;;  %v3795_v16 = vsub.f32 %v3787_v47, %v3791_v1  ;;  %v3792_v61 = vmul.f32 %v3768_v44, %v3768_v44 }
0x1a03   :  { %v3782_v56 = vpop.xlane.xlu0 %3781  ;;  %v3765_v51 = vpop.xlane.xlu1 %3764 }
0x1a04   :  { %4795 = vrsqrt.f32 %v3802_v18  ;;  %v3799_v50 = vmax.f32 %v3795_v16, 0.0  ;;  %v3788_v63 = vmul.f32 0.03125, %v3782_v56  ;;  %v3769_v7 = vmul.f32 0.03125, %v3765_v51 }
0x1a06   :  { %v3803_v42 = vadd.f32 1e-05, %v3799_v50  ;;  %v3796_v58 = vsub.f32 %v3788_v63, %v3792_v61  ;;  %v3793_v60 = vmul.f32 %v3769_v7, %v3769_v7  ;;  %v4177_v63 = vld [vmem:[%s6193_s1 + $0x3] ss:$0 sm:$0xff] }
0x1a07   :  { %v3785_v12 = vpop.xlane.xlu1 %3784 }
0x1a08   :  { %4797 = vrsqrt.f32 %v3803_v42  ;;  %v3800_v54 = vmax.f32 %v3796_v58, 0.0  ;;  %v3789_v62 = vmul.f32 0.03125, %v3785_v12 }
0x1a0a   :  { %v3804_v30 = vadd.f32 1e-05, %v3800_v54  ;;  %v3797_v34 = vsub.f32 %v3789_v62, %v3793_v60 }
0x1a0c   :  { %4799 = vrsqrt.f32 %v3804_v30  ;;  %v3801_v11 = vmax.f32 %v3797_v34, 0.0 }
0x1a0e   :  { %v4796_v26 = vpop.eup %4795  ;;  %v3805_v4 = vadd.f32 1e-05, %v3801_v11 }
0x1a0f   :  { %v3814_v17 = vmul.f32 %v4796_v26, %v4175_v31 }
0x1a10   :  { %4801 = vrsqrt.f32 %v3805_v4 }
0x1a11   :  { %v3822_v43 = vmul.f32 %v3814_v17, %v3766_v23  ;;  %v3818_v53 = vmul.f32 %v3814_v17, %v6125_v15 }
0x1a12   :  { %v4798_v21 = vpop.eup %4797 }
0x1a13   :  { %v3830_v35 = vsub.f32 %v4176_v0, %v3822_v43  ;;  %v3815_v59 = vmul.f32 %v4798_v21, %v4175_v31 }
0x1a15   :  { %v3823_v38 = vmul.f32 %v3815_v59, %v3767_v10  ;;  %v3834_v13 = vadd.f32 %v3830_v35, %v3818_v53  ;;  %v3819_v57 = vmul.f32 %v3815_v59, %v6132_v48 }
0x1a16   :  { %v4800_v5 = vpop.eup %4799 }
0x1a17   :  { %v3831_v33 = vsub.f32 %v4176_v0, %v3823_v38  ;;  %v3816_v8 = vmul.f32 %v4800_v5, %v4175_v31  ;;  %v3838_v6 = vsel %vm132_vm1, %v3834_v13, 0.0 }
0x1a19   :  { %v3835_v3 = vadd.f32 %v3831_v33, %v3819_v57  ;;  %v3824_v14 = vmul.f32 %v3816_v8, %v3768_v44  ;;  %v3820_v29 = vmul.f32 %v3816_v8, %v6140_v45 }
0x1a1a   :  { %v4802_v36 = vpop.eup %4801 }
0x1a1b   :  { %v3839_v28 = vsel %vm132_vm1, %v3835_v3, 0.0  ;;  %v3832_v46 = vsub.f32 %v4176_v0, %v3824_v14  ;;  %v3817_v27 = vmul.f32 %v4802_v36, %v4175_v31 }
0x1a1c   :  { %v3840_v2 = vadd.f32 %v3839_v28, %v3838_v6 }
0x1a1d   :  { %v3825_v15 = vmul.f32 %v3817_v27, %v3769_v7  ;;  %v3836_v25 = vadd.f32 %v3832_v46, %v3820_v29  ;;  %v3821_v24 = vmul.f32 %v3817_v27, %v6148_v20 }
0x1a1e   :  { %v3841_v52 = vrot.slane %v3840_v2, 4 }
0x1a1f   :  { %v3833_v48 = vsub.f32 %v4176_v0, %v3825_v15  ;;  %v3847_v40 = vsel %vm132_vm1, %v3836_v25, 0.0 }
0x1a20   :  { %v3842_v32 = vadd.f32 %v3841_v52, %v3840_v2 }
0x1a21   :  { %v3837_v37 = vadd.f32 %v3833_v48, %v3821_v24 }
0x1a22   :  { %v3843_v23 = vrot.slane %v3842_v32, 2 }
0x1a23   :  { %v3848_v55 = vsel %vm132_vm1, %v3837_v37, 0.0 }
0x1a24   :  { %v3849_v9 = vadd.f32 %v3848_v55, %v3847_v40  ;;  %v3844_v39 = vadd.f32 %v3843_v23, %v3842_v32 }
0x1a26   :  { %v3850_v10 = vrot.slane %v3849_v9, 4  ;;  %v3845_v41 = vrot.slane %v3844_v39, 1 }
0x1a28   :  { %v3851_v22 = vadd.f32 %v3850_v10, %v3849_v9  ;;  %v3846_v19 = vadd.f32 %v3845_v41, %v3844_v39 }
0x1a2a   :  { %v3852_v45 = vrot.slane %v3851_v22, 2  ;;  %v3856_v44 = vmul.f32 0.0625, %v3846_v19 }
0x1a2c   :  { %v3853_v49 = vadd.f32 %v3852_v45, %v3851_v22  ;;  %v3858_v18 = vpack.c.bf16 %v3856_v44, %v3856_v44 }
0x1a2e   :  { %v3854_v1 = vrot.slane %v3853_v49, 1  ;;  %v3871_v61 = vunpack.c.l.b16 %v3858_v18 }
0x1a30   :  { %v3855_v47 = vadd.f32 %v3854_v1, %v3853_v49 }
0x1a32   :  { %v3857_v20 = vmul.f32 0.0625, %v3855_v47 }
0x1a34   :  { %v3859_v16 = vpack.c.bf16 %v3857_v20, %v3857_v20 }
0x1a36   :  { %v3872_v56 = vunpack.c.l.b16 %v3859_v16 }
0x1a38   :  { %v3874_v51 = vsel %vm3873_vm4, %v3872_v56, %v3871_v61 }
0x1a39   :  { %v3875_v50 = vpack.c.b16 %v3874_v51, %v3874_v51 }
0x1a3b   :  { %4531 = vmatmul.mubr.msk.bf16.vlgmr.msra.gmra.mrb[48].mxu0 %vm132_vm1, %v3875_v50 }
0x1b0e   :  { %v3925_v7 = vpop.f32.mrb[48].mxu0 }
0x1b0f   :  { %v3926_v42 = vadd.f32 %v4177_v63, %v3925_v7  ;;  %v4532_v58 = vpop.f32.mrb[49].mxu0 }
0x1b10   :  { %v3928_v12 = vpop.f32.mrb[50].mxu0 }
0x1b11   :  { %3931 = vst [vmem:[#allocation2] sm:$0x3] %v3926_v42  ;;  %v4533_v54 = vpop.f32.mrb[51].mxu0 }
0x1b12   :  { %4814 = shalt.err (!%p4811_p4)
}
0x1b13   :  { %s4815_s1 = scalar_lea.hbm %s6200_s8, 32 }
0x1b14   :  { %p4816_p5 = scmp.ne.s32.totalorder %s6200_s8, %s4815_s1  ;;  %p4819_p6 = scmp.lt.u32.totalorder %s4815_s1, %s6200_s8 }
0x1b16   :  { %p4821_p7 = pnand %p4819_p6, %p4816_p5 }
0x1b18   :  { %4824 = shalt.err (!%p4821_p7)
}
0x1b19   :  { %3941 = dma.vmem_to_hbm [thread:$0]  %s3939_s19, 32, %s6200_s8, [#allocation3]  }
0x1b1a   :  { %4825 = dma.done.wait [#allocation3], 32  }
0x1b1b   :  { %4826 = vsyncadd [#allocation3], 4294967264 }
0x1b1c   :  { %3945 = vsyncpa [#allocation3], 1 }

// kernel: tpu_custom_call.1
= control target key start
LH: loop header
LB: loop body
LE: loop exit
PB: predicated region body
PF: predicated region fallthrough
CT: control target
= control target key end

     0   :  { %vm77_vm0 = vcmask 523264   ;;  %s6493_s0 = inlined_call_operand.vmem [shape: f32[2,16,64], index: 0, kind: input, shape index: {}]   ;;  %s6494_s1 = inlined_call_operand.vmem [shape: f32[36,128], index: 1, kind: input, shape index: {}]   ;;  %s6495_s2 = inlined_call_operand.vmem [shape: f32[4,112,1], index: 2, kind: input, shape index: {}]   ;;  %s6496_s3 = inlined_call_operand.vmem [shape: bf16[64,32], index: 3, kind: input, shape index: {}]   ;;  %s6497_s4 = inlined_call_operand.vmem [shape: bf16[4,32,128], index: 4, kind: input, shape index: {}]   ;;  %s6498_s5 = inlined_call_operand.vmem [shape: bf16[4,128,32], index: 5, kind: input, shape index: {}]   ;;  %s6499_s6 = inlined_call_operand.vmem [shape: bf16[4,64,16], index: 6, kind: input, shape index: {}]   ;;  %s6500_s7 = inlined_call_operand.vmem [shape: bf16[4,16,64], index: 7, kind: input, shape index: {}]   ;;  %s6501_s8 = inlined_call_operand.vmem [shape: bf16[32,128], index: 8, kind: input, shape index: {}]   ;;  %s6502_s9 = inlined_call_operand.hbm [shape: f32[2,128], index: 9, kind: output, shape index: {}]  }
   0x1   :  { %v4680_v0 = vld [vmem:[%s6496_s3] sm:$0xff]   ;;  %v4681_v1 = vld [vmem:[%s6496_s3 + $0x8] sm:$0xff]   ;;  %v4682_v2 = vld [vmem:[%s6496_s3 + $0x10] sm:$0xff]  }
   0x2   :  { %4366 = vmatprep.subr.bf16.mxu0 %v4680_v0  ;;  %v34_v3 = vld [vmem:[%s6493_s0] sm:$0xff]  ;;  %v35_v4 = vld [vmem:[%s6493_s0 + $0x8] sm:$0xff]  ;;  %v4683_v6 = vld [vmem:[%s6496_s3 + $0x18] sm:$0xff]  }
   0x3   :  { %4367 = vmatpush3.bf16.msra.mxu0 %v4680_v0  ;;  %v38_v5 = vpack.c.bf16 %v35_v4, %v34_v3  ;;  %v36_v7 = vld [vmem:[%s6493_s0 + $0x10] sm:$0xff]  ;;  %v37_v8 = vld [vmem:[%s6493_s0 + $0x18] sm:$0xff] }
   0x4   :  { %4368 = vmatprep.subr.bf16.mxu0 %v4681_v1  ;;  %v39_v9 = vpack.c.bf16 %v37_v8, %v36_v7 }
   0x5   :  { %4374 = vmatprep.mubr.msk.bf16.mxu0 %vm77_vm0, %v38_v5 }
   0x7   :  { %4369 = vmatpush3.bf16.msra.mxu0 %v4681_v1 }
   0x8   :  { %4370 = vmatprep.subr.bf16.mxu0 %v4682_v2 }
   0xb   :  { %4371 = vmatpush3.bf16.msra.mxu0 %v4682_v2 }
   0xc   :  { %4372 = vmatprep.subr.bf16.mxu0 %v4683_v6 }
   0xf   :  { %4373 = vmatpush3.bf16.msra.mxu0 %v4683_v6 }
  0x12   :  { %4375 = vmatmul.mubr.msk.bf16.vlgmr.msra.gmra.mrb[0].mxu0 %vm77_vm0, %v39_v9 }
  0x13   :  { %14 = vsyncpa [#allocation3], 0  ;;  %v3952_v10 = vld [vmem:[%s6494_s1] ss:$0 sm:$0xff]  ;;  %vm135_vm1 = vcmask 261120   ;;  %v4685_v32 = vld [vmem:[%s6497_s4 + $0x8] sm:$0xff]  }
  0x14   :  { %v4684_v31 = vld [vmem:[%s6497_s4] sm:$0xff]   ;;  %vm634_vm2 = vcmask 130048   ;;  %vm4988_vm3 = vmmov 0   ;;  %vm3879_vm4 = vcmask 1041409   ;;  %s4989_s17 = smov [#allocation2]  }
  0x15   :  { %4378 = vmatprep.subr.bf16.mxu1 %v4684_v31  ;;  %v3959_v1 = vld [vmem:[%s6494_s1 + $0x4] ss:$0 sm:$0xff]  ;;  %v3960_v5 = vld [vmem:[%s6494_s1 + $0x5] ss:$0 sm:$0xff]  ;;  %s3944_s18 = sshll.u32 %s4989_s17, 4  ;;  %s3945_s18 = int_to_ptr.vmem [resolvable:$true] %s3944_s18 }
  0x16   :  { %4379 = vmatpush3.bf16.msra.mxu1 %v4684_v31  ;;  %s4962_s19 = scalar_lea.vmem %s3945_s18, 32  ;;  %p4967_p1 = scmp.lt.s32.totalorder %s3945_s18, %s3945_s18 }
  0x17   :  { %4380 = vmatprep.subr.bf16.mxu1 %v4685_v32  ;;  %p4963_p0 = scmp.ne.s32.totalorder %s3945_s18, %s4962_s19  ;;  %p4968_p2 = scmp.lt.s32.totalorder %s4962_s19, %s4962_s19 }
  0x19   :  { %p4969_p3 = por %p4968_p2, %p4967_p1 }
  0x1a   :  { %4381 = vmatpush3.bf16.msra.mxu1 %v4685_v32 }
  0x1b   :  { %p4970_p4 = pnand %p4969_p3, %p4963_p0 }
  0xe5   :  { %v4376_v11 = vpop.f32.mrb[0].mxu0 }
  0xe6   :  { %v5069_v12 = vadd.f32 %v4376_v11, %v3952_v10  ;;  %v118_v13 = vpop.f32.mrb[1].mxu0 }
  0xe7   :  { %v5071_v14 = vadd.f32 %v3952_v10, %v118_v13  ;;  %v4377_v15 = vpop.f32.mrb[2].mxu0 }
  0xe8   :  { %v5073_v16 = vadd.f32 %v4377_v15, %v3952_v10  ;;  %v121_v17 = vpop.f32.mrb[3].mxu0  ;;  %v142_v18 = vsel %vm135_vm1, %v5069_v12, 0.0  ;;  %v154_v28 = vmul.f32 %v5069_v12, %v5069_v12 }
  0xe9   :  { %v5077_v19 = vadd.f32 %v3952_v10, %v121_v17  ;;  %143 = vadd.xlane.f32.xlu1 %v142_v18  ;;  %v136_v20 = vsel %vm135_vm1, %v5071_v14, 0.0  ;;  %v152_v24 = vmul.f32 %v5071_v14, %v5071_v14 }
  0xea   :  { %137 = vadd.xlane.f32.xlu0 %v136_v20  ;;  %v145_v21 = vsel %vm135_vm1, %v5073_v16, 0.0  ;;  %v155_v26 = vmul.f32 %v5073_v16, %v5073_v16  ;;  %v162_v30 = vsel %vm135_vm1, %v154_v28, 0.0 }
  0xeb   :  { %v153_v22 = vmul.f32 %v5077_v19, %v5077_v19  ;;  %v139_v23 = vsel %vm135_vm1, %v5077_v19, 0.0  ;;  %v156_v27 = vsel %vm135_vm1, %v152_v24, 0.0 }
  0xec   :  { %v165_v29 = vsel %vm135_vm1, %v155_v26, 0.0 }
  0xed   :  { %146 = vadd.xlane.f32.xlu1 %v145_v21  ;;  %v159_v25 = vsel %vm135_vm1, %v153_v22, 0.0 }
  0xee   :  { %140 = vadd.xlane.f32.xlu0 %v139_v23 }
  0xf1   :  { %160 = vadd.xlane.f32.xlu1 %v159_v25 }
  0xf2   :  { %157 = vadd.xlane.f32.xlu0 %v156_v27 }
  0xf5   :  { %166 = vadd.xlane.f32.xlu1 %v165_v29 }
  0xf6   :  { %163 = vadd.xlane.f32.xlu0 %v162_v30 }
 0x176   :  { %v144_v33 = vpop.xlane.xlu1 %143 }
 0x177   :  { %v138_v34 = vpop.xlane.xlu0 %137  ;;  %v150_v44 = vmul.f32 0.03125, %v144_v33  ;;  %v4686_v33 = vld [vmem:[%s6498_s5] sm:$0xff]  }
 0x178   :  { %v148_v37 = vmul.f32 0.03125, %v138_v34  ;;  %4386 = vmatprep.subr.bf16.mxu1 %v4686_v33  ;;  %v4687_v34 = vld [vmem:[%s6498_s5 + $0x8] sm:$0xff]  }
 0x179   :  { %v174_v54 = vmul.f32 %v150_v44, %v150_v44 }
 0x17a   :  { %v147_v35 = vpop.xlane.xlu1 %146  ;;  %v172_v45 = vmul.f32 %v148_v37, %v148_v37 }
 0x17b   :  { %v141_v36 = vpop.xlane.xlu0 %140  ;;  %v151_v41 = vmul.f32 0.03125, %v147_v35  ;;  %v4688_v35 = vld [vmem:[%s6498_s5 + $0x10] sm:$0xff]  }
 0x17c   :  { %v149_v38 = vmul.f32 0.03125, %v141_v36  ;;  %v4689_v36 = vld [vmem:[%s6498_s5 + $0x18] sm:$0xff]  }
 0x17d   :  { %v175_v50 = vmul.f32 %v151_v41, %v151_v41 }
 0x17e   :  { %v173_v39 = vmul.f32 %v149_v38, %v149_v38  ;;  %v161_v40 = vpop.xlane.xlu1 %160 }
 0x17f   :  { %v169_v42 = vmul.f32 0.03125, %v161_v40  ;;  %v158_v43 = vpop.xlane.xlu0 %157  ;;  %v4693_v40 = vld [vmem:[%s6498_s5 + $0x38] sm:$0xff]  }
 0x180   :  { %v168_v46 = vmul.f32 0.03125, %v158_v43  ;;  %v458_v43 = vld [vmem:[%s6495_s2] sm:$0xff] }
 0x181   :  { %v177_v47 = vsub.f32 %v169_v42, %v173_v39  ;;  %v4692_v39 = vld [vmem:[%s6498_s5 + $0x30] sm:$0xff]   ;;  %v4986_v42 = vmov 0  }
 0x182   :  { %v176_v48 = vsub.f32 %v168_v46, %v172_v45  ;;  %v167_v49 = vpop.xlane.xlu1 %166  ;;  %4679 = vset.pattern.permute.xlu1 %v4986_v42  ;;  %4678 = vset.pattern.permute.xlu0 %v4986_v42  ;;  %v571_v45 = vld [vmem:[%s6495_s2 + $0x48] sm:$0xff]  ;;  %v461_v46 = vld [vmem:[%s6495_s2 + $0x18] sm:$0xff] }
 0x183   :  { %v181_v51 = vmax.f32 %v177_v47, 0.0  ;;  %v171_v52 = vmul.f32 0.03125, %v167_v49  ;;  %v164_v53 = vpop.xlane.xlu0 %163  ;;  %518 = vperm.xlu0 %4678, %v458_v43   ;;  %v573_v47 = vld [vmem:[%s6495_s2 + $0x58] sm:$0xff]  ;;  %v932_v49 = vld [vmem:[%s6495_s2 + $0x68] sm:$0xff]  ;;  %v5187_v43 = vld [vmem:[%s6499_s6] sm:$0xff]  }
 0x184   :  { %v180_v55 = vmax.f32 %v176_v48, 0.0  ;;  %v170_v56 = vmul.f32 0.03125, %v164_v53  ;;  %v566_v48 = vld [vmem:[%s6495_s2 + $0x20] sm:$0xff]  ;;  %4408 = vmatprep.mubr.msk.bf16.mxu0 %vm634_vm2, %v5187_v43 }
 0x185   :  { %v185_v57 = vadd.f32 1e-05, %v181_v51  ;;  %v179_v58 = vsub.f32 %v171_v52, %v175_v50  ;;  %v567_v50 = vld [vmem:[%s6495_s2 + $0x28] sm:$0xff]  ;;  %v568_v51 = vld [vmem:[%s6495_s2 + $0x30] sm:$0xff]  ;;  %v569_v52 = vld [vmem:[%s6495_s2 + $0x38] sm:$0xff] }
 0x186   :  { %v184_v59 = vadd.f32 1e-05, %v180_v55  ;;  %v178_v60 = vsub.f32 %v170_v56, %v174_v54  ;;  %v570_v53 = vld [vmem:[%s6495_s2 + $0x40] sm:$0xff]  ;;  %v572_v54 = vld [vmem:[%s6495_s2 + $0x50] sm:$0xff] }
 0x187   :  { %4746 = vrsqrt.f32 %v185_v57  ;;  %v183_v61 = vmax.f32 %v179_v58, 0.0  ;;  %601 = vperm.xlu0 %4678, %v571_v45   ;;  %v931_v55 = vld [vmem:[%s6495_s2 + $0x60] sm:$0xff] }
 0x188   :  { %4748 = vrsqrt.f32 %v184_v59  ;;  %v182_v62 = vmax.f32 %v178_v60, 0.0  ;;  %v3961_v56 = vld [vmem:[%s6494_s1 + $0x6] ss:$0 sm:$0xff] }
 0x189   :  { %v187_v63 = vadd.f32 1e-05, %v183_v61 }
 0x18a   :  { %v186_v0 = vadd.f32 1e-05, %v182_v62 }
 0x18b   :  { %4750 = vrsqrt.f32 %v187_v63  ;;  %611 = vperm.xlu0 %4678, %v573_v47  }
 0x18c   :  { %4752 = vrsqrt.f32 %v186_v0 }
 0x18f   :  { %940 = vperm.xlu0 %4678, %v932_v49  }
 0x191   :  { %v4747_v2 = vpop.eup %4746 }
 0x192   :  { %v4749_v3 = vpop.eup %4748  ;;  %v197_v4 = vmul.f32 %v4747_v2, %v3959_v1 }
 0x193   :  { %v196_v6 = vmul.f32 %v4749_v3, %v3959_v1 }
 0x194   :  { %v205_v7 = vmul.f32 %v197_v4, %v149_v38  ;;  %v201_v11 = vmul.f32 %v197_v4, %v5077_v19  ;;  %v4691_v38 = vld [vmem:[%s6498_s5 + $0x28] sm:$0xff]  }
 0x195   :  { %v4751_v8 = vpop.eup %4750  ;;  %v204_v9 = vmul.f32 %v196_v6, %v148_v37  ;;  %v200_v17 = vmul.f32 %v196_v6, %v5071_v14  ;;  %v4690_v37 = vld [vmem:[%s6498_s5 + $0x20] sm:$0xff]  }
 0x196   :  { %v4753_v10 = vpop.eup %4752  ;;  %v213_v13 = vsub.f32 %v3960_v5, %v205_v7  ;;  %v199_v15 = vmul.f32 %v4751_v8, %v3959_v1 }
 0x197   :  { %v212_v18 = vsub.f32 %v3960_v5, %v204_v9  ;;  %v198_v20 = vmul.f32 %v4753_v10, %v3959_v1 }
 0x198   :  { %v217_v21 = vadd.f32 %v213_v13, %v201_v11  ;;  %v207_v22 = vmul.f32 %v199_v15, %v151_v41  ;;  %v203_v25 = vmul.f32 %v199_v15, %v5073_v16  ;;  %v459_v41 = vld [vmem:[%s6495_s2 + $0x8] sm:$0xff] }
 0x199   :  { %v216_v23 = vadd.f32 %v212_v18, %v200_v17  ;;  %v206_v24 = vmul.f32 %v198_v20, %v150_v44  ;;  %v202_v28 = vmul.f32 %v198_v20, %v5069_v12  ;;  %523 = vperm.xlu1 %4679, %v459_v41   ;;  %v460_v44 = vld [vmem:[%s6495_s2 + $0x10] sm:$0xff] }
 0x19a   :  { %v215_v26 = vsub.f32 %v3960_v5, %v207_v22 }
 0x19b   :  { %v220_v27 = vpack.c.bf16 %v217_v21, %v216_v23  ;;  %v214_v29 = vsub.f32 %v3960_v5, %v206_v24 }
 0x19c   :  { %v219_v30 = vadd.f32 %v215_v26, %v203_v25 }
 0x19d   :  { %4382 = vmatprep.mubr.msk.bf16.mxu1 %vm135_vm1, %v220_v27  ;;  %v218_v31 = vadd.f32 %v214_v29, %v202_v28  ;;  %540 = vperm.xlu1 %4679, %v460_v44   ;;  %v3966_v44 = vld [vmem:[%s6494_s1 + $0x7] ss:$0 sm:$0xff] }
 0x19f   :  { %v221_v32 = vpack.c.bf16 %v219_v30, %v218_v31 }
 0x1a1   :  { %4383 = vmatmul.mubr.msk.bf16.vlgmr.msra.gmra.mrb[0].mxu1 %vm135_vm1, %v221_v32  ;;  %545 = vperm.xlu1 %4679, %v461_v46  }
 0x1a2   :  { %4387 = vmatpush3.bf16.msra.mxu1 %v4686_v33 }
 0x1a3   :  { %4388 = vmatprep.subr.bf16.mxu1 %v4687_v34 }
 0x1a5   :  { %576 = vperm.xlu1 %4679, %v566_v48  }
 0x1a6   :  { %4389 = vmatpush3.bf16.msra.mxu1 %v4687_v34 }
 0x1a7   :  { %4390 = vmatprep.subr.bf16.mxu1 %v4688_v35 }
 0x1a9   :  { %581 = vperm.xlu1 %4679, %v567_v50  }
 0x1aa   :  { %4391 = vmatpush3.bf16.msra.mxu1 %v4688_v35 }
 0x1ab   :  { %4392 = vmatprep.subr.bf16.mxu1 %v4689_v36 }
 0x1ad   :  { %586 = vperm.xlu1 %4679, %v568_v51  }
 0x1ae   :  { %4393 = vmatpush3.bf16.msra.mxu1 %v4689_v36 }
 0x1af   :  { %4394 = vmatprep.subr.bf16.mxu1 %v4690_v37 }
 0x1b1   :  { %591 = vperm.xlu1 %4679, %v569_v52  }
 0x1b2   :  { %4395 = vmatpush3.bf16.msra.mxu1 %v4690_v37 }
 0x1b3   :  { %4396 = vmatprep.subr.bf16.mxu1 %v4691_v38 }
 0x1b5   :  { %596 = vperm.xlu1 %4679, %v570_v53  }
 0x1b6   :  { %4397 = vmatpush3.bf16.msra.mxu1 %v4691_v38 }
 0x1b7   :  { %4398 = vmatprep.subr.bf16.mxu1 %v4692_v39 }
 0x1b9   :  { %606 = vperm.xlu1 %4679, %v572_v54  }
 0x1ba   :  { %4399 = vmatpush3.bf16.msra.mxu1 %v4692_v39 }
 0x1bb   :  { %4400 = vmatprep.subr.bf16.mxu1 %v4693_v40 }
 0x1bd   :  { %935 = vperm.xlu1 %4679, %v931_v55  }
 0x1be   :  { %4401 = vmatpush3.bf16.msra.mxu1 %v4693_v40 }
 0x274   :  { %v4384_v57 = vpop.f32.mrb[0].mxu1 }
 0x275   :  { %v292_v58 = vadd.f32 %v4384_v57, %v3961_v56  ;;  %v283_v59 = vpop.f32.mrb[1].mxu1 }
 0x276   :  { %v284_v60 = vadd.f32 %v3961_v56, %v283_v59  ;;  %v4385_v61 = vpop.f32.mrb[2].mxu1 }
 0x277   :  { %v300_v62 = vmul.f32 %v292_v58, %v292_v58  ;;  %v295_v63 = vadd.f32 %v4385_v61, %v3961_v56  ;;  %v286_v0 = vpop.f32.mrb[3].mxu1 }
 0x278   :  { %v298_v1 = vmul.f32 %v284_v60, %v284_v60  ;;  %v287_v2 = vadd.f32 %v3961_v56, %v286_v0 }
 0x279   :  { %v304_v3 = vmul.f32 %v300_v62, %v292_v58  ;;  %v301_v4 = vmul.f32 %v295_v63, %v295_v63 }
 0x27a   :  { %v302_v5 = vmul.f32 %v298_v1, %v284_v60  ;;  %v299_v6 = vmul.f32 %v287_v2, %v287_v2 }
 0x27b   :  { %v308_v7 = vmul.f32 0.044715, %v304_v3  ;;  %v305_v8 = vmul.f32 %v301_v4, %v295_v63 }
 0x27c   :  { %v306_v9 = vmul.f32 0.044715, %v302_v5  ;;  %v303_v10 = vmul.f32 %v299_v6, %v287_v2 }
 0x27d   :  { %v312_v11 = vadd.f32 %v308_v7, %v292_v58  ;;  %v309_v13 = vmul.f32 0.044715, %v305_v8 }
 0x27e   :  { %v310_v15 = vadd.f32 %v306_v9, %v284_v60  ;;  %v307_v17 = vmul.f32 0.044715, %v303_v10 }
 0x27f   :  { %v316_v18 = vmul.f32 0.7978846, %v312_v11  ;;  %v313_v20 = vadd.f32 %v309_v13, %v295_v63 }
 0x280   :  { %v314_v21 = vmul.f32 0.7978846, %v310_v15  ;;  %v311_v22 = vadd.f32 %v307_v17, %v287_v2 }
 0x281   :  { %4754 = vtanh.f32 %v316_v18  ;;  %v317_v23 = vmul.f32 0.7978846, %v313_v20 }
 0x282   :  { %4756 = vtanh.f32 %v314_v21  ;;  %v315_v24 = vmul.f32 0.7978846, %v311_v22 }
 0x283   :  { %4758 = vtanh.f32 %v317_v23 }
 0x284   :  { %4760 = vtanh.f32 %v315_v24 }
 0x28b   :  { %v4755_v25 = vpop.eup %4754 }
 0x28c   :  { %v4757_v26 = vpop.eup %4756  ;;  %v324_v27 = vadd.f32 1.0, %v4755_v25 }
 0x28d   :  { %v4759_v28 = vpop.eup %4758  ;;  %v322_v29 = vadd.f32 1.0, %v4757_v26 }
 0x28e   :  { %v4761_v30 = vpop.eup %4760  ;;  %v328_v31 = vmul.f32 0.5, %v324_v27  ;;  %v325_v32 = vadd.f32 1.0, %v4759_v28 }
 0x28f   :  { %v323_v33 = vadd.f32 1.0, %v4761_v30  ;;  %v326_v34 = vmul.f32 0.5, %v322_v29 }
 0x290   :  { %v329_v35 = vmul.f32 0.5, %v325_v32  ;;  %v332_v37 = vmul.f32 %v328_v31, %v292_v58 }
 0x291   :  { %v327_v36 = vmul.f32 0.5, %v323_v33  ;;  %v330_v39 = vmul.f32 %v326_v34, %v284_v60 }
 0x292   :  { %v333_v38 = vmul.f32 %v329_v35, %v295_v63 }
 0x293   :  { %v331_v40 = vmul.f32 %v327_v36, %v287_v2 }
 0x294   :  { %v335_v41 = vpack.c.bf16 %v333_v38, %v332_v37 }
 0x295   :  { %v334_v42 = vpack.c.bf16 %v331_v40, %v330_v39 }
 0x297   :  { %4402 = vmatprep.mubr.bf16.mxu1 %v334_v42 }
 0x298   :  { %4403 = vmatmul.mubr.bf16.vlgmr.msra.gmra.mrb[4].mxu1 %v335_v41 }
 0x36b   :  { %v4404_v45 = vpop.f32.mrb[4].mxu1 }
 0x36c   :  { %v448_v46 = vadd.f32 %v4404_v45, %v3966_v44  ;;  %v439_v47 = vpop.f32.mrb[5].mxu1 }
 0x36d   :  { %v440_v48 = vadd.f32 %v3966_v44, %v439_v47  ;;  %v4405_v49 = vpop.f32.mrb[6].mxu1 }
 0x36e   :  { %v5195_v50 = vadd.f32 %v448_v46, %v5069_v12  ;;  %v451_v51 = vadd.f32 %v4405_v49, %v3966_v44  ;;  %v442_v52 = vpop.f32.mrb[7].mxu1  ;;  %v524_v46 = vpop.permute.xlu1 %523 }
 0x36f   :  { %v5198_v53 = vadd.f32 %v440_v48, %v5071_v14  ;;  %v443_v54 = vadd.f32 %v3966_v44, %v442_v52  ;;  %v519_v49 = vpop.permute.xlu0 %518 }
 0x370   :  { %v484_v55 = vmul.f32 %v5195_v50, %v5195_v50  ;;  %v5203_v56 = vadd.f32 %v451_v51, %v5073_v16  ;;  %v471_v12 = vsel %vm135_vm1, %v5195_v50, 0.0 }
 0x371   :  { %v482_v57 = vmul.f32 %v5198_v53, %v5198_v53  ;;  %v5208_v58 = vadd.f32 %v443_v54, %v5077_v19  ;;  %v462_v60 = vsel %vm135_vm1, %v5198_v53, 0.0 }
 0x372   :  { %v472_v14 = vsel %vm135_vm1, %v5203_v56, 0.0  ;;  %v485_v59 = vmul.f32 %v5203_v56, %v5203_v56  ;;  %v495_v62 = vsel %vm135_vm1, %v484_v55, 0.0  ;;  %v541_v47 = vpop.permute.xlu1 %540 }
 0x373   :  { %v473_v16 = vadd.f32 %v472_v14, %v471_v12  ;;  %v463_v61 = vsel %vm135_vm1, %v5208_v58, 0.0  ;;  %v483_v19 = vmul.f32 %v5208_v58, %v5208_v58  ;;  %v486_v1 = vsel %vm135_vm1, %v482_v57, 0.0 }
 0x374   :  { %v496_v63 = vsel %vm135_vm1, %v485_v59, 0.0  ;;  %v464_v0 = vadd.f32 %v463_v61, %v462_v60 }
 0x375   :  { %v474_v2 = vrot.slane %v473_v16, 4  ;;  %v497_v3 = vadd.f32 %v496_v63, %v495_v62  ;;  %v487_v4 = vsel %vm135_vm1, %v483_v19, 0.0 }
 0x376   :  { %v465_v5 = vrot.slane %v464_v0, 4  ;;  %v488_v6 = vadd.f32 %v487_v4, %v486_v1  ;;  %v546_v59 = vpop.permute.xlu1 %545 }
 0x377   :  { %v475_v7 = vadd.f32 %v474_v2, %v473_v16  ;;  %v498_v8 = vrot.slane %v497_v3, 4 }
 0x378   :  { %v489_v9 = vrot.slane %v488_v6, 4  ;;  %v466_v10 = vadd.f32 %v465_v5, %v464_v0 }
 0x379   :  { %v476_v11 = vrot.slane %v475_v7, 2  ;;  %v499_v13 = vadd.f32 %v498_v8, %v497_v3 }
 0x37a   :  { %v490_v15 = vadd.f32 %v489_v9, %v488_v6  ;;  %v467_v17 = vrot.slane %v466_v10, 2 }
 0x37b   :  { %v477_v18 = vadd.f32 %v476_v11, %v475_v7  ;;  %v500_v20 = vrot.slane %v499_v13, 2  ;;  %v4696_v11 = vld [vmem:[%s6499_s6 + $0x10] sm:$0xff]  }
 0x37c   :  { %v491_v21 = vrot.slane %v490_v15, 2  ;;  %v468_v22 = vadd.f32 %v467_v17, %v466_v10  ;;  %v4695_v10 = vld [vmem:[%s6499_s6 + $0x8] sm:$0xff]   ;;  %v5253_v17 = vpop.permute.xlu1 %576 }
 0x37d   :  { %v478_v23 = vrot.slane %v477_v18, 1  ;;  %v501_v24 = vadd.f32 %v500_v20, %v499_v13  ;;  %v4697_v13 = vld [vmem:[%s6499_s6 + $0x18] sm:$0xff]  }
 0x37e   :  { %v492_v25 = vadd.f32 %v491_v21, %v490_v15  ;;  %v469_v26 = vrot.slane %v468_v22, 1  ;;  %v4987_v15 = vmov 0.0  }
 0x37f   :  { %v479_v27 = vadd.f32 %v478_v23, %v477_v18  ;;  %v502_v28 = vrot.slane %v501_v24, 1  ;;  %4438 = vmatprep.subr.bf16.mxu1 %v4987_v15  ;;  %4446 = vmatprep.mubr.msk.bf16.mxu1 %vm4988_vm3, %v4987_v15 }
 0x380   :  { %v470_v29 = vadd.f32 %v469_v26, %v468_v22  ;;  %v493_v30 = vrot.slane %v492_v25, 1 }
 0x381   :  { %v481_v31 = vmul.f32 0.0625, %v479_v27  ;;  %v503_v32 = vadd.f32 %v502_v28, %v501_v24 }
 0x382   :  { %v480_v33 = vmul.f32 0.0625, %v470_v29  ;;  %v494_v34 = vadd.f32 %v493_v30, %v492_v25  ;;  %v5271_v30 = vpop.permute.xlu0 %601 }
 0x383   :  { %v505_v35 = vmul.f32 0.0625, %v503_v32  ;;  %v507_v36 = vmul.f32 %v481_v31, %v481_v31 }
 0x384   :  { %v504_v37 = vmul.f32 0.0625, %v494_v34  ;;  %v506_v38 = vmul.f32 %v480_v33, %v480_v33 }
 0x385   :  { %v509_v39 = vsub.f32 %v505_v35, %v507_v36 }
 0x386   :  { %v508_v40 = vsub.f32 %v504_v37, %v506_v38 }
 0x387   :  { %v511_v41 = vmax.f32 %v509_v39, 0.0 }
 0x388   :  { %v510_v42 = vmax.f32 %v508_v40, 0.0 }
 0x389   :  { %v513_v44 = vadd.f32 1e-05, %v511_v41 }
 0x38a   :  { %v512_v45 = vadd.f32 1e-05, %v510_v42 }
 0x38b   :  { %4762 = vrsqrt.f32 %v513_v44 }
 0x38c   :  { %4764 = vrsqrt.f32 %v512_v45 }
 0x395   :  { %v4763_v48 = vpop.eup %4762 }
 0x396   :  { %v4765_v51 = vpop.eup %4764  ;;  %v529_v52 = vmul.f32 %v4763_v48, %v524_v46  ;;  %v528_v54 = vmul.f32 %v4763_v48, %v519_v49  ;;  %v5292_v48 = vpop.permute.xlu0 %611 }
 0x397   :  { %v527_v55 = vmul.f32 %v4765_v51, %v524_v46  ;;  %v526_v57 = vmul.f32 %v4765_v51, %v519_v49 }
 0x398   :  { %v537_v12 = vmul.f32 %v529_v52, %v481_v31  ;;  %v536_v14 = vmul.f32 %v528_v54, %v481_v31  ;;  %v533_v61 = vmul.f32 %v529_v52, %v5203_v56  ;;  %v532_v62 = vmul.f32 %v528_v54, %v5195_v50 }
 0x399   :  { %v535_v60 = vmul.f32 %v527_v55, %v480_v33  ;;  %v534_v16 = vmul.f32 %v526_v57, %v480_v33  ;;  %v531_v0 = vmul.f32 %v527_v55, %v5208_v58  ;;  %v530_v2 = vmul.f32 %v526_v57, %v5198_v53 }
 0x39a   :  { %v551_v19 = vsub.f32 %v546_v59, %v537_v12  ;;  %v550_v63 = vsub.f32 %v541_v47, %v536_v14 }
 0x39b   :  { %v549_v1 = vsub.f32 %v546_v59, %v535_v60  ;;  %v548_v3 = vsub.f32 %v541_v47, %v534_v16 }
 0x39c   :  { %v555_v5 = vadd.f32 %v551_v19, %v533_v61  ;;  %v554_v7 = vadd.f32 %v550_v63, %v532_v62 }
 0x39d   :  { %v553_v4 = vadd.f32 %v549_v1, %v531_v0  ;;  %v552_v6 = vadd.f32 %v548_v3, %v530_v2 }
 0x39e   :  { %v565_v9 = vpack.c.bf16 %v555_v5, %v554_v7 }
 0x39f   :  { %v564_v8 = vpack.c.bf16 %v553_v4, %v552_v6 }
 0x3a1   :  { %4406 = vmatprep.subr.bf16.mxu0 %v564_v8 }
 0x3a2   :  { %4407 = vmatpush3.bf16.msra.mxu0 %v564_v8 }
 0x3a3   :  { %4416 = vmatprep.subr.bf16.mxu0 %v565_v9 }
 0x3a5   :  { %4409 = vmatmul.mubr.msk.bf16.vlgmr.msra.gmra.mrb[4].mxu0 %vm634_vm2, %v4695_v10 }
 0x3a6   :  { %4417 = vmatpush3.bf16.msra.mxu0 %v565_v9  ;;  %4412 = vmatprep.mubr.msk.bf16.mxu0 %vm634_vm2, %v4696_v11 }
 0x3a7   :  { %4426 = vmatprep.subr.bf16.mxu0 %v4987_v15 }
 0x3ad   :  { %4413 = vmatmul.mubr.msk.bf16.gmra.mrb[8].mxu0 %vm634_vm2, %v4697_v13 }
 0x3ae   :  { %4418 = vmatprep.mubr.msk.bf16.mxu0 %vm634_vm2, %v5187_v43  ;;  %v5255_v43 = vpop.permute.xlu1 %581 }
 0x3b2   :  { %v587_v18 = vpop.permute.xlu1 %586 }
 0x3b5   :  { %4419 = vmatmul.mubr.msk.bf16.vlgmr.msra.gmra.mrb[12].mxu0 %vm634_vm2, %v4695_v10 }
 0x3b6   :  { %4422 = vmatprep.mubr.msk.bf16.mxu0 %vm634_vm2, %v4696_v11  ;;  %v5257_v20 = vpop.permute.xlu1 %591 }
 0x3ba   :  { %v5261_v24 = vpop.permute.xlu1 %596 }
 0x3bd   :  { %4423 = vmatmul.mubr.msk.bf16.gmra.mrb[16].mxu0 %vm634_vm2, %v4697_v13 }
 0x3be   :  { %4434 = vmatprep.mubr.msk.bf16.mxu0 %vm4988_vm3, %v4987_v15  ;;  %v5285_v39 = vpop.permute.xlu1 %606 }
 0x478   :  { %v4410_v21 = vpop.f32.mrb[4].mxu0 }
 0x479   :  { %v5259_v22 = vadd.f32 %v4410_v21, %v587_v18  ;;  %v681_v23 = vpop.f32.mrb[5].mxu0 }
 0x47a   :  { %v5264_v25 = vadd.f32 %v681_v23, %v5253_v17  ;;  %v4411_v26 = vpop.f32.mrb[6].mxu0 }
 0x47b   :  { %v779_v27 = vmul.f32 %v5259_v22, %v5259_v22  ;;  %v5269_v28 = vadd.f32 %v4411_v26, %v5257_v20  ;;  %v684_v29 = vpop.f32.mrb[7].mxu0 }
 0x47c   :  { %v777_v31 = vmul.f32 %v5264_v25, %v5264_v25  ;;  %v5276_v32 = vadd.f32 %v684_v29, %v5255_v43 }
 0x47d   :  { %v795_v33 = vmul.f32 %v779_v27, %v5259_v22  ;;  %v780_v34 = vmul.f32 %v5269_v28, %v5269_v28 }
 0x47e   :  { %v793_v35 = vmul.f32 %v777_v31, %v5264_v25  ;;  %v778_v36 = vmul.f32 %v5276_v32, %v5276_v32 }
 0x47f   :  { %v811_v37 = vmul.f32 0.044715, %v795_v33  ;;  %v796_v38 = vmul.f32 %v780_v34, %v5269_v28 }
 0x480   :  { %v809_v40 = vmul.f32 0.044715, %v793_v35  ;;  %v794_v41 = vmul.f32 %v778_v36, %v5276_v32  ;;  %v4414_v42 = vpop.f32.mrb[8].mxu0 }
 0x481   :  { %v827_v44 = vadd.f32 %v811_v37, %v5259_v22  ;;  %v812_v45 = vmul.f32 0.044715, %v796_v38  ;;  %v5290_v46 = vadd.f32 %v4414_v42, %v5285_v39  ;;  %v697_v47 = vpop.f32.mrb[9].mxu0 }
 0x482   :  { %v825_v49 = vadd.f32 %v809_v40, %v5264_v25  ;;  %v810_v51 = vmul.f32 0.044715, %v794_v41  ;;  %v5296_v52 = vadd.f32 %v697_v47, %v5261_v24  ;;  %v4415_v54 = vpop.f32.mrb[10].mxu0 }
 0x483   :  { %v843_v55 = vmul.f32 0.7978846, %v827_v44  ;;  %v828_v57 = vadd.f32 %v812_v45, %v5269_v28  ;;  %v783_v12 = vmul.f32 %v5290_v46, %v5290_v46  ;;  %v5302_v14 = vadd.f32 %v4415_v54, %v5292_v48  ;;  %v700_v59 = vpop.f32.mrb[11].mxu0 }
 0x484   :  { %v841_v60 = vmul.f32 0.7978846, %v825_v49  ;;  %v826_v16 = vadd.f32 %v810_v51, %v5276_v32  ;;  %v781_v61 = vmul.f32 %v5296_v52, %v5296_v52  ;;  %v5308_v19 = vadd.f32 %v700_v59, %v5271_v30 }
 0x485   :  { %4766 = vtanh.f32 %v843_v55  ;;  %v844_v62 = vmul.f32 0.7978846, %v828_v57  ;;  %v799_v63 = vmul.f32 %v783_v12, %v5290_v46  ;;  %v784_v0 = vmul.f32 %v5302_v14, %v5302_v14 }
 0x486   :  { %4768 = vtanh.f32 %v841_v60  ;;  %v842_v1 = vmul.f32 0.7978846, %v826_v16  ;;  %v797_v2 = vmul.f32 %v781_v61, %v5296_v52  ;;  %v782_v3 = vmul.f32 %v5308_v19, %v5308_v19 }
 0x487   :  { %4770 = vtanh.f32 %v844_v62  ;;  %v815_v4 = vmul.f32 0.044715, %v799_v63  ;;  %v800_v5 = vmul.f32 %v784_v0, %v5302_v14 }
 0x488   :  { %4772 = vtanh.f32 %v842_v1  ;;  %v813_v6 = vmul.f32 0.044715, %v797_v2  ;;  %v798_v7 = vmul.f32 %v782_v3, %v5308_v19  ;;  %v4420_v8 = vpop.f32.mrb[12].mxu0 }
 0x489   :  { %v831_v9 = vadd.f32 %v815_v4, %v5290_v46  ;;  %v816_v10 = vmul.f32 0.044715, %v800_v5  ;;  %v5319_v11 = vadd.f32 %v4420_v8, %v587_v18  ;;  %v746_v13 = vpop.f32.mrb[13].mxu0 }
 0x48a   :  { %v829_v21 = vadd.f32 %v813_v6, %v5296_v52  ;;  %v814_v23 = vmul.f32 0.044715, %v798_v7  ;;  %v5323_v26 = vadd.f32 %v746_v13, %v5253_v17  ;;  %v4421_v27 = vpop.f32.mrb[14].mxu0 }
 0x48b   :  { %v847_v29 = vmul.f32 0.7978846, %v831_v9  ;;  %v832_v31 = vadd.f32 %v816_v10, %v5302_v14  ;;  %v787_v33 = vmul.f32 %v5319_v11, %v5319_v11  ;;  %v5329_v34 = vadd.f32 %v4421_v27, %v5257_v20  ;;  %v749_v35 = vpop.f32.mrb[15].mxu0 }
 0x48c   :  { %v845_v18 = vmul.f32 0.7978846, %v829_v21  ;;  %v830_v36 = vadd.f32 %v814_v23, %v5308_v19  ;;  %v785_v37 = vmul.f32 %v5323_v26, %v5323_v26  ;;  %v5335_v17 = vadd.f32 %v749_v35, %v5255_v43 }
 0x48d   :  { %4774 = vtanh.f32 %v847_v29  ;;  %v848_v38 = vmul.f32 0.7978846, %v832_v31  ;;  %v803_v40 = vmul.f32 %v787_v33, %v5319_v11  ;;  %v788_v41 = vmul.f32 %v5329_v34, %v5329_v34 }
 0x48e   :  { %4776 = vtanh.f32 %v845_v18  ;;  %v846_v20 = vmul.f32 0.7978846, %v830_v36  ;;  %v801_v42 = vmul.f32 %v785_v37, %v5323_v26  ;;  %v786_v44 = vmul.f32 %v5335_v17, %v5335_v17 }
 0x48f   :  { %v4767_v45 = vpop.eup %4766  ;;  %4778 = vtanh.f32 %v848_v38  ;;  %v819_v47 = vmul.f32 0.044715, %v803_v40  ;;  %v804_v43 = vmul.f32 %v788_v41, %v5329_v34 }
 0x490   :  { %v4769_v49 = vpop.eup %4768  ;;  %v875_v51 = vadd.f32 1.0, %v4767_v45  ;;  %4780 = vtanh.f32 %v846_v20  ;;  %v817_v54 = vmul.f32 0.044715, %v801_v42  ;;  %v802_v55 = vmul.f32 %v786_v44, %v5335_v17  ;;  %v4424_v57 = vpop.f32.mrb[16].mxu0 }
 0x491   :  { %v4771_v12 = vpop.eup %4770  ;;  %v873_v59 = vadd.f32 1.0, %v4769_v49  ;;  %v835_v60 = vadd.f32 %v819_v47, %v5319_v11  ;;  %v820_v16 = vmul.f32 0.044715, %v804_v43  ;;  %v762_v61 = vpop.f32.mrb[17].mxu0  ;;  %v5348_v2 = vadd.f32 %v4424_v57, %v5285_v39 }
 0x492   :  { %v4773_v62 = vpop.eup %4772  ;;  %v876_v63 = vadd.f32 1.0, %v4771_v12  ;;  %v833_v0 = vadd.f32 %v817_v54, %v5323_v26  ;;  %v818_v1 = vmul.f32 0.044715, %v802_v55  ;;  %v4425_v3 = vpop.f32.mrb[18].mxu0  ;;  %v891_v9 = vmul.f32 0.5, %v875_v51 }
 0x493   :  { %v889_v4 = vmul.f32 0.5, %v873_v59  ;;  %v874_v5 = vadd.f32 1.0, %v4773_v62  ;;  %v851_v6 = vmul.f32 0.7978846, %v835_v60  ;;  %v836_v7 = vadd.f32 %v820_v16, %v5329_v34  ;;  %v765_v8 = vpop.f32.mrb[19].mxu0 }
 0x494   :  { %v892_v10 = vmul.f32 0.5, %v876_v63  ;;  %v849_v13 = vmul.f32 0.7978846, %v833_v0  ;;  %v834_v21 = vadd.f32 %v818_v1, %v5335_v17  ;;  %v791_v33 = vmul.f32 %v5348_v2, %v5348_v2 }
 0x495   :  { %v905_v23 = vmul.f32 %v889_v4, %v5264_v25  ;;  %v890_v27 = vmul.f32 0.5, %v874_v5  ;;  %4782 = vtanh.f32 %v851_v6  ;;  %v852_v29 = vmul.f32 0.7978846, %v836_v7 }
 0x496   :  { %v908_v39 = vmul.f32 %v892_v10, %v5269_v28  ;;  %4784 = vtanh.f32 %v849_v13  ;;  %v850_v31 = vmul.f32 0.7978846, %v834_v21  ;;  %v5358_v36 = vadd.f32 %v762_v61, %v5261_v24 }
 0x497   :  { %v4775_v35 = vpop.eup %4774  ;;  %v906_v18 = vmul.f32 %v890_v27, %v5276_v32  ;;  %4786 = vtanh.f32 %v852_v29  ;;  %v5361_v37 = vadd.f32 %v4425_v3, %v5292_v48  ;;  %v807_v28 = vmul.f32 %v791_v33, %v5348_v2 }
 0x498   :  { %v4777_v25 = vpop.eup %4776  ;;  %v879_v38 = vadd.f32 1.0, %v4775_v35  ;;  %4788 = vtanh.f32 %v850_v31  ;;  %v5365_v40 = vadd.f32 %v765_v8, %v5271_v30  ;;  %v789_v32 = vmul.f32 %v5358_v36, %v5358_v36 }
 0x499   :  { %v4779_v41 = vpop.eup %4778  ;;  %v877_v20 = vadd.f32 1.0, %v4777_v25  ;;  %v792_v24 = vmul.f32 %v5361_v37, %v5361_v37  ;;  %v923_v42 = vpack.c.bf16 %v906_v18, %v905_v23  ;;  %v823_v47 = vmul.f32 0.044715, %v807_v28 }
 0x49a   :  { %v4781_v44 = vpop.eup %4780  ;;  %v895_v48 = vmul.f32 0.5, %v879_v38  ;;  %v880_v45 = vadd.f32 1.0, %v4779_v41  ;;  %v790_v43 = vmul.f32 %v5365_v40, %v5365_v40  ;;  %v805_v30 = vmul.f32 %v789_v32, %v5358_v36 }
 0x49b   :  { %v893_v49 = vmul.f32 0.5, %v877_v20  ;;  %v878_v51 = vadd.f32 1.0, %v4781_v44  ;;  %v808_v54 = vmul.f32 %v792_v24, %v5361_v37  ;;  %4427 = vmatpush3.bf16.msra.mxu0 %v923_v42  ;;  %v907_v55 = vmul.f32 %v891_v9, %v5259_v22  ;;  %v4698_v20 = vld [vmem:[%s6500_s7] sm:$0xff]  }
 0x49c   :  { %v896_v57 = vmul.f32 0.5, %v880_v45  ;;  %v839_v12 = vadd.f32 %v823_v47, %v5348_v2  ;;  %v806_v59 = vmul.f32 %v790_v43, %v5365_v40  ;;  %4428 = vmatprep.subr.bf16.mxu0 %v4987_v15  ;;  %v911_v60 = vmul.f32 %v895_v48, %v5290_v46 }
 0x49d   :  { %v894_v16 = vmul.f32 0.5, %v878_v51  ;;  %v821_v61 = vmul.f32 0.044715, %v805_v30  ;;  %v824_v62 = vmul.f32 0.044715, %v808_v54  ;;  %v924_v3 = vpack.c.bf16 %v908_v39, %v907_v55 }
 0x49e   :  { %v912_v63 = vmul.f32 %v896_v57, %v5302_v14  ;;  %v855_v0 = vmul.f32 0.7978846, %v839_v12  ;;  %v822_v1 = vmul.f32 0.044715, %v806_v59  ;;  %v909_v22 = vmul.f32 %v893_v49, %v5296_v52 }
 0x49f   :  { %v4783_v4 = vpop.eup %4782  ;;  %v910_v5 = vmul.f32 %v894_v16, %v5308_v19  ;;  %v837_v6 = vadd.f32 %v821_v61, %v5358_v36  ;;  %v840_v7 = vadd.f32 %v824_v62, %v5361_v37  ;;  %4429 = vmatpush3.bf16.msra.mxu0 %v924_v3 }
 0x4a0   :  { %v4785_v8 = vpop.eup %4784  ;;  %v883_v9 = vadd.f32 1.0, %v4783_v4  ;;  %4790 = vtanh.f32 %v855_v0  ;;  %v838_v46 = vadd.f32 %v822_v1, %v5365_v40  ;;  %v926_v10 = vpack.c.bf16 %v912_v63, %v911_v60  ;;  %4430 = vmatprep.subr.bf16.mxu0 %v4987_v15  ;;  %v936_v60 = vpop.permute.xlu1 %935 }
 0x4a1   :  { %v4787_v14 = vpop.eup %4786  ;;  %v881_v13 = vadd.f32 1.0, %v4785_v8  ;;  %v853_v21 = vmul.f32 0.7978846, %v837_v6  ;;  %v856_v23 = vmul.f32 0.7978846, %v840_v7  ;;  %v925_v52 = vpack.c.bf16 %v910_v5, %v909_v22  ;;  %v941_v63 = vpop.permute.xlu0 %940 }
 0x4a2   :  { %v4789_v27 = vpop.eup %4788  ;;  %v899_v19 = vmul.f32 0.5, %v883_v9  ;;  %v884_v29 = vadd.f32 1.0, %v4787_v14  ;;  %v854_v39 = vmul.f32 0.7978846, %v838_v46 }
 0x4a3   :  { %v897_v31 = vmul.f32 0.5, %v881_v13  ;;  %v882_v33 = vadd.f32 1.0, %v4789_v27  ;;  %4792 = vtanh.f32 %v853_v21  ;;  %4431 = vmatpush3.bf16.msra.mxu0 %v925_v52  ;;  %v4027_v27 = vld [vmem:[%s6495_s2 + $0x78] sm:$0xff] }
 0x4a4   :  { %v900_v35 = vmul.f32 0.5, %v884_v29  ;;  %4794 = vtanh.f32 %v856_v23  ;;  %4432 = vmatprep.subr.bf16.mxu0 %v4987_v15  ;;  %v915_v25 = vmul.f32 %v899_v19, %v5319_v11  ;;  %v4026_v19 = vld [vmem:[%s6495_s2 + $0x70] sm:$0xff]  ;;  %v4028_v29 = vld [vmem:[%s6495_s2 + $0x80] sm:$0xff] }
 0x4a5   :  { %v898_v18 = vmul.f32 0.5, %v882_v33  ;;  %4796 = vtanh.f32 %v854_v39  ;;  %v913_v28 = vmul.f32 %v897_v31, %v5323_v26  ;;  %v4029_v39 = vld [vmem:[%s6495_s2 + $0x88] sm:$0xff]  ;;  %v4038_v31 = vld [vmem:[%s6495_s2 + $0x90] sm:$0xff]  ;;  %v4039_v33 = vld [vmem:[%s6495_s2 + $0x98] sm:$0xff] }
 0x4a6   :  { %v916_v38 = vmul.f32 %v900_v35, %v5329_v34  ;;  %v4040_v35 = vld [vmem:[%s6495_s2 + $0xa0] sm:$0xff] }
 0x4a7   :  { %v914_v41 = vmul.f32 %v898_v18, %v5335_v17  ;;  %4433 = vmatpush3.bf16.msra.mxu0 %v926_v10  ;;  %v4041_v18 = vld [vmem:[%s6495_s2 + $0xa8] sm:$0xff] }
 0x4a8   :  { %v928_v32 = vpack.c.bf16 %v916_v38, %v915_v25  ;;  %v4042_v25 = vld [vmem:[%s6495_s2 + $0xb0] sm:$0xff]  ;;  %v4043_v38 = vld [vmem:[%s6495_s2 + $0xb8] sm:$0xff] }
 0x4a9   :  { %v927_v24 = vpack.c.bf16 %v914_v41, %v913_v28  ;;  %v4044_v28 = vld [vmem:[%s6495_s2 + $0xc0] sm:$0xff]  ;;  %v4699_v41 = vld [vmem:[%s6497_s4 + $0x10] sm:$0xff]  }
 0x4aa   :  { %v4791_v42 = vpop.eup %4790  ;;  %4435 = vmatmul.mubr.msk.bf16.vlgmr.msra.gmra.mrb[20].mxu0 %vm77_vm0, %v4698_v20  ;;  %4450 = vmatprep.subr.bf16.mxu0 %v4699_v41 }
 0x4ab   :  { %v887_v44 = vadd.f32 1.0, %v4791_v42  ;;  %4439 = vmatpush3.bf16.msra.mxu1 %v927_v24  ;;  %4451 = vmatpush3.bf16.msra.mxu0 %v4699_v41  ;;  %v4060_v24 = vld [vmem:[%s6495_s2 + $0xd0] sm:$0xff]  ;;  %v4061_v42 = vld [vmem:[%s6495_s2 + $0xd8] sm:$0xff] }
 0x4ac   :  { %4440 = vmatprep.subr.bf16.mxu1 %v4987_v15 }
 0x4ad   :  { %v4793_v11 = vpop.eup %4792  ;;  %v903_v45 = vmul.f32 0.5, %v887_v44 }
 0x4ae   :  { %v4795_v34 = vpop.eup %4794  ;;  %v885_v48 = vadd.f32 1.0, %v4793_v11 }
 0x4af   :  { %v4797_v26 = vpop.eup %4796  ;;  %v888_v17 = vadd.f32 1.0, %v4795_v34  ;;  %4441 = vmatpush3.bf16.msra.mxu1 %v928_v32  ;;  %v919_v30 = vmul.f32 %v903_v45, %v5348_v2  ;;  %v4700_v32 = vld [vmem:[%s6497_s4 + $0x18] sm:$0xff]  }
 0x4b0   :  { %v901_v47 = vmul.f32 0.5, %v885_v48  ;;  %v886_v43 = vadd.f32 1.0, %v4797_v26  ;;  %4442 = vmatprep.subr.bf16.mxu1 %v4987_v15  ;;  %4452 = vmatprep.subr.bf16.mxu0 %v4700_v32 }
 0x4b1   :  { %v904_v49 = vmul.f32 0.5, %v888_v17  ;;  %4453 = vmatpush3.bf16.msra.mxu0 %v4700_v32 }
 0x4b2   :  { %v902_v51 = vmul.f32 0.5, %v886_v43  ;;  %v917_v55 = vmul.f32 %v901_v47, %v5358_v36 }
 0x4b3   :  { %v920_v54 = vmul.f32 %v904_v49, %v5361_v37 }
 0x4b4   :  { %v918_v57 = vmul.f32 %v902_v51, %v5365_v40 }
 0x4b5   :  { %v930_v12 = vpack.c.bf16 %v920_v54, %v919_v30 }
 0x4b6   :  { %v929_v59 = vpack.c.bf16 %v918_v57, %v917_v55 }
 0x4b8   :  { %4443 = vmatpush3.bf16.msra.mxu1 %v929_v59 }
 0x4b9   :  { %4444 = vmatprep.subr.bf16.mxu1 %v4987_v15 }
 0x4bc   :  { %4445 = vmatpush3.bf16.msra.mxu1 %v930_v12 }
 0x4bf   :  { %4447 = vmatmul.mubr.msk.bf16.vlgmr.msra.gmra.mrb[8].mxu1 %vm77_vm0, %v4698_v20  ;;  %v4045_v20 = vld [vmem:[%s6495_s2 + $0xc8] sm:$0xff] }
 0x57d   :  { %v985_v16 = vpop.f32.mrb[20].mxu0 }
 0x57e   :  { %v986_v61 = vadd.f32 %v985_v16, %v936_v60  ;;  %v4436_v62 = vpop.f32.mrb[21].mxu0  ;;  %v3990_v16 = vld [vmem:[%s6494_s1 + $0xc] ss:$0 sm:$0xff] }
 0x57f   :  { %v988_v2 = vpop.f32.mrb[22].mxu0 }
 0x580   :  { %v5405_v37 = vadd.f32 %v986_v61, %v5198_v53  ;;  %v989_v36 = vadd.f32 %v988_v2, %v941_v63  ;;  %v4437_v0 = vpop.f32.mrb[23].mxu0 }
 0x582   :  { %v5408_v40 = vadd.f32 %v989_v36, %v5208_v58  ;;  %v1039_v1 = vsel %vm135_vm1, %v5405_v37, 0.0  ;;  %v1055_v22 = vmul.f32 %v5405_v37, %v5405_v37 }
 0x583   :  { %1040 = vadd.xlane.f32.xlu1 %v1039_v1 }
 0x584   :  { %v1042_v3 = vsel %vm135_vm1, %v5408_v40, 0.0  ;;  %v1056_v4 = vmul.f32 %v5408_v40, %v5408_v40  ;;  %v1059_v58 = vsel %vm135_vm1, %v1055_v22, 0.0 }
 0x585   :  { %1043 = vadd.xlane.f32.xlu0 %v1042_v3 }
 0x586   :  { %v1062_v53 = vsel %vm135_vm1, %v1056_v4, 0.0  ;;  %v3991_v4 = vld [vmem:[%s6494_s1 + $0xd] ss:$0 sm:$0xff] }
 0x587   :  { %1063 = vadd.xlane.f32.xlu1 %v1062_v53 }
 0x589   :  { %1060 = vadd.xlane.f32.xlu0 %v1059_v58 }
 0x592   :  { %v1026_v5 = vpop.f32.mrb[8].mxu1 }
 0x593   :  { %v1027_v6 = vadd.f32 %v1026_v5, %v936_v60  ;;  %v4448_v7 = vpop.f32.mrb[9].mxu1 }
 0x594   :  { %v1029_v8 = vpop.f32.mrb[10].mxu1 }
 0x595   :  { %v5421_v9 = vadd.f32 %v1027_v6, %v5195_v50  ;;  %v1030_v46 = vadd.f32 %v1029_v8, %v941_v63  ;;  %v4449_v10 = vpop.f32.mrb[11].mxu1 }
 0x597   :  { %v5424_v14 = vadd.f32 %v1030_v46, %v5203_v56  ;;  %v1045_v13 = vsel %vm135_vm1, %v5421_v9, 0.0  ;;  %v1057_v21 = vmul.f32 %v5421_v9, %v5421_v9 }
 0x598   :  { %1046 = vadd.xlane.f32.xlu0 %v1045_v13 }
 0x599   :  { %v1048_v23 = vsel %vm135_vm1, %v5424_v14, 0.0  ;;  %v1058_v52 = vmul.f32 %v5424_v14, %v5424_v14  ;;  %v1065_v50 = vsel %vm135_vm1, %v1057_v21, 0.0 }
 0x59a   :  { %1049 = vadd.xlane.f32.xlu1 %v1048_v23 }
 0x59b   :  { %v1068_v56 = vsel %vm135_vm1, %v1058_v52, 0.0 }
 0x59c   :  { %1066 = vadd.xlane.f32.xlu0 %v1065_v50 }
 0x59e   :  { %1069 = vadd.xlane.f32.xlu1 %v1068_v56 }
 0x5af   :  { %1429 = vperm.xlu1 %4679, %v4027_v27  }
 0x5b2   :  { %1424 = vperm.xlu0 %4678, %v4026_v19  }
 0x5b3   :  { %1446 = vperm.xlu1 %4679, %v4028_v29  }
 0x5b6   :  { %1451 = vperm.xlu0 %4678, %v4029_v39  }
 0x5b7   :  { %1483 = vperm.xlu1 %4679, %v4038_v31  }
 0x5ba   :  { %1488 = vperm.xlu0 %4678, %v4039_v33  }
 0x5bb   :  { %1493 = vperm.xlu1 %4679, %v4040_v35  }
 0x5be   :  { %1498 = vperm.xlu0 %4678, %v4041_v18  }
 0x5bf   :  { %1503 = vperm.xlu1 %4679, %v4042_v25  }
 0x5c2   :  { %1508 = vperm.xlu0 %4678, %v4043_v38  }
 0x5c3   :  { %1513 = vperm.xlu1 %4679, %v4044_v28  }
 0x5c6   :  { %1518 = vperm.xlu0 %4678, %v4045_v20  }
 0x5c7   :  { %1842 = vperm.xlu1 %4679, %v4060_v24  }
 0x5ca   :  { %1847 = vperm.xlu0 %4678, %v4061_v42  }
 0x610   :  { %v1041_v44 = vpop.xlane.xlu1 %1040 }
 0x611   :  { %v1051_v34 = vmul.f32 0.03125, %v1041_v44 }
 0x612   :  { %v1044_v11 = vpop.xlane.xlu0 %1043 }
 0x613   :  { %v1052_v48 = vmul.f32 0.03125, %v1044_v11  ;;  %v1075_v43 = vmul.f32 %v1051_v34, %v1051_v34  ;;  %v4701_v11 = vld [vmem:[%s6498_s5 + $0x40] sm:$0xff]  }
 0x614   :  { %v1064_v26 = vpop.xlane.xlu1 %1063  ;;  %4458 = vmatprep.subr.bf16.mxu1 %v4701_v11 }
 0x615   :  { %v1076_v45 = vmul.f32 %v1052_v48, %v1052_v48  ;;  %v1072_v17 = vmul.f32 0.03125, %v1064_v26  ;;  %4459 = vmatpush3.bf16.msra.mxu1 %v4701_v11  ;;  %v4704_v26 = vld [vmem:[%s6498_s5 + $0x58] sm:$0xff]  }
 0x616   :  { %v1061_v47 = vpop.xlane.xlu0 %1060 }
 0x617   :  { %v1080_v49 = vsub.f32 %v1072_v17, %v1076_v45  ;;  %v1071_v51 = vmul.f32 0.03125, %v1061_v47  ;;  %v4705_v45 = vld [vmem:[%s6498_s5 + $0x60] sm:$0xff]   ;;  %v4706_v17 = vld [vmem:[%s6498_s5 + $0x68] sm:$0xff]   ;;  %v4707_v47 = vld [vmem:[%s6498_s5 + $0x70] sm:$0xff]  }
 0x619   :  { %v1084_v30 = vmax.f32 %v1080_v49, 0.0  ;;  %v1079_v54 = vsub.f32 %v1071_v51, %v1075_v43  ;;  %v4708_v43 = vld [vmem:[%s6498_s5 + $0x78] sm:$0xff]   ;;  %v3996_v49 = vld [vmem:[%s6494_s1 + $0xe] ss:$0 sm:$0xff] }
 0x61b   :  { %v1088_v55 = vadd.f32 1e-05, %v1084_v30  ;;  %v1083_v57 = vmax.f32 %v1079_v54, 0.0 }
 0x61d   :  { %4798 = vrsqrt.f32 %v1088_v55  ;;  %v1087_v12 = vadd.f32 1e-05, %v1083_v57 }
 0x61f   :  { %4800 = vrsqrt.f32 %v1087_v12 }
 0x625   :  { %v1047_v59 = vpop.xlane.xlu0 %1046 }
 0x626   :  { %v1053_v60 = vmul.f32 0.03125, %v1047_v59 }
 0x627   :  { %v1050_v61 = vpop.xlane.xlu1 %1049  ;;  %v4799_v62 = vpop.eup %4798 }
 0x628   :  { %v1054_v63 = vmul.f32 0.03125, %v1050_v61  ;;  %v1100_v36 = vmul.f32 %v4799_v62, %v3990_v16  ;;  %v1077_v1 = vmul.f32 %v1053_v60, %v1053_v60 }
 0x629   :  { %v1067_v2 = vpop.xlane.xlu0 %1066  ;;  %v4801_v0 = vpop.eup %4800 }
 0x62a   :  { %v1073_v3 = vmul.f32 0.03125, %v1067_v2  ;;  %v1099_v53 = vmul.f32 %v4801_v0, %v3990_v16  ;;  %v1108_v58 = vmul.f32 %v1100_v36, %v1052_v48  ;;  %v1078_v5 = vmul.f32 %v1054_v63, %v1054_v63  ;;  %v4703_v48 = vld [vmem:[%s6498_s5 + $0x50] sm:$0xff]  }
 0x62b   :  { %v1070_v22 = vpop.xlane.xlu1 %1069  ;;  %v1104_v23 = vmul.f32 %v1100_v36, %v5408_v40 }
 0x62c   :  { %v1081_v6 = vsub.f32 %v1073_v3, %v1077_v1  ;;  %v1074_v7 = vmul.f32 0.03125, %v1070_v22  ;;  %v1107_v8 = vmul.f32 %v1099_v53, %v1051_v34  ;;  %v1116_v46 = vsub.f32 %v3991_v4, %v1108_v58  ;;  %v4702_v34 = vld [vmem:[%s6498_s5 + $0x48] sm:$0xff]  }
 0x62d   :  { %v1103_v21 = vmul.f32 %v1099_v53, %v5405_v37  ;;  %4460 = vmatprep.subr.bf16.mxu1 %v4702_v34 }
 0x62e   :  { %v1085_v10 = vmax.f32 %v1081_v6, 0.0  ;;  %v1082_v13 = vsub.f32 %v1074_v7, %v1078_v5  ;;  %v1115_v52 = vsub.f32 %v3991_v4, %v1107_v8  ;;  %v1120_v19 = vadd.f32 %v1116_v46, %v1104_v23  ;;  %4461 = vmatpush3.bf16.msra.mxu1 %v4702_v34 }
 0x62f   :  { %4462 = vmatprep.subr.bf16.mxu1 %v4703_v48 }
 0x630   :  { %v1089_v50 = vadd.f32 1e-05, %v1085_v10  ;;  %v1086_v56 = vmax.f32 %v1082_v13, 0.0  ;;  %v1119_v27 = vadd.f32 %v1115_v52, %v1103_v21 }
 0x632   :  { %4802 = vrsqrt.f32 %v1089_v50  ;;  %v1090_v29 = vadd.f32 1e-05, %v1086_v56  ;;  %v1123_v39 = vpack.c.bf16 %v1120_v19, %v1119_v27  ;;  %4463 = vmatpush3.bf16.msra.mxu1 %v4703_v48 }
 0x633   :  { %4464 = vmatprep.subr.bf16.mxu1 %v4704_v26 }
 0x634   :  { %4804 = vrsqrt.f32 %v1090_v29  ;;  %4454 = vmatprep.mubr.msk.bf16.mxu0 %vm135_vm1, %v1123_v39 }
 0x636   :  { %4465 = vmatpush3.bf16.msra.mxu1 %v4704_v26 }
 0x637   :  { %4466 = vmatprep.subr.bf16.mxu1 %v4705_v45 }
 0x63a   :  { %4467 = vmatpush3.bf16.msra.mxu1 %v4705_v45 }
 0x63b   :  { %4468 = vmatprep.subr.bf16.mxu1 %v4706_v17 }
 0x63c   :  { %v4803_v31 = vpop.eup %4802 }
 0x63d   :  { %v1101_v33 = vmul.f32 %v4803_v31, %v3990_v16 }
 0x63e   :  { %v4805_v35 = vpop.eup %4804  ;;  %4469 = vmatpush3.bf16.msra.mxu1 %v4706_v17 }
 0x63f   :  { %v1109_v18 = vmul.f32 %v1101_v33, %v1053_v60  ;;  %v1102_v25 = vmul.f32 %v4805_v35, %v3990_v16  ;;  %v1105_v41 = vmul.f32 %v1101_v33, %v5421_v9  ;;  %4470 = vmatprep.subr.bf16.mxu1 %v4707_v47 }
 0x641   :  { %v1110_v38 = vmul.f32 %v1102_v25, %v1054_v63  ;;  %v1117_v28 = vsub.f32 %v3991_v4, %v1109_v18  ;;  %v1106_v20 = vmul.f32 %v1102_v25, %v5424_v14 }
 0x642   :  { %4471 = vmatpush3.bf16.msra.mxu1 %v4707_v47 }
 0x643   :  { %v1118_v32 = vsub.f32 %v3991_v4, %v1110_v38  ;;  %v1121_v24 = vadd.f32 %v1117_v28, %v1105_v41  ;;  %4472 = vmatprep.subr.bf16.mxu1 %v4708_v43 }
 0x645   :  { %v1122_v42 = vadd.f32 %v1118_v32, %v1106_v20  ;;  %v5529_v32 = vld [vmem:[%s6499_s6 + $0x20] sm:$0xff]  }
 0x646   :  { %4473 = vmatpush3.bf16.msra.mxu1 %v4708_v43 }
 0x647   :  { %v1124_v44 = vpack.c.bf16 %v1122_v42, %v1121_v24  ;;  %4510 = vmatprep.subr.bf16.mxu1 %v4987_v15  ;;  %v4017_v24 = vld [vmem:[%s6494_s1 + $0xf] ss:$0 sm:$0xff] }
 0x649   :  { %4455 = vmatmul.mubr.msk.bf16.vlgmr.msra.gmra.mrb[24].mxu0 %vm135_vm1, %v1124_v44 }
 0x64a   :  { %4480 = vmatprep.mubr.msk.bf16.mxu0 %vm634_vm2, %v5529_v32 }
 0x71c   :  { %v4456_v51 = vpop.f32.mrb[24].mxu0 }
 0x71d   :  { %v1196_v30 = vadd.f32 %v4456_v51, %v3996_v49  ;;  %v1187_v54 = vpop.f32.mrb[25].mxu0 }
 0x71e   :  { %v1188_v55 = vadd.f32 %v3996_v49, %v1187_v54  ;;  %v4457_v57 = vpop.f32.mrb[26].mxu0 }
 0x71f   :  { %v1204_v12 = vmul.f32 %v1196_v30, %v1196_v30  ;;  %v1199_v59 = vadd.f32 %v4457_v57, %v3996_v49  ;;  %v1190_v60 = vpop.f32.mrb[27].mxu0 }
 0x720   :  { %v1202_v16 = vmul.f32 %v1188_v55, %v1188_v55  ;;  %v1191_v61 = vadd.f32 %v3996_v49, %v1190_v60 }
 0x721   :  { %v1208_v62 = vmul.f32 %v1204_v12, %v1196_v30  ;;  %v1205_v63 = vmul.f32 %v1199_v59, %v1199_v59 }
 0x722   :  { %v1206_v2 = vmul.f32 %v1202_v16, %v1188_v55  ;;  %v1203_v36 = vmul.f32 %v1191_v61, %v1191_v61 }
 0x723   :  { %v1212_v0 = vmul.f32 0.044715, %v1208_v62  ;;  %v1209_v1 = vmul.f32 %v1205_v63, %v1199_v59 }
 0x724   :  { %v1210_v3 = vmul.f32 0.044715, %v1206_v2  ;;  %v1207_v4 = vmul.f32 %v1203_v36, %v1191_v61 }
 0x725   :  { %v1216_v22 = vadd.f32 %v1212_v0, %v1196_v30  ;;  %v1213_v53 = vmul.f32 0.044715, %v1209_v1 }
 0x726   :  { %v1214_v58 = vadd.f32 %v1210_v3, %v1188_v55  ;;  %v1211_v5 = vmul.f32 0.044715, %v1207_v4 }
 0x727   :  { %v1220_v6 = vmul.f32 0.7978846, %v1216_v22  ;;  %v1217_v7 = vadd.f32 %v1213_v53, %v1199_v59 }
 0x728   :  { %v1218_v8 = vmul.f32 0.7978846, %v1214_v58  ;;  %v1215_v46 = vadd.f32 %v1211_v5, %v1191_v61 }
 0x729   :  { %4806 = vtanh.f32 %v1220_v6  ;;  %v1221_v10 = vmul.f32 0.7978846, %v1217_v7 }
 0x72a   :  { %4808 = vtanh.f32 %v1218_v8  ;;  %v1219_v13 = vmul.f32 0.7978846, %v1215_v46 }
 0x72b   :  { %4810 = vtanh.f32 %v1221_v10 }
 0x72c   :  { %4812 = vtanh.f32 %v1219_v13 }
 0x733   :  { %v4807_v21 = vpop.eup %4806 }
 0x734   :  { %v4809_v23 = vpop.eup %4808  ;;  %v1228_v52 = vadd.f32 1.0, %v4807_v21 }
 0x735   :  { %v4811_v50 = vpop.eup %4810  ;;  %v1226_v56 = vadd.f32 1.0, %v4809_v23 }
 0x736   :  { %v4813_v27 = vpop.eup %4812  ;;  %v1232_v19 = vmul.f32 0.5, %v1228_v52  ;;  %v1229_v29 = vadd.f32 1.0, %v4811_v50 }
 0x737   :  { %v1227_v39 = vadd.f32 1.0, %v4813_v27  ;;  %v1230_v31 = vmul.f32 0.5, %v1226_v56 }
 0x738   :  { %v1233_v33 = vmul.f32 0.5, %v1229_v29  ;;  %v1236_v18 = vmul.f32 %v1232_v19, %v1196_v30 }
 0x739   :  { %v1231_v35 = vmul.f32 0.5, %v1227_v39  ;;  %v1234_v38 = vmul.f32 %v1230_v31, %v1188_v55 }
 0x73a   :  { %v1237_v25 = vmul.f32 %v1233_v33, %v1199_v59 }
 0x73b   :  { %v1235_v28 = vmul.f32 %v1231_v35, %v1191_v61 }
 0x73c   :  { %v1239_v41 = vpack.c.bf16 %v1237_v25, %v1236_v18 }
 0x73d   :  { %v1238_v20 = vpack.c.bf16 %v1235_v28, %v1234_v38 }
 0x73f   :  { %4474 = vmatprep.mubr.bf16.mxu1 %v1238_v20 }
 0x740   :  { %4475 = vmatmul.mubr.bf16.vlgmr.msra.gmra.mrb[12].mxu1 %v1239_v41 }
 0x741   :  { %4518 = vmatprep.mubr.msk.bf16.mxu1 %vm4988_vm3, %v4987_v15 }
 0x813   :  { %v4476_v42 = vpop.f32.mrb[12].mxu1 }
 0x814   :  { %v1353_v44 = vadd.f32 %v4476_v42, %v4017_v24  ;;  %v1344_v11 = vpop.f32.mrb[13].mxu1 }
 0x815   :  { %v1345_v34 = vadd.f32 %v4017_v24, %v1344_v11  ;;  %v4477_v48 = vpop.f32.mrb[14].mxu1  ;;  %v1430_v11 = vpop.permute.xlu1 %1429 }
 0x816   :  { %v5537_v26 = vadd.f32 %v1353_v44, %v5421_v9  ;;  %v1356_v45 = vadd.f32 %v4477_v48, %v4017_v24  ;;  %v1347_v17 = vpop.f32.mrb[15].mxu1 }
 0x817   :  { %v5540_v47 = vadd.f32 %v1345_v34, %v5405_v37  ;;  %v1348_v43 = vadd.f32 %v4017_v24, %v1347_v17  ;;  %v1425_v34 = vpop.permute.xlu0 %1424 }
 0x818   :  { %v1390_v49 = vmul.f32 %v5537_v26, %v5537_v26  ;;  %v5545_v51 = vadd.f32 %v1356_v45, %v5424_v14  ;;  %v1377_v9 = vsel %vm135_vm1, %v5537_v26, 0.0 }
 0x819   :  { %v1388_v30 = vmul.f32 %v5540_v47, %v5540_v47  ;;  %v5550_v54 = vadd.f32 %v1348_v43, %v5408_v40  ;;  %v1368_v57 = vsel %vm135_vm1, %v5540_v47, 0.0 }
 0x81a   :  { %v1378_v37 = vsel %vm135_vm1, %v5545_v51, 0.0  ;;  %v1391_v55 = vmul.f32 %v5545_v51, %v5545_v51  ;;  %v1401_v59 = vsel %vm135_vm1, %v1390_v49, 0.0 }
 0x81b   :  { %v1379_v14 = vadd.f32 %v1378_v37, %v1377_v9  ;;  %v1369_v12 = vsel %vm135_vm1, %v5550_v54, 0.0  ;;  %v1389_v40 = vmul.f32 %v5550_v54, %v5550_v54  ;;  %v1392_v61 = vsel %vm135_vm1, %v1388_v30, 0.0 }
 0x81c   :  { %v1402_v60 = vsel %vm135_vm1, %v1391_v55, 0.0  ;;  %v1370_v16 = vadd.f32 %v1369_v12, %v1368_v57  ;;  %v1447_v55 = vpop.permute.xlu1 %1446  ;;  %v1452_v57 = vpop.permute.xlu0 %1451 }
 0x81d   :  { %v1380_v62 = vrot.slane %v1379_v14, 4  ;;  %v1403_v63 = vadd.f32 %v1402_v60, %v1401_v59  ;;  %v1393_v2 = vsel %vm135_vm1, %v1389_v40, 0.0 }
 0x81e   :  { %v1371_v36 = vrot.slane %v1370_v16, 4  ;;  %v1394_v0 = vadd.f32 %v1393_v2, %v1392_v61 }
 0x81f   :  { %v1381_v1 = vadd.f32 %v1380_v62, %v1379_v14  ;;  %v1404_v3 = vrot.slane %v1403_v63, 4 }
 0x820   :  { %v1372_v4 = vadd.f32 %v1371_v36, %v1370_v16  ;;  %v1395_v22 = vrot.slane %v1394_v0, 4 }
 0x821   :  { %v1382_v53 = vrot.slane %v1381_v1, 2  ;;  %v1405_v58 = vadd.f32 %v1404_v3, %v1403_v63 }
 0x822   :  { %v1373_v5 = vrot.slane %v1372_v4, 2  ;;  %v1396_v6 = vadd.f32 %v1395_v22, %v1394_v0 }
 0x823   :  { %v1383_v7 = vadd.f32 %v1382_v53, %v1381_v1  ;;  %v1406_v8 = vrot.slane %v1405_v58, 2  ;;  %v4710_v53 = vld [vmem:[%s6499_s6 + $0x28] sm:$0xff]  }
 0x824   :  { %v1374_v46 = vadd.f32 %v1373_v5, %v1372_v4  ;;  %v1397_v10 = vrot.slane %v1396_v6, 2  ;;  %v4712_v5 = vld [vmem:[%s6499_s6 + $0x38] sm:$0xff]  }
 0x825   :  { %v1407_v13 = vadd.f32 %v1406_v8, %v1405_v58  ;;  %v1384_v21 = vrot.slane %v1383_v7, 1  ;;  %v4711_v58 = vld [vmem:[%s6499_s6 + $0x30] sm:$0xff]  }
 0x826   :  { %v1398_v23 = vadd.f32 %v1397_v10, %v1396_v6  ;;  %v1375_v52 = vrot.slane %v1374_v46, 1  ;;  %v5592_v6 = vpop.permute.xlu1 %1483 }
 0x827   :  { %v1408_v50 = vrot.slane %v1407_v13, 1  ;;  %v1385_v56 = vadd.f32 %v1384_v21, %v1383_v7  ;;  %v5594_v7 = vpop.permute.xlu0 %1488 }
 0x828   :  { %v1399_v27 = vrot.slane %v1398_v23, 1  ;;  %v1376_v19 = vadd.f32 %v1375_v52, %v1374_v46 }
 0x829   :  { %v1409_v29 = vadd.f32 %v1408_v50, %v1407_v13  ;;  %v1387_v39 = vmul.f32 0.0625, %v1385_v56 }
 0x82a   :  { %v1400_v31 = vadd.f32 %v1399_v27, %v1398_v23  ;;  %v1386_v33 = vmul.f32 0.0625, %v1376_v19  ;;  %v1494_v8 = vpop.permute.xlu1 %1493 }
 0x82b   :  { %v1411_v35 = vmul.f32 0.0625, %v1409_v29  ;;  %v1413_v18 = vmul.f32 %v1387_v39, %v1387_v39  ;;  %v5596_v46 = vpop.permute.xlu0 %1498 }
 0x82c   :  { %v1410_v25 = vmul.f32 0.0625, %v1400_v31  ;;  %v1412_v38 = vmul.f32 %v1386_v33, %v1386_v33 }
 0x82d   :  { %v1415_v28 = vsub.f32 %v1411_v35, %v1413_v18 }
 0x82e   :  { %v1414_v41 = vsub.f32 %v1410_v25, %v1412_v38  ;;  %v5600_v21 = vpop.permute.xlu1 %1503 }
 0x82f   :  { %v1417_v20 = vmax.f32 %v1415_v28, 0.0  ;;  %v5610_v19 = vpop.permute.xlu0 %1508 }
 0x830   :  { %v1416_v24 = vmax.f32 %v1414_v41, 0.0 }
 0x831   :  { %v1419_v42 = vadd.f32 1e-05, %v1417_v20 }
 0x832   :  { %v1418_v44 = vadd.f32 1e-05, %v1416_v24  ;;  %v5624_v28 = vpop.permute.xlu1 %1513 }
 0x833   :  { %4814 = vrsqrt.f32 %v1419_v42 }
 0x834   :  { %4816 = vrsqrt.f32 %v1418_v44 }
 0x83d   :  { %v4815_v48 = vpop.eup %4814 }
 0x83e   :  { %v4817_v45 = vpop.eup %4816  ;;  %v1434_v17 = vmul.f32 %v4815_v48, %v1425_v34  ;;  %v1435_v43 = vmul.f32 %v4815_v48, %v1430_v11  ;;  %v5631_v48 = vpop.permute.xlu0 %1518 }
 0x83f   :  { %v1432_v49 = vmul.f32 %v4817_v45, %v1425_v34  ;;  %v1433_v30 = vmul.f32 %v4817_v45, %v1430_v11 }
 0x840   :  { %v1442_v9 = vmul.f32 %v1434_v17, %v1387_v39  ;;  %v1443_v37 = vmul.f32 %v1435_v43, %v1387_v39  ;;  %v1438_v40 = vmul.f32 %v1434_v17, %v5537_v26  ;;  %v1439_v59 = vmul.f32 %v1435_v43, %v5545_v51 }
 0x841   :  { %v1440_v14 = vmul.f32 %v1432_v49, %v1386_v33  ;;  %v1441_v12 = vmul.f32 %v1433_v30, %v1386_v33  ;;  %v1436_v61 = vmul.f32 %v1432_v49, %v5540_v47  ;;  %v1437_v62 = vmul.f32 %v1433_v30, %v5550_v54 }
 0x842   :  { %v1456_v60 = vsub.f32 %v1447_v55, %v1442_v9  ;;  %v1457_v16 = vsub.f32 %v1452_v57, %v1443_v37 }
 0x843   :  { %v1454_v63 = vsub.f32 %v1447_v55, %v1440_v14  ;;  %v1455_v2 = vsub.f32 %v1452_v57, %v1441_v12 }
 0x844   :  { %v1460_v1 = vadd.f32 %v1456_v60, %v1438_v40  ;;  %v1461_v3 = vadd.f32 %v1457_v16, %v1439_v59 }
 0x845   :  { %v1458_v36 = vadd.f32 %v1454_v63, %v1436_v61  ;;  %v1459_v0 = vadd.f32 %v1455_v2, %v1437_v62 }
 0x846   :  { %v1472_v22 = vpack.c.bf16 %v1461_v3, %v1460_v1 }
 0x847   :  { %v1471_v4 = vpack.c.bf16 %v1459_v0, %v1458_v36 }
 0x849   :  { %4478 = vmatprep.subr.bf16.mxu0 %v1471_v4 }
 0x84a   :  { %4479 = vmatpush3.bf16.msra.mxu0 %v1471_v4 }
 0x84b   :  { %4488 = vmatprep.subr.bf16.mxu0 %v1472_v22 }
 0x84d   :  { %4481 = vmatmul.mubr.msk.bf16.vlgmr.msra.gmra.mrb[28].mxu0 %vm634_vm2, %v4710_v53 }
 0x84e   :  { %4489 = vmatpush3.bf16.msra.mxu0 %v1472_v22  ;;  %4484 = vmatprep.mubr.msk.bf16.mxu0 %vm634_vm2, %v4711_v58 }
 0x84f   :  { %4498 = vmatprep.subr.bf16.mxu0 %v4987_v15 }
 0x855   :  { %4485 = vmatmul.mubr.msk.bf16.gmra.mrb[32].mxu0 %vm634_vm2, %v4712_v5 }
 0x856   :  { %4490 = vmatprep.mubr.msk.bf16.mxu0 %vm634_vm2, %v5529_v32 }
 0x85d   :  { %4491 = vmatmul.mubr.msk.bf16.vlgmr.msra.gmra.mrb[36].mxu0 %vm634_vm2, %v4710_v53 }
 0x85e   :  { %4494 = vmatprep.mubr.msk.bf16.mxu0 %vm634_vm2, %v4711_v58 }
 0x865   :  { %4495 = vmatmul.mubr.msk.bf16.gmra.mrb[40].mxu0 %vm634_vm2, %v4712_v5 }
 0x866   :  { %4506 = vmatprep.mubr.msk.bf16.mxu0 %vm4988_vm3, %v4987_v15 }
 0x920   :  { %v4482_v10 = vpop.f32.mrb[28].mxu0 }
 0x921   :  { %v5598_v13 = vadd.f32 %v4482_v10, %v1494_v8  ;;  %v1587_v32 = vpop.f32.mrb[29].mxu0 }
 0x922   :  { %v5603_v23 = vadd.f32 %v1587_v32, %v5592_v6  ;;  %v4483_v52 = vpop.f32.mrb[30].mxu0 }
 0x923   :  { %v1685_v50 = vmul.f32 %v5598_v13, %v5598_v13  ;;  %v5608_v56 = vadd.f32 %v4483_v52, %v5596_v46  ;;  %v1590_v27 = vpop.f32.mrb[31].mxu0 }
 0x924   :  { %v1683_v29 = vmul.f32 %v5603_v23, %v5603_v23  ;;  %v5615_v39 = vadd.f32 %v1590_v27, %v5594_v7 }
 0x925   :  { %v1701_v31 = vmul.f32 %v1685_v50, %v5598_v13  ;;  %v1686_v33 = vmul.f32 %v5608_v56, %v5608_v56 }
 0x926   :  { %v1699_v35 = vmul.f32 %v1683_v29, %v5603_v23  ;;  %v1684_v18 = vmul.f32 %v5615_v39, %v5615_v39 }
 0x927   :  { %v1717_v25 = vmul.f32 0.044715, %v1701_v31  ;;  %v1702_v38 = vmul.f32 %v1686_v33, %v5608_v56 }
 0x928   :  { %v1715_v41 = vmul.f32 0.044715, %v1699_v35  ;;  %v1700_v20 = vmul.f32 %v1684_v18, %v5615_v39  ;;  %v4486_v24 = vpop.f32.mrb[32].mxu0 }
 0x929   :  { %v1733_v42 = vadd.f32 %v1717_v25, %v5598_v13  ;;  %v1718_v44 = vmul.f32 0.044715, %v1702_v38  ;;  %v5629_v11 = vadd.f32 %v4486_v24, %v5624_v28  ;;  %v1603_v34 = vpop.f32.mrb[33].mxu0 }
 0x92a   :  { %v1731_v45 = vadd.f32 %v1715_v41, %v5603_v23  ;;  %v1716_v17 = vmul.f32 0.044715, %v1700_v20  ;;  %v5635_v43 = vadd.f32 %v1603_v34, %v5600_v21  ;;  %v4487_v49 = vpop.f32.mrb[34].mxu0 }
 0x92b   :  { %v1749_v30 = vmul.f32 0.7978846, %v1733_v42  ;;  %v1734_v9 = vadd.f32 %v1718_v44, %v5608_v56  ;;  %v1689_v37 = vmul.f32 %v5629_v11, %v5629_v11  ;;  %v5641_v55 = vadd.f32 %v4487_v49, %v5631_v48  ;;  %v1606_v57 = vpop.f32.mrb[35].mxu0 }
 0x92c   :  { %v1747_v14 = vmul.f32 0.7978846, %v1731_v45  ;;  %v1732_v12 = vadd.f32 %v1716_v17, %v5615_v39  ;;  %v1687_v40 = vmul.f32 %v5635_v43, %v5635_v43  ;;  %v5647_v59 = vadd.f32 %v1606_v57, %v5610_v19 }
 0x92d   :  { %4818 = vtanh.f32 %v1749_v30  ;;  %v1750_v60 = vmul.f32 0.7978846, %v1734_v9  ;;  %v1705_v16 = vmul.f32 %v1689_v37, %v5629_v11  ;;  %v1690_v61 = vmul.f32 %v5641_v55, %v5641_v55 }
 0x92e   :  { %4820 = vtanh.f32 %v1747_v14  ;;  %v1748_v62 = vmul.f32 0.7978846, %v1732_v12  ;;  %v1703_v63 = vmul.f32 %v1687_v40, %v5635_v43  ;;  %v1688_v2 = vmul.f32 %v5647_v59, %v5647_v59 }
 0x92f   :  { %4822 = vtanh.f32 %v1750_v60  ;;  %v1721_v36 = vmul.f32 0.044715, %v1705_v16  ;;  %v1706_v0 = vmul.f32 %v1690_v61, %v5641_v55 }
 0x930   :  { %4824 = vtanh.f32 %v1748_v62  ;;  %v1719_v1 = vmul.f32 0.044715, %v1703_v63  ;;  %v1704_v3 = vmul.f32 %v1688_v2, %v5647_v59  ;;  %v4492_v4 = vpop.f32.mrb[36].mxu0 }
 0x931   :  { %v1737_v22 = vadd.f32 %v1721_v36, %v5629_v11  ;;  %v1722_v53 = vmul.f32 0.044715, %v1706_v0  ;;  %v5658_v58 = vadd.f32 %v4492_v4, %v1494_v8  ;;  %v1652_v5 = vpop.f32.mrb[37].mxu0 }
 0x932   :  { %v1735_v10 = vadd.f32 %v1719_v1, %v5635_v43  ;;  %v1720_v32 = vmul.f32 0.044715, %v1704_v3  ;;  %v5662_v52 = vadd.f32 %v1652_v5, %v5592_v6  ;;  %v4493_v50 = vpop.f32.mrb[38].mxu0 }
 0x933   :  { %v1753_v27 = vmul.f32 0.7978846, %v1737_v22  ;;  %v1738_v29 = vadd.f32 %v1722_v53, %v5641_v55  ;;  %v1693_v31 = vmul.f32 %v5658_v58, %v5658_v58  ;;  %v5668_v33 = vadd.f32 %v4493_v50, %v5596_v46  ;;  %v1655_v35 = vpop.f32.mrb[39].mxu0 }
 0x934   :  { %v1751_v8 = vmul.f32 0.7978846, %v1735_v10  ;;  %v1736_v18 = vadd.f32 %v1720_v32, %v5647_v59  ;;  %v1691_v25 = vmul.f32 %v5662_v52, %v5662_v52  ;;  %v5674_v6 = vadd.f32 %v1655_v35, %v5594_v7 }
 0x935   :  { %4826 = vtanh.f32 %v1753_v27  ;;  %v1754_v38 = vmul.f32 0.7978846, %v1738_v29  ;;  %v1709_v41 = vmul.f32 %v1693_v31, %v5658_v58  ;;  %v1694_v20 = vmul.f32 %v5668_v33, %v5668_v33 }
 0x936   :  { %4828 = vtanh.f32 %v1751_v8  ;;  %v1752_v46 = vmul.f32 0.7978846, %v1736_v18  ;;  %v1707_v24 = vmul.f32 %v1691_v25, %v5662_v52  ;;  %v1692_v42 = vmul.f32 %v5674_v6, %v5674_v6 }
 0x937   :  { %v4819_v44 = vpop.eup %4818  ;;  %4830 = vtanh.f32 %v1754_v38  ;;  %v1725_v34 = vmul.f32 0.044715, %v1709_v41  ;;  %v1710_v7 = vmul.f32 %v1694_v20, %v5668_v33 }
 0x938   :  { %v4821_v45 = vpop.eup %4820  ;;  %v1781_v17 = vadd.f32 1.0, %v4819_v44  ;;  %4832 = vtanh.f32 %v1752_v46  ;;  %v1723_v49 = vmul.f32 0.044715, %v1707_v24  ;;  %v1708_v30 = vmul.f32 %v1692_v42, %v5674_v6  ;;  %v4496_v9 = vpop.f32.mrb[40].mxu0 }
 0x939   :  { %v4823_v37 = vpop.eup %4822  ;;  %v1779_v57 = vadd.f32 1.0, %v4821_v45  ;;  %v1741_v14 = vadd.f32 %v1725_v34, %v5658_v58  ;;  %v1726_v12 = vmul.f32 0.044715, %v1710_v7  ;;  %v1668_v40 = vpop.f32.mrb[41].mxu0  ;;  %v5687_v63 = vadd.f32 %v4496_v9, %v5624_v28 }
 0x93a   :  { %v4825_v60 = vpop.eup %4824  ;;  %v1782_v16 = vadd.f32 1.0, %v4823_v37  ;;  %v1739_v61 = vadd.f32 %v1723_v49, %v5662_v52  ;;  %v1724_v62 = vmul.f32 0.044715, %v1708_v30  ;;  %v4497_v2 = vpop.f32.mrb[42].mxu0  ;;  %v1797_v22 = vmul.f32 0.5, %v1781_v17 }
 0x93b   :  { %v1795_v36 = vmul.f32 0.5, %v1779_v57  ;;  %v1780_v0 = vadd.f32 1.0, %v4825_v60  ;;  %v1757_v1 = vmul.f32 0.7978846, %v1741_v14  ;;  %v1742_v3 = vadd.f32 %v1726_v12, %v5668_v33  ;;  %v1671_v4 = vpop.f32.mrb[43].mxu0 }
 0x93c   :  { %v1798_v53 = vmul.f32 0.5, %v1782_v16  ;;  %v1755_v5 = vmul.f32 0.7978846, %v1739_v61  ;;  %v1740_v10 = vadd.f32 %v1724_v62, %v5674_v6  ;;  %v1697_v31 = vmul.f32 %v5687_v63, %v5687_v63 }
 0x93d   :  { %v1811_v32 = vmul.f32 %v1795_v36, %v5603_v23  ;;  %v1796_v50 = vmul.f32 0.5, %v1780_v0  ;;  %4834 = vtanh.f32 %v1757_v1  ;;  %v1758_v27 = vmul.f32 0.7978846, %v1742_v3 }
 0x93e   :  { %v1814_v28 = vmul.f32 %v1798_v53, %v5608_v56  ;;  %4836 = vtanh.f32 %v1755_v5  ;;  %v1756_v29 = vmul.f32 0.7978846, %v1740_v10  ;;  %v5697_v18 = vadd.f32 %v1668_v40, %v5600_v21 }
 0x93f   :  { %v4827_v35 = vpop.eup %4826  ;;  %v1812_v8 = vmul.f32 %v1796_v50, %v5615_v39  ;;  %4838 = vtanh.f32 %v1758_v27  ;;  %v5700_v25 = vadd.f32 %v4497_v2, %v5631_v48  ;;  %v1713_v56 = vmul.f32 %v1697_v31, %v5687_v63 }
 0x940   :  { %v4829_v23 = vpop.eup %4828  ;;  %v1785_v38 = vadd.f32 1.0, %v4827_v35  ;;  %4840 = vtanh.f32 %v1756_v29  ;;  %v5704_v41 = vadd.f32 %v1671_v4, %v5610_v19  ;;  %v1695_v39 = vmul.f32 %v5697_v18, %v5697_v18 }
 0x941   :  { %v4831_v20 = vpop.eup %4830  ;;  %v1783_v46 = vadd.f32 1.0, %v4829_v23  ;;  %v1698_v21 = vmul.f32 %v5700_v25, %v5700_v25  ;;  %v1830_v24 = vpack.c.bf16 %v1812_v8, %v1811_v32  ;;  %v1729_v34 = vmul.f32 0.044715, %v1713_v56 }
 0x942   :  { %v4833_v42 = vpop.eup %4832  ;;  %v1801_v48 = vmul.f32 0.5, %v1785_v38  ;;  %v1786_v44 = vadd.f32 1.0, %v4831_v20  ;;  %v1696_v7 = vmul.f32 %v5704_v41, %v5704_v41  ;;  %v1711_v19 = vmul.f32 %v1695_v39, %v5697_v18 }
 0x943   :  { %v1799_v45 = vmul.f32 0.5, %v1783_v46  ;;  %v1784_v17 = vadd.f32 1.0, %v4833_v42  ;;  %v1714_v49 = vmul.f32 %v1698_v21, %v5700_v25  ;;  %4499 = vmatpush3.bf16.msra.mxu0 %v1830_v24  ;;  %v1813_v30 = vmul.f32 %v1797_v22, %v5598_v13  ;;  %v4713_v46 = vld [vmem:[%s6500_s7 + $0x8] sm:$0xff]  }
 0x944   :  { %v1802_v9 = vmul.f32 0.5, %v1786_v44  ;;  %v1745_v37 = vadd.f32 %v1729_v34, %v5687_v63  ;;  %v1712_v57 = vmul.f32 %v1696_v7, %v5704_v41  ;;  %4500 = vmatprep.subr.bf16.mxu0 %v4987_v15  ;;  %v1817_v14 = vmul.f32 %v1801_v48, %v5629_v11 }
 0x945   :  { %v1800_v12 = vmul.f32 0.5, %v1784_v17  ;;  %v1727_v40 = vmul.f32 0.044715, %v1711_v19  ;;  %v1730_v60 = vmul.f32 0.044715, %v1714_v49  ;;  %v1831_v2 = vpack.c.bf16 %v1814_v28, %v1813_v30 }
 0x946   :  { %v1818_v16 = vmul.f32 %v1802_v9, %v5641_v55  ;;  %v1761_v61 = vmul.f32 0.7978846, %v1745_v37  ;;  %v1728_v62 = vmul.f32 0.044715, %v1712_v57  ;;  %v1815_v13 = vmul.f32 %v1799_v45, %v5635_v43 }
 0x947   :  { %v4835_v36 = vpop.eup %4834  ;;  %v1816_v0 = vmul.f32 %v1800_v12, %v5647_v59  ;;  %v1743_v1 = vadd.f32 %v1727_v40, %v5697_v18  ;;  %v1746_v3 = vadd.f32 %v1730_v60, %v5700_v25  ;;  %4501 = vmatpush3.bf16.msra.mxu0 %v1831_v2 }
 0x948   :  { %v4837_v4 = vpop.eup %4836  ;;  %v1789_v22 = vadd.f32 1.0, %v4835_v36  ;;  %4842 = vtanh.f32 %v1761_v61  ;;  %v1744_v11 = vadd.f32 %v1728_v62, %v5704_v41  ;;  %v1833_v53 = vpack.c.bf16 %v1818_v16, %v1817_v14  ;;  %4502 = vmatprep.subr.bf16.mxu0 %v4987_v15  ;;  %v1843_v14 = vpop.permute.xlu1 %1842 }
 0x949   :  { %v4839_v55 = vpop.eup %4838  ;;  %v1787_v5 = vadd.f32 1.0, %v4837_v4  ;;  %v1759_v10 = vmul.f32 0.7978846, %v1743_v1  ;;  %v1762_v32 = vmul.f32 0.7978846, %v1746_v3  ;;  %v1832_v43 = vpack.c.bf16 %v1816_v0, %v1815_v13  ;;  %v1848_v16 = vpop.permute.xlu0 %1847 }
 0x94a   :  { %v4841_v50 = vpop.eup %4840  ;;  %v1805_v59 = vmul.f32 0.5, %v1789_v22  ;;  %v1790_v27 = vadd.f32 1.0, %v4839_v55  ;;  %v1760_v28 = vmul.f32 0.7978846, %v1744_v11 }
 0x94b   :  { %v1803_v29 = vmul.f32 0.5, %v1787_v5  ;;  %v1788_v31 = vadd.f32 1.0, %v4841_v50  ;;  %4844 = vtanh.f32 %v1759_v10  ;;  %4503 = vmatpush3.bf16.msra.mxu0 %v1832_v43  ;;  %v4102_v50 = vld [vmem:[%s6495_s2 + $0xe8] sm:$0xff] }
 0x94c   :  { %v1806_v35 = vmul.f32 0.5, %v1790_v27  ;;  %4846 = vtanh.f32 %v1762_v32  ;;  %4504 = vmatprep.subr.bf16.mxu0 %v4987_v15  ;;  %v1821_v23 = vmul.f32 %v1805_v59, %v5658_v58  ;;  %v4101_v59 = vld [vmem:[%s6495_s2 + $0xe0] sm:$0xff]  ;;  %v4103_v27 = vld [vmem:[%s6495_s2 + $0xf0] sm:$0xff] }
 0x94d   :  { %v1804_v8 = vmul.f32 0.5, %v1788_v31  ;;  %4848 = vtanh.f32 %v1760_v28  ;;  %v1819_v56 = vmul.f32 %v1803_v29, %v5662_v52  ;;  %v4104_v28 = vld [vmem:[%s6495_s2 + $0xf8] sm:$0xff]  ;;  %v4113_v29 = vld [vmem:[%s6495_s2 + $0x100] sm:$0xff]  ;;  %v4114_v31 = vld [vmem:[%s6495_s2 + $0x108] sm:$0xff] }
 0x94e   :  { %v1822_v38 = vmul.f32 %v1806_v35, %v5668_v33  ;;  %v4115_v35 = vld [vmem:[%s6495_s2 + $0x110] sm:$0xff] }
 0x94f   :  { %v1820_v20 = vmul.f32 %v1804_v8, %v5674_v6  ;;  %4505 = vmatpush3.bf16.msra.mxu0 %v1833_v53  ;;  %v4116_v8 = vld [vmem:[%s6495_s2 + $0x118] sm:$0xff] }
 0x950   :  { %v1835_v39 = vpack.c.bf16 %v1822_v38, %v1821_v23  ;;  %v4117_v23 = vld [vmem:[%s6495_s2 + $0x120] sm:$0xff]  ;;  %v4118_v38 = vld [vmem:[%s6495_s2 + $0x128] sm:$0xff] }
 0x951   :  { %v1834_v21 = vpack.c.bf16 %v1820_v20, %v1819_v56  ;;  %v4119_v56 = vld [vmem:[%s6495_s2 + $0x130] sm:$0xff]  ;;  %v4714_v20 = vld [vmem:[%s6497_s4 + $0x20] sm:$0xff]  }
 0x952   :  { %v4843_v24 = vpop.eup %4842  ;;  %4507 = vmatmul.mubr.msk.bf16.vlgmr.msra.gmra.mrb[44].mxu0 %vm77_vm0, %v4713_v46  ;;  %4522 = vmatprep.subr.bf16.mxu0 %v4714_v20 }
 0x953   :  { %v1793_v42 = vadd.f32 1.0, %v4843_v24  ;;  %4511 = vmatpush3.bf16.msra.mxu1 %v1834_v21  ;;  %4523 = vmatpush3.bf16.msra.mxu0 %v4714_v20  ;;  %v4135_v21 = vld [vmem:[%s6495_s2 + $0x140] sm:$0xff]  ;;  %v4136_v24 = vld [vmem:[%s6495_s2 + $0x148] sm:$0xff] }
 0x954   :  { %4512 = vmatprep.subr.bf16.mxu1 %v4987_v15 }
 0x955   :  { %v4845_v58 = vpop.eup %4844  ;;  %v1809_v44 = vmul.f32 0.5, %v1793_v42 }
 0x956   :  { %v4847_v33 = vpop.eup %4846  ;;  %v1791_v48 = vadd.f32 1.0, %v4845_v58 }
 0x957   :  { %v4849_v52 = vpop.eup %4848  ;;  %v1794_v6 = vadd.f32 1.0, %v4847_v33  ;;  %4513 = vmatpush3.bf16.msra.mxu1 %v1835_v39  ;;  %v1825_v19 = vmul.f32 %v1809_v44, %v5687_v63  ;;  %v4715_v39 = vld [vmem:[%s6497_s4 + $0x28] sm:$0xff]  }
 0x958   :  { %v1807_v34 = vmul.f32 0.5, %v1791_v48  ;;  %v1792_v7 = vadd.f32 1.0, %v4849_v52  ;;  %4514 = vmatprep.subr.bf16.mxu1 %v4987_v15  ;;  %4524 = vmatprep.subr.bf16.mxu0 %v4715_v39 }
 0x959   :  { %v1810_v45 = vmul.f32 0.5, %v1794_v6  ;;  %4525 = vmatpush3.bf16.msra.mxu0 %v4715_v39 }
 0x95a   :  { %v1808_v17 = vmul.f32 0.5, %v1792_v7  ;;  %v1823_v30 = vmul.f32 %v1807_v34, %v5697_v18 }
 0x95b   :  { %v1826_v49 = vmul.f32 %v1810_v45, %v5700_v25 }
 0x95c   :  { %v1824_v9 = vmul.f32 %v1808_v17, %v5704_v41 }
 0x95d   :  { %v1837_v37 = vpack.c.bf16 %v1826_v49, %v1825_v19 }
 0x95e   :  { %v1836_v57 = vpack.c.bf16 %v1824_v9, %v1823_v30 }
 0x960   :  { %4515 = vmatpush3.bf16.msra.mxu1 %v1836_v57 }
 0x961   :  { %4516 = vmatprep.subr.bf16.mxu1 %v4987_v15 }
 0x964   :  { %4517 = vmatpush3.bf16.msra.mxu1 %v1837_v37 }
 0x967   :  { %4519 = vmatmul.mubr.msk.bf16.vlgmr.msra.gmra.mrb[16].mxu1 %vm77_vm0, %v4713_v46  ;;  %v4120_v46 = vld [vmem:[%s6495_s2 + $0x138] sm:$0xff] }
 0xa25   :  { %v1892_v12 = vpop.f32.mrb[44].mxu0 }
 0xa26   :  { %v1893_v40 = vadd.f32 %v1892_v12, %v1843_v14  ;;  %v4508_v60 = vpop.f32.mrb[45].mxu0  ;;  %v4065_v12 = vld [vmem:[%s6494_s1 + $0x14] ss:$0 sm:$0xff] }
 0xa27   :  { %v1895_v63 = vpop.f32.mrb[46].mxu0 }
 0xa28   :  { %v5744_v25 = vadd.f32 %v1893_v40, %v5540_v47  ;;  %v1896_v18 = vadd.f32 %v1895_v63, %v1848_v16  ;;  %v4509_v61 = vpop.f32.mrb[47].mxu0 }
 0xa2a   :  { %v5747_v41 = vadd.f32 %v1896_v18, %v5550_v54  ;;  %v1946_v62 = vsel %vm135_vm1, %v5744_v25, 0.0  ;;  %v1962_v13 = vmul.f32 %v5744_v25, %v5744_v25 }
 0xa2b   :  { %1947 = vadd.xlane.f32.xlu1 %v1946_v62 }
 0xa2c   :  { %v1949_v2 = vsel %vm135_vm1, %v5747_v41, 0.0  ;;  %v1963_v36 = vmul.f32 %v5747_v41, %v5747_v41  ;;  %v1966_v54 = vsel %vm135_vm1, %v1962_v13, 0.0 }
 0xa2d   :  { %1950 = vadd.xlane.f32.xlu0 %v1949_v2 }
 0xa2e   :  { %v1969_v47 = vsel %vm135_vm1, %v1963_v36, 0.0  ;;  %v4066_v36 = vld [vmem:[%s6494_s1 + $0x15] ss:$0 sm:$0xff] }
 0xa2f   :  { %1970 = vadd.xlane.f32.xlu1 %v1969_v47 }
 0xa31   :  { %1967 = vadd.xlane.f32.xlu0 %v1966_v54 }
 0xa3a   :  { %v1933_v0 = vpop.f32.mrb[16].mxu1 }
 0xa3b   :  { %v1934_v1 = vadd.f32 %v1933_v0, %v1843_v14  ;;  %v4520_v3 = vpop.f32.mrb[17].mxu1 }
 0xa3c   :  { %v1936_v4 = vpop.f32.mrb[18].mxu1 }
 0xa3d   :  { %v5760_v22 = vadd.f32 %v1934_v1, %v5537_v26  ;;  %v1937_v11 = vadd.f32 %v1936_v4, %v1848_v16  ;;  %v4521_v53 = vpop.f32.mrb[19].mxu1 }
 0xa3f   :  { %v5763_v55 = vadd.f32 %v1937_v11, %v5545_v51  ;;  %v1952_v5 = vsel %vm135_vm1, %v5760_v22, 0.0  ;;  %v1964_v10 = vmul.f32 %v5760_v22, %v5760_v22 }
 0xa40   :  { %1953 = vadd.xlane.f32.xlu0 %v1952_v5 }
 0xa41   :  { %v1955_v32 = vsel %vm135_vm1, %v5763_v55, 0.0  ;;  %v1965_v43 = vmul.f32 %v5763_v55, %v5763_v55  ;;  %v1972_v26 = vsel %vm135_vm1, %v1964_v10, 0.0 }
 0xa42   :  { %1956 = vadd.xlane.f32.xlu1 %v1955_v32 }
 0xa43   :  { %v1975_v51 = vsel %vm135_vm1, %v1965_v43, 0.0 }
 0xa44   :  { %1973 = vadd.xlane.f32.xlu0 %v1972_v26 }
 0xa46   :  { %1976 = vadd.xlane.f32.xlu1 %v1975_v51 }
 0xa57   :  { %2336 = vperm.xlu1 %4679, %v4102_v50  }
 0xa5a   :  { %2331 = vperm.xlu0 %4678, %v4101_v59  }
 0xa5b   :  { %2353 = vperm.xlu1 %4679, %v4103_v27  }
 0xa5e   :  { %2358 = vperm.xlu0 %4678, %v4104_v28  }
 0xa5f   :  { %2390 = vperm.xlu1 %4679, %v4113_v29  }
 0xa62   :  { %2395 = vperm.xlu0 %4678, %v4114_v31  }
 0xa63   :  { %2400 = vperm.xlu1 %4679, %v4115_v35  }
 0xa66   :  { %2405 = vperm.xlu0 %4678, %v4116_v8  }
 0xa67   :  { %2410 = vperm.xlu1 %4679, %v4117_v23  }
 0xa6a   :  { %2415 = vperm.xlu0 %4678, %v4118_v38  }
 0xa6b   :  { %2420 = vperm.xlu1 %4679, %v4119_v56  }
 0xa6e   :  { %2425 = vperm.xlu0 %4678, %v4120_v46  }
 0xa6f   :  { %2749 = vperm.xlu1 %4679, %v4135_v21  }
 0xa72   :  { %2754 = vperm.xlu0 %4678, %v4136_v24  }
 0xab8   :  { %v1948_v42 = vpop.xlane.xlu1 %1947 }
 0xab9   :  { %v1958_v33 = vmul.f32 0.03125, %v1948_v42 }
 0xaba   :  { %v1951_v58 = vpop.xlane.xlu0 %1950 }
 0xabb   :  { %v1959_v48 = vmul.f32 0.03125, %v1951_v58  ;;  %v1982_v7 = vmul.f32 %v1958_v33, %v1958_v33  ;;  %v4716_v58 = vld [vmem:[%s6498_s5 + $0x80] sm:$0xff]  }
 0xabc   :  { %v1971_v52 = vpop.xlane.xlu1 %1970  ;;  %4530 = vmatprep.subr.bf16.mxu1 %v4716_v58 }
 0xabd   :  { %v1983_v44 = vmul.f32 %v1959_v48, %v1959_v48  ;;  %v1979_v6 = vmul.f32 0.03125, %v1971_v52  ;;  %4531 = vmatpush3.bf16.msra.mxu1 %v4716_v58  ;;  %v4719_v52 = vld [vmem:[%s6498_s5 + $0x98] sm:$0xff]  }
 0xabe   :  { %v1968_v34 = vpop.xlane.xlu0 %1967 }
 0xabf   :  { %v1987_v45 = vsub.f32 %v1979_v6, %v1983_v44  ;;  %v1978_v17 = vmul.f32 0.03125, %v1968_v34  ;;  %v4720_v44 = vld [vmem:[%s6498_s5 + $0xa0] sm:$0xff]   ;;  %v4721_v6 = vld [vmem:[%s6498_s5 + $0xa8] sm:$0xff]   ;;  %v4722_v34 = vld [vmem:[%s6498_s5 + $0xb0] sm:$0xff]  }
 0xac1   :  { %v1991_v19 = vmax.f32 %v1987_v45, 0.0  ;;  %v1986_v49 = vsub.f32 %v1978_v17, %v1982_v7  ;;  %v4723_v7 = vld [vmem:[%s6498_s5 + $0xb8] sm:$0xff]   ;;  %v4071_v45 = vld [vmem:[%s6494_s1 + $0x16] ss:$0 sm:$0xff] }
 0xac3   :  { %v1995_v30 = vadd.f32 1e-05, %v1991_v19  ;;  %v1990_v9 = vmax.f32 %v1986_v49, 0.0 }
 0xac5   :  { %4850 = vrsqrt.f32 %v1995_v30  ;;  %v1994_v37 = vadd.f32 1e-05, %v1990_v9 }
 0xac7   :  { %4852 = vrsqrt.f32 %v1994_v37 }
 0xacd   :  { %v1954_v57 = vpop.xlane.xlu0 %1953 }
 0xace   :  { %v1960_v14 = vmul.f32 0.03125, %v1954_v57 }
 0xacf   :  { %v1957_v40 = vpop.xlane.xlu1 %1956  ;;  %v4851_v60 = vpop.eup %4850 }
 0xad0   :  { %v1961_v16 = vmul.f32 0.03125, %v1957_v40  ;;  %v2007_v18 = vmul.f32 %v4851_v60, %v4065_v12  ;;  %v1984_v62 = vmul.f32 %v1960_v14, %v1960_v14 }
 0xad1   :  { %v1974_v63 = vpop.xlane.xlu0 %1973  ;;  %v4853_v61 = vpop.eup %4852 }
 0xad2   :  { %v1980_v2 = vmul.f32 0.03125, %v1974_v63  ;;  %v2006_v47 = vmul.f32 %v4853_v61, %v4065_v12  ;;  %v2015_v54 = vmul.f32 %v2007_v18, %v1959_v48  ;;  %v1985_v0 = vmul.f32 %v1961_v16, %v1961_v16  ;;  %v4718_v48 = vld [vmem:[%s6498_s5 + $0x90] sm:$0xff]  }
 0xad3   :  { %v1977_v13 = vpop.xlane.xlu1 %1976  ;;  %v2011_v32 = vmul.f32 %v2007_v18, %v5747_v41 }
 0xad4   :  { %v1988_v1 = vsub.f32 %v1980_v2, %v1984_v62  ;;  %v1981_v3 = vmul.f32 0.03125, %v1977_v13  ;;  %v2014_v4 = vmul.f32 %v2006_v47, %v1958_v33  ;;  %v2023_v11 = vsub.f32 %v4066_v36, %v2015_v54  ;;  %v4717_v33 = vld [vmem:[%s6498_s5 + $0x88] sm:$0xff]  }
 0xad5   :  { %v2010_v10 = vmul.f32 %v2006_v47, %v5744_v25  ;;  %4532 = vmatprep.subr.bf16.mxu1 %v4717_v33 }
 0xad6   :  { %v1992_v53 = vmax.f32 %v1988_v1, 0.0  ;;  %v1989_v5 = vsub.f32 %v1981_v3, %v1985_v0  ;;  %v2022_v43 = vsub.f32 %v4066_v36, %v2014_v4  ;;  %v2027_v59 = vadd.f32 %v2023_v11, %v2011_v32  ;;  %4533 = vmatpush3.bf16.msra.mxu1 %v4717_v33 }
 0xad7   :  { %4534 = vmatprep.subr.bf16.mxu1 %v4718_v48 }
 0xad8   :  { %v1996_v26 = vadd.f32 1e-05, %v1992_v53  ;;  %v1993_v51 = vmax.f32 %v1989_v5, 0.0  ;;  %v2026_v50 = vadd.f32 %v2022_v43, %v2010_v10 }
 0xada   :  { %4854 = vrsqrt.f32 %v1996_v26  ;;  %v1997_v27 = vadd.f32 1e-05, %v1993_v51  ;;  %v2030_v28 = vpack.c.bf16 %v2027_v59, %v2026_v50  ;;  %4535 = vmatpush3.bf16.msra.mxu1 %v4718_v48 }
 0xadb   :  { %4536 = vmatprep.subr.bf16.mxu1 %v4719_v52 }
 0xadc   :  { %4856 = vrsqrt.f32 %v1997_v27  ;;  %4526 = vmatprep.mubr.msk.bf16.mxu0 %vm135_vm1, %v2030_v28 }
 0xade   :  { %4537 = vmatpush3.bf16.msra.mxu1 %v4719_v52 }
 0xadf   :  { %4538 = vmatprep.subr.bf16.mxu1 %v4720_v44 }
 0xae2   :  { %4539 = vmatpush3.bf16.msra.mxu1 %v4720_v44 }
 0xae3   :  { %4540 = vmatprep.subr.bf16.mxu1 %v4721_v6 }
 0xae4   :  { %v4855_v29 = vpop.eup %4854 }
 0xae5   :  { %v2008_v31 = vmul.f32 %v4855_v29, %v4065_v12 }
 0xae6   :  { %v4857_v35 = vpop.eup %4856  ;;  %4541 = vmatpush3.bf16.msra.mxu1 %v4721_v6 }
 0xae7   :  { %v2016_v8 = vmul.f32 %v2008_v31, %v1960_v14  ;;  %v2009_v23 = vmul.f32 %v4857_v35, %v4065_v12  ;;  %v2012_v20 = vmul.f32 %v2008_v31, %v5760_v22  ;;  %4542 = vmatprep.subr.bf16.mxu1 %v4722_v34 }
 0xae9   :  { %v2017_v38 = vmul.f32 %v2009_v23, %v1961_v16  ;;  %v2024_v56 = vsub.f32 %v4066_v36, %v2016_v8  ;;  %v2013_v46 = vmul.f32 %v2009_v23, %v5763_v55 }
 0xaea   :  { %4543 = vmatpush3.bf16.msra.mxu1 %v4722_v34 }
 0xaeb   :  { %v2025_v39 = vsub.f32 %v4066_v36, %v2017_v38  ;;  %v2028_v21 = vadd.f32 %v2024_v56, %v2012_v20  ;;  %4544 = vmatprep.subr.bf16.mxu1 %v4723_v7 }
 0xaed   :  { %v2029_v24 = vadd.f32 %v2025_v39, %v2013_v46  ;;  %v5868_v39 = vld [vmem:[%s6499_s6 + $0x40] sm:$0xff]  }
 0xaee   :  { %4545 = vmatpush3.bf16.msra.mxu1 %v4723_v7 }
 0xaef   :  { %v2031_v42 = vpack.c.bf16 %v2029_v24, %v2028_v21  ;;  %4582 = vmatprep.subr.bf16.mxu1 %v4987_v15  ;;  %v4092_v21 = vld [vmem:[%s6494_s1 + $0x17] ss:$0 sm:$0xff] }
 0xaf1   :  { %4527 = vmatmul.mubr.msk.bf16.vlgmr.msra.gmra.mrb[48].mxu0 %vm135_vm1, %v2031_v42 }
 0xaf2   :  { %4552 = vmatprep.mubr.msk.bf16.mxu0 %vm634_vm2, %v5868_v39 }
 0xbc4   :  { %v4528_v17 = vpop.f32.mrb[48].mxu0 }
 0xbc5   :  { %v2103_v19 = vadd.f32 %v4528_v17, %v4071_v45  ;;  %v2094_v49 = vpop.f32.mrb[49].mxu0 }
 0xbc6   :  { %v2095_v30 = vadd.f32 %v4071_v45, %v2094_v49  ;;  %v4529_v9 = vpop.f32.mrb[50].mxu0 }
 0xbc7   :  { %v2111_v37 = vmul.f32 %v2103_v19, %v2103_v19  ;;  %v2106_v57 = vadd.f32 %v4529_v9, %v4071_v45  ;;  %v2097_v14 = vpop.f32.mrb[51].mxu0 }
 0xbc8   :  { %v2109_v12 = vmul.f32 %v2095_v30, %v2095_v30  ;;  %v2098_v40 = vadd.f32 %v4071_v45, %v2097_v14 }
 0xbc9   :  { %v2115_v60 = vmul.f32 %v2111_v37, %v2103_v19  ;;  %v2112_v16 = vmul.f32 %v2106_v57, %v2106_v57 }
 0xbca   :  { %v2113_v63 = vmul.f32 %v2109_v12, %v2095_v30  ;;  %v2110_v18 = vmul.f32 %v2098_v40, %v2098_v40 }
 0xbcb   :  { %v2119_v61 = vmul.f32 0.044715, %v2115_v60  ;;  %v2116_v62 = vmul.f32 %v2112_v16, %v2106_v57 }
 0xbcc   :  { %v2117_v2 = vmul.f32 0.044715, %v2113_v63  ;;  %v2114_v36 = vmul.f32 %v2110_v18, %v2098_v40 }
 0xbcd   :  { %v2123_v13 = vadd.f32 %v2119_v61, %v2103_v19  ;;  %v2120_v47 = vmul.f32 0.044715, %v2116_v62 }
 0xbce   :  { %v2121_v54 = vadd.f32 %v2117_v2, %v2095_v30  ;;  %v2118_v0 = vmul.f32 0.044715, %v2114_v36 }
 0xbcf   :  { %v2127_v1 = vmul.f32 0.7978846, %v2123_v13  ;;  %v2124_v3 = vadd.f32 %v2120_v47, %v2106_v57 }
 0xbd0   :  { %v2125_v4 = vmul.f32 0.7978846, %v2121_v54  ;;  %v2122_v11 = vadd.f32 %v2118_v0, %v2098_v40 }
 0xbd1   :  { %4858 = vtanh.f32 %v2127_v1  ;;  %v2128_v53 = vmul.f32 0.7978846, %v2124_v3 }
 0xbd2   :  { %4860 = vtanh.f32 %v2125_v4  ;;  %v2126_v5 = vmul.f32 0.7978846, %v2122_v11 }
 0xbd3   :  { %4862 = vtanh.f32 %v2128_v53 }
 0xbd4   :  { %4864 = vtanh.f32 %v2126_v5 }
 0xbdb   :  { %v4859_v10 = vpop.eup %4858 }
 0xbdc   :  { %v4861_v32 = vpop.eup %4860  ;;  %v2135_v43 = vadd.f32 1.0, %v4859_v10 }
 0xbdd   :  { %v4863_v26 = vpop.eup %4862  ;;  %v2133_v51 = vadd.f32 1.0, %v4861_v32 }
 0xbde   :  { %v4865_v50 = vpop.eup %4864  ;;  %v2139_v59 = vmul.f32 0.5, %v2135_v43  ;;  %v2136_v27 = vadd.f32 1.0, %v4863_v26 }
 0xbdf   :  { %v2134_v28 = vadd.f32 1.0, %v4865_v50  ;;  %v2137_v29 = vmul.f32 0.5, %v2133_v51 }
 0xbe0   :  { %v2140_v31 = vmul.f32 0.5, %v2136_v27  ;;  %v2143_v8 = vmul.f32 %v2139_v59, %v2103_v19 }
 0xbe1   :  { %v2138_v35 = vmul.f32 0.5, %v2134_v28  ;;  %v2141_v38 = vmul.f32 %v2137_v29, %v2095_v30 }
 0xbe2   :  { %v2144_v23 = vmul.f32 %v2140_v31, %v2106_v57 }
 0xbe3   :  { %v2142_v56 = vmul.f32 %v2138_v35, %v2098_v40 }
 0xbe4   :  { %v2146_v20 = vpack.c.bf16 %v2144_v23, %v2143_v8 }
 0xbe5   :  { %v2145_v46 = vpack.c.bf16 %v2142_v56, %v2141_v38 }
 0xbe7   :  { %4546 = vmatprep.mubr.bf16.mxu1 %v2145_v46 }
 0xbe8   :  { %4547 = vmatmul.mubr.bf16.vlgmr.msra.gmra.mrb[20].mxu1 %v2146_v20 }
 0xbe9   :  { %4590 = vmatprep.mubr.msk.bf16.mxu1 %vm4988_vm3, %v4987_v15 }
 0xcbb   :  { %v4548_v24 = vpop.f32.mrb[20].mxu1 }
 0xcbc   :  { %v2260_v42 = vadd.f32 %v4548_v24, %v4092_v21  ;;  %v2251_v58 = vpop.f32.mrb[21].mxu1 }
 0xcbd   :  { %v2252_v33 = vadd.f32 %v4092_v21, %v2251_v58  ;;  %v4549_v48 = vpop.f32.mrb[22].mxu1  ;;  %v2337_v58 = vpop.permute.xlu1 %2336 }
 0xcbe   :  { %v5876_v52 = vadd.f32 %v2260_v42, %v5760_v22  ;;  %v2263_v44 = vadd.f32 %v4549_v48, %v4092_v21  ;;  %v2254_v6 = vpop.f32.mrb[23].mxu1 }
 0xcbf   :  { %v5879_v34 = vadd.f32 %v2252_v33, %v5744_v25  ;;  %v2255_v7 = vadd.f32 %v4092_v21, %v2254_v6  ;;  %v2332_v33 = vpop.permute.xlu0 %2331 }
 0xcc0   :  { %v2297_v45 = vmul.f32 %v5876_v52, %v5876_v52  ;;  %v5884_v17 = vadd.f32 %v2263_v44, %v5763_v55  ;;  %v2284_v22 = vsel %vm135_vm1, %v5876_v52, 0.0 }
 0xcc1   :  { %v2295_v19 = vmul.f32 %v5879_v34, %v5879_v34  ;;  %v5889_v49 = vadd.f32 %v2255_v7, %v5747_v41  ;;  %v2275_v9 = vsel %vm135_vm1, %v5879_v34, 0.0 }
 0xcc2   :  { %v2285_v25 = vsel %vm135_vm1, %v5884_v17, 0.0  ;;  %v2298_v30 = vmul.f32 %v5884_v17, %v5884_v17  ;;  %v2308_v57 = vsel %vm135_vm1, %v2297_v45, 0.0 }
 0xcc3   :  { %v2286_v55 = vadd.f32 %v2285_v25, %v2284_v22  ;;  %v2276_v37 = vsel %vm135_vm1, %v5889_v49, 0.0  ;;  %v2296_v41 = vmul.f32 %v5889_v49, %v5889_v49  ;;  %v2299_v40 = vsel %vm135_vm1, %v2295_v19, 0.0 }
 0xcc4   :  { %v2309_v14 = vsel %vm135_vm1, %v2298_v30, 0.0  ;;  %v2277_v12 = vadd.f32 %v2276_v37, %v2275_v9  ;;  %v2354_v30 = vpop.permute.xlu1 %2353  ;;  %v2359_v9 = vpop.permute.xlu0 %2358 }
 0xcc5   :  { %v2287_v60 = vrot.slane %v2286_v55, 4  ;;  %v2310_v16 = vadd.f32 %v2309_v14, %v2308_v57  ;;  %v2300_v63 = vsel %vm135_vm1, %v2296_v41, 0.0 }
 0xcc6   :  { %v2278_v18 = vrot.slane %v2277_v12, 4  ;;  %v2301_v61 = vadd.f32 %v2300_v63, %v2299_v40 }
 0xcc7   :  { %v2288_v62 = vadd.f32 %v2287_v60, %v2286_v55  ;;  %v2311_v2 = vrot.slane %v2310_v16, 4 }
 0xcc8   :  { %v2279_v36 = vadd.f32 %v2278_v18, %v2277_v12  ;;  %v2302_v13 = vrot.slane %v2301_v61, 4 }
 0xcc9   :  { %v2289_v47 = vrot.slane %v2288_v62, 2  ;;  %v2312_v54 = vadd.f32 %v2311_v2, %v2310_v16 }
 0xcca   :  { %v2280_v0 = vrot.slane %v2279_v36, 2  ;;  %v2303_v1 = vadd.f32 %v2302_v13, %v2301_v61 }
 0xccb   :  { %v2290_v3 = vadd.f32 %v2289_v47, %v2288_v62  ;;  %v2313_v4 = vrot.slane %v2312_v54, 2  ;;  %v4725_v47 = vld [vmem:[%s6499_s6 + $0x48] sm:$0xff]  }
 0xccc   :  { %v2281_v11 = vadd.f32 %v2280_v0, %v2279_v36  ;;  %v2304_v53 = vrot.slane %v2303_v1, 2  ;;  %v4727_v0 = vld [vmem:[%s6499_s6 + $0x58] sm:$0xff]  }
 0xccd   :  { %v2314_v5 = vadd.f32 %v2313_v4, %v2312_v54  ;;  %v2291_v10 = vrot.slane %v2290_v3, 1  ;;  %v4726_v54 = vld [vmem:[%s6499_s6 + $0x50] sm:$0xff]  }
 0xcce   :  { %v2305_v32 = vadd.f32 %v2304_v53, %v2303_v1  ;;  %v2282_v43 = vrot.slane %v2281_v11, 1  ;;  %v5931_v1 = vpop.permute.xlu1 %2390 }
 0xccf   :  { %v2315_v26 = vrot.slane %v2314_v5, 1  ;;  %v2292_v51 = vadd.f32 %v2291_v10, %v2290_v3  ;;  %v5933_v3 = vpop.permute.xlu0 %2395 }
 0xcd0   :  { %v2306_v50 = vrot.slane %v2305_v32, 1  ;;  %v2283_v59 = vadd.f32 %v2282_v43, %v2281_v11 }
 0xcd1   :  { %v2316_v27 = vadd.f32 %v2315_v26, %v2314_v5  ;;  %v2294_v28 = vmul.f32 0.0625, %v2292_v51 }
 0xcd2   :  { %v2307_v29 = vadd.f32 %v2306_v50, %v2305_v32  ;;  %v2293_v31 = vmul.f32 0.0625, %v2283_v59  ;;  %v2401_v4 = vpop.permute.xlu1 %2400 }
 0xcd3   :  { %v2318_v35 = vmul.f32 0.0625, %v2316_v27  ;;  %v2320_v8 = vmul.f32 %v2294_v28, %v2294_v28  ;;  %v5935_v11 = vpop.permute.xlu0 %2405 }
 0xcd4   :  { %v2317_v23 = vmul.f32 0.0625, %v2307_v29  ;;  %v2319_v38 = vmul.f32 %v2293_v31, %v2293_v31 }
 0xcd5   :  { %v2322_v56 = vsub.f32 %v2318_v35, %v2320_v8 }
 0xcd6   :  { %v2321_v20 = vsub.f32 %v2317_v23, %v2319_v38  ;;  %v5939_v10 = vpop.permute.xlu1 %2410 }
 0xcd7   :  { %v2324_v46 = vmax.f32 %v2322_v56, 0.0  ;;  %v5949_v59 = vpop.permute.xlu0 %2415 }
 0xcd8   :  { %v2323_v21 = vmax.f32 %v2321_v20, 0.0 }
 0xcd9   :  { %v2326_v24 = vadd.f32 1e-05, %v2324_v46 }
 0xcda   :  { %v2325_v42 = vadd.f32 1e-05, %v2323_v21  ;;  %v5963_v56 = vpop.permute.xlu1 %2420 }
 0xcdb   :  { %4866 = vrsqrt.f32 %v2326_v24 }
 0xcdc   :  { %4868 = vrsqrt.f32 %v2325_v42 }
 0xce5   :  { %v4867_v48 = vpop.eup %4866 }
 0xce6   :  { %v4869_v44 = vpop.eup %4868  ;;  %v2341_v6 = vmul.f32 %v4867_v48, %v2332_v33  ;;  %v2342_v7 = vmul.f32 %v4867_v48, %v2337_v58  ;;  %v5970_v48 = vpop.permute.xlu0 %2425 }
 0xce7   :  { %v2339_v45 = vmul.f32 %v4869_v44, %v2332_v33  ;;  %v2340_v19 = vmul.f32 %v4869_v44, %v2337_v58 }
 0xce8   :  { %v2349_v22 = vmul.f32 %v2341_v6, %v2294_v28  ;;  %v2350_v25 = vmul.f32 %v2342_v7, %v2294_v28  ;;  %v2345_v41 = vmul.f32 %v2341_v6, %v5876_v52  ;;  %v2346_v57 = vmul.f32 %v2342_v7, %v5884_v17 }
 0xce9   :  { %v2347_v55 = vmul.f32 %v2339_v45, %v2293_v31  ;;  %v2348_v37 = vmul.f32 %v2340_v19, %v2293_v31  ;;  %v2343_v40 = vmul.f32 %v2339_v45, %v5879_v34  ;;  %v2344_v60 = vmul.f32 %v2340_v19, %v5889_v49 }
 0xcea   :  { %v2363_v14 = vsub.f32 %v2354_v30, %v2349_v22  ;;  %v2364_v12 = vsub.f32 %v2359_v9, %v2350_v25 }
 0xceb   :  { %v2361_v16 = vsub.f32 %v2354_v30, %v2347_v55  ;;  %v2362_v63 = vsub.f32 %v2359_v9, %v2348_v37 }
 0xcec   :  { %v2367_v62 = vadd.f32 %v2363_v14, %v2345_v41  ;;  %v2368_v2 = vadd.f32 %v2364_v12, %v2346_v57 }
 0xced   :  { %v2365_v18 = vadd.f32 %v2361_v16, %v2343_v40  ;;  %v2366_v61 = vadd.f32 %v2362_v63, %v2344_v60 }
 0xcee   :  { %v2379_v13 = vpack.c.bf16 %v2368_v2, %v2367_v62 }
 0xcef   :  { %v2378_v36 = vpack.c.bf16 %v2366_v61, %v2365_v18 }
 0xcf1   :  { %4550 = vmatprep.subr.bf16.mxu0 %v2378_v36 }
 0xcf2   :  { %4551 = vmatpush3.bf16.msra.mxu0 %v2378_v36 }
 0xcf3   :  { %4560 = vmatprep.subr.bf16.mxu0 %v2379_v13 }
 0xcf5   :  { %4553 = vmatmul.mubr.msk.bf16.vlgmr.msra.gmra.mrb[52].mxu0 %vm634_vm2, %v4725_v47 }
 0xcf6   :  { %4561 = vmatpush3.bf16.msra.mxu0 %v2379_v13  ;;  %4556 = vmatprep.mubr.msk.bf16.mxu0 %vm634_vm2, %v4726_v54 }
 0xcf7   :  { %4570 = vmatprep.subr.bf16.mxu0 %v4987_v15 }
 0xcfd   :  { %4557 = vmatmul.mubr.msk.bf16.gmra.mrb[56].mxu0 %vm634_vm2, %v4727_v0 }
 0xcfe   :  { %4562 = vmatprep.mubr.msk.bf16.mxu0 %vm634_vm2, %v5868_v39 }
 0xd05   :  { %4563 = vmatmul.mubr.msk.bf16.vlgmr.msra.gmra.mrb[60].mxu0 %vm634_vm2, %v4725_v47 }
 0xd06   :  { %4566 = vmatprep.mubr.msk.bf16.mxu0 %vm634_vm2, %v4726_v54 }
 0xd0d   :  { %4567 = vmatmul.mubr.msk.bf16.gmra.mrb[64].mxu0 %vm634_vm2, %v4727_v0 }
 0xd0e   :  { %4578 = vmatprep.mubr.msk.bf16.mxu0 %vm4988_vm3, %v4987_v15 }
 0xdc8   :  { %v4554_v53 = vpop.f32.mrb[52].mxu0 }
 0xdc9   :  { %v5937_v5 = vadd.f32 %v4554_v53, %v2401_v4  ;;  %v2494_v39 = vpop.f32.mrb[53].mxu0 }
 0xdca   :  { %v5942_v32 = vadd.f32 %v2494_v39, %v5931_v1  ;;  %v4555_v43 = vpop.f32.mrb[54].mxu0 }
 0xdcb   :  { %v2592_v26 = vmul.f32 %v5937_v5, %v5937_v5  ;;  %v5947_v51 = vadd.f32 %v4555_v43, %v5935_v11  ;;  %v2497_v50 = vpop.f32.mrb[55].mxu0 }
 0xdcc   :  { %v2590_v27 = vmul.f32 %v5942_v32, %v5942_v32  ;;  %v5954_v28 = vadd.f32 %v2497_v50, %v5933_v3 }
 0xdcd   :  { %v2608_v29 = vmul.f32 %v2592_v26, %v5937_v5  ;;  %v2593_v31 = vmul.f32 %v5947_v51, %v5947_v51 }
 0xdce   :  { %v2606_v35 = vmul.f32 %v2590_v27, %v5942_v32  ;;  %v2591_v8 = vmul.f32 %v5954_v28, %v5954_v28 }
 0xdcf   :  { %v2624_v23 = vmul.f32 0.044715, %v2608_v29  ;;  %v2609_v38 = vmul.f32 %v2593_v31, %v5947_v51 }
 0xdd0   :  { %v2622_v20 = vmul.f32 0.044715, %v2606_v35  ;;  %v2607_v46 = vmul.f32 %v2591_v8, %v5954_v28  ;;  %v4558_v21 = vpop.f32.mrb[56].mxu0 }
 0xdd1   :  { %v2640_v24 = vadd.f32 %v2624_v23, %v5937_v5  ;;  %v2625_v42 = vmul.f32 0.044715, %v2609_v38  ;;  %v5968_v58 = vadd.f32 %v4558_v21, %v5963_v56  ;;  %v2510_v33 = vpop.f32.mrb[57].mxu0 }
 0xdd2   :  { %v2638_v44 = vadd.f32 %v2622_v20, %v5942_v32  ;;  %v2623_v6 = vmul.f32 0.044715, %v2607_v46  ;;  %v5974_v7 = vadd.f32 %v2510_v33, %v5939_v10  ;;  %v4559_v45 = vpop.f32.mrb[58].mxu0 }
 0xdd3   :  { %v2656_v19 = vmul.f32 0.7978846, %v2640_v24  ;;  %v2641_v22 = vadd.f32 %v2625_v42, %v5947_v51  ;;  %v2596_v25 = vmul.f32 %v5968_v58, %v5968_v58  ;;  %v5980_v30 = vadd.f32 %v4559_v45, %v5970_v48  ;;  %v2513_v9 = vpop.f32.mrb[59].mxu0 }
 0xdd4   :  { %v2654_v55 = vmul.f32 0.7978846, %v2638_v44  ;;  %v2639_v37 = vadd.f32 %v2623_v6, %v5954_v28  ;;  %v2594_v41 = vmul.f32 %v5974_v7, %v5974_v7  ;;  %v5986_v57 = vadd.f32 %v2513_v9, %v5949_v59 }
 0xdd5   :  { %4870 = vtanh.f32 %v2656_v19  ;;  %v2657_v14 = vmul.f32 0.7978846, %v2641_v22  ;;  %v2612_v12 = vmul.f32 %v2596_v25, %v5968_v58  ;;  %v2597_v40 = vmul.f32 %v5980_v30, %v5980_v30 }
 0xdd6   :  { %4872 = vtanh.f32 %v2654_v55  ;;  %v2655_v60 = vmul.f32 0.7978846, %v2639_v37  ;;  %v2610_v16 = vmul.f32 %v2594_v41, %v5974_v7  ;;  %v2595_v63 = vmul.f32 %v5986_v57, %v5986_v57 }
 0xdd7   :  { %4874 = vtanh.f32 %v2657_v14  ;;  %v2628_v18 = vmul.f32 0.044715, %v2612_v12  ;;  %v2613_v61 = vmul.f32 %v2597_v40, %v5980_v30 }
 0xdd8   :  { %4876 = vtanh.f32 %v2655_v60  ;;  %v2626_v62 = vmul.f32 0.044715, %v2610_v16  ;;  %v2611_v2 = vmul.f32 %v2595_v63, %v5986_v57  ;;  %v4564_v36 = vpop.f32.mrb[60].mxu0 }
 0xdd9   :  { %v2644_v13 = vadd.f32 %v2628_v18, %v5968_v58  ;;  %v2629_v47 = vmul.f32 0.044715, %v2613_v61  ;;  %v5997_v54 = vadd.f32 %v4564_v36, %v2401_v4  ;;  %v2559_v0 = vpop.f32.mrb[61].mxu0 }
 0xdda   :  { %v2642_v53 = vadd.f32 %v2626_v62, %v5974_v7  ;;  %v2627_v39 = vmul.f32 0.044715, %v2611_v2  ;;  %v6001_v43 = vadd.f32 %v2559_v0, %v5931_v1  ;;  %v4565_v26 = vpop.f32.mrb[62].mxu0 }
 0xddb   :  { %v2660_v50 = vmul.f32 0.7978846, %v2644_v13  ;;  %v2645_v27 = vadd.f32 %v2629_v47, %v5980_v30  ;;  %v2600_v29 = vmul.f32 %v5997_v54, %v5997_v54  ;;  %v6007_v31 = vadd.f32 %v4565_v26, %v5935_v11  ;;  %v2562_v35 = vpop.f32.mrb[63].mxu0 }
 0xddc   :  { %v2658_v4 = vmul.f32 0.7978846, %v2642_v53  ;;  %v2643_v8 = vadd.f32 %v2627_v39, %v5986_v57  ;;  %v2598_v23 = vmul.f32 %v6001_v43, %v6001_v43  ;;  %v6013_v1 = vadd.f32 %v2562_v35, %v5933_v3 }
 0xddd   :  { %4878 = vtanh.f32 %v2660_v50  ;;  %v2661_v38 = vmul.f32 0.7978846, %v2645_v27  ;;  %v2616_v20 = vmul.f32 %v2600_v29, %v5997_v54  ;;  %v2601_v46 = vmul.f32 %v6007_v31, %v6007_v31 }
 0xdde   :  { %4880 = vtanh.f32 %v2658_v4  ;;  %v2659_v11 = vmul.f32 0.7978846, %v2643_v8  ;;  %v2614_v21 = vmul.f32 %v2598_v23, %v6001_v43  ;;  %v2599_v24 = vmul.f32 %v6013_v1, %v6013_v1 }
 0xddf   :  { %v4871_v42 = vpop.eup %4870  ;;  %4882 = vtanh.f32 %v2661_v38  ;;  %v2632_v33 = vmul.f32 0.044715, %v2616_v20  ;;  %v2617_v3 = vmul.f32 %v2601_v46, %v6007_v31 }
 0xde0   :  { %v4873_v44 = vpop.eup %4872  ;;  %v2688_v6 = vadd.f32 1.0, %v4871_v42  ;;  %4884 = vtanh.f32 %v2659_v11  ;;  %v2630_v45 = vmul.f32 0.044715, %v2614_v21  ;;  %v2615_v19 = vmul.f32 %v2599_v24, %v6013_v1  ;;  %v4568_v22 = vpop.f32.mrb[64].mxu0 }
 0xde1   :  { %v4875_v25 = vpop.eup %4874  ;;  %v2686_v9 = vadd.f32 1.0, %v4873_v44  ;;  %v2648_v55 = vadd.f32 %v2632_v33, %v5997_v54  ;;  %v2633_v37 = vmul.f32 0.044715, %v2617_v3  ;;  %v2575_v41 = vpop.f32.mrb[65].mxu0  ;;  %v6026_v16 = vadd.f32 %v4568_v22, %v5963_v56 }
 0xde2   :  { %v4877_v14 = vpop.eup %4876  ;;  %v2689_v12 = vadd.f32 1.0, %v4875_v25  ;;  %v2646_v40 = vadd.f32 %v2630_v45, %v6001_v43  ;;  %v2631_v60 = vmul.f32 0.044715, %v2615_v19  ;;  %v4569_v63 = vpop.f32.mrb[66].mxu0  ;;  %v2704_v13 = vmul.f32 0.5, %v2688_v6 }
 0xde3   :  { %v2702_v18 = vmul.f32 0.5, %v2686_v9  ;;  %v2687_v61 = vadd.f32 1.0, %v4877_v14  ;;  %v2664_v62 = vmul.f32 0.7978846, %v2648_v55  ;;  %v2649_v2 = vadd.f32 %v2633_v37, %v6007_v31  ;;  %v2578_v36 = vpop.f32.mrb[67].mxu0 }
 0xde4   :  { %v2705_v47 = vmul.f32 0.5, %v2689_v12  ;;  %v2662_v0 = vmul.f32 0.7978846, %v2646_v40  ;;  %v2647_v53 = vadd.f32 %v2631_v60, %v6013_v1  ;;  %v2604_v29 = vmul.f32 %v6026_v16, %v6026_v16 }
 0xde5   :  { %v2718_v39 = vmul.f32 %v2702_v18, %v5942_v32  ;;  %v2703_v26 = vmul.f32 0.5, %v2687_v61  ;;  %4886 = vtanh.f32 %v2664_v62  ;;  %v2665_v50 = vmul.f32 0.7978846, %v2649_v2 }
 0xde6   :  { %v2721_v56 = vmul.f32 %v2705_v47, %v5947_v51  ;;  %4888 = vtanh.f32 %v2662_v0  ;;  %v2663_v27 = vmul.f32 0.7978846, %v2647_v53  ;;  %v6036_v8 = vadd.f32 %v2575_v41, %v5939_v10 }
 0xde7   :  { %v4879_v35 = vpop.eup %4878  ;;  %v2719_v4 = vmul.f32 %v2703_v26, %v5954_v28  ;;  %4890 = vtanh.f32 %v2665_v50  ;;  %v6039_v23 = vadd.f32 %v4569_v63, %v5970_v48  ;;  %v2620_v51 = vmul.f32 %v2604_v29, %v6026_v16 }
 0xde8   :  { %v4881_v32 = vpop.eup %4880  ;;  %v2692_v38 = vadd.f32 1.0, %v4879_v35  ;;  %4892 = vtanh.f32 %v2663_v27  ;;  %v6043_v20 = vadd.f32 %v2578_v36, %v5949_v59  ;;  %v2602_v28 = vmul.f32 %v6036_v8, %v6036_v8 }
 0xde9   :  { %v4883_v46 = vpop.eup %4882  ;;  %v2690_v11 = vadd.f32 1.0, %v4881_v32  ;;  %v2605_v10 = vmul.f32 %v6039_v23, %v6039_v23  ;;  %v2737_v21 = vpack.c.bf16 %v2719_v4, %v2718_v39  ;;  %v2636_v33 = vmul.f32 0.044715, %v2620_v51 }
 0xdea   :  { %v4885_v24 = vpop.eup %4884  ;;  %v2708_v48 = vmul.f32 0.5, %v2692_v38  ;;  %v2693_v42 = vadd.f32 1.0, %v4883_v46  ;;  %v2603_v3 = vmul.f32 %v6043_v20, %v6043_v20  ;;  %v2618_v59 = vmul.f32 %v2602_v28, %v6036_v8 }
 0xdeb   :  { %v2706_v44 = vmul.f32 0.5, %v2690_v11  ;;  %v2691_v6 = vadd.f32 1.0, %v4885_v24  ;;  %v2621_v45 = vmul.f32 %v2605_v10, %v6039_v23  ;;  %4571 = vmatpush3.bf16.msra.mxu0 %v2737_v21  ;;  %v2720_v19 = vmul.f32 %v2704_v13, %v5937_v5  ;;  %v4728_v11 = vld [vmem:[%s6500_s7 + $0x10] sm:$0xff]  }
 0xdec   :  { %v2709_v22 = vmul.f32 0.5, %v2693_v42  ;;  %v2652_v25 = vadd.f32 %v2636_v33, %v6026_v16  ;;  %v2619_v9 = vmul.f32 %v2603_v3, %v6043_v20  ;;  %4572 = vmatprep.subr.bf16.mxu0 %v4987_v15  ;;  %v2724_v55 = vmul.f32 %v2708_v48, %v5968_v58 }
 0xded   :  { %v2707_v37 = vmul.f32 0.5, %v2691_v6  ;;  %v2634_v41 = vmul.f32 0.044715, %v2618_v59  ;;  %v2637_v14 = vmul.f32 0.044715, %v2621_v45  ;;  %v2738_v63 = vpack.c.bf16 %v2721_v56, %v2720_v19 }
 0xdee   :  { %v2725_v12 = vmul.f32 %v2709_v22, %v5980_v30  ;;  %v2668_v40 = vmul.f32 0.7978846, %v2652_v25  ;;  %v2635_v60 = vmul.f32 0.044715, %v2619_v9  ;;  %v2722_v5 = vmul.f32 %v2706_v44, %v5974_v7 }
 0xdef   :  { %v4887_v18 = vpop.eup %4886  ;;  %v2723_v61 = vmul.f32 %v2707_v37, %v5986_v57  ;;  %v2650_v62 = vadd.f32 %v2634_v41, %v6036_v8  ;;  %v2653_v2 = vadd.f32 %v2637_v14, %v6039_v23  ;;  %4573 = vmatpush3.bf16.msra.mxu0 %v2738_v63 }
 0xdf0   :  { %v4889_v36 = vpop.eup %4888  ;;  %v2696_v13 = vadd.f32 1.0, %v4887_v18  ;;  %4894 = vtanh.f32 %v2668_v40  ;;  %v2651_v58 = vadd.f32 %v2635_v60, %v6043_v20  ;;  %v2740_v47 = vpack.c.bf16 %v2725_v12, %v2724_v55  ;;  %4574 = vmatprep.subr.bf16.mxu0 %v4987_v15  ;;  %v2750_v55 = vpop.permute.xlu1 %2749 }
 0xdf1   :  { %v4891_v30 = vpop.eup %4890  ;;  %v2694_v0 = vadd.f32 1.0, %v4889_v36  ;;  %v2666_v53 = vmul.f32 0.7978846, %v2650_v62  ;;  %v2669_v39 = vmul.f32 0.7978846, %v2653_v2  ;;  %v2739_v7 = vpack.c.bf16 %v2723_v61, %v2722_v5  ;;  %v2755_v12 = vpop.permute.xlu0 %2754 }
 0xdf2   :  { %v4893_v26 = vpop.eup %4892  ;;  %v2712_v57 = vmul.f32 0.5, %v2696_v13  ;;  %v2697_v50 = vadd.f32 1.0, %v4891_v30  ;;  %v2667_v56 = vmul.f32 0.7978846, %v2651_v58 }
 0xdf3   :  { %v2710_v27 = vmul.f32 0.5, %v2694_v0  ;;  %v2695_v29 = vadd.f32 1.0, %v4893_v26  ;;  %4896 = vtanh.f32 %v2666_v53  ;;  %4575 = vmatpush3.bf16.msra.mxu0 %v2739_v7  ;;  %v4177_v26 = vld [vmem:[%s6495_s2 + $0x158] sm:$0xff] }
 0xdf4   :  { %v2713_v35 = vmul.f32 0.5, %v2697_v50  ;;  %4898 = vtanh.f32 %v2669_v39  ;;  %4576 = vmatprep.subr.bf16.mxu0 %v4987_v15  ;;  %v2728_v32 = vmul.f32 %v2712_v57, %v5997_v54  ;;  %v4176_v57 = vld [vmem:[%s6495_s2 + $0x150] sm:$0xff]  ;;  %v4178_v50 = vld [vmem:[%s6495_s2 + $0x160] sm:$0xff] }
 0xdf5   :  { %v2711_v4 = vmul.f32 0.5, %v2695_v29  ;;  %4900 = vtanh.f32 %v2667_v56  ;;  %v2726_v51 = vmul.f32 %v2710_v27, %v6001_v43  ;;  %v4179_v56 = vld [vmem:[%s6495_s2 + $0x168] sm:$0xff]  ;;  %v4188_v27 = vld [vmem:[%s6495_s2 + $0x170] sm:$0xff]  ;;  %v4189_v29 = vld [vmem:[%s6495_s2 + $0x178] sm:$0xff] }
 0xdf6   :  { %v2729_v38 = vmul.f32 %v2713_v35, %v6007_v31  ;;  %v4190_v35 = vld [vmem:[%s6495_s2 + $0x180] sm:$0xff] }
 0xdf7   :  { %v2727_v46 = vmul.f32 %v2711_v4, %v6013_v1  ;;  %4577 = vmatpush3.bf16.msra.mxu0 %v2740_v47  ;;  %v4191_v4 = vld [vmem:[%s6495_s2 + $0x188] sm:$0xff] }
 0xdf8   :  { %v2742_v28 = vpack.c.bf16 %v2729_v38, %v2728_v32  ;;  %v4192_v32 = vld [vmem:[%s6495_s2 + $0x190] sm:$0xff]  ;;  %v4193_v38 = vld [vmem:[%s6495_s2 + $0x198] sm:$0xff] }
 0xdf9   :  { %v2741_v10 = vpack.c.bf16 %v2727_v46, %v2726_v51  ;;  %v4194_v51 = vld [vmem:[%s6495_s2 + $0x1a0] sm:$0xff]  ;;  %v4729_v46 = vld [vmem:[%s6497_s4 + $0x30] sm:$0xff]  }
 0xdfa   :  { %v4895_v21 = vpop.eup %4894  ;;  %4579 = vmatmul.mubr.msk.bf16.vlgmr.msra.gmra.mrb[68].mxu0 %vm77_vm0, %v4728_v11  ;;  %4594 = vmatprep.subr.bf16.mxu0 %v4729_v46 }
 0xdfb   :  { %v2700_v24 = vadd.f32 1.0, %v4895_v21  ;;  %4583 = vmatpush3.bf16.msra.mxu1 %v2741_v10  ;;  %4595 = vmatpush3.bf16.msra.mxu0 %v4729_v46  ;;  %v4210_v10 = vld [vmem:[%s6495_s2 + $0x1b0] sm:$0xff]  ;;  %v4211_v21 = vld [vmem:[%s6495_s2 + $0x1b8] sm:$0xff] }
 0xdfc   :  { %4584 = vmatprep.subr.bf16.mxu1 %v4987_v15 }
 0xdfd   :  { %v4897_v54 = vpop.eup %4896  ;;  %v2716_v42 = vmul.f32 0.5, %v2700_v24 }
 0xdfe   :  { %v4899_v31 = vpop.eup %4898  ;;  %v2698_v48 = vadd.f32 1.0, %v4897_v54 }
 0xdff   :  { %v4901_v43 = vpop.eup %4900  ;;  %v2701_v1 = vadd.f32 1.0, %v4899_v31  ;;  %4585 = vmatpush3.bf16.msra.mxu1 %v2742_v28  ;;  %v2732_v59 = vmul.f32 %v2716_v42, %v6026_v16  ;;  %v4730_v28 = vld [vmem:[%s6497_s4 + $0x38] sm:$0xff]  }
 0xe00   :  { %v2714_v33 = vmul.f32 0.5, %v2698_v48  ;;  %v2699_v3 = vadd.f32 1.0, %v4901_v43  ;;  %4586 = vmatprep.subr.bf16.mxu1 %v4987_v15  ;;  %4596 = vmatprep.subr.bf16.mxu0 %v4730_v28 }
 0xe01   :  { %v2717_v44 = vmul.f32 0.5, %v2701_v1  ;;  %4597 = vmatpush3.bf16.msra.mxu0 %v4730_v28 }
 0xe02   :  { %v2715_v6 = vmul.f32 0.5, %v2699_v3  ;;  %v2730_v19 = vmul.f32 %v2714_v33, %v6036_v8 }
 0xe03   :  { %v2733_v45 = vmul.f32 %v2717_v44, %v6039_v23 }
 0xe04   :  { %v2731_v22 = vmul.f32 %v2715_v6, %v6043_v20 }
 0xe05   :  { %v2744_v25 = vpack.c.bf16 %v2733_v45, %v2732_v59 }
 0xe06   :  { %v2743_v9 = vpack.c.bf16 %v2731_v22, %v2730_v19 }
 0xe08   :  { %4587 = vmatpush3.bf16.msra.mxu1 %v2743_v9 }
 0xe09   :  { %4588 = vmatprep.subr.bf16.mxu1 %v4987_v15 }
 0xe0c   :  { %4589 = vmatpush3.bf16.msra.mxu1 %v2744_v25 }
 0xe0f   :  { %4591 = vmatmul.mubr.msk.bf16.vlgmr.msra.gmra.mrb[24].mxu1 %vm77_vm0, %v4728_v11  ;;  %v4195_v11 = vld [vmem:[%s6495_s2 + $0x1a8] sm:$0xff] }
 0xecd   :  { %v2799_v37 = vpop.f32.mrb[68].mxu0 }
 0xece   :  { %v2800_v41 = vadd.f32 %v2799_v37, %v2750_v55  ;;  %v4580_v14 = vpop.f32.mrb[69].mxu0  ;;  %v4140_v37 = vld [vmem:[%s6494_s1 + $0x1c] ss:$0 sm:$0xff] }
 0xecf   :  { %v2802_v16 = vpop.f32.mrb[70].mxu0 }
 0xed0   :  { %v6083_v23 = vadd.f32 %v2800_v41, %v5879_v34  ;;  %v2803_v8 = vadd.f32 %v2802_v16, %v2755_v12  ;;  %v4581_v40 = vpop.f32.mrb[71].mxu0 }
 0xed2   :  { %v6086_v20 = vadd.f32 %v2803_v8, %v5889_v49  ;;  %v2853_v60 = vsel %vm135_vm1, %v6083_v23, 0.0  ;;  %v2869_v5 = vmul.f32 %v6083_v23, %v6083_v23 }
 0xed3   :  { %2854 = vadd.xlane.f32.xlu1 %v2853_v60 }
 0xed4   :  { %v2856_v63 = vsel %vm135_vm1, %v6086_v20, 0.0  ;;  %v2870_v18 = vmul.f32 %v6086_v20, %v6086_v20  ;;  %v2873_v49 = vsel %vm135_vm1, %v2869_v5, 0.0 }
 0xed5   :  { %2857 = vadd.xlane.f32.xlu0 %v2856_v63 }
 0xed6   :  { %v2876_v34 = vsel %vm135_vm1, %v2870_v18, 0.0  ;;  %v4141_v18 = vld [vmem:[%s6494_s1 + $0x1d] ss:$0 sm:$0xff] }
 0xed7   :  { %2877 = vadd.xlane.f32.xlu1 %v2876_v34 }
 0xed9   :  { %2874 = vadd.xlane.f32.xlu0 %v2873_v49 }
 0xee2   :  { %v2840_v61 = vpop.f32.mrb[24].mxu1 }
 0xee3   :  { %v2841_v62 = vadd.f32 %v2840_v61, %v2750_v55  ;;  %v4592_v2 = vpop.f32.mrb[25].mxu1 }
 0xee4   :  { %v2843_v36 = vpop.f32.mrb[26].mxu1 }
 0xee5   :  { %v6099_v13 = vadd.f32 %v2841_v62, %v5876_v52  ;;  %v2844_v58 = vadd.f32 %v2843_v36, %v2755_v12  ;;  %v4593_v47 = vpop.f32.mrb[27].mxu1 }
 0xee7   :  { %v6102_v30 = vadd.f32 %v2844_v58, %v5884_v17  ;;  %v2859_v0 = vsel %vm135_vm1, %v6099_v13, 0.0  ;;  %v2871_v53 = vmul.f32 %v6099_v13, %v6099_v13 }
 0xee8   :  { %2860 = vadd.xlane.f32.xlu0 %v2859_v0 }
 0xee9   :  { %v2862_v39 = vsel %vm135_vm1, %v6102_v30, 0.0  ;;  %v2872_v7 = vmul.f32 %v6102_v30, %v6102_v30  ;;  %v2879_v52 = vsel %vm135_vm1, %v2871_v53, 0.0 }
 0xeea   :  { %2863 = vadd.xlane.f32.xlu1 %v2862_v39 }
 0xeeb   :  { %v2882_v17 = vsel %vm135_vm1, %v2872_v7, 0.0 }
 0xeec   :  { %2880 = vadd.xlane.f32.xlu0 %v2879_v52 }
 0xeee   :  { %2883 = vadd.xlane.f32.xlu1 %v2882_v17 }
 0xeff   :  { %3243 = vperm.xlu1 %4679, %v4177_v26  }
 0xf02   :  { %3238 = vperm.xlu0 %4678, %v4176_v57  }
 0xf03   :  { %3260 = vperm.xlu1 %4679, %v4178_v50  }
 0xf06   :  { %3265 = vperm.xlu0 %4678, %v4179_v56  }
 0xf07   :  { %3297 = vperm.xlu1 %4679, %v4188_v27  }
 0xf0a   :  { %3302 = vperm.xlu0 %4678, %v4189_v29  }
 0xf0b   :  { %3307 = vperm.xlu1 %4679, %v4190_v35  }
 0xf0e   :  { %3312 = vperm.xlu0 %4678, %v4191_v4  }
 0xf0f   :  { %3317 = vperm.xlu1 %4679, %v4192_v32  }
 0xf12   :  { %3322 = vperm.xlu0 %4678, %v4193_v38  }
 0xf13   :  { %3327 = vperm.xlu1 %4679, %v4194_v51  }
 0xf16   :  { %3332 = vperm.xlu0 %4678, %v4195_v11  }
 0xf17   :  { %3656 = vperm.xlu1 %4679, %v4210_v10  }
 0xf1a   :  { %3661 = vperm.xlu0 %4678, %v4211_v21  }
 0xf60   :  { %v2855_v24 = vpop.xlane.xlu1 %2854 }
 0xf61   :  { %v2865_v31 = vmul.f32 0.03125, %v2855_v24 }
 0xf62   :  { %v2858_v54 = vpop.xlane.xlu0 %2857 }
 0xf63   :  { %v2866_v48 = vmul.f32 0.03125, %v2858_v54  ;;  %v2889_v3 = vmul.f32 %v2865_v31, %v2865_v31  ;;  %v4731_v54 = vld [vmem:[%s6498_s5 + $0xc0] sm:$0xff]  }
 0xf64   :  { %v2878_v43 = vpop.xlane.xlu1 %2877  ;;  %4602 = vmatprep.subr.bf16.mxu1 %v4731_v54 }
 0xf65   :  { %v2890_v42 = vmul.f32 %v2866_v48, %v2866_v48  ;;  %v2886_v1 = vmul.f32 0.03125, %v2878_v43  ;;  %4603 = vmatpush3.bf16.msra.mxu1 %v4731_v54  ;;  %v4734_v43 = vld [vmem:[%s6498_s5 + $0xd8] sm:$0xff]  }
 0xf66   :  { %v2875_v33 = vpop.xlane.xlu0 %2874 }
 0xf67   :  { %v2894_v44 = vsub.f32 %v2886_v1, %v2890_v42  ;;  %v2885_v6 = vmul.f32 0.03125, %v2875_v33  ;;  %v4735_v42 = vld [vmem:[%s6498_s5 + $0xe0] sm:$0xff]   ;;  %v4736_v1 = vld [vmem:[%s6498_s5 + $0xe8] sm:$0xff]   ;;  %v4737_v33 = vld [vmem:[%s6498_s5 + $0xf0] sm:$0xff]  }
 0xf69   :  { %v2898_v59 = vmax.f32 %v2894_v44, 0.0  ;;  %v2893_v45 = vsub.f32 %v2885_v6, %v2889_v3  ;;  %v4738_v3 = vld [vmem:[%s6498_s5 + $0xf8] sm:$0xff]  }
 0xf6a   :  { %v4146_v44 = vld [vmem:[%s6494_s1 + $0x1e] ss:$0 sm:$0xff] }
 0xf6b   :  { %v2902_v19 = vadd.f32 1e-05, %v2898_v59  ;;  %v2897_v22 = vmax.f32 %v2893_v45, 0.0 }
 0xf6d   :  { %4902 = vrsqrt.f32 %v2902_v19  ;;  %v2901_v25 = vadd.f32 1e-05, %v2897_v22 }
 0xf6f   :  { %4904 = vrsqrt.f32 %v2901_v25 }
 0xf75   :  { %v2861_v9 = vpop.xlane.xlu0 %2860 }
 0xf76   :  { %v2867_v55 = vmul.f32 0.03125, %v2861_v9 }
 0xf77   :  { %v2864_v41 = vpop.xlane.xlu1 %2863  ;;  %v4903_v14 = vpop.eup %4902 }
 0xf78   :  { %v2868_v12 = vmul.f32 0.03125, %v2864_v41  ;;  %v2914_v8 = vmul.f32 %v4903_v14, %v4140_v37  ;;  %v2891_v60 = vmul.f32 %v2867_v55, %v2867_v55 }
 0xf79   :  { %v2881_v16 = vpop.xlane.xlu0 %2880  ;;  %v4905_v40 = vpop.eup %4904 }
 0xf7a   :  { %v2887_v63 = vmul.f32 0.03125, %v2881_v16  ;;  %v2913_v34 = vmul.f32 %v4905_v40, %v4140_v37  ;;  %v2922_v49 = vmul.f32 %v2914_v8, %v2866_v48  ;;  %v2892_v61 = vmul.f32 %v2868_v12, %v2868_v12  ;;  %v4733_v48 = vld [vmem:[%s6498_s5 + $0xd0] sm:$0xff]  }
 0xf7b   :  { %v2884_v5 = vpop.xlane.xlu1 %2883  ;;  %v2918_v39 = vmul.f32 %v2914_v8, %v6086_v20 }
 0xf7c   :  { %v2895_v62 = vsub.f32 %v2887_v63, %v2891_v60  ;;  %v2888_v2 = vmul.f32 0.03125, %v2884_v5  ;;  %v2921_v36 = vmul.f32 %v2913_v34, %v2865_v31  ;;  %v2930_v58 = vsub.f32 %v4141_v18, %v2922_v49  ;;  %v4732_v31 = vld [vmem:[%s6498_s5 + $0xc8] sm:$0xff]  }
 0xf7d   :  { %v2917_v53 = vmul.f32 %v2913_v34, %v6083_v23  ;;  %4604 = vmatprep.subr.bf16.mxu1 %v4732_v31 }
 0xf7e   :  { %v2899_v47 = vmax.f32 %v2895_v62, 0.0  ;;  %v2896_v0 = vsub.f32 %v2888_v2, %v2892_v61  ;;  %v2929_v7 = vsub.f32 %v4141_v18, %v2921_v36  ;;  %v2934_v57 = vadd.f32 %v2930_v58, %v2918_v39  ;;  %4605 = vmatpush3.bf16.msra.mxu1 %v4732_v31 }
 0xf7f   :  { %4606 = vmatprep.subr.bf16.mxu1 %v4733_v48 }
 0xf80   :  { %v2903_v52 = vadd.f32 1e-05, %v2899_v47  ;;  %v2900_v17 = vmax.f32 %v2896_v0, 0.0  ;;  %v2933_v26 = vadd.f32 %v2929_v7, %v2917_v53 }
 0xf82   :  { %4906 = vrsqrt.f32 %v2903_v52  ;;  %v2904_v50 = vadd.f32 1e-05, %v2900_v17  ;;  %v2937_v56 = vpack.c.bf16 %v2934_v57, %v2933_v26  ;;  %4607 = vmatpush3.bf16.msra.mxu1 %v4733_v48 }
 0xf83   :  { %4608 = vmatprep.subr.bf16.mxu1 %v4734_v43 }
 0xf84   :  { %4908 = vrsqrt.f32 %v2904_v50  ;;  %4598 = vmatprep.mubr.msk.bf16.mxu0 %vm135_vm1, %v2937_v56 }
 0xf86   :  { %4609 = vmatpush3.bf16.msra.mxu1 %v4734_v43 }
 0xf87   :  { %4610 = vmatprep.subr.bf16.mxu1 %v4735_v42 }
 0xf8a   :  { %4611 = vmatpush3.bf16.msra.mxu1 %v4735_v42 }
 0xf8b   :  { %4612 = vmatprep.subr.bf16.mxu1 %v4736_v1 }
 0xf8c   :  { %v4907_v27 = vpop.eup %4906 }
 0xf8d   :  { %v2915_v29 = vmul.f32 %v4907_v27, %v4140_v37 }
 0xf8e   :  { %v4909_v35 = vpop.eup %4908  ;;  %4613 = vmatpush3.bf16.msra.mxu1 %v4736_v1 }
 0xf8f   :  { %v2923_v4 = vmul.f32 %v2915_v29, %v2867_v55  ;;  %v2916_v32 = vmul.f32 %v4909_v35, %v4140_v37  ;;  %v2919_v46 = vmul.f32 %v2915_v29, %v6099_v13  ;;  %4614 = vmatprep.subr.bf16.mxu1 %v4737_v33 }
 0xf91   :  { %v2924_v38 = vmul.f32 %v2916_v32, %v2868_v12  ;;  %v2931_v51 = vsub.f32 %v4141_v18, %v2923_v4  ;;  %v2920_v11 = vmul.f32 %v2916_v32, %v6102_v30 }
 0xf92   :  { %4615 = vmatpush3.bf16.msra.mxu1 %v4737_v33 }
 0xf93   :  { %v2932_v28 = vsub.f32 %v4141_v18, %v2924_v38  ;;  %v2935_v10 = vadd.f32 %v2931_v51, %v2919_v46  ;;  %4616 = vmatprep.subr.bf16.mxu1 %v4738_v3 }
 0xf95   :  { %v2936_v21 = vadd.f32 %v2932_v28, %v2920_v11  ;;  %v6207_v28 = vld [vmem:[%s6499_s6 + $0x60] sm:$0xff]  }
 0xf96   :  { %4617 = vmatpush3.bf16.msra.mxu1 %v4738_v3 }
 0xf97   :  { %v2938_v24 = vpack.c.bf16 %v2936_v21, %v2935_v10  ;;  %4654 = vmatprep.subr.bf16.mxu1 %v4987_v15  ;;  %v4167_v10 = vld [vmem:[%s6494_s1 + $0x1f] ss:$0 sm:$0xff] }
 0xf99   :  { %4599 = vmatmul.mubr.msk.bf16.vlgmr.msra.gmra.mrb[72].mxu0 %vm135_vm1, %v2938_v24 }
 0xf9a   :  { %4624 = vmatprep.mubr.msk.bf16.mxu0 %vm634_vm2, %v6207_v28 }
0x106c   :  { %v4600_v6 = vpop.f32.mrb[72].mxu0 }
0x106d   :  { %v3010_v59 = vadd.f32 %v4600_v6, %v4146_v44  ;;  %v3001_v45 = vpop.f32.mrb[73].mxu0 }
0x106e   :  { %v3002_v19 = vadd.f32 %v4146_v44, %v3001_v45  ;;  %v4601_v22 = vpop.f32.mrb[74].mxu0 }
0x106f   :  { %v3018_v25 = vmul.f32 %v3010_v59, %v3010_v59  ;;  %v3013_v9 = vadd.f32 %v4601_v22, %v4146_v44  ;;  %v3004_v55 = vpop.f32.mrb[75].mxu0 }
0x1070   :  { %v3016_v37 = vmul.f32 %v3002_v19, %v3002_v19  ;;  %v3005_v41 = vadd.f32 %v4146_v44, %v3004_v55 }
0x1071   :  { %v3022_v14 = vmul.f32 %v3018_v25, %v3010_v59  ;;  %v3019_v12 = vmul.f32 %v3013_v9, %v3013_v9 }
0x1072   :  { %v3020_v16 = vmul.f32 %v3016_v37, %v3002_v19  ;;  %v3017_v8 = vmul.f32 %v3005_v41, %v3005_v41 }
0x1073   :  { %v3026_v40 = vmul.f32 0.044715, %v3022_v14  ;;  %v3023_v60 = vmul.f32 %v3019_v12, %v3013_v9 }
0x1074   :  { %v3024_v63 = vmul.f32 0.044715, %v3020_v16  ;;  %v3021_v18 = vmul.f32 %v3017_v8, %v3005_v41 }
0x1075   :  { %v3030_v5 = vadd.f32 %v3026_v40, %v3010_v59  ;;  %v3027_v34 = vmul.f32 0.044715, %v3023_v60 }
0x1076   :  { %v3028_v49 = vadd.f32 %v3024_v63, %v3002_v19  ;;  %v3025_v61 = vmul.f32 0.044715, %v3021_v18 }
0x1077   :  { %v3034_v62 = vmul.f32 0.7978846, %v3030_v5  ;;  %v3031_v2 = vadd.f32 %v3027_v34, %v3013_v9 }
0x1078   :  { %v3032_v36 = vmul.f32 0.7978846, %v3028_v49  ;;  %v3029_v58 = vadd.f32 %v3025_v61, %v3005_v41 }
0x1079   :  { %4910 = vtanh.f32 %v3034_v62  ;;  %v3035_v47 = vmul.f32 0.7978846, %v3031_v2 }
0x107a   :  { %4912 = vtanh.f32 %v3032_v36  ;;  %v3033_v0 = vmul.f32 0.7978846, %v3029_v58 }
0x107b   :  { %4914 = vtanh.f32 %v3035_v47 }
0x107c   :  { %4916 = vtanh.f32 %v3033_v0 }
0x1083   :  { %v4911_v53 = vpop.eup %4910 }
0x1084   :  { %v4913_v39 = vpop.eup %4912  ;;  %v3042_v7 = vadd.f32 1.0, %v4911_v53 }
0x1085   :  { %v4915_v52 = vpop.eup %4914  ;;  %v3040_v17 = vadd.f32 1.0, %v4913_v39 }
0x1086   :  { %v4917_v26 = vpop.eup %4916  ;;  %v3046_v57 = vmul.f32 0.5, %v3042_v7  ;;  %v3043_v50 = vadd.f32 1.0, %v4915_v52 }
0x1087   :  { %v3041_v56 = vadd.f32 1.0, %v4917_v26  ;;  %v3044_v27 = vmul.f32 0.5, %v3040_v17 }
0x1088   :  { %v3047_v29 = vmul.f32 0.5, %v3043_v50  ;;  %v3050_v4 = vmul.f32 %v3046_v57, %v3010_v59 }
0x1089   :  { %v3045_v35 = vmul.f32 0.5, %v3041_v56  ;;  %v3048_v38 = vmul.f32 %v3044_v27, %v3002_v19 }
0x108a   :  { %v3051_v32 = vmul.f32 %v3047_v29, %v3013_v9 }
0x108b   :  { %v3049_v51 = vmul.f32 %v3045_v35, %v3005_v41 }
0x108c   :  { %v3053_v46 = vpack.c.bf16 %v3051_v32, %v3050_v4 }
0x108d   :  { %v3052_v11 = vpack.c.bf16 %v3049_v51, %v3048_v38 }
0x108f   :  { %4618 = vmatprep.mubr.bf16.mxu1 %v3052_v11 }
0x1090   :  { %4619 = vmatmul.mubr.bf16.vlgmr.msra.gmra.mrb[28].mxu1 %v3053_v46 }
0x1091   :  { %4662 = vmatprep.mubr.msk.bf16.mxu1 %vm4988_vm3, %v4987_v15 }
0x1163   :  { %v4620_v21 = vpop.f32.mrb[28].mxu1 }
0x1164   :  { %v3167_v24 = vadd.f32 %v4620_v21, %v4167_v10  ;;  %v3158_v54 = vpop.f32.mrb[29].mxu1 }
0x1165   :  { %v3159_v31 = vadd.f32 %v4167_v10, %v3158_v54  ;;  %v4621_v48 = vpop.f32.mrb[30].mxu1  ;;  %v3244_v54 = vpop.permute.xlu1 %3243 }
0x1166   :  { %v6215_v43 = vadd.f32 %v3167_v24, %v6099_v13  ;;  %v3170_v42 = vadd.f32 %v4621_v48, %v4167_v10  ;;  %v3161_v1 = vpop.f32.mrb[31].mxu1 }
0x1167   :  { %v6218_v33 = vadd.f32 %v3159_v31, %v6083_v23  ;;  %v3162_v3 = vadd.f32 %v4167_v10, %v3161_v1  ;;  %v3239_v31 = vpop.permute.xlu0 %3238 }
0x1168   :  { %v3204_v44 = vmul.f32 %v6215_v43, %v6215_v43  ;;  %v6223_v6 = vadd.f32 %v3170_v42, %v6102_v30  ;;  %v3191_v13 = vsel %vm135_vm1, %v6215_v43, 0.0 }
0x1169   :  { %v3202_v59 = vmul.f32 %v6218_v33, %v6218_v33  ;;  %v6228_v45 = vadd.f32 %v3162_v3, %v6086_v20  ;;  %v3182_v22 = vsel %vm135_vm1, %v6218_v33, 0.0 }
0x116a   :  { %v3192_v23 = vsel %vm135_vm1, %v6223_v6, 0.0  ;;  %v3205_v19 = vmul.f32 %v6223_v6, %v6223_v6  ;;  %v3215_v9 = vsel %vm135_vm1, %v3204_v44, 0.0 }
0x116b   :  { %v3193_v30 = vadd.f32 %v3192_v23, %v3191_v13  ;;  %v3183_v25 = vsel %vm135_vm1, %v6228_v45, 0.0  ;;  %v3203_v20 = vmul.f32 %v6228_v45, %v6228_v45  ;;  %v3206_v41 = vsel %vm135_vm1, %v3202_v59, 0.0 }
0x116c   :  { %v3216_v55 = vsel %vm135_vm1, %v3205_v19, 0.0  ;;  %v3184_v37 = vadd.f32 %v3183_v25, %v3182_v22  ;;  %v3261_v19 = vpop.permute.xlu1 %3260  ;;  %v3266_v22 = vpop.permute.xlu0 %3265 }
0x116d   :  { %v3194_v14 = vrot.slane %v3193_v30, 4  ;;  %v3217_v12 = vadd.f32 %v3216_v55, %v3215_v9  ;;  %v3207_v16 = vsel %vm135_vm1, %v3203_v20, 0.0 }
0x116e   :  { %v3185_v8 = vrot.slane %v3184_v37, 4  ;;  %v3208_v40 = vadd.f32 %v3207_v16, %v3206_v41 }
0x116f   :  { %v3195_v60 = vadd.f32 %v3194_v14, %v3193_v30  ;;  %v3218_v63 = vrot.slane %v3217_v12, 4 }
0x1170   :  { %v3186_v18 = vadd.f32 %v3185_v8, %v3184_v37  ;;  %v3209_v5 = vrot.slane %v3208_v40, 4 }
0x1171   :  { %v3196_v34 = vrot.slane %v3195_v60, 2  ;;  %v3219_v49 = vadd.f32 %v3218_v63, %v3217_v12 }
0x1172   :  { %v3187_v61 = vrot.slane %v3186_v18, 2  ;;  %v3210_v62 = vadd.f32 %v3209_v5, %v3208_v40 }
0x1173   :  { %v3197_v2 = vadd.f32 %v3196_v34, %v3195_v60  ;;  %v3220_v36 = vrot.slane %v3219_v49, 2  ;;  %v4740_v34 = vld [vmem:[%s6499_s6 + $0x68] sm:$0xff]  }
0x1174   :  { %v3188_v58 = vadd.f32 %v3187_v61, %v3186_v18  ;;  %v3211_v47 = vrot.slane %v3210_v62, 2  ;;  %v4742_v61 = vld [vmem:[%s6499_s6 + $0x78] sm:$0xff]  }
0x1175   :  { %v3221_v0 = vadd.f32 %v3220_v36, %v3219_v49  ;;  %v3198_v53 = vrot.slane %v3197_v2, 1  ;;  %v4741_v49 = vld [vmem:[%s6499_s6 + $0x70] sm:$0xff]  }
0x1176   :  { %v3212_v39 = vadd.f32 %v3211_v47, %v3210_v62  ;;  %v3189_v7 = vrot.slane %v3188_v58, 1  ;;  %v6270_v62 = vpop.permute.xlu1 %3297 }
0x1177   :  { %v3222_v52 = vrot.slane %v3221_v0, 1  ;;  %v3199_v17 = vadd.f32 %v3198_v53, %v3197_v2  ;;  %v6272_v2 = vpop.permute.xlu0 %3302 }
0x1178   :  { %v3213_v26 = vrot.slane %v3212_v39, 1  ;;  %v3190_v57 = vadd.f32 %v3189_v7, %v3188_v58 }
0x1179   :  { %v3223_v50 = vadd.f32 %v3222_v52, %v3221_v0  ;;  %v3201_v56 = vmul.f32 0.0625, %v3199_v17 }
0x117a   :  { %v3214_v27 = vadd.f32 %v3213_v26, %v3212_v39  ;;  %v3200_v29 = vmul.f32 0.0625, %v3190_v57  ;;  %v3308_v36 = vpop.permute.xlu1 %3307 }
0x117b   :  { %v3225_v35 = vmul.f32 0.0625, %v3223_v50  ;;  %v3227_v4 = vmul.f32 %v3201_v56, %v3201_v56  ;;  %v6274_v58 = vpop.permute.xlu0 %3312 }
0x117c   :  { %v3224_v32 = vmul.f32 0.0625, %v3214_v27  ;;  %v3226_v38 = vmul.f32 %v3200_v29, %v3200_v29 }
0x117d   :  { %v3229_v51 = vsub.f32 %v3225_v35, %v3227_v4 }
0x117e   :  { %v3228_v46 = vsub.f32 %v3224_v32, %v3226_v38  ;;  %v6278_v53 = vpop.permute.xlu1 %3317 }
0x117f   :  { %v3231_v11 = vmax.f32 %v3229_v51, 0.0  ;;  %v6288_v57 = vpop.permute.xlu0 %3322 }
0x1180   :  { %v3230_v10 = vmax.f32 %v3228_v46, 0.0 }
0x1181   :  { %v3233_v21 = vadd.f32 1e-05, %v3231_v11 }
0x1182   :  { %v3232_v24 = vadd.f32 1e-05, %v3230_v10  ;;  %v6302_v51 = vpop.permute.xlu1 %3327 }
0x1183   :  { %4918 = vrsqrt.f32 %v3233_v21 }
0x1184   :  { %4920 = vrsqrt.f32 %v3232_v24 }
0x118d   :  { %v4919_v48 = vpop.eup %4918 }
0x118e   :  { %v4921_v42 = vpop.eup %4920  ;;  %v3248_v1 = vmul.f32 %v4919_v48, %v3239_v31  ;;  %v3249_v3 = vmul.f32 %v4919_v48, %v3244_v54  ;;  %v6309_v48 = vpop.permute.xlu0 %3332 }
0x118f   :  { %v3246_v44 = vmul.f32 %v4921_v42, %v3239_v31  ;;  %v3247_v59 = vmul.f32 %v4921_v42, %v3244_v54 }
0x1190   :  { %v3256_v13 = vmul.f32 %v3248_v1, %v3201_v56  ;;  %v3257_v23 = vmul.f32 %v3249_v3, %v3201_v56  ;;  %v3252_v20 = vmul.f32 %v3248_v1, %v6215_v43  ;;  %v3253_v9 = vmul.f32 %v3249_v3, %v6223_v6 }
0x1191   :  { %v3254_v30 = vmul.f32 %v3246_v44, %v3200_v29  ;;  %v3255_v25 = vmul.f32 %v3247_v59, %v3200_v29  ;;  %v3250_v41 = vmul.f32 %v3246_v44, %v6218_v33  ;;  %v3251_v14 = vmul.f32 %v3247_v59, %v6228_v45 }
0x1192   :  { %v3270_v55 = vsub.f32 %v3261_v19, %v3256_v13  ;;  %v3271_v37 = vsub.f32 %v3266_v22, %v3257_v23 }
0x1193   :  { %v3268_v12 = vsub.f32 %v3261_v19, %v3254_v30  ;;  %v3269_v16 = vsub.f32 %v3266_v22, %v3255_v25 }
0x1194   :  { %v3274_v60 = vadd.f32 %v3270_v55, %v3252_v20  ;;  %v3275_v63 = vadd.f32 %v3271_v37, %v3253_v9 }
0x1195   :  { %v3272_v8 = vadd.f32 %v3268_v12, %v3250_v41  ;;  %v3273_v40 = vadd.f32 %v3269_v16, %v3251_v14 }
0x1196   :  { %v3286_v5 = vpack.c.bf16 %v3275_v63, %v3274_v60 }
0x1197   :  { %v3285_v18 = vpack.c.bf16 %v3273_v40, %v3272_v8 }
0x1199   :  { %4622 = vmatprep.subr.bf16.mxu0 %v3285_v18 }
0x119a   :  { %4623 = vmatpush3.bf16.msra.mxu0 %v3285_v18 }
0x119b   :  { %4632 = vmatprep.subr.bf16.mxu0 %v3286_v5 }
0x119d   :  { %4625 = vmatmul.mubr.msk.bf16.vlgmr.msra.gmra.mrb[76].mxu0 %vm634_vm2, %v4740_v34 }
0x119e   :  { %4633 = vmatpush3.bf16.msra.mxu0 %v3286_v5  ;;  %4628 = vmatprep.mubr.msk.bf16.mxu0 %vm634_vm2, %v4741_v49 }
0x119f   :  { %4642 = vmatprep.subr.bf16.mxu0 %v4987_v15 }
0x11a5   :  { %4629 = vmatmul.mubr.msk.bf16.gmra.mrb[80].mxu0 %vm634_vm2, %v4742_v61 }
0x11a6   :  { %4634 = vmatprep.mubr.msk.bf16.mxu0 %vm634_vm2, %v6207_v28 }
0x11ad   :  { %4635 = vmatmul.mubr.msk.bf16.vlgmr.msra.gmra.mrb[84].mxu0 %vm634_vm2, %v4740_v34 }
0x11ae   :  { %4638 = vmatprep.mubr.msk.bf16.mxu0 %vm634_vm2, %v4741_v49 }
0x11b5   :  { %4639 = vmatmul.mubr.msk.bf16.gmra.mrb[88].mxu0 %vm634_vm2, %v4742_v61 }
0x11b6   :  { %4650 = vmatprep.mubr.msk.bf16.mxu0 %vm4988_vm3, %v4987_v15 }
0x1270   :  { %v4626_v47 = vpop.f32.mrb[76].mxu0 }
0x1271   :  { %v6276_v0 = vadd.f32 %v4626_v47, %v3308_v36  ;;  %v3401_v28 = vpop.f32.mrb[77].mxu0 }
0x1272   :  { %v6281_v39 = vadd.f32 %v3401_v28, %v6270_v62  ;;  %v4627_v7 = vpop.f32.mrb[78].mxu0 }
0x1273   :  { %v3499_v52 = vmul.f32 %v6276_v0, %v6276_v0  ;;  %v6286_v17 = vadd.f32 %v4627_v7, %v6274_v58  ;;  %v3404_v26 = vpop.f32.mrb[79].mxu0 }
0x1274   :  { %v3497_v50 = vmul.f32 %v6281_v39, %v6281_v39  ;;  %v6293_v56 = vadd.f32 %v3404_v26, %v6272_v2 }
0x1275   :  { %v3515_v27 = vmul.f32 %v3499_v52, %v6276_v0  ;;  %v3500_v29 = vmul.f32 %v6286_v17, %v6286_v17 }
0x1276   :  { %v3513_v35 = vmul.f32 %v3497_v50, %v6281_v39  ;;  %v3498_v4 = vmul.f32 %v6293_v56, %v6293_v56 }
0x1277   :  { %v3531_v32 = vmul.f32 0.044715, %v3515_v27  ;;  %v3516_v38 = vmul.f32 %v3500_v29, %v6286_v17 }
0x1278   :  { %v3529_v46 = vmul.f32 0.044715, %v3513_v35  ;;  %v3514_v11 = vmul.f32 %v3498_v4, %v6293_v56  ;;  %v4630_v10 = vpop.f32.mrb[80].mxu0 }
0x1279   :  { %v3547_v21 = vadd.f32 %v3531_v32, %v6276_v0  ;;  %v3532_v24 = vmul.f32 0.044715, %v3516_v38  ;;  %v6307_v54 = vadd.f32 %v4630_v10, %v6302_v51  ;;  %v3417_v31 = vpop.f32.mrb[81].mxu0 }
0x127a   :  { %v3545_v42 = vadd.f32 %v3529_v46, %v6281_v39  ;;  %v3530_v1 = vmul.f32 0.044715, %v3514_v11  ;;  %v6313_v3 = vadd.f32 %v3417_v31, %v6278_v53  ;;  %v4631_v44 = vpop.f32.mrb[82].mxu0 }
0x127b   :  { %v3563_v59 = vmul.f32 0.7978846, %v3547_v21  ;;  %v3548_v13 = vadd.f32 %v3532_v24, %v6286_v17  ;;  %v3503_v23 = vmul.f32 %v6307_v54, %v6307_v54  ;;  %v6319_v19 = vadd.f32 %v4631_v44, %v6309_v48  ;;  %v3420_v22 = vpop.f32.mrb[83].mxu0 }
0x127c   :  { %v3561_v30 = vmul.f32 0.7978846, %v3545_v42  ;;  %v3546_v25 = vadd.f32 %v3530_v1, %v6293_v56  ;;  %v3501_v20 = vmul.f32 %v6313_v3, %v6313_v3  ;;  %v6325_v9 = vadd.f32 %v3420_v22, %v6288_v57 }
0x127d   :  { %4922 = vtanh.f32 %v3563_v59  ;;  %v3564_v55 = vmul.f32 0.7978846, %v3548_v13  ;;  %v3519_v37 = vmul.f32 %v3503_v23, %v6307_v54  ;;  %v3504_v41 = vmul.f32 %v6319_v19, %v6319_v19 }
0x127e   :  { %4924 = vtanh.f32 %v3561_v30  ;;  %v3562_v14 = vmul.f32 0.7978846, %v3546_v25  ;;  %v3517_v12 = vmul.f32 %v3501_v20, %v6313_v3  ;;  %v3502_v16 = vmul.f32 %v6325_v9, %v6325_v9 }
0x127f   :  { %4926 = vtanh.f32 %v3564_v55  ;;  %v3535_v8 = vmul.f32 0.044715, %v3519_v37  ;;  %v3520_v40 = vmul.f32 %v3504_v41, %v6319_v19 }
0x1280   :  { %4928 = vtanh.f32 %v3562_v14  ;;  %v3533_v60 = vmul.f32 0.044715, %v3517_v12  ;;  %v3518_v63 = vmul.f32 %v3502_v16, %v6325_v9  ;;  %v4636_v18 = vpop.f32.mrb[84].mxu0 }
0x1281   :  { %v3551_v5 = vadd.f32 %v3535_v8, %v6307_v54  ;;  %v3536_v34 = vmul.f32 0.044715, %v3520_v40  ;;  %v6336_v49 = vadd.f32 %v4636_v18, %v3308_v36  ;;  %v3466_v61 = vpop.f32.mrb[85].mxu0 }
0x1282   :  { %v3549_v47 = vadd.f32 %v3533_v60, %v6313_v3  ;;  %v3534_v28 = vmul.f32 0.044715, %v3518_v63  ;;  %v6340_v7 = vadd.f32 %v3466_v61, %v6270_v62  ;;  %v4637_v52 = vpop.f32.mrb[86].mxu0 }
0x1283   :  { %v3567_v26 = vmul.f32 0.7978846, %v3551_v5  ;;  %v3552_v50 = vadd.f32 %v3536_v34, %v6319_v19  ;;  %v3507_v27 = vmul.f32 %v6336_v49, %v6336_v49  ;;  %v6346_v29 = vadd.f32 %v4637_v52, %v6274_v58  ;;  %v3469_v35 = vpop.f32.mrb[87].mxu0 }
0x1284   :  { %v3565_v36 = vmul.f32 0.7978846, %v3549_v47  ;;  %v3550_v4 = vadd.f32 %v3534_v28, %v6325_v9  ;;  %v3505_v32 = vmul.f32 %v6340_v7, %v6340_v7  ;;  %v6352_v62 = vadd.f32 %v3469_v35, %v6272_v2 }
0x1285   :  { %4930 = vtanh.f32 %v3567_v26  ;;  %v3568_v38 = vmul.f32 0.7978846, %v3552_v50  ;;  %v3523_v46 = vmul.f32 %v3507_v27, %v6336_v49  ;;  %v3508_v11 = vmul.f32 %v6346_v29, %v6346_v29 }
0x1286   :  { %4932 = vtanh.f32 %v3565_v36  ;;  %v3566_v58 = vmul.f32 0.7978846, %v3550_v4  ;;  %v3521_v10 = vmul.f32 %v3505_v32, %v6340_v7  ;;  %v3506_v21 = vmul.f32 %v6352_v62, %v6352_v62 }
0x1287   :  { %v4923_v24 = vpop.eup %4922  ;;  %4934 = vtanh.f32 %v3568_v38  ;;  %v3539_v31 = vmul.f32 0.044715, %v3523_v46  ;;  %v3524_v2 = vmul.f32 %v3508_v11, %v6346_v29 }
0x1288   :  { %v4925_v42 = vpop.eup %4924  ;;  %v3595_v1 = vadd.f32 1.0, %v4923_v24  ;;  %4936 = vtanh.f32 %v3566_v58  ;;  %v3537_v44 = vmul.f32 0.044715, %v3521_v10  ;;  %v3522_v59 = vmul.f32 %v3506_v21, %v6352_v62  ;;  %v4640_v13 = vpop.f32.mrb[88].mxu0 }
0x1289   :  { %v4927_v23 = vpop.eup %4926  ;;  %v3593_v22 = vadd.f32 1.0, %v4925_v42  ;;  %v3555_v30 = vadd.f32 %v3539_v31, %v6336_v49  ;;  %v3540_v25 = vmul.f32 0.044715, %v3524_v2  ;;  %v3482_v20 = vpop.f32.mrb[89].mxu0  ;;  %v6365_v12 = vadd.f32 %v4640_v13, %v6302_v51 }
0x128a   :  { %v4929_v55 = vpop.eup %4928  ;;  %v3596_v37 = vadd.f32 1.0, %v4927_v23  ;;  %v3553_v41 = vadd.f32 %v3537_v44, %v6340_v7  ;;  %v3538_v14 = vmul.f32 0.044715, %v3522_v59  ;;  %v4641_v16 = vpop.f32.mrb[90].mxu0  ;;  %v3611_v5 = vmul.f32 0.5, %v3595_v1 }
0x128b   :  { %v3609_v8 = vmul.f32 0.5, %v3593_v22  ;;  %v3594_v40 = vadd.f32 1.0, %v4929_v55  ;;  %v3571_v60 = vmul.f32 0.7978846, %v3555_v30  ;;  %v3556_v63 = vadd.f32 %v3540_v25, %v6346_v29  ;;  %v3485_v18 = vpop.f32.mrb[91].mxu0 }
0x128c   :  { %v3612_v34 = vmul.f32 0.5, %v3596_v37  ;;  %v3569_v61 = vmul.f32 0.7978846, %v3553_v41  ;;  %v3554_v47 = vadd.f32 %v3538_v14, %v6352_v62  ;;  %v3511_v27 = vmul.f32 %v6365_v12, %v6365_v12 }
0x128d   :  { %v3625_v28 = vmul.f32 %v3609_v8, %v6281_v39  ;;  %v3610_v52 = vmul.f32 0.5, %v3594_v40  ;;  %4938 = vtanh.f32 %v3571_v60  ;;  %v3572_v26 = vmul.f32 0.7978846, %v3556_v63 }
0x128e   :  { %v3628_v51 = vmul.f32 %v3612_v34, %v6286_v17  ;;  %4940 = vtanh.f32 %v3569_v61  ;;  %v3570_v50 = vmul.f32 0.7978846, %v3554_v47  ;;  %v6375_v4 = vadd.f32 %v3482_v20, %v6278_v53 }
0x128f   :  { %v4931_v35 = vpop.eup %4930  ;;  %v3626_v36 = vmul.f32 %v3610_v52, %v6293_v56  ;;  %4942 = vtanh.f32 %v3572_v26  ;;  %v6378_v32 = vadd.f32 %v4641_v16, %v6309_v48  ;;  %v3527_v17 = vmul.f32 %v3511_v27, %v6365_v12 }
0x1290   :  { %v4933_v39 = vpop.eup %4932  ;;  %v3599_v38 = vadd.f32 1.0, %v4931_v35  ;;  %4944 = vtanh.f32 %v3570_v50  ;;  %v6382_v46 = vadd.f32 %v3485_v18, %v6288_v57  ;;  %v3509_v56 = vmul.f32 %v6375_v4, %v6375_v4 }
0x1291   :  { %v4935_v11 = vpop.eup %4934  ;;  %v3597_v58 = vadd.f32 1.0, %v4933_v39  ;;  %v3512_v53 = vmul.f32 %v6378_v32, %v6378_v32  ;;  %v3644_v10 = vpack.c.bf16 %v3626_v36, %v3625_v28  ;;  %v3543_v31 = vmul.f32 0.044715, %v3527_v17 }
0x1292   :  { %v4937_v21 = vpop.eup %4936  ;;  %v3615_v48 = vmul.f32 0.5, %v3599_v38  ;;  %v3600_v24 = vadd.f32 1.0, %v4935_v11  ;;  %v3510_v2 = vmul.f32 %v6382_v46, %v6382_v46  ;;  %v3525_v57 = vmul.f32 %v3509_v56, %v6375_v4 }
0x1293   :  { %v3613_v42 = vmul.f32 0.5, %v3597_v58  ;;  %v3598_v1 = vadd.f32 1.0, %v4937_v21  ;;  %v3528_v44 = vmul.f32 %v3512_v53, %v6378_v32  ;;  %4643 = vmatpush3.bf16.msra.mxu0 %v3644_v10  ;;  %v3627_v59 = vmul.f32 %v3611_v5, %v6276_v0  ;;  %v4743_v58 = vld [vmem:[%s6500_s7 + $0x18] sm:$0xff]  }
0x1294   :  { %v3616_v13 = vmul.f32 0.5, %v3600_v24  ;;  %v3559_v23 = vadd.f32 %v3543_v31, %v6365_v12  ;;  %v3526_v22 = vmul.f32 %v3510_v2, %v6382_v46  ;;  %4644 = vmatprep.subr.bf16.mxu0 %v4987_v15  ;;  %v3631_v30 = vmul.f32 %v3615_v48, %v6307_v54 }
0x1295   :  { %v3614_v25 = vmul.f32 0.5, %v3598_v1  ;;  %v3541_v20 = vmul.f32 0.044715, %v3525_v57  ;;  %v3544_v55 = vmul.f32 0.044715, %v3528_v44  ;;  %v3645_v16 = vpack.c.bf16 %v3628_v51, %v3627_v59 }
0x1296   :  { %v3632_v37 = vmul.f32 %v3616_v13, %v6319_v19  ;;  %v3575_v41 = vmul.f32 0.7978846, %v3559_v23  ;;  %v3542_v14 = vmul.f32 0.044715, %v3526_v22  ;;  %v3629_v0 = vmul.f32 %v3613_v42, %v6313_v3 }
0x1297   :  { %v4939_v8 = vpop.eup %4938  ;;  %v3630_v40 = vmul.f32 %v3614_v25, %v6325_v9  ;;  %v3557_v60 = vadd.f32 %v3541_v20, %v6375_v4  ;;  %v3560_v63 = vadd.f32 %v3544_v55, %v6378_v32  ;;  %4645 = vmatpush3.bf16.msra.mxu0 %v3645_v16 }
0x1298   :  { %v4941_v18 = vpop.eup %4940  ;;  %v3603_v5 = vadd.f32 1.0, %v4939_v8  ;;  %4946 = vtanh.f32 %v3575_v41  ;;  %v3558_v54 = vadd.f32 %v3542_v14, %v6382_v46  ;;  %v3647_v34 = vpack.c.bf16 %v3632_v37, %v3631_v30  ;;  %4646 = vmatprep.subr.bf16.mxu0 %v4987_v15  ;;  %v3657_v30 = vpop.permute.xlu1 %3656 }
0x1299   :  { %v4943_v19 = vpop.eup %4942  ;;  %v3601_v61 = vadd.f32 1.0, %v4941_v18  ;;  %v3573_v47 = vmul.f32 0.7978846, %v3557_v60  ;;  %v3576_v28 = vmul.f32 0.7978846, %v3560_v63  ;;  %v3646_v3 = vpack.c.bf16 %v3630_v40, %v3629_v0  ;;  %v3662_v37 = vpop.permute.xlu0 %3661 }
0x129a   :  { %v4945_v52 = vpop.eup %4944  ;;  %v3619_v9 = vmul.f32 0.5, %v3603_v5  ;;  %v3604_v26 = vadd.f32 1.0, %v4943_v19  ;;  %v3574_v51 = vmul.f32 0.7978846, %v3558_v54 }
0x129b   :  { %v3617_v50 = vmul.f32 0.5, %v3601_v61  ;;  %v3602_v27 = vadd.f32 1.0, %v4945_v52  ;;  %4948 = vtanh.f32 %v3573_v47  ;;  %4647 = vmatpush3.bf16.msra.mxu0 %v3646_v3  ;;  %v4744_v52 = vld [vmem:[%s6501_s8] sm:$0xff]  }
0x129c   :  { %v3620_v35 = vmul.f32 0.5, %v3604_v26  ;;  %4950 = vtanh.f32 %v3576_v28  ;;  %4648 = vmatprep.subr.bf16.mxu0 %v4987_v15  ;;  %v3635_v39 = vmul.f32 %v3619_v9, %v6336_v49  ;;  %v4745_v9 = vld [vmem:[%s6501_s8 + $0x8] sm:$0xff]  }
0x129d   :  { %v3618_v36 = vmul.f32 0.5, %v3602_v27  ;;  %4952 = vtanh.f32 %v3574_v51  ;;  %v3633_v17 = vmul.f32 %v3617_v50, %v6340_v7 }
0x129e   :  { %v3636_v38 = vmul.f32 %v3620_v35, %v6346_v29 }
0x129f   :  { %v3634_v11 = vmul.f32 %v3618_v36, %v6352_v62  ;;  %4649 = vmatpush3.bf16.msra.mxu0 %v3647_v34 }
0x12a0   :  { %v3649_v56 = vpack.c.bf16 %v3636_v38, %v3635_v39  ;;  %4666 = vmatprep.subr.bf16.mxu0 %v4987_v15 }
0x12a1   :  { %v3648_v53 = vpack.c.bf16 %v3634_v11, %v3633_v17 }
0x12a2   :  { %v4947_v10 = vpop.eup %4946  ;;  %4651 = vmatmul.mubr.msk.bf16.vlgmr.msra.gmra.mrb[92].mxu0 %vm77_vm0, %v4743_v58 }
0x12a3   :  { %v3607_v21 = vadd.f32 1.0, %v4947_v10  ;;  %4655 = vmatpush3.bf16.msra.mxu1 %v3648_v53  ;;  %4670 = vmatprep.mubr.msk.bf16.mxu0 %vm4988_vm3, %v4987_v15 }
0x12a4   :  { %4656 = vmatprep.subr.bf16.mxu1 %v4987_v15  ;;  %4667 = vmatpush3.bf16.msra.mxu0 %v4744_v52 }
0x12a5   :  { %v4949_v49 = vpop.eup %4948  ;;  %v3623_v48 = vmul.f32 0.5, %v3607_v21  ;;  %4668 = vmatprep.subr.bf16.mxu0 %v4987_v15 }
0x12a6   :  { %v4951_v7 = vpop.eup %4950  ;;  %v3605_v29 = vadd.f32 1.0, %v4949_v49 }
0x12a7   :  { %v4953_v62 = vpop.eup %4952  ;;  %v3608_v24 = vadd.f32 1.0, %v4951_v7  ;;  %4657 = vmatpush3.bf16.msra.mxu1 %v3649_v56  ;;  %v3639_v57 = vmul.f32 %v3623_v48, %v6365_v12  ;;  %v4215_v7 = vld [vmem:[%s6494_s1 + $0x1] ss:$0 sm:$0xff] }
0x12a8   :  { %v3621_v31 = vmul.f32 0.5, %v3605_v29  ;;  %v3606_v2 = vadd.f32 1.0, %v4953_v62  ;;  %4658 = vmatprep.subr.bf16.mxu1 %v4987_v15  ;;  %4669 = vmatpush3.bf16.msra.mxu0 %v4745_v9 }
0x12a9   :  { %v3624_v42 = vmul.f32 0.5, %v3608_v24 }
0x12aa   :  { %v3622_v1 = vmul.f32 0.5, %v3606_v2  ;;  %v3637_v59 = vmul.f32 %v3621_v31, %v6375_v4 }
0x12ab   :  { %v3640_v44 = vmul.f32 %v3624_v42, %v6378_v32 }
0x12ac   :  { %v3638_v13 = vmul.f32 %v3622_v1, %v6382_v46  ;;  %v4216_v1 = vld [vmem:[%s6494_s1 + $0x2] ss:$0 sm:$0xff] }
0x12ad   :  { %v3651_v23 = vpack.c.bf16 %v3640_v44, %v3639_v57 }
0x12ae   :  { %v3650_v22 = vpack.c.bf16 %v3638_v13, %v3637_v59 }
0x12b0   :  { %4659 = vmatpush3.bf16.msra.mxu1 %v3650_v22 }
0x12b1   :  { %4660 = vmatprep.subr.bf16.mxu1 %v4987_v15 }
0x12b4   :  { %4661 = vmatpush3.bf16.msra.mxu1 %v3651_v23 }
0x12b7   :  { %4663 = vmatmul.mubr.msk.bf16.vlgmr.msra.gmra.mrb[32].mxu1 %vm77_vm0, %v4743_v58 }
0x1375   :  { %v3706_v25 = vpop.f32.mrb[92].mxu0 }
0x1376   :  { %v3707_v20 = vadd.f32 %v3706_v25, %v3657_v30  ;;  %v4652_v55 = vpop.f32.mrb[93].mxu0 }
0x1377   :  { %v3709_v12 = vpop.f32.mrb[94].mxu0 }
0x1378   :  { %v6425_v32 = vadd.f32 %v3707_v20, %v6218_v33  ;;  %v3710_v4 = vadd.f32 %v3709_v12, %v3662_v37  ;;  %v4653_v41 = vpop.f32.mrb[95].mxu0 }
0x137a   :  { %v6428_v46 = vadd.f32 %v3710_v4, %v6228_v45  ;;  %v3760_v14 = vsel %vm135_vm1, %v6425_v32, 0.0  ;;  %v3776_v0 = vmul.f32 %v6425_v32, %v6425_v32 }
0x137b   :  { %3761 = vadd.xlane.f32.xlu1 %v3760_v14 }
0x137c   :  { %v3763_v16 = vsel %vm135_vm1, %v6428_v46, 0.0  ;;  %v3777_v8 = vmul.f32 %v6428_v46, %v6428_v46  ;;  %v3780_v45 = vsel %vm135_vm1, %v3776_v0, 0.0 }
0x137d   :  { %3764 = vadd.xlane.f32.xlu0 %v3763_v16 }
0x137e   :  { %v3783_v33 = vsel %vm135_vm1, %v3777_v8, 0.0 }
0x137f   :  { %3784 = vadd.xlane.f32.xlu1 %v3783_v33 }
0x1381   :  { %3781 = vadd.xlane.f32.xlu0 %v3780_v45 }
0x138a   :  { %v3747_v40 = vpop.f32.mrb[32].mxu1 }
0x138b   :  { %v3748_v60 = vadd.f32 %v3747_v40, %v3657_v30  ;;  %v4664_v63 = vpop.f32.mrb[33].mxu1 }
0x138c   :  { %v3750_v18 = vpop.f32.mrb[34].mxu1 }
0x138d   :  { %v6441_v5 = vadd.f32 %v3748_v60, %v6215_v43  ;;  %v3751_v54 = vadd.f32 %v3750_v18, %v3662_v37  ;;  %v4665_v34 = vpop.f32.mrb[35].mxu1 }
0x138f   :  { %v6444_v19 = vadd.f32 %v3751_v54, %v6223_v6  ;;  %v3766_v61 = vsel %vm135_vm1, %v6441_v5, 0.0  ;;  %v3778_v47 = vmul.f32 %v6441_v5, %v6441_v5 }
0x1390   :  { %3767 = vadd.xlane.f32.xlu0 %v3766_v61 }
0x1391   :  { %v3769_v28 = vsel %vm135_vm1, %v6444_v19, 0.0  ;;  %v3779_v3 = vmul.f32 %v6444_v19, %v6444_v19  ;;  %v3786_v43 = vsel %vm135_vm1, %v3778_v47, 0.0 }
0x1392   :  { %3770 = vadd.xlane.f32.xlu1 %v3769_v28 }
0x1393   :  { %v3789_v6 = vsel %vm135_vm1, %v3779_v3, 0.0 }
0x1394   :  { %3787 = vadd.xlane.f32.xlu0 %v3786_v43 }
0x1396   :  { %3790 = vadd.xlane.f32.xlu1 %v3789_v6 }
0x1408   :  { %v3762_v26 = vpop.xlane.xlu1 %3761 }
0x1409   :  { %v3772_v50 = vmul.f32 0.03125, %v3762_v26 }
0x140a   :  { %v3765_v51 = vpop.xlane.xlu0 %3764 }
0x140b   :  { %v3773_v27 = vmul.f32 0.03125, %v3765_v51  ;;  %v3796_v17 = vmul.f32 %v3772_v50, %v3772_v50 }
0x140c   :  { %v3785_v35 = vpop.xlane.xlu1 %3784 }
0x140d   :  { %v3797_v36 = vmul.f32 %v3773_v27, %v3773_v27  ;;  %v3793_v39 = vmul.f32 0.03125, %v3785_v35 }
0x140e   :  { %v3782_v38 = vpop.xlane.xlu0 %3781 }
0x140f   :  { %v3801_v11 = vsub.f32 %v3793_v39, %v3797_v36  ;;  %v3792_v58 = vmul.f32 0.03125, %v3782_v38 }
0x1411   :  { %v3805_v56 = vmax.f32 %v3801_v11, 0.0  ;;  %v3800_v53 = vsub.f32 %v3792_v58, %v3796_v17 }
0x1413   :  { %v3809_v10 = vadd.f32 1e-05, %v3805_v56  ;;  %v3804_v21 = vmax.f32 %v3800_v53, 0.0 }
0x1415   :  { %4954 = vrsqrt.f32 %v3809_v10  ;;  %v3808_v49 = vadd.f32 1e-05, %v3804_v21 }
0x1417   :  { %4956 = vrsqrt.f32 %v3808_v49 }
0x141d   :  { %v3768_v15 = vpop.xlane.xlu0 %3767 }
0x141e   :  { %v3774_v29 = vmul.f32 0.03125, %v3768_v15 }
0x141f   :  { %v3771_v62 = vpop.xlane.xlu1 %3770  ;;  %v4955_v48 = vpop.eup %4954 }
0x1420   :  { %v3775_v24 = vmul.f32 0.03125, %v3771_v62  ;;  %v3821_v31 = vmul.f32 %v4955_v48, %v4215_v7  ;;  %v3798_v57 = vmul.f32 %v3774_v29, %v3774_v29  ;;  %v4217_v48 = vld [vmem:[%s6494_s1 + $0x3] ss:$0 sm:$0xff] }
0x1421   :  { %v3788_v2 = vpop.xlane.xlu0 %3787  ;;  %v4957_v42 = vpop.eup %4956 }
0x1422   :  { %v3794_v44 = vmul.f32 0.03125, %v3788_v2  ;;  %v3829_v59 = vmul.f32 %v3821_v31, %v3773_v27  ;;  %v3820_v13 = vmul.f32 %v4957_v42, %v4215_v7  ;;  %v3799_v22 = vmul.f32 %v3775_v24, %v3775_v24 }
0x1423   :  { %v3791_v23 = vpop.xlane.xlu1 %3790  ;;  %v3825_v4 = vmul.f32 %v3821_v31, %v6428_v46 }
0x1424   :  { %v3802_v30 = vsub.f32 %v3794_v44, %v3798_v57  ;;  %v3795_v25 = vmul.f32 0.03125, %v3791_v23  ;;  %v3837_v20 = vsub.f32 %v4216_v1, %v3829_v59  ;;  %v3828_v55 = vmul.f32 %v3820_v13, %v3772_v50 }
0x1425   :  { %v3824_v41 = vmul.f32 %v3820_v13, %v6425_v32 }
0x1426   :  { %v3806_v37 = vmax.f32 %v3802_v30, 0.0  ;;  %v3803_v12 = vsub.f32 %v3795_v25, %v3799_v22  ;;  %v3836_v14 = vsub.f32 %v4216_v1, %v3828_v55  ;;  %v3841_v0 = vadd.f32 %v3837_v20, %v3825_v4 }
0x1428   :  { %v3810_v16 = vadd.f32 1e-05, %v3806_v37  ;;  %v3807_v8 = vmax.f32 %v3803_v12, 0.0  ;;  %v3840_v33 = vadd.f32 %v3836_v14, %v3824_v41  ;;  %v3845_v60 = vsel %vm135_vm1, %v3841_v0, 0.0 }
0x142a   :  { %4958 = vrsqrt.f32 %v3810_v16  ;;  %v3811_v45 = vadd.f32 1e-05, %v3807_v8  ;;  %v3844_v40 = vsel %vm135_vm1, %v3840_v33, 0.0 }
0x142b   :  { %v3846_v63 = vadd.f32 %v3845_v60, %v3844_v40 }
0x142c   :  { %4960 = vrsqrt.f32 %v3811_v45 }
0x142d   :  { %v3847_v18 = vrot.slane %v3846_v63, 4 }
0x142f   :  { %v3848_v46 = vadd.f32 %v3847_v18, %v3846_v63 }
0x1431   :  { %v3849_v6 = vrot.slane %v3848_v46, 2 }
0x1433   :  { %v3850_v50 = vadd.f32 %v3849_v6, %v3848_v46 }
0x1434   :  { %v4959_v54 = vpop.eup %4958 }
0x1435   :  { %v3822_v34 = vmul.f32 %v4959_v54, %v4215_v7  ;;  %v3851_v38 = vrot.slane %v3850_v50, 1 }
0x1436   :  { %v4961_v61 = vpop.eup %4960 }
0x1437   :  { %v3830_v47 = vmul.f32 %v3822_v34, %v3774_v29  ;;  %v3823_v32 = vmul.f32 %v4961_v61, %v4215_v7  ;;  %v3826_v28 = vmul.f32 %v3822_v34, %v6441_v5  ;;  %v3852_v11 = vadd.f32 %v3851_v38, %v3850_v50 }
0x1439   :  { %v3838_v3 = vsub.f32 %v4216_v1, %v3830_v47  ;;  %v3831_v43 = vmul.f32 %v3823_v32, %v3775_v24  ;;  %v3827_v9 = vmul.f32 %v3823_v32, %v6444_v19  ;;  %v3862_v53 = vmul.f32 0.0625, %v3852_v11 }
0x143b   :  { %v3842_v52 = vadd.f32 %v3838_v3, %v3826_v28  ;;  %v3839_v26 = vsub.f32 %v4216_v1, %v3831_v43  ;;  %v3864_v49 = vpack.c.bf16 %v3862_v53, %v3862_v53 }
0x143d   :  { %v3843_v51 = vadd.f32 %v3839_v26, %v3827_v9  ;;  %v3853_v27 = vsel %vm135_vm1, %v3842_v52, 0.0  ;;  %v3877_v15 = vunpack.c.l.b16 %v3864_v49 }
0x143f   :  { %v3854_v35 = vsel %vm135_vm1, %v3843_v51, 0.0 }
0x1440   :  { %v3855_v36 = vadd.f32 %v3854_v35, %v3853_v27 }
0x1442   :  { %v3856_v39 = vrot.slane %v3855_v36, 4 }
0x1444   :  { %v3857_v17 = vadd.f32 %v3856_v39, %v3855_v36 }
0x1446   :  { %v3858_v58 = vrot.slane %v3857_v17, 2 }
0x1448   :  { %v3859_v5 = vadd.f32 %v3858_v58, %v3857_v17 }
0x144a   :  { %v3860_v56 = vrot.slane %v3859_v5, 1 }
0x144c   :  { %v3861_v10 = vadd.f32 %v3860_v56, %v3859_v5 }
0x144e   :  { %v3863_v21 = vmul.f32 0.0625, %v3861_v10 }
0x1450   :  { %v3865_v19 = vpack.c.bf16 %v3863_v21, %v3863_v21 }
0x1452   :  { %v3878_v7 = vunpack.c.l.b16 %v3865_v19 }
0x1454   :  { %v3880_v29 = vsel %vm3879_vm4, %v3878_v7, %v3877_v15 }
0x1455   :  { %v3881_v62 = vpack.c.b16 %v3880_v29, %v3880_v29 }
0x1457   :  { %4671 = vmatmul.mubr.msk.bf16.vlgmr.msra.gmra.mrb[96].mxu0 %vm135_vm1, %v3881_v62 }
0x152a   :  { %v3931_v24 = vpop.f32.mrb[96].mxu0 }
0x152b   :  { %v3932_v31 = vadd.f32 %v4217_v48, %v3931_v24  ;;  %v4672_v2 = vpop.f32.mrb[97].mxu0 }
0x152c   :  { %v3934_v42 = vpop.f32.mrb[98].mxu0 }
0x152d   :  { %3937 = vst [vmem:[#allocation2] sm:$0x3] %v3932_v31  ;;  %v4673_v1 = vpop.f32.mrb[99].mxu0 }
0x152e   :  { %4973 = shalt.err (!%p4970_p4)
}
0x152f   :  { %s4974_s1 = scalar_lea.hbm %s6502_s9, 32 }
0x1530   :  { %p4975_p5 = scmp.ne.s32.totalorder %s6502_s9, %s4974_s1  ;;  %p4978_p6 = scmp.lt.u32.totalorder %s4974_s1, %s6502_s9 }
0x1532   :  { %p4980_p7 = pnand %p4978_p6, %p4975_p5 }
0x1534   :  { %4983 = shalt.err (!%p4980_p7)
}
0x1535   :  { %3947 = dma.vmem_to_hbm [thread:$0]  %s3945_s18, 32, %s6502_s9, [#allocation3]  }
0x1536   :  { %4984 = dma.done.wait [#allocation3], 32  }
0x1537   :  { %4985 = vsyncadd [#allocation3], 4294967264 }
0x1538   :  { %3951 = vsyncpa [#allocation3], 1 }

</bundles_post_ra>
